<compile_context>
chip_gen: v5e
topology: v5e:2x2
jax: 0.10.0
libtpu: 0.0.40
codegen_flags: <defaults>
</compile_context>

<pallas_src>
import functools

import jax
import jax.numpy as jnp
from jax import lax
from jax.experimental import pallas as pl
from jax.experimental.pallas import tpu as pltpu


def _round_up(x, m):
    return (x + m - 1) // m * m


def _row_chunk(m, cap=128):
    # largest divisor of m that is a multiple of 8 and <= cap (bounds vregs)
    for cm in range(min(m, cap), 0, -8):
        if m % cm == 0:
            return cm
    return m


def _batch_block(n, cap=8):
    # images per grid step: divides n and keeps grid length >= 2 so both
    # TensorCores get work on v7x under dimension_semantics=("parallel",)
    best = 1
    for b in range(1, min(cap, n) + 1):
        if n % b == 0 and n // b >= 2:
            best = b
    return best


# ----------------------------------------------------------------------------
# Fused conv block kernel:
#   Conv3x3(valid, tap-packed MXU matmuls) + bias -> ReLU -> BN(eval)
#   -> MaxPool2d(2,2) fused at scratch-read time -> single consolidated store
# ----------------------------------------------------------------------------
def conv_pool_kernel(x_ref, w_ref, b_ref, sc_ref, sh_ref, o_ref, y_ref,
                     *, B, cm, M, G, T, shifts, Wp, PH, PW, wh, Wn, flat_out):
    # x_ref : (B, R, Cin)        bf16  flat padded activation (row stride Wp)
    #                                  (conv1: im2col rows, K already packed)
    # w_ref : (G, T*Cin, Cout)   bf16  tap-packed weights
    # b/sc/sh : (1, Cout)        f32   conv bias, folded-BN scale/shift
    # o_ref : (B, (PH+1)*Wn, Cout) or (B, PH*PW, Cout)  bf16
    # y_ref : (M, Cout) f32 VMEM scratch (un-pooled conv output, one image)
    bia = b_ref[...]
    sc = sc_ref[...]
    sh = sh_ref[...]
    cout = o_ref.shape[-1]

    for b in range(B):
        # ---- conv: G packed matmuls per row chunk, f32 accumulate ----------
        for c in range(M // cm):
            r0 = c * cm
            acc = jnp.zeros((cm, cout), jnp.float32)
            for g in range(G):
                if T == 1:
                    lhs = x_ref[b, r0:r0 + cm, :]
                else:
                    lhs = jnp.concatenate(
                        [x_ref[b, r0 + shifts[g * T + tt]:
                               r0 + shifts[g * T + tt] + cm, :]
                         for tt in range(T)], axis=-1)
                acc = acc + jnp.dot(lhs, w_ref[g],
                                    preferred_element_type=jnp.float32)
            # bias + ReLU + folded BatchNorm (eval)  -- f32 epilogue
            y_ref[r0:r0 + cm, :] = jnp.maximum(acc + bia, 0.0) * sc + sh

        # ---- fused MaxPool2d(2,2) (floor) + one consolidated store ----------
        if flat_out:
            # pooled map written directly in flat (pos, channel) HWC order
            rows = []
            for i in range(PH):
                for j in range(PW):
                    e0 = 2 * i * Wp + 2 * j
                    o0 = (2 * i + 1) * Wp + 2 * j
                    p = jnp.maximum(
                        jnp.maximum(y_ref[e0:e0 + 1, :], y_ref[e0 + 1:e0 + 2, :]),
                        jnp.maximum(y_ref[o0:o0 + 1, :], y_ref[o0 + 1:o0 + 2, :]))
                    rows.append(p)
            o_ref[b] = jnp.concatenate(rows, axis=0).astype(o_ref.dtype)
        else:
            # pooled garbage columns (j >= PW) are explicitly zeroed; pad row
            # is zero -> next layer's padded regions are exactly zero.
            col = lax.broadcasted_iota(jnp.int32, (Wn, cout), 0)
            keep = col < PW
            rows = []
            for i in range(PH):
                e0 = 2 * i * Wp
                o0 = (2 * i + 1) * Wp
                ra = y_ref[pl.ds(e0, wh, stride=2), :]       # even cols, row 2i
                rb = y_ref[pl.ds(e0 + 1, wh, stride=2), :]   # odd  cols, row 2i
                rc = y_ref[pl.ds(o0, wh, stride=2), :]       # even cols, row 2i+1
                rd = y_ref[pl.ds(o0 + 1, wh, stride=2), :]   # odd  cols, row 2i+1
                r = jnp.maximum(jnp.maximum(ra, rb), jnp.maximum(rc, rd))
                rows.append(jnp.where(keep, r, 0.0).astype(o_ref.dtype))
            rows.append(jnp.zeros((Wn, cout), o_ref.dtype))  # pad row
            o_ref[b] = jnp.concatenate(rows, axis=0)


def conv_bn_relu_pool(x, wp_, bias, scale, shift, *, Wp, OH, OW, T, flat_out, B):
    """x: (N, R, Cin) bf16 flat padded activation -> (out bf16, (PH, PW, Wn))."""
    N, R, cin = x.shape
    G, K, cout = wp_.shape
    assert K == T * cin, (K, T, cin)
    M = OH * Wp
    PH, PW = OH // 2, OW // 2
    wh = Wp // 2
    Wn = _round_up(PW, 8)
    cm = _row_chunk(M, 128)
    assert R >= M + (2 * Wp + 2 if T > 1 else 0), (R, M, Wp)
    # taps ordered kh*3+kw; padded tap slots reuse shift 0 (their weight is 0)
    shifts = tuple((t // 3) * Wp + (t % 3) if t < 9 else 0 for t in range(G * T))

    if flat_out:
        out_shape = (N, PH * PW, cout)
        out_spec = pl.BlockSpec((B, PH * PW, cout), lambda n: (n, 0, 0))
    else:
        assert wh == Wn, (wh, Wn)
        out_shape = (N, (PH + 1) * Wn, cout)
        out_spec = pl.BlockSpec((B, (PH + 1) * Wn, cout), lambda n: (n, 0, 0))

    kern = functools.partial(
        conv_pool_kernel, B=B, cm=cm, M=M, G=G, T=T, shifts=shifts, Wp=Wp,
        PH=PH, PW=PW, wh=wh, Wn=Wn, flat_out=flat_out)

    out = pl.pallas_call(
        kern,
        out_shape=jax.ShapeDtypeStruct(out_shape, jnp.bfloat16),
        grid=(N // B,),
        in_specs=[
            pl.BlockSpec((B, R, cin), lambda n: (n, 0, 0)),
            pl.BlockSpec((G, K, cout), lambda n: (0, 0, 0)),
            pl.BlockSpec((1, cout), lambda n: (0, 0)),
            pl.BlockSpec((1, cout), lambda n: (0, 0)),
            pl.BlockSpec((1, cout), lambda n: (0, 0)),
        ],
        out_specs=out_spec,
        scratch_shapes=[pltpu.VMEM((M, cout), jnp.float32)],
        compiler_params=pltpu.CompilerParams(
            dimension_semantics=("parallel",)),
    )(x, wp_, bias, scale, shift)
    return out, (PH, PW, Wn)


# ----------------------------------------------------------------------------
# Fused MLP kernel:  lin1 (4 x K=256 pieces) -> ReLU -> lin2 -> ReLU -> lin3
# ----------------------------------------------------------------------------
def mlp_kernel(x_ref, w1_ref, b1_ref, w2_ref, b2_ref, w3_ref, o_ref):
    P = x_ref.shape[1]
    acc = jnp.dot(x_ref[:, 0, :], w1_ref[0], preferred_element_type=jnp.float32)
    for p in range(1, P):
        acc = acc + jnp.dot(x_ref[:, p, :], w1_ref[p],
                            preferred_element_type=jnp.float32)
    h = jnp.maximum(acc + b1_ref[...], 0.0).astype(jnp.bfloat16)
    h = jnp.maximum(jnp.dot(h, w2_ref[...], preferred_element_type=jnp.float32)
                    + b2_ref[...], 0.0).astype(jnp.bfloat16)
    o_ref[...] = jnp.dot(h, w3_ref[...], preferred_element_type=jnp.float32)


def fused_mlp(x, w1s, b1, w2, b2, w3p):
    """x: (N, 4, 256) bf16 flat pooled features -> (N, 128) f32 logits (padded)."""
    N = x.shape[0]
    P, K, D1 = w1s.shape
    D2, D3 = w2.shape[1], w3p.shape[1]
    Np = _round_up(max(N, 8), 8)
    if Np != N:
        x = jnp.pad(x, ((0, Np - N), (0, 0), (0, 0)))
    TM = Np if Np <= 256 else 256
    Np2 = _round_up(Np, TM)
    if Np2 != Np:
        x = jnp.pad(x, ((0, Np2 - Np), (0, 0), (0, 0)))

    out = pl.pallas_call(
        mlp_kernel,
        out_shape=jax.ShapeDtypeStruct((Np2, D3), jnp.float32),
        grid=(Np2 // TM,),
        in_specs=[
            pl.BlockSpec((TM, P, K), lambda i: (i, 0, 0)),
            pl.BlockSpec((P, K, D1), lambda i: (0, 0, 0)),
            pl.BlockSpec((1, D1), lambda i: (0, 0)),
            pl.BlockSpec((D1, D2), lambda i: (0, 0)),
            pl.BlockSpec((1, D2), lambda i: (0, 0)),
            pl.BlockSpec((D2, D3), lambda i: (0, 0)),
        ],
        out_specs=pl.BlockSpec((TM, D3), lambda i: (i, 0)),
        compiler_params=pltpu.CompilerParams(
            dimension_semantics=("parallel",)),
    )(x, w1s, b1, w2, b2, w3p)
    return out[:N]


# ----------------------------------------------------------------------------
# Parameters (deterministic synthetic init; shapes follow the PyTorch module)
# ----------------------------------------------------------------------------
def init_params(key):
    eps = 1e-5
    kc1, kc2, kc3, kl1, kl2, kl3 = jax.random.split(key, 6)

    def conv_params(k, cin, cout, T, k_pad=0):
        k_w, k_b, k_g, k_be = jax.random.split(k, 4)
        w = jax.random.normal(k_w, (3, 3, cin, cout), jnp.float32) / jnp.sqrt(9.0 * cin)
        b = 0.01 * jax.random.normal(k_b, (1, cout), jnp.float32)
        gamma = 1.0 + 0.1 * jax.random.normal(k_g, (1, cout), jnp.float32)
        beta = 0.1 * jax.random.normal(k_be, (1, cout), jnp.float32)
        run_mean = jnp.zeros((1, cout), jnp.float32)
        run_var = jnp.ones((1, cout), jnp.float32)
        scale = gamma / jnp.sqrt(run_var + eps)     # folded BN (eval mode)
        shift = beta - run_mean * scale
        w9 = w.reshape(9, cin, cout)                # taps ordered kh*3+kw
        if T == 1:
            # conv1: all 9 taps form one K=27 matmul (im2col input); pad K
            wk = w9.reshape(9 * cin, cout)
            wk = jnp.pad(wk, ((0, k_pad - 9 * cin), (0, 0)))
            wp_ = wk[None]
        else:
            ntap = _round_up(9, T)
            if ntap != 9:
                w9 = jnp.concatenate(
                    [w9, jnp.zeros((ntap - 9, cin, cout), jnp.float32)], axis=0)
            wp_ = w9.reshape(ntap // T, T * cin, cout)
        return wp_.astype(jnp.bfloat16), b, scale, shift

    def lin(k, fin, fout):
        k_w, k_b = jax.random.split(k, 2)
        w = jax.random.normal(k_w, (fin, fout), jnp.float32) / jnp.sqrt(fin)
        b = 0.01 * jax.random.normal(k_b, (1, fout), jnp.float32)
        return w, b

    params = {
        "conv1": conv_params(kc1, 3, 64, T=1, k_pad=32),
        "conv2": conv_params(kc2, 64, 128, T=4),
        "conv3": conv_params(kc3, 128, 256, T=2),
    }
    w1, b1 = lin(kl1, 1024, 384)
    # lin1 consumed as 4 K=256 pieces matching the (pos, channel) HWC flatten
    params["lin1"] = (w1.reshape(4, 256, 384).astype(jnp.bfloat16), b1)
    w2, b2 = lin(kl2, 384, 192)
    params["lin2"] = (w2.astype(jnp.bfloat16), b2)
    # lin3: Linear(192, 10, bias=False); pad output dim to 128 lanes so the
    # final store is lane-dense (sliced back to 10 logits in the wrapper).
    w3 = jax.random.normal(kl3, (192, 10), jnp.float32) / jnp.sqrt(192.0)
    w3p = jnp.zeros((192, 128), jnp.float32).at[:, :10].set(w3)
    params["lin3"] = w3p.astype(jnp.bfloat16)
    return params


# ----------------------------------------------------------------------------
# Forward pass (matches TFCifar.forward, inference mode)
# ----------------------------------------------------------------------------
def tf_cifar_forward(x_nchw, params):
    N, C, H, W = x_nchw.shape
    assert (C, H, W) == (3, 32, 32), "TFCifar's lin1 requires 3x32x32 inputs"
    B = _batch_block(N)

    # conv1 input: im2col rows (row = oh*Wp + ow, K = 27 -> 32) in bf16.
    # This re-layout makes conv1's lane dim 32 instead of 3 and turns each row
    # chunk into a single K=32 matmul; it is tiny (~60 KB/image).
    OH, OW = H - 2, W - 2
    Wp = _round_up(W, 8)
    xh = jnp.transpose(x_nchw, (0, 2, 3, 1))                       # NHWC f32
    cols = [xh[:, kh:kh + OH, kw:kw + OW, :]
            for kh in range(3) for kw in range(3)]
    pat = jnp.concatenate(cols, axis=-1)                           # (N,OH,OW,27)
    pat = jnp.pad(pat, ((0, 0), (0, 0), (0, Wp - OW), (0, 32 - 27)))
    x1 = pat.reshape(N, OH * Wp, 32).astype(jnp.bfloat16)

    w, b, sc, sh = params["conv1"]
    a, (ph, pw, wn) = conv_bn_relu_pool(x1, w, b, sc, sh, Wp=Wp, OH=OH, OW=OW,
                                        T=1, flat_out=False, B=B)
    w, b, sc, sh = params["conv2"]
    a, (ph, pw, wn) = conv_bn_relu_pool(a, w, b, sc, sh, Wp=wn,
                                        OH=ph - 2, OW=pw - 2,
                                        T=4, flat_out=False, B=B)
    w, b, sc, sh = params["conv3"]
    a, _ = conv_bn_relu_pool(a, w, b, sc, sh, Wp=wn, OH=ph - 2, OW=pw - 2,
                             T=2, flat_out=True, B=B)
    # a: (N, 4, 256) bf16 -- pooled features already in the flat MLP layout
    # (HWC flatten; a fixed permutation of PyTorch's CHW flatten, and the
    #  synthetic lin1 weights are defined in this layout).
    w1s, b1 = params["lin1"]
    w2, b2 = params["lin2"]
    logits = fused_mlp(a, w1s, b1, w2, b2, params["lin3"])
    return logits[:, :10]


if __name__ == "__main__":
    key = jax.random.PRNGKey(0)
    k_x, k_p = jax.random.split(key)
    # CIFAR-sized input required by the 1024-wide flatten: (N, 3, 32, 32) NCHW
    x = jax.random.normal(k_x, (2, 3, 32, 32), jnp.float32)
    params = init_params(k_p)

    fwd = jax.jit(tf_cifar_forward)
    out = jax.block_until_ready(fwd(x, params))
    assert out.shape == (2, 10), out.shape
    print("KERNEL_OK")
</pallas_src>

<mosaic_0001>
module attributes {stable_mosaic.version = 11 : i64} {
  func.func @conv_pool_kernel(%arg0: i32, %arg1: memref<1x256x64xbf16, #tpu.memory_space<vmem>>, %arg2: memref<3x256x128xbf16, #tpu.memory_space<vmem>>, %arg3: memref<1x128xf32, #tpu.memory_space<vmem>>, %arg4: memref<1x128xf32, #tpu.memory_space<vmem>>, %arg5: memref<1x128xf32, #tpu.memory_space<vmem>>, %arg6: memref<1x56x128xbf16, #tpu.memory_space<vmem>>, %arg7: memref<208x128xf32, #tpu.memory_space<vmem>>) attributes {dimension_semantics = [#tpu.dimension_semantics<parallel>], iteration_bounds = array<i64: 2>, scalar_prefetch = 0 : i64, scratch_operands = 1 : i64, tpu.core_type = #tpu.core_type<tc>, window_params = [{transform_indices = @transform_0, window_bounds = array<i64: 1, 256, 64>}, {pipeline_mode = #tpu.pipeline_mode<synchronous>, transform_indices = @transform_1, window_bounds = array<i64: 3, 256, 128>}, {pipeline_mode = #tpu.pipeline_mode<synchronous>, transform_indices = @transform_2, window_bounds = array<i64: 1, 128>}, {pipeline_mode = #tpu.pipeline_mode<synchronous>, transform_indices = @transform_3, window_bounds = array<i64: 1, 128>}, {pipeline_mode = #tpu.pipeline_mode<synchronous>, transform_indices = @transform_4, window_bounds = array<i64: 1, 128>}, {transform_indices = @transform_5, window_bounds = array<i64: 1, 56, 128>}]} {
    %c0 = arith.constant 0 : index
    %c0_0 = arith.constant 0 : index
    %0 = vector.load %arg3[%c0, %c0_0] : memref<1x128xf32, #tpu.memory_space<vmem>>, vector<1x128xf32>
    %c0_1 = arith.constant 0 : index
    %c0_2 = arith.constant 0 : index
    %1 = vector.load %arg4[%c0_1, %c0_2] : memref<1x128xf32, #tpu.memory_space<vmem>>, vector<1x128xf32>
    %c0_3 = arith.constant 0 : index
    %c0_4 = arith.constant 0 : index
    %2 = vector.load %arg5[%c0_3, %c0_4] : memref<1x128xf32, #tpu.memory_space<vmem>>, vector<1x128xf32>
    %cst = arith.constant 0.000000e+00 : f32
    %3 = vector.broadcast %cst : f32 to vector<104x128xf32>
    %c0_5 = arith.constant 0 : index
    %c0_6 = arith.constant 0 : index
    %c0_7 = arith.constant 0 : index
    %4 = vector.load %arg1[%c0_5, %c0_6, %c0_7] : memref<1x256x64xbf16, #tpu.memory_space<vmem>>, vector<1x104x64xbf16>
    %5 = vector.shape_cast %4 : vector<1x104x64xbf16> to vector<104x64xbf16>
    %c0_8 = arith.constant 0 : index
    %c1 = arith.constant 1 : index
    %c0_9 = arith.constant 0 : index
    %6 = vector.load %arg1[%c0_8, %c1, %c0_9] : memref<1x256x64xbf16, #tpu.memory_space<vmem>>, vector<1x104x64xbf16>
    %7 = vector.shape_cast %6 : vector<1x104x64xbf16> to vector<104x64xbf16>
    %c0_10 = arith.constant 0 : index
    %c2 = arith.constant 2 : index
    %c0_11 = arith.constant 0 : index
    %8 = vector.load %arg1[%c0_10, %c2, %c0_11] : memref<1x256x64xbf16, #tpu.memory_space<vmem>>, vector<1x104x64xbf16>
    %9 = vector.shape_cast %8 : vector<1x104x64xbf16> to vector<104x64xbf16>
    %c0_12 = arith.constant 0 : index
    %c16 = arith.constant 16 : index
    %c0_13 = arith.constant 0 : index
    %10 = vector.load %arg1[%c0_12, %c16, %c0_13] : memref<1x256x64xbf16, #tpu.memory_space<vmem>>, vector<1x104x64xbf16>
    %11 = vector.shape_cast %10 : vector<1x104x64xbf16> to vector<104x64xbf16>
    %12 = tpu.concatenate %5, %7, %9, %11 in 1 : vector<104x64xbf16>, vector<104x64xbf16>, vector<104x64xbf16>, vector<104x64xbf16> -> vector<104x256xbf16>
    %c0_14 = arith.constant 0 : index
    %c0_15 = arith.constant 0 : index
    %c0_16 = arith.constant 0 : index
    %13 = vector.load %arg2[%c0_14, %c0_15, %c0_16] : memref<3x256x128xbf16, #tpu.memory_space<vmem>>, vector<1x256x128xbf16>
    %14 = vector.shape_cast %13 : vector<1x256x128xbf16> to vector<256x128xbf16>
    %cst_17 = arith.constant dense<0.000000e+00> : vector<104x128xf32>
    %15 = tpu.matmul %12, %14, %cst_17 {dimension_numbers = #tpu.dot_dimension_numbers<[1], [0], [0], [1], [0, 0, 1, 1], [], []>} : vector<104x256xbf16>, vector<256x128xbf16>, vector<104x128xf32> -> vector<104x128xf32>
    %16 = arith.addf %3, %15 : vector<104x128xf32>
    %c0_18 = arith.constant 0 : index
    %c17 = arith.constant 17 : index
    %c0_19 = arith.constant 0 : index
    %17 = vector.load %arg1[%c0_18, %c17, %c0_19] : memref<1x256x64xbf16, #tpu.memory_space<vmem>>, vector<1x104x64xbf16>
    %18 = vector.shape_cast %17 : vector<1x104x64xbf16> to vector<104x64xbf16>
    %c0_20 = arith.constant 0 : index
    %c18 = arith.constant 18 : index
    %c0_21 = arith.constant 0 : index
    %19 = vector.load %arg1[%c0_20, %c18, %c0_21] : memref<1x256x64xbf16, #tpu.memory_space<vmem>>, vector<1x104x64xbf16>
    %20 = vector.shape_cast %19 : vector<1x104x64xbf16> to vector<104x64xbf16>
    %c0_22 = arith.constant 0 : index
    %c32 = arith.constant 32 : index
    %c0_23 = arith.constant 0 : index
    %21 = vector.load %arg1[%c0_22, %c32, %c0_23] : memref<1x256x64xbf16, #tpu.memory_space<vmem>>, vector<1x104x64xbf16>
    %22 = vector.shape_cast %21 : vector<1x104x64xbf16> to vector<104x64xbf16>
    %c0_24 = arith.constant 0 : index
    %c33 = arith.constant 33 : index
    %c0_25 = arith.constant 0 : index
    %23 = vector.load %arg1[%c0_24, %c33, %c0_25] : memref<1x256x64xbf16, #tpu.memory_space<vmem>>, vector<1x104x64xbf16>
    %24 = vector.shape_cast %23 : vector<1x104x64xbf16> to vector<104x64xbf16>
    %25 = tpu.concatenate %18, %20, %22, %24 in 1 : vector<104x64xbf16>, vector<104x64xbf16>, vector<104x64xbf16>, vector<104x64xbf16> -> vector<104x256xbf16>
    %c1_26 = arith.constant 1 : index
    %c0_27 = arith.constant 0 : index
    %c0_28 = arith.constant 0 : index
    %26 = vector.load %arg2[%c1_26, %c0_27, %c0_28] : memref<3x256x128xbf16, #tpu.memory_space<vmem>>, vector<1x256x128xbf16>
    %27 = vector.shape_cast %26 : vector<1x256x128xbf16> to vector<256x128xbf16>
    %cst_29 = arith.constant dense<0.000000e+00> : vector<104x128xf32>
    %28 = tpu.matmul %25, %27, %cst_29 {dimension_numbers = #tpu.dot_dimension_numbers<[1], [0], [0], [1], [0, 0, 1, 1], [], []>} : vector<104x256xbf16>, vector<256x128xbf16>, vector<104x128xf32> -> vector<104x128xf32>
    %29 = arith.addf %16, %28 : vector<104x128xf32>
    %c0_30 = arith.constant 0 : index
    %c34 = arith.constant 34 : index
    %c0_31 = arith.constant 0 : index
    %30 = vector.load %arg1[%c0_30, %c34, %c0_31] : memref<1x256x64xbf16, #tpu.memory_space<vmem>>, vector<1x104x64xbf16>
    %31 = vector.shape_cast %30 : vector<1x104x64xbf16> to vector<104x64xbf16>
    %c0_32 = arith.constant 0 : index
    %c0_33 = arith.constant 0 : index
    %c0_34 = arith.constant 0 : index
    %32 = vector.load %arg1[%c0_32, %c0_33, %c0_34] : memref<1x256x64xbf16, #tpu.memory_space<vmem>>, vector<1x104x64xbf16>
    %33 = vector.shape_cast %32 : vector<1x104x64xbf16> to vector<104x64xbf16>
    %c0_35 = arith.constant 0 : index
    %c0_36 = arith.constant 0 : index
    %c0_37 = arith.constant 0 : index
    %34 = vector.load %arg1[%c0_35, %c0_36, %c0_37] : memref<1x256x64xbf16, #tpu.memory_space<vmem>>, vector<1x104x64xbf16>
    %35 = vector.shape_cast %34 : vector<1x104x64xbf16> to vector<104x64xbf16>
    %c0_38 = arith.constant 0 : index
    %c0_39 = arith.constant 0 : index
    %c0_40 = arith.constant 0 : index
    %36 = vector.load %arg1[%c0_38, %c0_39, %c0_40] : memref<1x256x64xbf16, #tpu.memory_space<vmem>>, vector<1x104x64xbf16>
    %37 = vector.shape_cast %36 : vector<1x104x64xbf16> to vector<104x64xbf16>
    %38 = tpu.concatenate %31, %33, %35, %37 in 1 : vector<104x64xbf16>, vector<104x64xbf16>, vector<104x64xbf16>, vector<104x64xbf16> -> vector<104x256xbf16>
    %c2_41 = arith.constant 2 : index
    %c0_42 = arith.constant 0 : index
    %c0_43 = arith.constant 0 : index
    %39 = vector.load %arg2[%c2_41, %c0_42, %c0_43] : memref<3x256x128xbf16, #tpu.memory_space<vmem>>, vector<1x256x128xbf16>
    %40 = vector.shape_cast %39 : vector<1x256x128xbf16> to vector<256x128xbf16>
    %cst_44 = arith.constant dense<0.000000e+00> : vector<104x128xf32>
    %41 = tpu.matmul %38, %40, %cst_44 {dimension_numbers = #tpu.dot_dimension_numbers<[1], [0], [0], [1], [0, 0, 1, 1], [], []>} : vector<104x256xbf16>, vector<256x128xbf16>, vector<104x128xf32> -> vector<104x128xf32>
    %42 = arith.addf %29, %41 : vector<104x128xf32>
    %43 = vector.broadcast %0 : vector<1x128xf32> to vector<104x128xf32>
    %44 = arith.addf %42, %43 : vector<104x128xf32>
    %cst_45 = arith.constant 0.000000e+00 : f32
    %45 = vector.broadcast %cst_45 : f32 to vector<104x128xf32>
    %46 = arith.maximumf %44, %45 : vector<104x128xf32>
    %47 = vector.broadcast %1 : vector<1x128xf32> to vector<104x128xf32>
    %48 = arith.mulf %46, %47 : vector<104x128xf32>
    %49 = vector.broadcast %2 : vector<1x128xf32> to vector<104x128xf32>
    %50 = arith.addf %48, %49 : vector<104x128xf32>
    %c0_46 = arith.constant 0 : index
    %c0_47 = arith.constant 0 : index
    %51 = vector.load %arg7[%c0_46, %c0_47] : memref<208x128xf32, #tpu.memory_space<vmem>>, vector<104x128xf32>
    tpu.vector_store %arg7[%c0_46, %c0_47], %50 {strides = array<i32>} : memref<208x128xf32, #tpu.memory_space<vmem>>, vector<104x128xf32>,
    %cst_48 = arith.constant 0.000000e+00 : f32
    %52 = vector.broadcast %cst_48 : f32 to vector<104x128xf32>
    %c0_49 = arith.constant 0 : index
    %c104 = arith.constant 104 : index
    %c0_50 = arith.constant 0 : index
    %53 = vector.load %arg1[%c0_49, %c104, %c0_50] : memref<1x256x64xbf16, #tpu.memory_space<vmem>>, vector<1x104x64xbf16>
    %54 = vector.shape_cast %53 : vector<1x104x64xbf16> to vector<104x64xbf16>
    %c0_51 = arith.constant 0 : index
    %c105 = arith.constant 105 : index
    %c0_52 = arith.constant 0 : index
    %55 = vector.load %arg1[%c0_51, %c105, %c0_52] : memref<1x256x64xbf16, #tpu.memory_space<vmem>>, vector<1x104x64xbf16>
    %56 = vector.shape_cast %55 : vector<1x104x64xbf16> to vector<104x64xbf16>
    %c0_53 = arith.constant 0 : index
    %c106 = arith.constant 106 : index
    %c0_54 = arith.constant 0 : index
    %57 = vector.load %arg1[%c0_53, %c106, %c0_54] : memref<1x256x64xbf16, #tpu.memory_space<vmem>>, vector<1x104x64xbf16>
    %58 = vector.shape_cast %57 : vector<1x104x64xbf16> to vector<104x64xbf16>
    %c0_55 = arith.constant 0 : index
    %c120 = arith.constant 120 : index
    %c0_56 = arith.constant 0 : index
    %59 = vector.load %arg1[%c0_55, %c120, %c0_56] : memref<1x256x64xbf16, #tpu.memory_space<vmem>>, vector<1x104x64xbf16>
    %60 = vector.shape_cast %59 : vector<1x104x64xbf16> to vector<104x64xbf16>
    %61 = tpu.concatenate %54, %56, %58, %60 in 1 : vector<104x64xbf16>, vector<104x64xbf16>, vector<104x64xbf16>, vector<104x64xbf16> -> vector<104x256xbf16>
    %c0_57 = arith.constant 0 : index
    %c0_58 = arith.constant 0 : index
    %c0_59 = arith.constant 0 : index
    %62 = vector.load %arg2[%c0_57, %c0_58, %c0_59] : memref<3x256x128xbf16, #tpu.memory_space<vmem>>, vector<1x256x128xbf16>
    %63 = vector.shape_cast %62 : vector<1x256x128xbf16> to vector<256x128xbf16>
    %cst_60 = arith.constant dense<0.000000e+00> : vector<104x128xf32>
    %64 = tpu.matmul %61, %63, %cst_60 {dimension_numbers = #tpu.dot_dimension_numbers<[1], [0], [0], [1], [0, 0, 1, 1], [], []>} : vector<104x256xbf16>, vector<256x128xbf16>, vector<104x128xf32> -> vector<104x128xf32>
    %65 = arith.addf %52, %64 : vector<104x128xf32>
    %c0_61 = arith.constant 0 : index
    %c121 = arith.constant 121 : index
    %c0_62 = arith.constant 0 : index
    %66 = vector.load %arg1[%c0_61, %c121, %c0_62] : memref<1x256x64xbf16, #tpu.memory_space<vmem>>, vector<1x104x64xbf16>
    %67 = vector.shape_cast %66 : vector<1x104x64xbf16> to vector<104x64xbf16>
    %c0_63 = arith.constant 0 : index
    %c122 = arith.constant 122 : index
    %c0_64 = arith.constant 0 : index
    %68 = vector.load %arg1[%c0_63, %c122, %c0_64] : memref<1x256x64xbf16, #tpu.memory_space<vmem>>, vector<1x104x64xbf16>
    %69 = vector.shape_cast %68 : vector<1x104x64xbf16> to vector<104x64xbf16>
    %c0_65 = arith.constant 0 : index
    %c136 = arith.constant 136 : index
    %c0_66 = arith.constant 0 : index
    %70 = vector.load %arg1[%c0_65, %c136, %c0_66] : memref<1x256x64xbf16, #tpu.memory_space<vmem>>, vector<1x104x64xbf16>
    %71 = vector.shape_cast %70 : vector<1x104x64xbf16> to vector<104x64xbf16>
    %c0_67 = arith.constant 0 : index
    %c137 = arith.constant 137 : index
    %c0_68 = arith.constant 0 : index
    %72 = vector.load %arg1[%c0_67, %c137, %c0_68] : memref<1x256x64xbf16, #tpu.memory_space<vmem>>, vector<1x104x64xbf16>
    %73 = vector.shape_cast %72 : vector<1x104x64xbf16> to vector<104x64xbf16>
    %74 = tpu.concatenate %67, %69, %71, %73 in 1 : vector<104x64xbf16>, vector<104x64xbf16>, vector<104x64xbf16>, vector<104x64xbf16> -> vector<104x256xbf16>
    %c1_69 = arith.constant 1 : index
    %c0_70 = arith.constant 0 : index
    %c0_71 = arith.constant 0 : index
    %75 = vector.load %arg2[%c1_69, %c0_70, %c0_71] : memref<3x256x128xbf16, #tpu.memory_space<vmem>>, vector<1x256x128xbf16>
    %76 = vector.shape_cast %75 : vector<1x256x128xbf16> to vector<256x128xbf16>
    %cst_72 = arith.constant dense<0.000000e+00> : vector<104x128xf32>
    %77 = tpu.matmul %74, %76, %cst_72 {dimension_numbers = #tpu.dot_dimension_numbers<[1], [0], [0], [1], [0, 0, 1, 1], [], []>} : vector<104x256xbf16>, vector<256x128xbf16>, vector<104x128xf32> -> vector<104x128xf32>
    %78 = arith.addf %65, %77 : vector<104x128xf32>
    %c0_73 = arith.constant 0 : index
    %c138 = arith.constant 138 : index
    %c0_74 = arith.constant 0 : index
    %79 = vector.load %arg1[%c0_73, %c138, %c0_74] : memref<1x256x64xbf16, #tpu.memory_space<vmem>>, vector<1x104x64xbf16>
    %80 = vector.shape_cast %79 : vector<1x104x64xbf16> to vector<104x64xbf16>
    %c0_75 = arith.constant 0 : index
    %c104_76 = arith.constant 104 : index
    %c0_77 = arith.constant 0 : index
    %81 = vector.load %arg1[%c0_75, %c104_76, %c0_77] : memref<1x256x64xbf16, #tpu.memory_space<vmem>>, vector<1x104x64xbf16>
    %82 = vector.shape_cast %81 : vector<1x104x64xbf16> to vector<104x64xbf16>
    %c0_78 = arith.constant 0 : index
    %c104_79 = arith.constant 104 : index
    %c0_80 = arith.constant 0 : index
    %83 = vector.load %arg1[%c0_78, %c104_79, %c0_80] : memref<1x256x64xbf16, #tpu.memory_space<vmem>>, vector<1x104x64xbf16>
    %84 = vector.shape_cast %83 : vector<1x104x64xbf16> to vector<104x64xbf16>
    %c0_81 = arith.constant 0 : index
    %c104_82 = arith.constant 104 : index
    %c0_83 = arith.constant 0 : index
    %85 = vector.load %arg1[%c0_81, %c104_82, %c0_83] : memref<1x256x64xbf16, #tpu.memory_space<vmem>>, vector<1x104x64xbf16>
    %86 = vector.shape_cast %85 : vector<1x104x64xbf16> to vector<104x64xbf16>
    %87 = tpu.concatenate %80, %82, %84, %86 in 1 : vector<104x64xbf16>, vector<104x64xbf16>, vector<104x64xbf16>, vector<104x64xbf16> -> vector<104x256xbf16>
    %c2_84 = arith.constant 2 : index
    %c0_85 = arith.constant 0 : index
    %c0_86 = arith.constant 0 : index
    %88 = vector.load %arg2[%c2_84, %c0_85, %c0_86] : memref<3x256x128xbf16, #tpu.memory_space<vmem>>, vector<1x256x128xbf16>
    %89 = vector.shape_cast %88 : vector<1x256x128xbf16> to vector<256x128xbf16>
    %cst_87 = arith.constant dense<0.000000e+00> : vector<104x128xf32>
    %90 = tpu.matmul %87, %89, %cst_87 {dimension_numbers = #tpu.dot_dimension_numbers<[1], [0], [0], [1], [0, 0, 1, 1], [], []>} : vector<104x256xbf16>, vector<256x128xbf16>, vector<104x128xf32> -> vector<104x128xf32>
    %91 = arith.addf %78, %90 : vector<104x128xf32>
    %92 = vector.broadcast %0 : vector<1x128xf32> to vector<104x128xf32>
    %93 = arith.addf %91, %92 : vector<104x128xf32>
    %cst_88 = arith.constant 0.000000e+00 : f32
    %94 = vector.broadcast %cst_88 : f32 to vector<104x128xf32>
    %95 = arith.maximumf %93, %94 : vector<104x128xf32>
    %96 = vector.broadcast %1 : vector<1x128xf32> to vector<104x128xf32>
    %97 = arith.mulf %95, %96 : vector<104x128xf32>
    %98 = vector.broadcast %2 : vector<1x128xf32> to vector<104x128xf32>
    %99 = arith.addf %97, %98 : vector<104x128xf32>
    %c104_89 = arith.constant 104 : index
    %c0_90 = arith.constant 0 : index
    %100 = vector.load %arg7[%c104_89, %c0_90] : memref<208x128xf32, #tpu.memory_space<vmem>>, vector<104x128xf32>
    tpu.vector_store %arg7[%c104_89, %c0_90], %99 {strides = array<i32>} : memref<208x128xf32, #tpu.memory_space<vmem>>, vector<104x128xf32>,
    %101 = tpu.iota {dimensions = array<i32: 0>} : vector<8x128xi32>
    %c6_i32 = arith.constant 6 : i32
    %102 = vector.broadcast %c6_i32 : i32 to vector<8x128xi32>
    %103 = arith.cmpi slt, %101, %102 : vector<8x128xi32>
    %c0_91 = arith.constant 0 : index
    %c0_92 = arith.constant 0 : index
    %104 = tpu.strided_load %arg7[%c0_91, %c0_92] {strides = array<i32: 2, 1>} : memref<208x128xf32, #tpu.memory_space<vmem>>, vector<8x128xf32>
    %c1_93 = arith.constant 1 : index
    %c0_94 = arith.constant 0 : index
    %105 = tpu.strided_load %arg7[%c1_93, %c0_94] {strides = array<i32: 2, 1>} : memref<208x128xf32, #tpu.memory_space<vmem>>, vector<8x128xf32>
    %c16_95 = arith.constant 16 : index
    %c0_96 = arith.constant 0 : index
    %106 = tpu.strided_load %arg7[%c16_95, %c0_96] {strides = array<i32: 2, 1>} : memref<208x128xf32, #tpu.memory_space<vmem>>, vector<8x128xf32>
    %c17_97 = arith.constant 17 : index
    %c0_98 = arith.constant 0 : index
    %107 = tpu.strided_load %arg7[%c17_97, %c0_98] {strides = array<i32: 2, 1>} : memref<208x128xf32, #tpu.memory_space<vmem>>, vector<8x128xf32>
    %108 = arith.maximumf %104, %105 : vector<8x128xf32>
    %109 = arith.maximumf %106, %107 : vector<8x128xf32>
    %110 = arith.maximumf %108, %109 : vector<8x128xf32>
    %cst_99 = arith.constant 0.000000e+00 : f32
    %111 = vector.broadcast %cst_99 : f32 to vector<8x128xf32>
    %112 = arith.select %103, %110, %111 : vector<8x128xi1>, vector<8x128xf32>
    %113 = arith.truncf %112 : vector<8x128xf32> to vector<8x128xbf16>
    %c32_100 = arith.constant 32 : index
    %c0_101 = arith.constant 0 : index
    %114 = tpu.strided_load %arg7[%c32_100, %c0_101] {strides = array<i32: 2, 1>} : memref<208x128xf32, #tpu.memory_space<vmem>>, vector<8x128xf32>
    %c33_102 = arith.constant 33 : index
    %c0_103 = arith.constant 0 : index
    %115 = tpu.strided_load %arg7[%c33_102, %c0_103] {strides = array<i32: 2, 1>} : memref<208x128xf32, #tpu.memory_space<vmem>>, vector<8x128xf32>
    %c48 = arith.constant 48 : index
    %c0_104 = arith.constant 0 : index
    %116 = tpu.strided_load %arg7[%c48, %c0_104] {strides = array<i32: 2, 1>} : memref<208x128xf32, #tpu.memory_space<vmem>>, vector<8x128xf32>
    %c49 = arith.constant 49 : index
    %c0_105 = arith.constant 0 : index
    %117 = tpu.strided_load %arg7[%c49, %c0_105] {strides = array<i32: 2, 1>} : memref<208x128xf32, #tpu.memory_space<vmem>>, vector<8x128xf32>
    %118 = arith.maximumf %114, %115 : vector<8x128xf32>
    %119 = arith.maximumf %116, %117 : vector<8x128xf32>
    %120 = arith.maximumf %118, %119 : vector<8x128xf32>
    %cst_106 = arith.constant 0.000000e+00 : f32
    %121 = vector.broadcast %cst_106 : f32 to vector<8x128xf32>
    %122 = arith.select %103, %120, %121 : vector<8x128xi1>, vector<8x128xf32>
    %123 = arith.truncf %122 : vector<8x128xf32> to vector<8x128xbf16>
    %c64 = arith.constant 64 : index
    %c0_107 = arith.constant 0 : index
    %124 = tpu.strided_load %arg7[%c64, %c0_107] {strides = array<i32: 2, 1>} : memref<208x128xf32, #tpu.memory_space<vmem>>, vector<8x128xf32>
    %c65 = arith.constant 65 : index
    %c0_108 = arith.constant 0 : index
    %125 = tpu.strided_load %arg7[%c65, %c0_108] {strides = array<i32: 2, 1>} : memref<208x128xf32, #tpu.memory_space<vmem>>, vector<8x128xf32>
    %c80 = arith.constant 80 : index
    %c0_109 = arith.constant 0 : index
    %126 = tpu.strided_load %arg7[%c80, %c0_109] {strides = array<i32: 2, 1>} : memref<208x128xf32, #tpu.memory_space<vmem>>, vector<8x128xf32>
    %c81 = arith.constant 81 : index
    %c0_110 = arith.constant 0 : index
    %127 = tpu.strided_load %arg7[%c81, %c0_110] {strides = array<i32: 2, 1>} : memref<208x128xf32, #tpu.memory_space<vmem>>, vector<8x128xf32>
    %128 = arith.maximumf %124, %125 : vector<8x128xf32>
    %129 = arith.maximumf %126, %127 : vector<8x128xf32>
    %130 = arith.maximumf %128, %129 : vector<8x128xf32>
    %cst_111 = arith.constant 0.000000e+00 : f32
    %131 = vector.broadcast %cst_111 : f32 to vector<8x128xf32>
    %132 = arith.select %103, %130, %131 : vector<8x128xi1>, vector<8x128xf32>
    %133 = arith.truncf %132 : vector<8x128xf32> to vector<8x128xbf16>
    %c96 = arith.constant 96 : index
    %c0_112 = arith.constant 0 : index
    %134 = tpu.strided_load %arg7[%c96, %c0_112] {strides = array<i32: 2, 1>} : memref<208x128xf32, #tpu.memory_space<vmem>>, vector<8x128xf32>
    %c97 = arith.constant 97 : index
    %c0_113 = arith.constant 0 : index
    %135 = tpu.strided_load %arg7[%c97, %c0_113] {strides = array<i32: 2, 1>} : memref<208x128xf32, #tpu.memory_space<vmem>>, vector<8x128xf32>
    %c112 = arith.constant 112 : index
    %c0_114 = arith.constant 0 : index
    %136 = tpu.strided_load %arg7[%c112, %c0_114] {strides = array<i32: 2, 1>} : memref<208x128xf32, #tpu.memory_space<vmem>>, vector<8x128xf32>
    %c113 = arith.constant 113 : index
    %c0_115 = arith.constant 0 : index
    %137 = tpu.strided_load %arg7[%c113, %c0_115] {strides = array<i32: 2, 1>} : memref<208x128xf32, #tpu.memory_space<vmem>>, vector<8x128xf32>
    %138 = arith.maximumf %134, %135 : vector<8x128xf32>
    %139 = arith.maximumf %136, %137 : vector<8x128xf32>
    %140 = arith.maximumf %138, %139 : vector<8x128xf32>
    %cst_116 = arith.constant 0.000000e+00 : f32
    %141 = vector.broadcast %cst_116 : f32 to vector<8x128xf32>
    %142 = arith.select %103, %140, %141 : vector<8x128xi1>, vector<8x128xf32>
    %143 = arith.truncf %142 : vector<8x128xf32> to vector<8x128xbf16>
    %c128 = arith.constant 128 : index
    %c0_117 = arith.constant 0 : index
    %144 = tpu.strided_load %arg7[%c128, %c0_117] {strides = array<i32: 2, 1>} : memref<208x128xf32, #tpu.memory_space<vmem>>, vector<8x128xf32>
    %c129 = arith.constant 129 : index
    %c0_118 = arith.constant 0 : index
    %145 = tpu.strided_load %arg7[%c129, %c0_118] {strides = array<i32: 2, 1>} : memref<208x128xf32, #tpu.memory_space<vmem>>, vector<8x128xf32>
    %c144 = arith.constant 144 : index
    %c0_119 = arith.constant 0 : index
    %146 = tpu.strided_load %arg7[%c144, %c0_119] {strides = array<i32: 2, 1>} : memref<208x128xf32, #tpu.memory_space<vmem>>, vector<8x128xf32>
    %c145 = arith.constant 145 : index
    %c0_120 = arith.constant 0 : index
    %147 = tpu.strided_load %arg7[%c145, %c0_120] {strides = array<i32: 2, 1>} : memref<208x128xf32, #tpu.memory_space<vmem>>, vector<8x128xf32>
    %148 = arith.maximumf %144, %145 : vector<8x128xf32>
    %149 = arith.maximumf %146, %147 : vector<8x128xf32>
    %150 = arith.maximumf %148, %149 : vector<8x128xf32>
    %cst_121 = arith.constant 0.000000e+00 : f32
    %151 = vector.broadcast %cst_121 : f32 to vector<8x128xf32>
    %152 = arith.select %103, %150, %151 : vector<8x128xi1>, vector<8x128xf32>
    %153 = arith.truncf %152 : vector<8x128xf32> to vector<8x128xbf16>
    %c160 = arith.constant 160 : index
    %c0_122 = arith.constant 0 : index
    %154 = tpu.strided_load %arg7[%c160, %c0_122] {strides = array<i32: 2, 1>} : memref<208x128xf32, #tpu.memory_space<vmem>>, vector<8x128xf32>
    %c161 = arith.constant 161 : index
    %c0_123 = arith.constant 0 : index
    %155 = tpu.strided_load %arg7[%c161, %c0_123] {strides = array<i32: 2, 1>} : memref<208x128xf32, #tpu.memory_space<vmem>>, vector<8x128xf32>
    %c176 = arith.constant 176 : index
    %c0_124 = arith.constant 0 : index
    %156 = tpu.strided_load %arg7[%c176, %c0_124] {strides = array<i32: 2, 1>} : memref<208x128xf32, #tpu.memory_space<vmem>>, vector<8x128xf32>
    %c177 = arith.constant 177 : index
    %c0_125 = arith.constant 0 : index
    %157 = tpu.strided_load %arg7[%c177, %c0_125] {strides = array<i32: 2, 1>} : memref<208x128xf32, #tpu.memory_space<vmem>>, vector<8x128xf32>
    %158 = arith.maximumf %154, %155 : vector<8x128xf32>
    %159 = arith.maximumf %156, %157 : vector<8x128xf32>
    %160 = arith.maximumf %158, %159 : vector<8x128xf32>
    %cst_126 = arith.constant 0.000000e+00 : f32
    %161 = vector.broadcast %cst_126 : f32 to vector<8x128xf32>
    %162 = arith.select %103, %160, %161 : vector<8x128xi1>, vector<8x128xf32>
    %163 = arith.truncf %162 : vector<8x128xf32> to vector<8x128xbf16>
    %cst_127 = arith.constant 0.000000e+00 : bf16
    %164 = vector.broadcast %cst_127 : bf16 to vector<8x128xbf16>
    %165 = tpu.concatenate %113, %123, %133, %143, %153, %163, %164 in 0 : vector<8x128xbf16>, vector<8x128xbf16>, vector<8x128xbf16>, vector<8x128xbf16>, vector<8x128xbf16>, vector<8x128xbf16>, vector<8x128xbf16> -> vector<56x128xbf16>
    %c0_128 = arith.constant 0 : index
    %c0_129 = arith.constant 0 : index
    %c0_130 = arith.constant 0 : index
    %166 = vector.load %arg6[%c0_128, %c0_129, %c0_130] : memref<1x56x128xbf16, #tpu.memory_space<vmem>>, vector<1x56x128xbf16>
    %167 = vector.shape_cast %166 : vector<1x56x128xbf16> to vector<56x128xbf16>
    %168 = vector.shape_cast %165 : vector<56x128xbf16> to vector<1x56x128xbf16>
    tpu.vector_store %arg6[%c0_128, %c0_129, %c0_130], %168 {strides = array<i32>} : memref<1x56x128xbf16, #tpu.memory_space<vmem>>, vector<1x56x128xbf16>,
    return
  }
  func.func @transform_0(%arg0: i32) -> (i32, i32, i32) {
    %c0_i32 = arith.constant 0 : i32
    %c0_i32_0 = arith.constant 0 : i32
    %c0_i32_1 = arith.constant 0 : i32
    return %arg0, %c0_i32, %c0_i32_0 : i32, i32, i32
  }
  func.func @transform_1(%arg0: i32) -> (i32, i32, i32) {
    %c0_i32 = arith.constant 0 : i32
    %c0_i32_0 = arith.constant 0 : i32
    %c0_i32_1 = arith.constant 0 : i32
    %c0_i32_2 = arith.constant 0 : i32
    return %c0_i32, %c0_i32_0, %c0_i32_1 : i32, i32, i32
  }
  func.func @transform_2(%arg0: i32) -> (i32, i32) {
    %c0_i32 = arith.constant 0 : i32
    %c0_i32_0 = arith.constant 0 : i32
    %c0_i32_1 = arith.constant 0 : i32
    return %c0_i32, %c0_i32_0 : i32, i32
  }
  func.func @transform_3(%arg0: i32) -> (i32, i32) {
    %c0_i32 = arith.constant 0 : i32
    %c0_i32_0 = arith.constant 0 : i32
    %c0_i32_1 = arith.constant 0 : i32
    return %c0_i32, %c0_i32_0 : i32, i32
  }
  func.func @transform_4(%arg0: i32) -> (i32, i32) {
    %c0_i32 = arith.constant 0 : i32
    %c0_i32_0 = arith.constant 0 : i32
    %c0_i32_1 = arith.constant 0 : i32
    return %c0_i32, %c0_i32_0 : i32, i32
  }
  func.func @transform_5(%arg0: i32) -> (i32, i32, i32) {
    %c0_i32 = arith.constant 0 : i32
    %c0_i32_0 = arith.constant 0 : i32
    %c0_i32_1 = arith.constant 0 : i32
    return %arg0, %c0_i32, %c0_i32_0 : i32, i32, i32
  }
}

module attributes {stable_mosaic.version = 11 : i64} {
  func.func @conv_pool_kernel(%arg0: i32, %arg1: memref<1x960x32xbf16, #tpu.memory_space<vmem>>, %arg2: memref<1x32x64xbf16, #tpu.memory_space<vmem>>, %arg3: memref<1x64xf32, #tpu.memory_space<vmem>>, %arg4: memref<1x64xf32, #tpu.memory_space<vmem>>, %arg5: memref<1x64xf32, #tpu.memory_space<vmem>>, %arg6: memref<1x256x64xbf16, #tpu.memory_space<vmem>>, %arg7: memref<960x64xf32, #tpu.memory_space<vmem>>) attributes {dimension_semantics = [#tpu.dimension_semantics<parallel>], iteration_bounds = array<i64: 2>, scalar_prefetch = 0 : i64, scratch_operands = 1 : i64, tpu.core_type = #tpu.core_type<tc>, window_params = [{transform_indices = @transform_0, window_bounds = array<i64: 1, 960, 32>}, {pipeline_mode = #tpu.pipeline_mode<synchronous>, transform_indices = @transform_1, window_bounds = array<i64: 1, 32, 64>}, {pipeline_mode = #tpu.pipeline_mode<synchronous>, transform_indices = @transform_2, window_bounds = array<i64: 1, 64>}, {pipeline_mode = #tpu.pipeline_mode<synchronous>, transform_indices = @transform_3, window_bounds = array<i64: 1, 64>}, {pipeline_mode = #tpu.pipeline_mode<synchronous>, transform_indices = @transform_4, window_bounds = array<i64: 1, 64>}, {transform_indices = @transform_5, window_bounds = array<i64: 1, 256, 64>}]} {
    %c0 = arith.constant 0 : index
    %c0_0 = arith.constant 0 : index
    %0 = vector.load %arg3[%c0, %c0_0] : memref<1x64xf32, #tpu.memory_space<vmem>>, vector<1x64xf32>
    %c0_1 = arith.constant 0 : index
    %c0_2 = arith.constant 0 : index
    %1 = vector.load %arg4[%c0_1, %c0_2] : memref<1x64xf32, #tpu.memory_space<vmem>>, vector<1x64xf32>
    %c0_3 = arith.constant 0 : index
    %c0_4 = arith.constant 0 : index
    %2 = vector.load %arg5[%c0_3, %c0_4] : memref<1x64xf32, #tpu.memory_space<vmem>>, vector<1x64xf32>
    %cst = arith.constant 0.000000e+00 : f32
    %3 = vector.broadcast %cst : f32 to vector<120x64xf32>
    %c0_5 = arith.constant 0 : index
    %c0_6 = arith.constant 0 : index
    %c0_7 = arith.constant 0 : index
    %4 = vector.load %arg1[%c0_5, %c0_6, %c0_7] : memref<1x960x32xbf16, #tpu.memory_space<vmem>>, vector<1x120x32xbf16>
    %5 = vector.shape_cast %4 : vector<1x120x32xbf16> to vector<120x32xbf16>
    %c0_8 = arith.constant 0 : index
    %c0_9 = arith.constant 0 : index
    %c0_10 = arith.constant 0 : index
    %6 = vector.load %arg2[%c0_8, %c0_9, %c0_10] : memref<1x32x64xbf16, #tpu.memory_space<vmem>>, vector<1x32x64xbf16>
    %7 = vector.shape_cast %6 : vector<1x32x64xbf16> to vector<32x64xbf16>
    %cst_11 = arith.constant dense<0.000000e+00> : vector<120x64xf32>
    %8 = tpu.matmul %5, %7, %cst_11 {dimension_numbers = #tpu.dot_dimension_numbers<[1], [0], [0], [1], [0, 0, 1, 1], [], []>} : vector<120x32xbf16>, vector<32x64xbf16>, vector<120x64xf32> -> vector<120x64xf32>
    %9 = arith.addf %3, %8 : vector<120x64xf32>
    %10 = vector.broadcast %0 : vector<1x64xf32> to vector<120x64xf32>
    %11 = arith.addf %9, %10 : vector<120x64xf32>
    %cst_12 = arith.constant 0.000000e+00 : f32
    %12 = vector.broadcast %cst_12 : f32 to vector<120x64xf32>
    %13 = arith.maximumf %11, %12 : vector<120x64xf32>
    %14 = vector.broadcast %1 : vector<1x64xf32> to vector<120x64xf32>
    %15 = arith.mulf %13, %14 : vector<120x64xf32>
    %16 = vector.broadcast %2 : vector<1x64xf32> to vector<120x64xf32>
    %17 = arith.addf %15, %16 : vector<120x64xf32>
    %c0_13 = arith.constant 0 : index
    %c0_14 = arith.constant 0 : index
    %18 = vector.load %arg7[%c0_13, %c0_14] : memref<960x64xf32, #tpu.memory_space<vmem>>, vector<120x64xf32>
    tpu.vector_store %arg7[%c0_13, %c0_14], %17 {strides = array<i32>} : memref<960x64xf32, #tpu.memory_space<vmem>>, vector<120x64xf32>,
    %cst_15 = arith.constant 0.000000e+00 : f32
    %19 = vector.broadcast %cst_15 : f32 to vector<120x64xf32>
    %c0_16 = arith.constant 0 : index
    %c120 = arith.constant 120 : index
    %c0_17 = arith.constant 0 : index
    %20 = vector.load %arg1[%c0_16, %c120, %c0_17] : memref<1x960x32xbf16, #tpu.memory_space<vmem>>, vector<1x120x32xbf16>
    %21 = vector.shape_cast %20 : vector<1x120x32xbf16> to vector<120x32xbf16>
    %c0_18 = arith.constant 0 : index
    %c0_19 = arith.constant 0 : index
    %c0_20 = arith.constant 0 : index
    %22 = vector.load %arg2[%c0_18, %c0_19, %c0_20] : memref<1x32x64xbf16, #tpu.memory_space<vmem>>, vector<1x32x64xbf16>
    %23 = vector.shape_cast %22 : vector<1x32x64xbf16> to vector<32x64xbf16>
    %cst_21 = arith.constant dense<0.000000e+00> : vector<120x64xf32>
    %24 = tpu.matmul %21, %23, %cst_21 {dimension_numbers = #tpu.dot_dimension_numbers<[1], [0], [0], [1], [0, 0, 1, 1], [], []>} : vector<120x32xbf16>, vector<32x64xbf16>, vector<120x64xf32> -> vector<120x64xf32>
    %25 = arith.addf %19, %24 : vector<120x64xf32>
    %26 = vector.broadcast %0 : vector<1x64xf32> to vector<120x64xf32>
    %27 = arith.addf %25, %26 : vector<120x64xf32>
    %cst_22 = arith.constant 0.000000e+00 : f32
    %28 = vector.broadcast %cst_22 : f32 to vector<120x64xf32>
    %29 = arith.maximumf %27, %28 : vector<120x64xf32>
    %30 = vector.broadcast %1 : vector<1x64xf32> to vector<120x64xf32>
    %31 = arith.mulf %29, %30 : vector<120x64xf32>
    %32 = vector.broadcast %2 : vector<1x64xf32> to vector<120x64xf32>
    %33 = arith.addf %31, %32 : vector<120x64xf32>
    %c120_23 = arith.constant 120 : index
    %c0_24 = arith.constant 0 : index
    %34 = vector.load %arg7[%c120_23, %c0_24] : memref<960x64xf32, #tpu.memory_space<vmem>>, vector<120x64xf32>
    tpu.vector_store %arg7[%c120_23, %c0_24], %33 {strides = array<i32>} : memref<960x64xf32, #tpu.memory_space<vmem>>, vector<120x64xf32>,
    %cst_25 = arith.constant 0.000000e+00 : f32
    %35 = vector.broadcast %cst_25 : f32 to vector<120x64xf32>
    %c0_26 = arith.constant 0 : index
    %c240 = arith.constant 240 : index
    %c0_27 = arith.constant 0 : index
    %36 = vector.load %arg1[%c0_26, %c240, %c0_27] : memref<1x960x32xbf16, #tpu.memory_space<vmem>>, vector<1x120x32xbf16>
    %37 = vector.shape_cast %36 : vector<1x120x32xbf16> to vector<120x32xbf16>
    %c0_28 = arith.constant 0 : index
    %c0_29 = arith.constant 0 : index
    %c0_30 = arith.constant 0 : index
    %38 = vector.load %arg2[%c0_28, %c0_29, %c0_30] : memref<1x32x64xbf16, #tpu.memory_space<vmem>>, vector<1x32x64xbf16>
    %39 = vector.shape_cast %38 : vector<1x32x64xbf16> to vector<32x64xbf16>
    %cst_31 = arith.constant dense<0.000000e+00> : vector<120x64xf32>
    %40 = tpu.matmul %37, %39, %cst_31 {dimension_numbers = #tpu.dot_dimension_numbers<[1], [0], [0], [1], [0, 0, 1, 1], [], []>} : vector<120x32xbf16>, vector<32x64xbf16>, vector<120x64xf32> -> vector<120x64xf32>
    %41 = arith.addf %35, %40 : vector<120x64xf32>
    %42 = vector.broadcast %0 : vector<1x64xf32> to vector<120x64xf32>
    %43 = arith.addf %41, %42 : vector<120x64xf32>
    %cst_32 = arith.constant 0.000000e+00 : f32
    %44 = vector.broadcast %cst_32 : f32 to vector<120x64xf32>
    %45 = arith.maximumf %43, %44 : vector<120x64xf32>
    %46 = vector.broadcast %1 : vector<1x64xf32> to vector<120x64xf32>
    %47 = arith.mulf %45, %46 : vector<120x64xf32>
    %48 = vector.broadcast %2 : vector<1x64xf32> to vector<120x64xf32>
    %49 = arith.addf %47, %48 : vector<120x64xf32>
    %c240_33 = arith.constant 240 : index
    %c0_34 = arith.constant 0 : index
    %50 = vector.load %arg7[%c240_33, %c0_34] : memref<960x64xf32, #tpu.memory_space<vmem>>, vector<120x64xf32>
    tpu.vector_store %arg7[%c240_33, %c0_34], %49 {strides = array<i32>} : memref<960x64xf32, #tpu.memory_space<vmem>>, vector<120x64xf32>,
    %cst_35 = arith.constant 0.000000e+00 : f32
    %51 = vector.broadcast %cst_35 : f32 to vector<120x64xf32>
    %c0_36 = arith.constant 0 : index
    %c360 = arith.constant 360 : index
    %c0_37 = arith.constant 0 : index
    %52 = vector.load %arg1[%c0_36, %c360, %c0_37] : memref<1x960x32xbf16, #tpu.memory_space<vmem>>, vector<1x120x32xbf16>
    %53 = vector.shape_cast %52 : vector<1x120x32xbf16> to vector<120x32xbf16>
    %c0_38 = arith.constant 0 : index
    %c0_39 = arith.constant 0 : index
    %c0_40 = arith.constant 0 : index
    %54 = vector.load %arg2[%c0_38, %c0_39, %c0_40] : memref<1x32x64xbf16, #tpu.memory_space<vmem>>, vector<1x32x64xbf16>
    %55 = vector.shape_cast %54 : vector<1x32x64xbf16> to vector<32x64xbf16>
    %cst_41 = arith.constant dense<0.000000e+00> : vector<120x64xf32>
    %56 = tpu.matmul %53, %55, %cst_41 {dimension_numbers = #tpu.dot_dimension_numbers<[1], [0], [0], [1], [0, 0, 1, 1], [], []>} : vector<120x32xbf16>, vector<32x64xbf16>, vector<120x64xf32> -> vector<120x64xf32>
    %57 = arith.addf %51, %56 : vector<120x64xf32>
    %58 = vector.broadcast %0 : vector<1x64xf32> to vector<120x64xf32>
    %59 = arith.addf %57, %58 : vector<120x64xf32>
    %cst_42 = arith.constant 0.000000e+00 : f32
    %60 = vector.broadcast %cst_42 : f32 to vector<120x64xf32>
    %61 = arith.maximumf %59, %60 : vector<120x64xf32>
    %62 = vector.broadcast %1 : vector<1x64xf32> to vector<120x64xf32>
    %63 = arith.mulf %61, %62 : vector<120x64xf32>
    %64 = vector.broadcast %2 : vector<1x64xf32> to vector<120x64xf32>
    %65 = arith.addf %63, %64 : vector<120x64xf32>
    %c360_43 = arith.constant 360 : index
    %c0_44 = arith.constant 0 : index
    %66 = vector.load %arg7[%c360_43, %c0_44] : memref<960x64xf32, #tpu.memory_space<vmem>>, vector<120x64xf32>
    tpu.vector_store %arg7[%c360_43, %c0_44], %65 {strides = array<i32>} : memref<960x64xf32, #tpu.memory_space<vmem>>, vector<120x64xf32>,
    %cst_45 = arith.constant 0.000000e+00 : f32
    %67 = vector.broadcast %cst_45 : f32 to vector<120x64xf32>
    %c0_46 = arith.constant 0 : index
    %c480 = arith.constant 480 : index
    %c0_47 = arith.constant 0 : index
    %68 = vector.load %arg1[%c0_46, %c480, %c0_47] : memref<1x960x32xbf16, #tpu.memory_space<vmem>>, vector<1x120x32xbf16>
    %69 = vector.shape_cast %68 : vector<1x120x32xbf16> to vector<120x32xbf16>
    %c0_48 = arith.constant 0 : index
    %c0_49 = arith.constant 0 : index
    %c0_50 = arith.constant 0 : index
    %70 = vector.load %arg2[%c0_48, %c0_49, %c0_50] : memref<1x32x64xbf16, #tpu.memory_space<vmem>>, vector<1x32x64xbf16>
    %71 = vector.shape_cast %70 : vector<1x32x64xbf16> to vector<32x64xbf16>
    %cst_51 = arith.constant dense<0.000000e+00> : vector<120x64xf32>
    %72 = tpu.matmul %69, %71, %cst_51 {dimension_numbers = #tpu.dot_dimension_numbers<[1], [0], [0], [1], [0, 0, 1, 1], [], []>} : vector<120x32xbf16>, vector<32x64xbf16>, vector<120x64xf32> -> vector<120x64xf32>
    %73 = arith.addf %67, %72 : vector<120x64xf32>
    %74 = vector.broadcast %0 : vector<1x64xf32> to vector<120x64xf32>
    %75 = arith.addf %73, %74 : vector<120x64xf32>
    %cst_52 = arith.constant 0.000000e+00 : f32
    %76 = vector.broadcast %cst_52 : f32 to vector<120x64xf32>
    %77 = arith.maximumf %75, %76 : vector<120x64xf32>
    %78 = vector.broadcast %1 : vector<1x64xf32> to vector<120x64xf32>
    %79 = arith.mulf %77, %78 : vector<120x64xf32>
    %80 = vector.broadcast %2 : vector<1x64xf32> to vector<120x64xf32>
    %81 = arith.addf %79, %80 : vector<120x64xf32>
    %c480_53 = arith.constant 480 : index
    %c0_54 = arith.constant 0 : index
    %82 = vector.load %arg7[%c480_53, %c0_54] : memref<960x64xf32, #tpu.memory_space<vmem>>, vector<120x64xf32>
    tpu.vector_store %arg7[%c480_53, %c0_54], %81 {strides = array<i32>} : memref<960x64xf32, #tpu.memory_space<vmem>>, vector<120x64xf32>,
    %cst_55 = arith.constant 0.000000e+00 : f32
    %83 = vector.broadcast %cst_55 : f32 to vector<120x64xf32>
    %c0_56 = arith.constant 0 : index
    %c600 = arith.constant 600 : index
    %c0_57 = arith.constant 0 : index
    %84 = vector.load %arg1[%c0_56, %c600, %c0_57] : memref<1x960x32xbf16, #tpu.memory_space<vmem>>, vector<1x120x32xbf16>
    %85 = vector.shape_cast %84 : vector<1x120x32xbf16> to vector<120x32xbf16>
    %c0_58 = arith.constant 0 : index
    %c0_59 = arith.constant 0 : index
    %c0_60 = arith.constant 0 : index
    %86 = vector.load %arg2[%c0_58, %c0_59, %c0_60] : memref<1x32x64xbf16, #tpu.memory_space<vmem>>, vector<1x32x64xbf16>
    %87 = vector.shape_cast %86 : vector<1x32x64xbf16> to vector<32x64xbf16>
    %cst_61 = arith.constant dense<0.000000e+00> : vector<120x64xf32>
    %88 = tpu.matmul %85, %87, %cst_61 {dimension_numbers = #tpu.dot_dimension_numbers<[1], [0], [0], [1], [0, 0, 1, 1], [], []>} : vector<120x32xbf16>, vector<32x64xbf16>, vector<120x64xf32> -> vector<120x64xf32>
    %89 = arith.addf %83, %88 : vector<120x64xf32>
    %90 = vector.broadcast %0 : vector<1x64xf32> to vector<120x64xf32>
    %91 = arith.addf %89, %90 : vector<120x64xf32>
    %cst_62 = arith.constant 0.000000e+00 : f32
    %92 = vector.broadcast %cst_62 : f32 to vector<120x64xf32>
    %93 = arith.maximumf %91, %92 : vector<120x64xf32>
    %94 = vector.broadcast %1 : vector<1x64xf32> to vector<120x64xf32>
    %95 = arith.mulf %93, %94 : vector<120x64xf32>
    %96 = vector.broadcast %2 : vector<1x64xf32> to vector<120x64xf32>
    %97 = arith.addf %95, %96 : vector<120x64xf32>
    %c600_63 = arith.constant 600 : index
    %c0_64 = arith.constant 0 : index
    %98 = vector.load %arg7[%c600_63, %c0_64] : memref<960x64xf32, #tpu.memory_space<vmem>>, vector<120x64xf32>
    tpu.vector_store %arg7[%c600_63, %c0_64], %97 {strides = array<i32>} : memref<960x64xf32, #tpu.memory_space<vmem>>, vector<120x64xf32>,
    %cst_65 = arith.constant 0.000000e+00 : f32
    %99 = vector.broadcast %cst_65 : f32 to vector<120x64xf32>
    %c0_66 = arith.constant 0 : index
    %c720 = arith.constant 720 : index
    %c0_67 = arith.constant 0 : index
    %100 = vector.load %arg1[%c0_66, %c720, %c0_67] : memref<1x960x32xbf16, #tpu.memory_space<vmem>>, vector<1x120x32xbf16>
    %101 = vector.shape_cast %100 : vector<1x120x32xbf16> to vector<120x32xbf16>
    %c0_68 = arith.constant 0 : index
    %c0_69 = arith.constant 0 : index
    %c0_70 = arith.constant 0 : index
    %102 = vector.load %arg2[%c0_68, %c0_69, %c0_70] : memref<1x32x64xbf16, #tpu.memory_space<vmem>>, vector<1x32x64xbf16>
    %103 = vector.shape_cast %102 : vector<1x32x64xbf16> to vector<32x64xbf16>
    %cst_71 = arith.constant dense<0.000000e+00> : vector<120x64xf32>
    %104 = tpu.matmul %101, %103, %cst_71 {dimension_numbers = #tpu.dot_dimension_numbers<[1], [0], [0], [1], [0, 0, 1, 1], [], []>} : vector<120x32xbf16>, vector<32x64xbf16>, vector<120x64xf32> -> vector<120x64xf32>
    %105 = arith.addf %99, %104 : vector<120x64xf32>
    %106 = vector.broadcast %0 : vector<1x64xf32> to vector<120x64xf32>
    %107 = arith.addf %105, %106 : vector<120x64xf32>
    %cst_72 = arith.constant 0.000000e+00 : f32
    %108 = vector.broadcast %cst_72 : f32 to vector<120x64xf32>
    %109 = arith.maximumf %107, %108 : vector<120x64xf32>
    %110 = vector.broadcast %1 : vector<1x64xf32> to vector<120x64xf32>
    %111 = arith.mulf %109, %110 : vector<120x64xf32>
    %112 = vector.broadcast %2 : vector<1x64xf32> to vector<120x64xf32>
    %113 = arith.addf %111, %112 : vector<120x64xf32>
    %c720_73 = arith.constant 720 : index
    %c0_74 = arith.constant 0 : index
    %114 = vector.load %arg7[%c720_73, %c0_74] : memref<960x64xf32, #tpu.memory_space<vmem>>, vector<120x64xf32>
    tpu.vector_store %arg7[%c720_73, %c0_74], %113 {strides = array<i32>} : memref<960x64xf32, #tpu.memory_space<vmem>>, vector<120x64xf32>,
    %cst_75 = arith.constant 0.000000e+00 : f32
    %115 = vector.broadcast %cst_75 : f32 to vector<120x64xf32>
    %c0_76 = arith.constant 0 : index
    %c840 = arith.constant 840 : index
    %c0_77 = arith.constant 0 : index
    %116 = vector.load %arg1[%c0_76, %c840, %c0_77] : memref<1x960x32xbf16, #tpu.memory_space<vmem>>, vector<1x120x32xbf16>
    %117 = vector.shape_cast %116 : vector<1x120x32xbf16> to vector<120x32xbf16>
    %c0_78 = arith.constant 0 : index
    %c0_79 = arith.constant 0 : index
    %c0_80 = arith.constant 0 : index
    %118 = vector.load %arg2[%c0_78, %c0_79, %c0_80] : memref<1x32x64xbf16, #tpu.memory_space<vmem>>, vector<1x32x64xbf16>
    %119 = vector.shape_cast %118 : vector<1x32x64xbf16> to vector<32x64xbf16>
    %cst_81 = arith.constant dense<0.000000e+00> : vector<120x64xf32>
    %120 = tpu.matmul %117, %119, %cst_81 {dimension_numbers = #tpu.dot_dimension_numbers<[1], [0], [0], [1], [0, 0, 1, 1], [], []>} : vector<120x32xbf16>, vector<32x64xbf16>, vector<120x64xf32> -> vector<120x64xf32>
    %121 = arith.addf %115, %120 : vector<120x64xf32>
    %122 = vector.broadcast %0 : vector<1x64xf32> to vector<120x64xf32>
    %123 = arith.addf %121, %122 : vector<120x64xf32>
    %cst_82 = arith.constant 0.000000e+00 : f32
    %124 = vector.broadcast %cst_82 : f32 to vector<120x64xf32>
    %125 = arith.maximumf %123, %124 : vector<120x64xf32>
    %126 = vector.broadcast %1 : vector<1x64xf32> to vector<120x64xf32>
    %127 = arith.mulf %125, %126 : vector<120x64xf32>
    %128 = vector.broadcast %2 : vector<1x64xf32> to vector<120x64xf32>
    %129 = arith.addf %127, %128 : vector<120x64xf32>
    %c840_83 = arith.constant 840 : index
    %c0_84 = arith.constant 0 : index
    %130 = vector.load %arg7[%c840_83, %c0_84] : memref<960x64xf32, #tpu.memory_space<vmem>>, vector<120x64xf32>
    tpu.vector_store %arg7[%c840_83, %c0_84], %129 {strides = array<i32>} : memref<960x64xf32, #tpu.memory_space<vmem>>, vector<120x64xf32>,
    %131 = tpu.iota {dimensions = array<i32: 0>} : vector<16x64xi32>
    %c15_i32 = arith.constant 15 : i32
    %132 = vector.broadcast %c15_i32 : i32 to vector<16x64xi32>
    %133 = arith.cmpi slt, %131, %132 : vector<16x64xi32>
    %c0_85 = arith.constant 0 : index
    %c0_86 = arith.constant 0 : index
    %134 = tpu.strided_load %arg7[%c0_85, %c0_86] {strides = array<i32: 2, 1>} : memref<960x64xf32, #tpu.memory_space<vmem>>, vector<16x64xf32>
    %c1 = arith.constant 1 : index
    %c0_87 = arith.constant 0 : index
    %135 = tpu.strided_load %arg7[%c1, %c0_87] {strides = array<i32: 2, 1>} : memref<960x64xf32, #tpu.memory_space<vmem>>, vector<16x64xf32>
    %c32 = arith.constant 32 : index
    %c0_88 = arith.constant 0 : index
    %136 = tpu.strided_load %arg7[%c32, %c0_88] {strides = array<i32: 2, 1>} : memref<960x64xf32, #tpu.memory_space<vmem>>, vector<16x64xf32>
    %c33 = arith.constant 33 : index
    %c0_89 = arith.constant 0 : index
    %137 = tpu.strided_load %arg7[%c33, %c0_89] {strides = array<i32: 2, 1>} : memref<960x64xf32, #tpu.memory_space<vmem>>, vector<16x64xf32>
    %138 = arith.maximumf %134, %135 : vector<16x64xf32>
    %139 = arith.maximumf %136, %137 : vector<16x64xf32>
    %140 = arith.maximumf %138, %139 : vector<16x64xf32>
    %cst_90 = arith.constant 0.000000e+00 : f32
    %141 = vector.broadcast %cst_90 : f32 to vector<16x64xf32>
    %142 = arith.select %133, %140, %141 : vector<16x64xi1>, vector<16x64xf32>
    %143 = arith.truncf %142 : vector<16x64xf32> to vector<16x64xbf16>
    %c64 = arith.constant 64 : index
    %c0_91 = arith.constant 0 : index
    %144 = tpu.strided_load %arg7[%c64, %c0_91] {strides = array<i32: 2, 1>} : memref<960x64xf32, #tpu.memory_space<vmem>>, vector<16x64xf32>
    %c65 = arith.constant 65 : index
    %c0_92 = arith.constant 0 : index
    %145 = tpu.strided_load %arg7[%c65, %c0_92] {strides = array<i32: 2, 1>} : memref<960x64xf32, #tpu.memory_space<vmem>>, vector<16x64xf32>
    %c96 = arith.constant 96 : index
    %c0_93 = arith.constant 0 : index
    %146 = tpu.strided_load %arg7[%c96, %c0_93] {strides = array<i32: 2, 1>} : memref<960x64xf32, #tpu.memory_space<vmem>>, vector<16x64xf32>
    %c97 = arith.constant 97 : index
    %c0_94 = arith.constant 0 : index
    %147 = tpu.strided_load %arg7[%c97, %c0_94] {strides = array<i32: 2, 1>} : memref<960x64xf32, #tpu.memory_space<vmem>>, vector<16x64xf32>
    %148 = arith.maximumf %144, %145 : vector<16x64xf32>
    %149 = arith.maximumf %146, %147 : vector<16x64xf32>
    %150 = arith.maximumf %148, %149 : vector<16x64xf32>
    %cst_95 = arith.constant 0.000000e+00 : f32
    %151 = vector.broadcast %cst_95 : f32 to vector<16x64xf32>
    %152 = arith.select %133, %150, %151 : vector<16x64xi1>, vector<16x64xf32>
    %153 = arith.truncf %152 : vector<16x64xf32> to vector<16x64xbf16>
    %c128 = arith.constant 128 : index
    %c0_96 = arith.constant 0 : index
    %154 = tpu.strided_load %arg7[%c128, %c0_96] {strides = array<i32: 2, 1>} : memref<960x64xf32, #tpu.memory_space<vmem>>, vector<16x64xf32>
    %c129 = arith.constant 129 : index
    %c0_97 = arith.constant 0 : index
    %155 = tpu.strided_load %arg7[%c129, %c0_97] {strides = array<i32: 2, 1>} : memref<960x64xf32, #tpu.memory_space<vmem>>, vector<16x64xf32>
    %c160 = arith.constant 160 : index
    %c0_98 = arith.constant 0 : index
    %156 = tpu.strided_load %arg7[%c160, %c0_98] {strides = array<i32: 2, 1>} : memref<960x64xf32, #tpu.memory_space<vmem>>, vector<16x64xf32>
    %c161 = arith.constant 161 : index
    %c0_99 = arith.constant 0 : index
    %157 = tpu.strided_load %arg7[%c161, %c0_99] {strides = array<i32: 2, 1>} : memref<960x64xf32, #tpu.memory_space<vmem>>, vector<16x64xf32>
    %158 = arith.maximumf %154, %155 : vector<16x64xf32>
    %159 = arith.maximumf %156, %157 : vector<16x64xf32>
    %160 = arith.maximumf %158, %159 : vector<16x64xf32>
    %cst_100 = arith.constant 0.000000e+00 : f32
    %161 = vector.broadcast %cst_100 : f32 to vector<16x64xf32>
    %162 = arith.select %133, %160, %161 : vector<16x64xi1>, vector<16x64xf32>
    %163 = arith.truncf %162 : vector<16x64xf32> to vector<16x64xbf16>
    %c192 = arith.constant 192 : index
    %c0_101 = arith.constant 0 : index
    %164 = tpu.strided_load %arg7[%c192, %c0_101] {strides = array<i32: 2, 1>} : memref<960x64xf32, #tpu.memory_space<vmem>>, vector<16x64xf32>
    %c193 = arith.constant 193 : index
    %c0_102 = arith.constant 0 : index
    %165 = tpu.strided_load %arg7[%c193, %c0_102] {strides = array<i32: 2, 1>} : memref<960x64xf32, #tpu.memory_space<vmem>>, vector<16x64xf32>
    %c224 = arith.constant 224 : index
    %c0_103 = arith.constant 0 : index
    %166 = tpu.strided_load %arg7[%c224, %c0_103] {strides = array<i32: 2, 1>} : memref<960x64xf32, #tpu.memory_space<vmem>>, vector<16x64xf32>
    %c225 = arith.constant 225 : index
    %c0_104 = arith.constant 0 : index
    %167 = tpu.strided_load %arg7[%c225, %c0_104] {strides = array<i32: 2, 1>} : memref<960x64xf32, #tpu.memory_space<vmem>>, vector<16x64xf32>
    %168 = arith.maximumf %164, %165 : vector<16x64xf32>
    %169 = arith.maximumf %166, %167 : vector<16x64xf32>
    %170 = arith.maximumf %168, %169 : vector<16x64xf32>
    %cst_105 = arith.constant 0.000000e+00 : f32
    %171 = vector.broadcast %cst_105 : f32 to vector<16x64xf32>
    %172 = arith.select %133, %170, %171 : vector<16x64xi1>, vector<16x64xf32>
    %173 = arith.truncf %172 : vector<16x64xf32> to vector<16x64xbf16>
    %c256 = arith.constant 256 : index
    %c0_106 = arith.constant 0 : index
    %174 = tpu.strided_load %arg7[%c256, %c0_106] {strides = array<i32: 2, 1>} : memref<960x64xf32, #tpu.memory_space<vmem>>, vector<16x64xf32>
    %c257 = arith.constant 257 : index
    %c0_107 = arith.constant 0 : index
    %175 = tpu.strided_load %arg7[%c257, %c0_107] {strides = array<i32: 2, 1>} : memref<960x64xf32, #tpu.memory_space<vmem>>, vector<16x64xf32>
    %c288 = arith.constant 288 : index
    %c0_108 = arith.constant 0 : index
    %176 = tpu.strided_load %arg7[%c288, %c0_108] {strides = array<i32: 2, 1>} : memref<960x64xf32, #tpu.memory_space<vmem>>, vector<16x64xf32>
    %c289 = arith.constant 289 : index
    %c0_109 = arith.constant 0 : index
    %177 = tpu.strided_load %arg7[%c289, %c0_109] {strides = array<i32: 2, 1>} : memref<960x64xf32, #tpu.memory_space<vmem>>, vector<16x64xf32>
    %178 = arith.maximumf %174, %175 : vector<16x64xf32>
    %179 = arith.maximumf %176, %177 : vector<16x64xf32>
    %180 = arith.maximumf %178, %179 : vector<16x64xf32>
    %cst_110 = arith.constant 0.000000e+00 : f32
    %181 = vector.broadcast %cst_110 : f32 to vector<16x64xf32>
    %182 = arith.select %133, %180, %181 : vector<16x64xi1>, vector<16x64xf32>
    %183 = arith.truncf %182 : vector<16x64xf32> to vector<16x64xbf16>
    %c320 = arith.constant 320 : index
    %c0_111 = arith.constant 0 : index
    %184 = tpu.strided_load %arg7[%c320, %c0_111] {strides = array<i32: 2, 1>} : memref<960x64xf32, #tpu.memory_space<vmem>>, vector<16x64xf32>
    %c321 = arith.constant 321 : index
    %c0_112 = arith.constant 0 : index
    %185 = tpu.strided_load %arg7[%c321, %c0_112] {strides = array<i32: 2, 1>} : memref<960x64xf32, #tpu.memory_space<vmem>>, vector<16x64xf32>
    %c352 = arith.constant 352 : index
    %c0_113 = arith.constant 0 : index
    %186 = tpu.strided_load %arg7[%c352, %c0_113] {strides = array<i32: 2, 1>} : memref<960x64xf32, #tpu.memory_space<vmem>>, vector<16x64xf32>
    %c353 = arith.constant 353 : index
    %c0_114 = arith.constant 0 : index
    %187 = tpu.strided_load %arg7[%c353, %c0_114] {strides = array<i32: 2, 1>} : memref<960x64xf32, #tpu.memory_space<vmem>>, vector<16x64xf32>
    %188 = arith.maximumf %184, %185 : vector<16x64xf32>
    %189 = arith.maximumf %186, %187 : vector<16x64xf32>
    %190 = arith.maximumf %188, %189 : vector<16x64xf32>
    %cst_115 = arith.constant 0.000000e+00 : f32
    %191 = vector.broadcast %cst_115 : f32 to vector<16x64xf32>
    %192 = arith.select %133, %190, %191 : vector<16x64xi1>, vector<16x64xf32>
    %193 = arith.truncf %192 : vector<16x64xf32> to vector<16x64xbf16>
    %c384 = arith.constant 384 : index
    %c0_116 = arith.constant 0 : index
    %194 = tpu.strided_load %arg7[%c384, %c0_116] {strides = array<i32: 2, 1>} : memref<960x64xf32, #tpu.memory_space<vmem>>, vector<16x64xf32>
    %c385 = arith.constant 385 : index
    %c0_117 = arith.constant 0 : index
    %195 = tpu.strided_load %arg7[%c385, %c0_117] {strides = array<i32: 2, 1>} : memref<960x64xf32, #tpu.memory_space<vmem>>, vector<16x64xf32>
    %c416 = arith.constant 416 : index
    %c0_118 = arith.constant 0 : index
    %196 = tpu.strided_load %arg7[%c416, %c0_118] {strides = array<i32: 2, 1>} : memref<960x64xf32, #tpu.memory_space<vmem>>, vector<16x64xf32>
    %c417 = arith.constant 417 : index
    %c0_119 = arith.constant 0 : index
    %197 = tpu.strided_load %arg7[%c417, %c0_119] {strides = array<i32: 2, 1>} : memref<960x64xf32, #tpu.memory_space<vmem>>, vector<16x64xf32>
    %198 = arith.maximumf %194, %195 : vector<16x64xf32>
    %199 = arith.maximumf %196, %197 : vector<16x64xf32>
    %200 = arith.maximumf %198, %199 : vector<16x64xf32>
    %cst_120 = arith.constant 0.000000e+00 : f32
    %201 = vector.broadcast %cst_120 : f32 to vector<16x64xf32>
    %202 = arith.select %133, %200, %201 : vector<16x64xi1>, vector<16x64xf32>
    %203 = arith.truncf %202 : vector<16x64xf32> to vector<16x64xbf16>
    %c448 = arith.constant 448 : index
    %c0_121 = arith.constant 0 : index
    %204 = tpu.strided_load %arg7[%c448, %c0_121] {strides = array<i32: 2, 1>} : memref<960x64xf32, #tpu.memory_space<vmem>>, vector<16x64xf32>
    %c449 = arith.constant 449 : index
    %c0_122 = arith.constant 0 : index
    %205 = tpu.strided_load %arg7[%c449, %c0_122] {strides = array<i32: 2, 1>} : memref<960x64xf32, #tpu.memory_space<vmem>>, vector<16x64xf32>
    %c480_123 = arith.constant 480 : index
    %c0_124 = arith.constant 0 : index
    %206 = tpu.strided_load %arg7[%c480_123, %c0_124] {strides = array<i32: 2, 1>} : memref<960x64xf32, #tpu.memory_space<vmem>>, vector<16x64xf32>
    %c481 = arith.constant 481 : index
    %c0_125 = arith.constant 0 : index
    %207 = tpu.strided_load %arg7[%c481, %c0_125] {strides = array<i32: 2, 1>} : memref<960x64xf32, #tpu.memory_space<vmem>>, vector<16x64xf32>
    %208 = arith.maximumf %204, %205 : vector<16x64xf32>
    %209 = arith.maximumf %206, %207 : vector<16x64xf32>
    %210 = arith.maximumf %208, %209 : vector<16x64xf32>
    %cst_126 = arith.constant 0.000000e+00 : f32
    %211 = vector.broadcast %cst_126 : f32 to vector<16x64xf32>
    %212 = arith.select %133, %210, %211 : vector<16x64xi1>, vector<16x64xf32>
    %213 = arith.truncf %212 : vector<16x64xf32> to vector<16x64xbf16>
    %c512 = arith.constant 512 : index
    %c0_127 = arith.constant 0 : index
    %214 = tpu.strided_load %arg7[%c512, %c0_127] {strides = array<i32: 2, 1>} : memref<960x64xf32, #tpu.memory_space<vmem>>, vector<16x64xf32>
    %c513 = arith.constant 513 : index
    %c0_128 = arith.constant 0 : index
    %215 = tpu.strided_load %arg7[%c513, %c0_128] {strides = array<i32: 2, 1>} : memref<960x64xf32, #tpu.memory_space<vmem>>, vector<16x64xf32>
    %c544 = arith.constant 544 : index
    %c0_129 = arith.constant 0 : index
    %216 = tpu.strided_load %arg7[%c544, %c0_129] {strides = array<i32: 2, 1>} : memref<960x64xf32, #tpu.memory_space<vmem>>, vector<16x64xf32>
    %c545 = arith.constant 545 : index
    %c0_130 = arith.constant 0 : index
    %217 = tpu.strided_load %arg7[%c545, %c0_130] {strides = array<i32: 2, 1>} : memref<960x64xf32, #tpu.memory_space<vmem>>, vector<16x64xf32>
    %218 = arith.maximumf %214, %215 : vector<16x64xf32>
    %219 = arith.maximumf %216, %217 : vector<16x64xf32>
    %220 = arith.maximumf %218, %219 : vector<16x64xf32>
    %cst_131 = arith.constant 0.000000e+00 : f32
    %221 = vector.broadcast %cst_131 : f32 to vector<16x64xf32>
    %222 = arith.select %133, %220, %221 : vector<16x64xi1>, vector<16x64xf32>
    %223 = arith.truncf %222 : vector<16x64xf32> to vector<16x64xbf16>
    %c576 = arith.constant 576 : index
    %c0_132 = arith.constant 0 : index
    %224 = tpu.strided_load %arg7[%c576, %c0_132] {strides = array<i32: 2, 1>} : memref<960x64xf32, #tpu.memory_space<vmem>>, vector<16x64xf32>
    %c577 = arith.constant 577 : index
    %c0_133 = arith.constant 0 : index
    %225 = tpu.strided_load %arg7[%c577, %c0_133] {strides = array<i32: 2, 1>} : memref<960x64xf32, #tpu.memory_space<vmem>>, vector<16x64xf32>
    %c608 = arith.constant 608 : index
    %c0_134 = arith.constant 0 : index
    %226 = tpu.strided_load %arg7[%c608, %c0_134] {strides = array<i32: 2, 1>} : memref<960x64xf32, #tpu.memory_space<vmem>>, vector<16x64xf32>
    %c609 = arith.constant 609 : index
    %c0_135 = arith.constant 0 : index
    %227 = tpu.strided_load %arg7[%c609, %c0_135] {strides = array<i32: 2, 1>} : memref<960x64xf32, #tpu.memory_space<vmem>>, vector<16x64xf32>
    %228 = arith.maximumf %224, %225 : vector<16x64xf32>
    %229 = arith.maximumf %226, %227 : vector<16x64xf32>
    %230 = arith.maximumf %228, %229 : vector<16x64xf32>
    %cst_136 = arith.constant 0.000000e+00 : f32
    %231 = vector.broadcast %cst_136 : f32 to vector<16x64xf32>
    %232 = arith.select %133, %230, %231 : vector<16x64xi1>, vector<16x64xf32>
    %233 = arith.truncf %232 : vector<16x64xf32> to vector<16x64xbf16>
    %c640 = arith.constant 640 : index
    %c0_137 = arith.constant 0 : index
    %234 = tpu.strided_load %arg7[%c640, %c0_137] {strides = array<i32: 2, 1>} : memref<960x64xf32, #tpu.memory_space<vmem>>, vector<16x64xf32>
    %c641 = arith.constant 641 : index
    %c0_138 = arith.constant 0 : index
    %235 = tpu.strided_load %arg7[%c641, %c0_138] {strides = array<i32: 2, 1>} : memref<960x64xf32, #tpu.memory_space<vmem>>, vector<16x64xf32>
    %c672 = arith.constant 672 : index
    %c0_139 = arith.constant 0 : index
    %236 = tpu.strided_load %arg7[%c672, %c0_139] {strides = array<i32: 2, 1>} : memref<960x64xf32, #tpu.memory_space<vmem>>, vector<16x64xf32>
    %c673 = arith.constant 673 : index
    %c0_140 = arith.constant 0 : index
    %237 = tpu.strided_load %arg7[%c673, %c0_140] {strides = array<i32: 2, 1>} : memref<960x64xf32, #tpu.memory_space<vmem>>, vector<16x64xf32>
    %238 = arith.maximumf %234, %235 : vector<16x64xf32>
    %239 = arith.maximumf %236, %237 : vector<16x64xf32>
    %240 = arith.maximumf %238, %239 : vector<16x64xf32>
    %cst_141 = arith.constant 0.000000e+00 : f32
    %241 = vector.broadcast %cst_141 : f32 to vector<16x64xf32>
    %242 = arith.select %133, %240, %241 : vector<16x64xi1>, vector<16x64xf32>
    %243 = arith.truncf %242 : vector<16x64xf32> to vector<16x64xbf16>
    %c704 = arith.constant 704 : index
    %c0_142 = arith.constant 0 : index
    %244 = tpu.strided_load %arg7[%c704, %c0_142] {strides = array<i32: 2, 1>} : memref<960x64xf32, #tpu.memory_space<vmem>>, vector<16x64xf32>
    %c705 = arith.constant 705 : index
    %c0_143 = arith.constant 0 : index
    %245 = tpu.strided_load %arg7[%c705, %c0_143] {strides = array<i32: 2, 1>} : memref<960x64xf32, #tpu.memory_space<vmem>>, vector<16x64xf32>
    %c736 = arith.constant 736 : index
    %c0_144 = arith.constant 0 : index
    %246 = tpu.strided_load %arg7[%c736, %c0_144] {strides = array<i32: 2, 1>} : memref<960x64xf32, #tpu.memory_space<vmem>>, vector<16x64xf32>
    %c737 = arith.constant 737 : index
    %c0_145 = arith.constant 0 : index
    %247 = tpu.strided_load %arg7[%c737, %c0_145] {strides = array<i32: 2, 1>} : memref<960x64xf32, #tpu.memory_space<vmem>>, vector<16x64xf32>
    %248 = arith.maximumf %244, %245 : vector<16x64xf32>
    %249 = arith.maximumf %246, %247 : vector<16x64xf32>
    %250 = arith.maximumf %248, %249 : vector<16x64xf32>
    %cst_146 = arith.constant 0.000000e+00 : f32
    %251 = vector.broadcast %cst_146 : f32 to vector<16x64xf32>
    %252 = arith.select %133, %250, %251 : vector<16x64xi1>, vector<16x64xf32>
    %253 = arith.truncf %252 : vector<16x64xf32> to vector<16x64xbf16>
    %c768 = arith.constant 768 : index
    %c0_147 = arith.constant 0 : index
    %254 = tpu.strided_load %arg7[%c768, %c0_147] {strides = array<i32: 2, 1>} : memref<960x64xf32, #tpu.memory_space<vmem>>, vector<16x64xf32>
    %c769 = arith.constant 769 : index
    %c0_148 = arith.constant 0 : index
    %255 = tpu.strided_load %arg7[%c769, %c0_148] {strides = array<i32: 2, 1>} : memref<960x64xf32, #tpu.memory_space<vmem>>, vector<16x64xf32>
    %c800 = arith.constant 800 : index
    %c0_149 = arith.constant 0 : index
    %256 = tpu.strided_load %arg7[%c800, %c0_149] {strides = array<i32: 2, 1>} : memref<960x64xf32, #tpu.memory_space<vmem>>, vector<16x64xf32>
    %c801 = arith.constant 801 : index
    %c0_150 = arith.constant 0 : index
    %257 = tpu.strided_load %arg7[%c801, %c0_150] {strides = array<i32: 2, 1>} : memref<960x64xf32, #tpu.memory_space<vmem>>, vector<16x64xf32>
    %258 = arith.maximumf %254, %255 : vector<16x64xf32>
    %259 = arith.maximumf %256, %257 : vector<16x64xf32>
    %260 = arith.maximumf %258, %259 : vector<16x64xf32>
    %cst_151 = arith.constant 0.000000e+00 : f32
    %261 = vector.broadcast %cst_151 : f32 to vector<16x64xf32>
    %262 = arith.select %133, %260, %261 : vector<16x64xi1>, vector<16x64xf32>
    %263 = arith.truncf %262 : vector<16x64xf32> to vector<16x64xbf16>
    %c832 = arith.constant 832 : index
    %c0_152 = arith.constant 0 : index
    %264 = tpu.strided_load %arg7[%c832, %c0_152] {strides = array<i32: 2, 1>} : memref<960x64xf32, #tpu.memory_space<vmem>>, vector<16x64xf32>
    %c833 = arith.constant 833 : index
    %c0_153 = arith.constant 0 : index
    %265 = tpu.strided_load %arg7[%c833, %c0_153] {strides = array<i32: 2, 1>} : memref<960x64xf32, #tpu.memory_space<vmem>>, vector<16x64xf32>
    %c864 = arith.constant 864 : index
    %c0_154 = arith.constant 0 : index
    %266 = tpu.strided_load %arg7[%c864, %c0_154] {strides = array<i32: 2, 1>} : memref<960x64xf32, #tpu.memory_space<vmem>>, vector<16x64xf32>
    %c865 = arith.constant 865 : index
    %c0_155 = arith.constant 0 : index
    %267 = tpu.strided_load %arg7[%c865, %c0_155] {strides = array<i32: 2, 1>} : memref<960x64xf32, #tpu.memory_space<vmem>>, vector<16x64xf32>
    %268 = arith.maximumf %264, %265 : vector<16x64xf32>
    %269 = arith.maximumf %266, %267 : vector<16x64xf32>
    %270 = arith.maximumf %268, %269 : vector<16x64xf32>
    %cst_156 = arith.constant 0.000000e+00 : f32
    %271 = vector.broadcast %cst_156 : f32 to vector<16x64xf32>
    %272 = arith.select %133, %270, %271 : vector<16x64xi1>, vector<16x64xf32>
    %273 = arith.truncf %272 : vector<16x64xf32> to vector<16x64xbf16>
    %c896 = arith.constant 896 : index
    %c0_157 = arith.constant 0 : index
    %274 = tpu.strided_load %arg7[%c896, %c0_157] {strides = array<i32: 2, 1>} : memref<960x64xf32, #tpu.memory_space<vmem>>, vector<16x64xf32>
    %c897 = arith.constant 897 : index
    %c0_158 = arith.constant 0 : index
    %275 = tpu.strided_load %arg7[%c897, %c0_158] {strides = array<i32: 2, 1>} : memref<960x64xf32, #tpu.memory_space<vmem>>, vector<16x64xf32>
    %c928 = arith.constant 928 : index
    %c0_159 = arith.constant 0 : index
    %276 = tpu.strided_load %arg7[%c928, %c0_159] {strides = array<i32: 2, 1>} : memref<960x64xf32, #tpu.memory_space<vmem>>, vector<16x64xf32>
    %c929 = arith.constant 929 : index
    %c0_160 = arith.constant 0 : index
    %277 = tpu.strided_load %arg7[%c929, %c0_160] {strides = array<i32: 2, 1>} : memref<960x64xf32, #tpu.memory_space<vmem>>, vector<16x64xf32>
    %278 = arith.maximumf %274, %275 : vector<16x64xf32>
    %279 = arith.maximumf %276, %277 : vector<16x64xf32>
    %280 = arith.maximumf %278, %279 : vector<16x64xf32>
    %cst_161 = arith.constant 0.000000e+00 : f32
    %281 = vector.broadcast %cst_161 : f32 to vector<16x64xf32>
    %282 = arith.select %133, %280, %281 : vector<16x64xi1>, vector<16x64xf32>
    %283 = arith.truncf %282 : vector<16x64xf32> to vector<16x64xbf16>
    %cst_162 = arith.constant 0.000000e+00 : bf16
    %284 = vector.broadcast %cst_162 : bf16 to vector<16x64xbf16>
    %285 = tpu.concatenate %143, %153, %163, %173, %183, %193, %203, %213, %223, %233, %243, %253, %263, %273, %283, %284 in 0 : vector<16x64xbf16>, vector<16x64xbf16>, vector<16x64xbf16>, vector<16x64xbf16>, vector<16x64xbf16>, vector<16x64xbf16>, vector<16x64xbf16>, vector<16x64xbf16>, vector<16x64xbf16>, vector<16x64xbf16>, vector<16x64xbf16>, vector<16x64xbf16>, vector<16x64xbf16>, vector<16x64xbf16>, vector<16x64xbf16>, vector<16x64xbf16> -> vector<256x64xbf16>
    %c0_163 = arith.constant 0 : index
    %c0_164 = arith.constant 0 : index
    %c0_165 = arith.constant 0 : index
    %286 = vector.load %arg6[%c0_163, %c0_164, %c0_165] : memref<1x256x64xbf16, #tpu.memory_space<vmem>>, vector<1x256x64xbf16>
    %287 = vector.shape_cast %286 : vector<1x256x64xbf16> to vector<256x64xbf16>
    %288 = vector.shape_cast %285 : vector<256x64xbf16> to vector<1x256x64xbf16>
    tpu.vector_store %arg6[%c0_163, %c0_164, %c0_165], %288 {strides = array<i32>} : memref<1x256x64xbf16, #tpu.memory_space<vmem>>, vector<1x256x64xbf16>,
    return
  }
  func.func @transform_0(%arg0: i32) -> (i32, i32, i32) {
    %c0_i32 = arith.constant 0 : i32
    %c0_i32_0 = arith.constant 0 : i32
    %c0_i32_1 = arith.constant 0 : i32
    return %arg0, %c0_i32, %c0_i32_0 : i32, i32, i32
  }
  func.func @transform_1(%arg0: i32) -> (i32, i32, i32) {
    %c0_i32 = arith.constant 0 : i32
    %c0_i32_0 = arith.constant 0 : i32
    %c0_i32_1 = arith.constant 0 : i32
    %c0_i32_2 = arith.constant 0 : i32
    return %c0_i32, %c0_i32_0, %c0_i32_1 : i32, i32, i32
  }
  func.func @transform_2(%arg0: i32) -> (i32, i32) {
    %c0_i32 = arith.constant 0 : i32
    %c0_i32_0 = arith.constant 0 : i32
    %c0_i32_1 = arith.constant 0 : i32
    return %c0_i32, %c0_i32_0 : i32, i32
  }
  func.func @transform_3(%arg0: i32) -> (i32, i32) {
    %c0_i32 = arith.constant 0 : i32
    %c0_i32_0 = arith.constant 0 : i32
    %c0_i32_1 = arith.constant 0 : i32
    return %c0_i32, %c0_i32_0 : i32, i32
  }
  func.func @transform_4(%arg0: i32) -> (i32, i32) {
    %c0_i32 = arith.constant 0 : i32
    %c0_i32_0 = arith.constant 0 : i32
    %c0_i32_1 = arith.constant 0 : i32
    return %c0_i32, %c0_i32_0 : i32, i32
  }
  func.func @transform_5(%arg0: i32) -> (i32, i32, i32) {
    %c0_i32 = arith.constant 0 : i32
    %c0_i32_0 = arith.constant 0 : i32
    %c0_i32_1 = arith.constant 0 : i32
    return %arg0, %c0_i32, %c0_i32_0 : i32, i32, i32
  }
}

module attributes {stable_mosaic.version = 11 : i64} {
  func.func @conv_pool_kernel(%arg0: i32, %arg1: memref<1x56x128xbf16, #tpu.memory_space<vmem>>, %arg2: memref<5x256x256xbf16, #tpu.memory_space<vmem>>, %arg3: memref<1x256xf32, #tpu.memory_space<vmem>>, %arg4: memref<1x256xf32, #tpu.memory_space<vmem>>, %arg5: memref<1x256xf32, #tpu.memory_space<vmem>>, %arg6: memref<1x4x256xbf16, #tpu.memory_space<vmem>>, %arg7: memref<32x256xf32, #tpu.memory_space<vmem>>) attributes {dimension_semantics = [#tpu.dimension_semantics<parallel>], iteration_bounds = array<i64: 2>, scalar_prefetch = 0 : i64, scratch_operands = 1 : i64, tpu.core_type = #tpu.core_type<tc>, window_params = [{transform_indices = @transform_0, window_bounds = array<i64: 1, 56, 128>}, {pipeline_mode = #tpu.pipeline_mode<synchronous>, transform_indices = @transform_1, window_bounds = array<i64: 5, 256, 256>}, {pipeline_mode = #tpu.pipeline_mode<synchronous>, transform_indices = @transform_2, window_bounds = array<i64: 1, 256>}, {pipeline_mode = #tpu.pipeline_mode<synchronous>, transform_indices = @transform_3, window_bounds = array<i64: 1, 256>}, {pipeline_mode = #tpu.pipeline_mode<synchronous>, transform_indices = @transform_4, window_bounds = array<i64: 1, 256>}, {transform_indices = @transform_5, window_bounds = array<i64: 1, 4, 256>}]} {
    %c0 = arith.constant 0 : index
    %c0_0 = arith.constant 0 : index
    %0 = vector.load %arg3[%c0, %c0_0] : memref<1x256xf32, #tpu.memory_space<vmem>>, vector<1x256xf32>
    %c0_1 = arith.constant 0 : index
    %c0_2 = arith.constant 0 : index
    %1 = vector.load %arg4[%c0_1, %c0_2] : memref<1x256xf32, #tpu.memory_space<vmem>>, vector<1x256xf32>
    %c0_3 = arith.constant 0 : index
    %c0_4 = arith.constant 0 : index
    %2 = vector.load %arg5[%c0_3, %c0_4] : memref<1x256xf32, #tpu.memory_space<vmem>>, vector<1x256xf32>
    %cst = arith.constant 0.000000e+00 : f32
    %3 = vector.broadcast %cst : f32 to vector<32x256xf32>
    %c0_5 = arith.constant 0 : index
    %c0_6 = arith.constant 0 : index
    %c0_7 = arith.constant 0 : index
    %4 = vector.load %arg1[%c0_5, %c0_6, %c0_7] : memref<1x56x128xbf16, #tpu.memory_space<vmem>>, vector<1x32x128xbf16>
    %5 = vector.shape_cast %4 : vector<1x32x128xbf16> to vector<32x128xbf16>
    %c0_8 = arith.constant 0 : index
    %c1 = arith.constant 1 : index
    %c0_9 = arith.constant 0 : index
    %6 = vector.load %arg1[%c0_8, %c1, %c0_9] : memref<1x56x128xbf16, #tpu.memory_space<vmem>>, vector<1x32x128xbf16>
    %7 = vector.shape_cast %6 : vector<1x32x128xbf16> to vector<32x128xbf16>
    %8 = tpu.concatenate %5, %7 in 1 : vector<32x128xbf16>, vector<32x128xbf16> -> vector<32x256xbf16>
    %c0_10 = arith.constant 0 : index
    %c0_11 = arith.constant 0 : index
    %c0_12 = arith.constant 0 : index
    %9 = vector.load %arg2[%c0_10, %c0_11, %c0_12] : memref<5x256x256xbf16, #tpu.memory_space<vmem>>, vector<1x256x256xbf16>
    %10 = vector.shape_cast %9 : vector<1x256x256xbf16> to vector<256x256xbf16>
    %cst_13 = arith.constant dense<0.000000e+00> : vector<32x256xf32>
    %11 = tpu.matmul %8, %10, %cst_13 {dimension_numbers = #tpu.dot_dimension_numbers<[1], [0], [0], [1], [0, 0, 1, 1], [], []>} : vector<32x256xbf16>, vector<256x256xbf16>, vector<32x256xf32> -> vector<32x256xf32>
    %12 = arith.addf %3, %11 : vector<32x256xf32>
    %c0_14 = arith.constant 0 : index
    %c2 = arith.constant 2 : index
    %c0_15 = arith.constant 0 : index
    %13 = vector.load %arg1[%c0_14, %c2, %c0_15] : memref<1x56x128xbf16, #tpu.memory_space<vmem>>, vector<1x32x128xbf16>
    %14 = vector.shape_cast %13 : vector<1x32x128xbf16> to vector<32x128xbf16>
    %c0_16 = arith.constant 0 : index
    %c8 = arith.constant 8 : index
    %c0_17 = arith.constant 0 : index
    %15 = vector.load %arg1[%c0_16, %c8, %c0_17] : memref<1x56x128xbf16, #tpu.memory_space<vmem>>, vector<1x32x128xbf16>
    %16 = vector.shape_cast %15 : vector<1x32x128xbf16> to vector<32x128xbf16>
    %17 = tpu.concatenate %14, %16 in 1 : vector<32x128xbf16>, vector<32x128xbf16> -> vector<32x256xbf16>
    %c1_18 = arith.constant 1 : index
    %c0_19 = arith.constant 0 : index
    %c0_20 = arith.constant 0 : index
    %18 = vector.load %arg2[%c1_18, %c0_19, %c0_20] : memref<5x256x256xbf16, #tpu.memory_space<vmem>>, vector<1x256x256xbf16>
    %19 = vector.shape_cast %18 : vector<1x256x256xbf16> to vector<256x256xbf16>
    %cst_21 = arith.constant dense<0.000000e+00> : vector<32x256xf32>
    %20 = tpu.matmul %17, %19, %cst_21 {dimension_numbers = #tpu.dot_dimension_numbers<[1], [0], [0], [1], [0, 0, 1, 1], [], []>} : vector<32x256xbf16>, vector<256x256xbf16>, vector<32x256xf32> -> vector<32x256xf32>
    %21 = arith.addf %12, %20 : vector<32x256xf32>
    %c0_22 = arith.constant 0 : index
    %c9 = arith.constant 9 : index
    %c0_23 = arith.constant 0 : index
    %22 = vector.load %arg1[%c0_22, %c9, %c0_23] : memref<1x56x128xbf16, #tpu.memory_space<vmem>>, vector<1x32x128xbf16>
    %23 = vector.shape_cast %22 : vector<1x32x128xbf16> to vector<32x128xbf16>
    %c0_24 = arith.constant 0 : index
    %c10 = arith.constant 10 : index
    %c0_25 = arith.constant 0 : index
    %24 = vector.load %arg1[%c0_24, %c10, %c0_25] : memref<1x56x128xbf16, #tpu.memory_space<vmem>>, vector<1x32x128xbf16>
    %25 = vector.shape_cast %24 : vector<1x32x128xbf16> to vector<32x128xbf16>
    %26 = tpu.concatenate %23, %25 in 1 : vector<32x128xbf16>, vector<32x128xbf16> -> vector<32x256xbf16>
    %c2_26 = arith.constant 2 : index
    %c0_27 = arith.constant 0 : index
    %c0_28 = arith.constant 0 : index
    %27 = vector.load %arg2[%c2_26, %c0_27, %c0_28] : memref<5x256x256xbf16, #tpu.memory_space<vmem>>, vector<1x256x256xbf16>
    %28 = vector.shape_cast %27 : vector<1x256x256xbf16> to vector<256x256xbf16>
    %cst_29 = arith.constant dense<0.000000e+00> : vector<32x256xf32>
    %29 = tpu.matmul %26, %28, %cst_29 {dimension_numbers = #tpu.dot_dimension_numbers<[1], [0], [0], [1], [0, 0, 1, 1], [], []>} : vector<32x256xbf16>, vector<256x256xbf16>, vector<32x256xf32> -> vector<32x256xf32>
    %30 = arith.addf %21, %29 : vector<32x256xf32>
    %c0_30 = arith.constant 0 : index
    %c16 = arith.constant 16 : index
    %c0_31 = arith.constant 0 : index
    %31 = vector.load %arg1[%c0_30, %c16, %c0_31] : memref<1x56x128xbf16, #tpu.memory_space<vmem>>, vector<1x32x128xbf16>
    %32 = vector.shape_cast %31 : vector<1x32x128xbf16> to vector<32x128xbf16>
    %c0_32 = arith.constant 0 : index
    %c17 = arith.constant 17 : index
    %c0_33 = arith.constant 0 : index
    %33 = vector.load %arg1[%c0_32, %c17, %c0_33] : memref<1x56x128xbf16, #tpu.memory_space<vmem>>, vector<1x32x128xbf16>
    %34 = vector.shape_cast %33 : vector<1x32x128xbf16> to vector<32x128xbf16>
    %35 = tpu.concatenate %32, %34 in 1 : vector<32x128xbf16>, vector<32x128xbf16> -> vector<32x256xbf16>
    %c3 = arith.constant 3 : index
    %c0_34 = arith.constant 0 : index
    %c0_35 = arith.constant 0 : index
    %36 = vector.load %arg2[%c3, %c0_34, %c0_35] : memref<5x256x256xbf16, #tpu.memory_space<vmem>>, vector<1x256x256xbf16>
    %37 = vector.shape_cast %36 : vector<1x256x256xbf16> to vector<256x256xbf16>
    %cst_36 = arith.constant dense<0.000000e+00> : vector<32x256xf32>
    %38 = tpu.matmul %35, %37, %cst_36 {dimension_numbers = #tpu.dot_dimension_numbers<[1], [0], [0], [1], [0, 0, 1, 1], [], []>} : vector<32x256xbf16>, vector<256x256xbf16>, vector<32x256xf32> -> vector<32x256xf32>
    %39 = arith.addf %30, %38 : vector<32x256xf32>
    %c0_37 = arith.constant 0 : index
    %c18 = arith.constant 18 : index
    %c0_38 = arith.constant 0 : index
    %40 = vector.load %arg1[%c0_37, %c18, %c0_38] : memref<1x56x128xbf16, #tpu.memory_space<vmem>>, vector<1x32x128xbf16>
    %41 = vector.shape_cast %40 : vector<1x32x128xbf16> to vector<32x128xbf16>
    %c0_39 = arith.constant 0 : index
    %c0_40 = arith.constant 0 : index
    %c0_41 = arith.constant 0 : index
    %42 = vector.load %arg1[%c0_39, %c0_40, %c0_41] : memref<1x56x128xbf16, #tpu.memory_space<vmem>>, vector<1x32x128xbf16>
    %43 = vector.shape_cast %42 : vector<1x32x128xbf16> to vector<32x128xbf16>
    %44 = tpu.concatenate %41, %43 in 1 : vector<32x128xbf16>, vector<32x128xbf16> -> vector<32x256xbf16>
    %c4 = arith.constant 4 : index
    %c0_42 = arith.constant 0 : index
    %c0_43 = arith.constant 0 : index
    %45 = vector.load %arg2[%c4, %c0_42, %c0_43] : memref<5x256x256xbf16, #tpu.memory_space<vmem>>, vector<1x256x256xbf16>
    %46 = vector.shape_cast %45 : vector<1x256x256xbf16> to vector<256x256xbf16>
    %cst_44 = arith.constant dense<0.000000e+00> : vector<32x256xf32>
    %47 = tpu.matmul %44, %46, %cst_44 {dimension_numbers = #tpu.dot_dimension_numbers<[1], [0], [0], [1], [0, 0, 1, 1], [], []>} : vector<32x256xbf16>, vector<256x256xbf16>, vector<32x256xf32> -> vector<32x256xf32>
    %48 = arith.addf %39, %47 : vector<32x256xf32>
    %49 = vector.broadcast %0 : vector<1x256xf32> to vector<32x256xf32>
    %50 = arith.addf %48, %49 : vector<32x256xf32>
    %cst_45 = arith.constant 0.000000e+00 : f32
    %51 = vector.broadcast %cst_45 : f32 to vector<32x256xf32>
    %52 = arith.maximumf %50, %51 : vector<32x256xf32>
    %53 = vector.broadcast %1 : vector<1x256xf32> to vector<32x256xf32>
    %54 = arith.mulf %52, %53 : vector<32x256xf32>
    %55 = vector.broadcast %2 : vector<1x256xf32> to vector<32x256xf32>
    %56 = arith.addf %54, %55 : vector<32x256xf32>
    %c0_46 = arith.constant 0 : index
    %c0_47 = arith.constant 0 : index
    %57 = vector.load %arg7[%c0_46, %c0_47] : memref<32x256xf32, #tpu.memory_space<vmem>>, vector<32x256xf32>
    tpu.vector_store %arg7[%c0_46, %c0_47], %56 {strides = array<i32>} : memref<32x256xf32, #tpu.memory_space<vmem>>, vector<32x256xf32>,
    %c0_48 = arith.constant 0 : index
    %c0_49 = arith.constant 0 : index
    %58 = vector.load %arg7[%c0_48, %c0_49] : memref<32x256xf32, #tpu.memory_space<vmem>>, vector<1x256xf32>
    %c1_50 = arith.constant 1 : index
    %c0_51 = arith.constant 0 : index
    %59 = vector.load %arg7[%c1_50, %c0_51] : memref<32x256xf32, #tpu.memory_space<vmem>>, vector<1x256xf32>
    %60 = arith.maximumf %58, %59 : vector<1x256xf32>
    %c8_52 = arith.constant 8 : index
    %c0_53 = arith.constant 0 : index
    %61 = vector.load %arg7[%c8_52, %c0_53] : memref<32x256xf32, #tpu.memory_space<vmem>>, vector<1x256xf32>
    %c9_54 = arith.constant 9 : index
    %c0_55 = arith.constant 0 : index
    %62 = vector.load %arg7[%c9_54, %c0_55] : memref<32x256xf32, #tpu.memory_space<vmem>>, vector<1x256xf32>
    %63 = arith.maximumf %61, %62 : vector<1x256xf32>
    %64 = arith.maximumf %60, %63 : vector<1x256xf32>
    %c2_56 = arith.constant 2 : index
    %c0_57 = arith.constant 0 : index
    %65 = vector.load %arg7[%c2_56, %c0_57] : memref<32x256xf32, #tpu.memory_space<vmem>>, vector<1x256xf32>
    %c3_58 = arith.constant 3 : index
    %c0_59 = arith.constant 0 : index
    %66 = vector.load %arg7[%c3_58, %c0_59] : memref<32x256xf32, #tpu.memory_space<vmem>>, vector<1x256xf32>
    %67 = arith.maximumf %65, %66 : vector<1x256xf32>
    %c10_60 = arith.constant 10 : index
    %c0_61 = arith.constant 0 : index
    %68 = vector.load %arg7[%c10_60, %c0_61] : memref<32x256xf32, #tpu.memory_space<vmem>>, vector<1x256xf32>
    %c11 = arith.constant 11 : index
    %c0_62 = arith.constant 0 : index
    %69 = vector.load %arg7[%c11, %c0_62] : memref<32x256xf32, #tpu.memory_space<vmem>>, vector<1x256xf32>
    %70 = arith.maximumf %68, %69 : vector<1x256xf32>
    %71 = arith.maximumf %67, %70 : vector<1x256xf32>
    %c16_63 = arith.constant 16 : index
    %c0_64 = arith.constant 0 : index
    %72 = vector.load %arg7[%c16_63, %c0_64] : memref<32x256xf32, #tpu.memory_space<vmem>>, vector<1x256xf32>
    %c17_65 = arith.constant 17 : index
    %c0_66 = arith.constant 0 : index
    %73 = vector.load %arg7[%c17_65, %c0_66] : memref<32x256xf32, #tpu.memory_space<vmem>>, vector<1x256xf32>
    %74 = arith.maximumf %72, %73 : vector<1x256xf32>
    %c24 = arith.constant 24 : index
    %c0_67 = arith.constant 0 : index
    %75 = vector.load %arg7[%c24, %c0_67] : memref<32x256xf32, #tpu.memory_space<vmem>>, vector<1x256xf32>
    %c25 = arith.constant 25 : index
    %c0_68 = arith.constant 0 : index
    %76 = vector.load %arg7[%c25, %c0_68] : memref<32x256xf32, #tpu.memory_space<vmem>>, vector<1x256xf32>
    %77 = arith.maximumf %75, %76 : vector<1x256xf32>
    %78 = arith.maximumf %74, %77 : vector<1x256xf32>
    %c18_69 = arith.constant 18 : index
    %c0_70 = arith.constant 0 : index
    %79 = vector.load %arg7[%c18_69, %c0_70] : memref<32x256xf32, #tpu.memory_space<vmem>>, vector<1x256xf32>
    %c19 = arith.constant 19 : index
    %c0_71 = arith.constant 0 : index
    %80 = vector.load %arg7[%c19, %c0_71] : memref<32x256xf32, #tpu.memory_space<vmem>>, vector<1x256xf32>
    %81 = arith.maximumf %79, %80 : vector<1x256xf32>
    %c26 = arith.constant 26 : index
    %c0_72 = arith.constant 0 : index
    %82 = vector.load %arg7[%c26, %c0_72] : memref<32x256xf32, #tpu.memory_space<vmem>>, vector<1x256xf32>
    %c27 = arith.constant 27 : index
    %c0_73 = arith.constant 0 : index
    %83 = vector.load %arg7[%c27, %c0_73] : memref<32x256xf32, #tpu.memory_space<vmem>>, vector<1x256xf32>
    %84 = arith.maximumf %82, %83 : vector<1x256xf32>
    %85 = arith.maximumf %81, %84 : vector<1x256xf32>
    %86 = tpu.concatenate %64, %71, %78, %85 in 0 : vector<1x256xf32>, vector<1x256xf32>, vector<1x256xf32>, vector<1x256xf32> -> vector<4x256xf32>
    %87 = arith.truncf %86 : vector<4x256xf32> to vector<4x256xbf16>
    %c0_74 = arith.constant 0 : index
    %c0_75 = arith.constant 0 : index
    %c0_76 = arith.constant 0 : index
    %88 = vector.load %arg6[%c0_74, %c0_75, %c0_76] : memref<1x4x256xbf16, #tpu.memory_space<vmem>>, vector<1x4x256xbf16>
    %89 = vector.shape_cast %88 : vector<1x4x256xbf16> to vector<4x256xbf16>
    %90 = vector.shape_cast %87 : vector<4x256xbf16> to vector<1x4x256xbf16>
    tpu.vector_store %arg6[%c0_74, %c0_75, %c0_76], %90 {strides = array<i32>} : memref<1x4x256xbf16, #tpu.memory_space<vmem>>, vector<1x4x256xbf16>,
    return
  }
  func.func @transform_0(%arg0: i32) -> (i32, i32, i32) {
    %c0_i32 = arith.constant 0 : i32
    %c0_i32_0 = arith.constant 0 : i32
    %c0_i32_1 = arith.constant 0 : i32
    return %arg0, %c0_i32, %c0_i32_0 : i32, i32, i32
  }
  func.func @transform_1(%arg0: i32) -> (i32, i32, i32) {
    %c0_i32 = arith.constant 0 : i32
    %c0_i32_0 = arith.constant 0 : i32
    %c0_i32_1 = arith.constant 0 : i32
    %c0_i32_2 = arith.constant 0 : i32
    return %c0_i32, %c0_i32_0, %c0_i32_1 : i32, i32, i32
  }
  func.func @transform_2(%arg0: i32) -> (i32, i32) {
    %c0_i32 = arith.constant 0 : i32
    %c0_i32_0 = arith.constant 0 : i32
    %c0_i32_1 = arith.constant 0 : i32
    return %c0_i32, %c0_i32_0 : i32, i32
  }
  func.func @transform_3(%arg0: i32) -> (i32, i32) {
    %c0_i32 = arith.constant 0 : i32
    %c0_i32_0 = arith.constant 0 : i32
    %c0_i32_1 = arith.constant 0 : i32
    return %c0_i32, %c0_i32_0 : i32, i32
  }
  func.func @transform_4(%arg0: i32) -> (i32, i32) {
    %c0_i32 = arith.constant 0 : i32
    %c0_i32_0 = arith.constant 0 : i32
    %c0_i32_1 = arith.constant 0 : i32
    return %c0_i32, %c0_i32_0 : i32, i32
  }
  func.func @transform_5(%arg0: i32) -> (i32, i32, i32) {
    %c0_i32 = arith.constant 0 : i32
    %c0_i32_0 = arith.constant 0 : i32
    %c0_i32_1 = arith.constant 0 : i32
    return %arg0, %c0_i32, %c0_i32_0 : i32, i32, i32
  }
}

module attributes {stable_mosaic.version = 11 : i64} {
  func.func @mlp_kernel(%arg0: i32, %arg1: memref<8x4x256xbf16, #tpu.memory_space<vmem>>, %arg2: memref<4x256x384xbf16, #tpu.memory_space<vmem>>, %arg3: memref<1x384xf32, #tpu.memory_space<vmem>>, %arg4: memref<384x192xbf16, #tpu.memory_space<vmem>>, %arg5: memref<1x192xf32, #tpu.memory_space<vmem>>, %arg6: memref<192x128xbf16, #tpu.memory_space<vmem>>, %arg7: memref<8x128xf32, #tpu.memory_space<vmem>>) attributes {dimension_semantics = [#tpu.dimension_semantics<parallel>], iteration_bounds = array<i64: 1>, scalar_prefetch = 0 : i64, scratch_operands = 0 : i64, tpu.core_type = #tpu.core_type<tc>, window_params = [{transform_indices = @transform_0, window_bounds = array<i64: 8, 4, 256>}, {pipeline_mode = #tpu.pipeline_mode<synchronous>, transform_indices = @transform_1, window_bounds = array<i64: 4, 256, 384>}, {pipeline_mode = #tpu.pipeline_mode<synchronous>, transform_indices = @transform_2, window_bounds = array<i64: 1, 384>}, {pipeline_mode = #tpu.pipeline_mode<synchronous>, transform_indices = @transform_3, window_bounds = array<i64: 384, 192>}, {pipeline_mode = #tpu.pipeline_mode<synchronous>, transform_indices = @transform_4, window_bounds = array<i64: 1, 192>}, {pipeline_mode = #tpu.pipeline_mode<synchronous>, transform_indices = @transform_5, window_bounds = array<i64: 192, 128>}, {transform_indices = @transform_6, window_bounds = array<i64: 8, 128>}]} {
    %c0 = arith.constant 0 : index
    %c0_0 = arith.constant 0 : index
    %c0_1 = arith.constant 0 : index
    %0 = vector.load %arg1[%c0, %c0_0, %c0_1] : memref<8x4x256xbf16, #tpu.memory_space<vmem>>, vector<8x1x256xbf16>
    %1 = vector.shape_cast %0 : vector<8x1x256xbf16> to vector<8x256xbf16>
    %c0_2 = arith.constant 0 : index
    %c0_3 = arith.constant 0 : index
    %c0_4 = arith.constant 0 : index
    %2 = vector.load %arg2[%c0_2, %c0_3, %c0_4] : memref<4x256x384xbf16, #tpu.memory_space<vmem>>, vector<1x256x384xbf16>
    %3 = vector.shape_cast %2 : vector<1x256x384xbf16> to vector<256x384xbf16>
    %cst = arith.constant dense<0.000000e+00> : vector<8x384xf32>
    %4 = tpu.matmul %1, %3, %cst {dimension_numbers = #tpu.dot_dimension_numbers<[1], [0], [0], [1], [0, 0, 1, 1], [], []>} : vector<8x256xbf16>, vector<256x384xbf16>, vector<8x384xf32> -> vector<8x384xf32>
    %c0_5 = arith.constant 0 : index
    %c1 = arith.constant 1 : index
    %c0_6 = arith.constant 0 : index
    %5 = vector.load %arg1[%c0_5, %c1, %c0_6] : memref<8x4x256xbf16, #tpu.memory_space<vmem>>, vector<8x1x256xbf16>
    %6 = vector.shape_cast %5 : vector<8x1x256xbf16> to vector<8x256xbf16>
    %c1_7 = arith.constant 1 : index
    %c0_8 = arith.constant 0 : index
    %c0_9 = arith.constant 0 : index
    %7 = vector.load %arg2[%c1_7, %c0_8, %c0_9] : memref<4x256x384xbf16, #tpu.memory_space<vmem>>, vector<1x256x384xbf16>
    %8 = vector.shape_cast %7 : vector<1x256x384xbf16> to vector<256x384xbf16>
    %cst_10 = arith.constant dense<0.000000e+00> : vector<8x384xf32>
    %9 = tpu.matmul %6, %8, %cst_10 {dimension_numbers = #tpu.dot_dimension_numbers<[1], [0], [0], [1], [0, 0, 1, 1], [], []>} : vector<8x256xbf16>, vector<256x384xbf16>, vector<8x384xf32> -> vector<8x384xf32>
    %10 = arith.addf %4, %9 : vector<8x384xf32>
    %c0_11 = arith.constant 0 : index
    %c2 = arith.constant 2 : index
    %c0_12 = arith.constant 0 : index
    %11 = vector.load %arg1[%c0_11, %c2, %c0_12] : memref<8x4x256xbf16, #tpu.memory_space<vmem>>, vector<8x1x256xbf16>
    %12 = vector.shape_cast %11 : vector<8x1x256xbf16> to vector<8x256xbf16>
    %c2_13 = arith.constant 2 : index
    %c0_14 = arith.constant 0 : index
    %c0_15 = arith.constant 0 : index
    %13 = vector.load %arg2[%c2_13, %c0_14, %c0_15] : memref<4x256x384xbf16, #tpu.memory_space<vmem>>, vector<1x256x384xbf16>
    %14 = vector.shape_cast %13 : vector<1x256x384xbf16> to vector<256x384xbf16>
    %cst_16 = arith.constant dense<0.000000e+00> : vector<8x384xf32>
    %15 = tpu.matmul %12, %14, %cst_16 {dimension_numbers = #tpu.dot_dimension_numbers<[1], [0], [0], [1], [0, 0, 1, 1], [], []>} : vector<8x256xbf16>, vector<256x384xbf16>, vector<8x384xf32> -> vector<8x384xf32>
    %16 = arith.addf %10, %15 : vector<8x384xf32>
    %c0_17 = arith.constant 0 : index
    %c3 = arith.constant 3 : index
    %c0_18 = arith.constant 0 : index
    %17 = vector.load %arg1[%c0_17, %c3, %c0_18] : memref<8x4x256xbf16, #tpu.memory_space<vmem>>, vector<8x1x256xbf16>
    %18 = vector.shape_cast %17 : vector<8x1x256xbf16> to vector<8x256xbf16>
    %c3_19 = arith.constant 3 : index
    %c0_20 = arith.constant 0 : index
    %c0_21 = arith.constant 0 : index
    %19 = vector.load %arg2[%c3_19, %c0_20, %c0_21] : memref<4x256x384xbf16, #tpu.memory_space<vmem>>, vector<1x256x384xbf16>
    %20 = vector.shape_cast %19 : vector<1x256x384xbf16> to vector<256x384xbf16>
    %cst_22 = arith.constant dense<0.000000e+00> : vector<8x384xf32>
    %21 = tpu.matmul %18, %20, %cst_22 {dimension_numbers = #tpu.dot_dimension_numbers<[1], [0], [0], [1], [0, 0, 1, 1], [], []>} : vector<8x256xbf16>, vector<256x384xbf16>, vector<8x384xf32> -> vector<8x384xf32>
    %22 = arith.addf %16, %21 : vector<8x384xf32>
    %c0_23 = arith.constant 0 : index
    %c0_24 = arith.constant 0 : index
    %23 = vector.load %arg3[%c0_23, %c0_24] : memref<1x384xf32, #tpu.memory_space<vmem>>, vector<1x384xf32>
    %24 = vector.broadcast %23 : vector<1x384xf32> to vector<8x384xf32>
    %25 = arith.addf %22, %24 : vector<8x384xf32>
    %cst_25 = arith.constant 0.000000e+00 : f32
    %26 = vector.broadcast %cst_25 : f32 to vector<8x384xf32>
    %27 = arith.maximumf %25, %26 : vector<8x384xf32>
    %28 = arith.truncf %27 : vector<8x384xf32> to vector<8x384xbf16>
    %c0_26 = arith.constant 0 : index
    %c0_27 = arith.constant 0 : index
    %29 = vector.load %arg4[%c0_26, %c0_27] : memref<384x192xbf16, #tpu.memory_space<vmem>>, vector<384x192xbf16>
    %cst_28 = arith.constant dense<0.000000e+00> : vector<8x192xf32>
    %30 = tpu.matmul %28, %29, %cst_28 {dimension_numbers = #tpu.dot_dimension_numbers<[1], [0], [0], [1], [0, 0, 1, 1], [], []>} : vector<8x384xbf16>, vector<384x192xbf16>, vector<8x192xf32> -> vector<8x192xf32>
    %c0_29 = arith.constant 0 : index
    %c0_30 = arith.constant 0 : index
    %31 = vector.load %arg5[%c0_29, %c0_30] : memref<1x192xf32, #tpu.memory_space<vmem>>, vector<1x192xf32>
    %32 = vector.broadcast %31 : vector<1x192xf32> to vector<8x192xf32>
    %33 = arith.addf %30, %32 : vector<8x192xf32>
    %cst_31 = arith.constant 0.000000e+00 : f32
    %34 = vector.broadcast %cst_31 : f32 to vector<8x192xf32>
    %35 = arith.maximumf %33, %34 : vector<8x192xf32>
    %36 = arith.truncf %35 : vector<8x192xf32> to vector<8x192xbf16>
    %c0_32 = arith.constant 0 : index
    %c0_33 = arith.constant 0 : index
    %37 = vector.load %arg6[%c0_32, %c0_33] : memref<192x128xbf16, #tpu.memory_space<vmem>>, vector<192x128xbf16>
    %cst_34 = arith.constant dense<0.000000e+00> : vector<8x128xf32>
    %38 = tpu.matmul %36, %37, %cst_34 {dimension_numbers = #tpu.dot_dimension_numbers<[1], [0], [0], [1], [0, 0, 1, 1], [], []>} : vector<8x192xbf16>, vector<192x128xbf16>, vector<8x128xf32> -> vector<8x128xf32>
    %c0_35 = arith.constant 0 : index
    %c0_36 = arith.constant 0 : index
    %39 = vector.load %arg7[%c0_35, %c0_36] : memref<8x128xf32, #tpu.memory_space<vmem>>, vector<8x128xf32>
    tpu.vector_store %arg7[%c0_35, %c0_36], %38 {strides = array<i32>} : memref<8x128xf32, #tpu.memory_space<vmem>>, vector<8x128xf32>,
    return
  }
  func.func @transform_0(%arg0: i32) -> (i32, i32, i32) {
    %c0_i32 = arith.constant 0 : i32
    %c0_i32_0 = arith.constant 0 : i32
    %c0_i32_1 = arith.constant 0 : i32
    return %arg0, %c0_i32, %c0_i32_0 : i32, i32, i32
  }
  func.func @transform_1(%arg0: i32) -> (i32, i32, i32) {
    %c0_i32 = arith.constant 0 : i32
    %c0_i32_0 = arith.constant 0 : i32
    %c0_i32_1 = arith.constant 0 : i32
    %c0_i32_2 = arith.constant 0 : i32
    return %c0_i32, %c0_i32_0, %c0_i32_1 : i32, i32, i32
  }
  func.func @transform_2(%arg0: i32) -> (i32, i32) {
    %c0_i32 = arith.constant 0 : i32
    %c0_i32_0 = arith.constant 0 : i32
    %c0_i32_1 = arith.constant 0 : i32
    return %c0_i32, %c0_i32_0 : i32, i32
  }
  func.func @transform_3(%arg0: i32) -> (i32, i32) {
    %c0_i32 = arith.constant 0 : i32
    %c0_i32_0 = arith.constant 0 : i32
    %c0_i32_1 = arith.constant 0 : i32
    return %c0_i32, %c0_i32_0 : i32, i32
  }
  func.func @transform_4(%arg0: i32) -> (i32, i32) {
    %c0_i32 = arith.constant 0 : i32
    %c0_i32_0 = arith.constant 0 : i32
    %c0_i32_1 = arith.constant 0 : i32
    return %c0_i32, %c0_i32_0 : i32, i32
  }
  func.func @transform_5(%arg0: i32) -> (i32, i32) {
    %c0_i32 = arith.constant 0 : i32
    %c0_i32_0 = arith.constant 0 : i32
    %c0_i32_1 = arith.constant 0 : i32
    return %c0_i32, %c0_i32_0 : i32, i32
  }
  func.func @transform_6(%arg0: i32) -> (i32, i32) {
    %c0_i32 = arith.constant 0 : i32
    %c0_i32_0 = arith.constant 0 : i32
    return %arg0, %c0_i32 : i32, i32
  }
}

</mosaic_0001>

<bundles_post_ra>
// kernel: tf_cifar_forward.6
= control target key start
LH: loop header
LB: loop body
LE: loop exit
PB: predicated region body
PF: predicated region fallthrough
CT: control target
= control target key end

     0   :  { %s3030_s18 = smov 0   ;;  %s4265_s0 = inlined_call_operand.vmem [shape: bf16[2,56,128], index: 0, kind: input, shape index: {}]   ;;  %s4266_s1 = inlined_call_operand.vmem [shape: bf16[5,256,256], index: 1, kind: input, shape index: {}]   ;;  %s4267_s2 = inlined_call_operand.vmem [shape: f32[1,256], index: 2, kind: input, shape index: {}]   ;;  %s4268_s3 = inlined_call_operand.vmem [shape: f32[1,256], index: 3, kind: input, shape index: {}]   ;;  %s4269_s4 = inlined_call_operand.vmem [shape: f32[1,256], index: 4, kind: input, shape index: {}]   ;;  %s4270_s5 = inlined_call_operand.vmem [shape: bf16[2,4,256], index: 5, kind: output, shape index: {}]  }
   0x1 LB: > { %s2001_s19 = sadd.s32 4294967295, %s2998_s18   ;;  %p2005_p0 = scmp.ge.s32.totalorder %s2998_s18, 1  ;;  %s2998_s18 = sphi %s3030_s18, %s15_s18  }
   0x2   : > { %p187_p1 = scmp.lt.s32.totalorder %s2998_s18, 3 }
   0x4   : > { %p188_p2 = pnand %p2005_p0, %p187_p1 }
   0x5   : > { %p215_p3 = scmp.lt.s32.totalorder (!%p188_p2), %s2001_s19, 1 }
   0x6   : > { %191 = sbr.rel (%p188_p2) target bundleno = 367 (0x16f), region = 40 }
   0xb   : > { %v2099_v0 = vld [vmem:[%s4266_s1 + $0x170] sm:$0xf]  ;;  %v2831_v1 = vld [vmem:[%s4266_s1 + $0x174] sm:$0xf0]  ;;  %v2830_v5 = vld [vmem:[%s4266_s1 + $0x174] sm:$0xf] }
   0xc   : > { %v2163_v2 = vld [vmem:[%s4266_s1 + $0x1f0] sm:$0xf]  ;;  %v2100_v3 = vor.u32 %v2831_v1, %v2099_v0  ;;  %v2847_v4 = vld [vmem:[%s4266_s1 + $0x1f4] sm:$0xf0]  ;;  %v2101_v6 = vld [vmem:[%s4266_s1 + $0x178] sm:$0xf0] }
   0xd   : > { %v2164_v7 = vor.u32 %v2847_v4, %v2163_v2  ;;  %v2104_v8 = vor.u32 %v2830_v5, %v2101_v6  ;;  %v2846_v9 = vld [vmem:[%s4266_s1 + $0x1f4] sm:$0xf]  ;;  %v2165_v10 = vld [vmem:[%s4266_s1 + $0x1f8] sm:$0xf0]  ;;  %v2091_v11 = vld [vmem:[%s4266_s1 + $0x160] sm:$0xf] }
   0xe   : > { %524 = vmatpush.bf16.msra.mxu0 %v2100_v3  ;;  %v2168_v12 = vor.u32 %v2846_v9, %v2165_v10  ;;  %v2829_v13 = vld [vmem:[%s4266_s1 + $0x164] sm:$0xf0]  ;;  %v2155_v14 = vld [vmem:[%s4266_s1 + $0x1e0] sm:$0xf]  ;;  %v2828_v18 = vld [vmem:[%s4266_s1 + $0x164] sm:$0xf] }
   0xf   : > { %v2845_v15 = vld [vmem:[%s4266_s1 + $0x1e4] sm:$0xf0]  ;;  %543 = vmatpush.bf16.msra.mxu1 %v2164_v7  ;;  %562 = vmatpush.bf16.msra.mxu2 %v2104_v8  ;;  %v2092_v16 = vor.u32 %v2829_v13, %v2091_v11  ;;  %v2093_v19 = vld [vmem:[%s4266_s1 + $0x168] sm:$0xf0]  ;;  %v2844_v20 = vld [vmem:[%s4266_s1 + $0x1e4] sm:$0xf] }
  0x10   : > { %v2156_v17 = vor.u32 %v2845_v15, %v2155_v14  ;;  %581 = vmatpush.bf16.msra.mxu3 %v2168_v12  ;;  %v2096_v21 = vor.u32 %v2828_v18, %v2093_v19  ;;  %v2157_v22 = vld [vmem:[%s4266_s1 + $0x1e8] sm:$0xf0]  ;;  %v2083_v23 = vld [vmem:[%s4266_s1 + $0x150] sm:$0xf]  ;;  %v2827_v24 = vld [vmem:[%s4266_s1 + $0x154] sm:$0xf0] }
  0x11   : > { %v2160_v25 = vor.u32 %v2844_v20, %v2157_v22  ;;  %v2147_v26 = vld [vmem:[%s4266_s1 + $0x1d0] sm:$0xf]  ;;  %v2843_v27 = vld [vmem:[%s4266_s1 + $0x1d4] sm:$0xf0]  ;;  %v2826_v28 = vld [vmem:[%s4266_s1 + $0x154] sm:$0xf]  ;;  %v2084_v29 = vor.u32 %v2827_v24, %v2083_v23 }
  0x12   : > { %525 = vmatpush.bf16.msra.mxu0 %v2092_v16  ;;  %v2085_v30 = vld [vmem:[%s4266_s1 + $0x158] sm:$0xf0]  ;;  %v2842_v31 = vld [vmem:[%s4266_s1 + $0x1d4] sm:$0xf]  ;;  %v2148_v33 = vor.u32 %v2843_v27, %v2147_v26  ;;  %v2075_v35 = vld [vmem:[%s4266_s1 + $0x140] sm:$0xf] }
  0x13   : > { %v2149_v32 = vld [vmem:[%s4266_s1 + $0x1d8] sm:$0xf0]  ;;  %544 = vmatpush.bf16.msra.mxu1 %v2156_v17  ;;  %563 = vmatpush.bf16.msra.mxu2 %v2096_v21  ;;  %v2088_v34 = vor.u32 %v2826_v28, %v2085_v30  ;;  %v2825_v36 = vld [vmem:[%s4266_s1 + $0x144] sm:$0xf0]  ;;  %v2139_v37 = vld [vmem:[%s4266_s1 + $0x1c0] sm:$0xf] }
  0x14   : > { %582 = vmatpush.bf16.msra.mxu3 %v2160_v25  ;;  %v2152_v38 = vor.u32 %v2842_v31, %v2149_v32  ;;  %v2841_v39 = vld [vmem:[%s4266_s1 + $0x1c4] sm:$0xf0]  ;;  %v2824_v40 = vld [vmem:[%s4266_s1 + $0x144] sm:$0xf]  ;;  %v2077_v41 = vld [vmem:[%s4266_s1 + $0x148] sm:$0xf0]  ;;  %v2076_v44 = vor.u32 %v2825_v36, %v2075_v35 }
  0x15   : > { %v2840_v42 = vld [vmem:[%s4266_s1 + $0x1c4] sm:$0xf]  ;;  %v2141_v43 = vld [vmem:[%s4266_s1 + $0x1c8] sm:$0xf0]  ;;  %v2140_v45 = vor.u32 %v2841_v39, %v2139_v37  ;;  %v2080_v46 = vor.u32 %v2824_v40, %v2077_v41  ;;  %v2067_v47 = vld [vmem:[%s4266_s1 + $0x130] sm:$0xf] }
  0x16   : > { %526 = vmatpush.bf16.msra.mxu0 %v2084_v29  ;;  %v2823_v48 = vld [vmem:[%s4266_s1 + $0x134] sm:$0xf0]  ;;  %v2131_v49 = vld [vmem:[%s4266_s1 + $0x1b0] sm:$0xf]  ;;  %v2144_v50 = vor.u32 %v2840_v42, %v2141_v43  ;;  %v2822_v52 = vld [vmem:[%s4266_s1 + $0x134] sm:$0xf] }
  0x17   : > { %545 = vmatpush.bf16.msra.mxu1 %v2148_v33  ;;  %564 = vmatpush.bf16.msra.mxu2 %v2088_v34  ;;  %v2839_v51 = vld [vmem:[%s4266_s1 + $0x1b4] sm:$0xf0]  ;;  %v2069_v53 = vld [vmem:[%s4266_s1 + $0x138] sm:$0xf0]  ;;  %v2838_v54 = vld [vmem:[%s4266_s1 + $0x1b4] sm:$0xf]  ;;  %v2068_v56 = vor.u32 %v2823_v48, %v2067_v47 }
  0x18   : > { %583 = vmatpush.bf16.msra.mxu3 %v2152_v38  ;;  %v2133_v55 = vld [vmem:[%s4266_s1 + $0x1b8] sm:$0xf0]  ;;  %v2132_v57 = vor.u32 %v2839_v51, %v2131_v49  ;;  %v2072_v58 = vor.u32 %v2822_v52, %v2069_v53  ;;  %v2059_v59 = vld [vmem:[%s4266_s1 + $0x120] sm:$0xf]  ;;  %v2821_v60 = vld [vmem:[%s4266_s1 + $0x124] sm:$0xf0] }
  0x19   : > { %v2123_v61 = vld [vmem:[%s4266_s1 + $0x1a0] sm:$0xf]  ;;  %v2136_v62 = vor.u32 %v2838_v54, %v2133_v55  ;;  %v2837_v63 = vld [vmem:[%s4266_s1 + $0x1a4] sm:$0xf0]  ;;  %v2820_v0 = vld [vmem:[%s4266_s1 + $0x124] sm:$0xf]  ;;  %v2060_v4 = vor.u32 %v2821_v60, %v2059_v59 }
  0x1a   : > { %527 = vmatpush.bf16.msra.mxu0 %v2076_v44  ;;  %v2061_v1 = vld [vmem:[%s4266_s1 + $0x128] sm:$0xf0]  ;;  %v2836_v2 = vld [vmem:[%s4266_s1 + $0x1a4] sm:$0xf]  ;;  %v2051_v5 = vld [vmem:[%s4266_s1 + $0x110] sm:$0xf]  ;;  %v2124_v7 = vor.u32 %v2837_v63, %v2123_v61 }
  0x1b   : > { %546 = vmatpush.bf16.msra.mxu1 %v2140_v45  ;;  %565 = vmatpush.bf16.msra.mxu2 %v2080_v46  ;;  %v2125_v3 = vld [vmem:[%s4266_s1 + $0x1a8] sm:$0xf0]  ;;  %v2819_v6 = vld [vmem:[%s4266_s1 + $0x114] sm:$0xf0]  ;;  %v2064_v8 = vor.u32 %v2820_v0, %v2061_v1  ;;  %v2115_v9 = vld [vmem:[%s4266_s1 + $0x190] sm:$0xf] }
  0x1c   : > { %584 = vmatpush.bf16.msra.mxu3 %v2144_v50  ;;  %v2835_v10 = vld [vmem:[%s4266_s1 + $0x194] sm:$0xf0]  ;;  %v2818_v11 = vld [vmem:[%s4266_s1 + $0x114] sm:$0xf]  ;;  %v2128_v12 = vor.u32 %v2836_v2, %v2125_v3  ;;  %v2053_v13 = vld [vmem:[%s4266_s1 + $0x118] sm:$0xf0]  ;;  %v2052_v18 = vor.u32 %v2819_v6, %v2051_v5 }
  0x1d   : > { %v2834_v14 = vld [vmem:[%s4266_s1 + $0x194] sm:$0xf]  ;;  %v2117_v15 = vld [vmem:[%s4266_s1 + $0x198] sm:$0xf0]  ;;  %v2043_v16 = vld [vmem:[%s4266_s1 + $0x100] sm:$0xf]  ;;  %v2116_v22 = vor.u32 %v2835_v10, %v2115_v9  ;;  %v2056_v23 = vor.u32 %v2818_v11, %v2053_v13 }
  0x1e   : > { %528 = vmatpush.bf16.msra.mxu0 %v2068_v56  ;;  %v2817_v17 = vld [vmem:[%s4266_s1 + $0x104] sm:$0xf0]  ;;  %v2107_v19 = vld [vmem:[%s4266_s1 + $0x180] sm:$0xf]  ;;  %v2816_v21 = vld [vmem:[%s4266_s1 + $0x104] sm:$0xf]  ;;  %v2120_v27 = vor.u32 %v2834_v14, %v2117_v15 }
  0x1f   : > { %547 = vmatpush.bf16.msra.mxu1 %v2132_v57  ;;  %566 = vmatpush.bf16.msra.mxu2 %v2072_v58  ;;  %v2833_v20 = vld [vmem:[%s4266_s1 + $0x184] sm:$0xf0]  ;;  %s4272_s19 = smov (!%p215_p3, %s2001_s19), 1  ;;  %v2045_v24 = vld [vmem:[%s4266_s1 + $0x108] sm:$0xf0]  ;;  %v2044_v33 = vor.u32 %v2817_v17, %v2043_v16  ;;  %vm349_vm0 = vcmask 1046528  }
  0x20   : > { %585 = vmatpush.bf16.msra.mxu3 %v2136_v62  ;;  %v2832_v25 = vld [vmem:[%s4266_s1 + $0x184] sm:$0xf]  ;;  %v2109_v26 = vld [vmem:[%s4266_s1 + $0x188] sm:$0xf0]  ;;  %s2974_s8 = smul.u32 28, %s4272_s19  ;;  %v2108_v37 = vor.u32 %v2833_v20, %v2107_v19  ;;  %v2048_v38 = vor.u32 %v2816_v21, %v2045_v24  ;;  %vm312_vm1 = vcmask 1040384  }
  0x21   : > { %v2798_v28 = vld [vmem:[%s4266_s1 + $0x74] sm:$0xf]  ;;  %v2229_v29 = vld [vmem:[%s4266_s1 + $0x78] sm:$0xf0]  ;;  %v2227_v32 = vld [vmem:[%s4266_s1 + $0x70] sm:$0xf]  ;;  %v2112_v39 = vor.u32 %v2832_v25, %v2109_v26 }
  0x22   : > { %529 = vmatpush.bf16.msra.mxu0 %v2060_v4  ;;  %v2814_v30 = vld [vmem:[%s4266_s1 + $0xf4] sm:$0xf]  ;;  %v2293_v31 = vld [vmem:[%s4266_s1 + $0xf8] sm:$0xf0]  ;;  %s3255_s23 = scalar_lea.vmem %s4265_s0, %s2974_s8  ;;  %v2799_v34 = vld [vmem:[%s4266_s1 + $0x74] sm:$0xf0]  ;;  %v2232_v48 = vor.u32 %v2798_v28, %v2229_v29 }
  0x23   : > { %548 = vmatpush.bf16.msra.mxu1 %v2124_v7  ;;  %567 = vmatpush.bf16.msra.mxu2 %v2064_v8  ;;  %v2291_v35 = vld [vmem:[%s4266_s1 + $0xf0] sm:$0xf]  ;;  %v2815_v36 = vld [vmem:[%s4266_s1 + $0xf4] sm:$0xf0]  ;;  %v3267_v40 = vld [vmem:[%s3255_s23] sm:$0xff]   ;;  %v2296_v50 = vor.u32 %v2814_v30, %v2293_v31  ;;  %v2228_v51 = vor.u32 %v2799_v34, %v2227_v32  ;;  %vm1932_vm3 = vcmask 1041408  }
  0x24   : > { %586 = vmatpush.bf16.msra.mxu3 %v2128_v12  ;;  %v3270_v41 = vld [vmem:[%s3255_s23 + $0x8] sm:$0xff]   ;;  %v303_v43 = vld [vmem:[%s3255_s23] sm:$0xe]  ;;  %v2948_v44 = vunpack.c.h.b16 %v3267_v40  ;;  %v2796_v49 = vld [vmem:[%s4266_s1 + $0x64] sm:$0xf]  ;;  %v2292_v52 = vor.u32 %v2815_v36, %v2291_v35  ;;  %vm1935_vm4 = vcmask 1042432  }
  0x25   : > { %v3273_v42 = vld [vmem:[%s3255_s23 + $0xc] sm:$0xf]  ;;  %v306_v45 = vunpack.c.l.b16 %v303_v43  ;;  %v3278_v46 = vunpack.c.l.b16 %v3270_v41  ;;  %v2812_v54 = vld [vmem:[%s4266_s1 + $0xe4] sm:$0xf]  ;;  %v351_v57 = vrot.slane %v3270_v41, 1  ;;  %s2783_s25 = sshll.u32 %s4272_s19, 2 }
  0x26   : > { %530 = vmatpush.bf16.msra.mxu0 %v2052_v18  ;;  %v3281_v47 = vld [vmem:[%s3255_s23 + $0xc] sm:$0xff]  ;;  %v2219_v60 = vld [vmem:[%s4266_s1 + $0x60] sm:$0xf]  ;;  %v2797_v61 = vld [vmem:[%s4266_s1 + $0x64] sm:$0xf0]  ;;  %s224_s28 = scalar_lea.vmem %s4270_s5, %s2783_s25 }
  0x27   : > { %549 = vmatpush.bf16.msra.mxu1 %v2116_v22  ;;  %568 = vmatpush.bf16.msra.mxu2 %v2056_v23  ;;  %v2221_v53 = vld [vmem:[%s4266_s1 + $0x68] sm:$0xf0]  ;;  %v307_v56 = vpack.c.b16 %v2948_v44, %v306_v45  ;;  %v310_v58 = vpack.c.b16 %v3278_v46, %v2948_v44  ;;  %v314_v59 = vrot.slane %v3281_v47, 7  ;;  %v2283_v62 = vld [vmem:[%s4266_s1 + $0xe0] sm:$0xf]  ;;  %v2220_v6 = vor.u32 %v2797_v61, %v2219_v60 }
  0x28   : > { %587 = vmatpush.bf16.msra.mxu3 %v2120_v27  ;;  %v2285_v55 = vld [vmem:[%s4266_s1 + $0xe8] sm:$0xf0]  ;;  %v2813_v63 = vld [vmem:[%s4266_s1 + $0xe4] sm:$0xf0]  ;;  %v2224_v2 = vor.u32 %v2796_v49, %v2221_v53  ;;  %v2794_v3 = vld [vmem:[%s4266_s1 + $0x54] sm:$0xf] }
  0x29   : > { %v350_v0 = vrot.slane %v307_v56, 1  ;;  %v313_v1 = vrot.slane %v310_v58, 7  ;;  %v2213_v4 = vld [vmem:[%s4266_s1 + $0x58] sm:$0xf0]  ;;  %v2288_v5 = vor.u32 %v2812_v54, %v2285_v55  ;;  %v2810_v7 = vld [vmem:[%s4266_s1 + $0xd4] sm:$0xf]  ;;  %v2284_v16 = vor.u32 %v2813_v63, %v2283_v62 }
  0x2a   : > { %531 = vmatpush.bf16.msra.mxu0 %v2044_v33  ;;  %v2277_v8 = vld [vmem:[%s4266_s1 + $0xd8] sm:$0xf0]  ;;  %v2211_v9 = vld [vmem:[%s4266_s1 + $0x50] sm:$0xf]  ;;  %v2795_v13 = vld [vmem:[%s4266_s1 + $0x54] sm:$0xf0]  ;;  %v2216_v17 = vor.u32 %v2794_v3, %v2213_v4 }
  0x2b   : > { %550 = vmatpush.bf16.msra.mxu1 %v2108_v37  ;;  %569 = vmatpush.bf16.msra.mxu2 %v2048_v38  ;;  %v352_v10 = vsel %vm349_vm0, %v350_v0, %v351_v57  ;;  %v3331_v11 = vsel %vm312_vm1, %v313_v1, %v314_v59  ;;  %v353_v12 = vrot.slane %v313_v1, 1  ;;  %v232_v14 = vld [vmem:[%s3255_s23 + $0x10] sm:$0x1]  ;;  %v2811_v19 = vld [vmem:[%s4266_s1 + $0xd4] sm:$0xf0]  ;;  %v2280_v22 = vor.u32 %v2810_v7, %v2277_v8 }
  0x2c   : > { %588 = vmatpush.bf16.msra.mxu3 %v2112_v39  ;;  %v354_v15 = vrot.slane %v3331_v11, 1  ;;  %v2275_v18 = vld [vmem:[%s4266_s1 + $0xd0] sm:$0xf]  ;;  %v246_v20 = vunpack.c.l.b16 %v232_v14  ;;  %v2212_v23 = vor.u32 %v2795_v13, %v2211_v9  ;;  %v2792_v24 = vld [vmem:[%s4266_s1 + $0x44] sm:$0xf]  ;;  %v358_v63 = vrot.slane %v314_v59, 1 }
  0x2d   : > { %532 = vmatmul.bf16.vlgmr.msra.gmra.mxu0 %v352_v10  ;;  %v2205_v25 = vld [vmem:[%s4266_s1 + $0x48] sm:$0xf0]  ;;  %v2808_v26 = vld [vmem:[%s4266_s1 + $0xc4] sm:$0xf]  ;;  %v2203_v28 = vld [vmem:[%s4266_s1 + $0x40] sm:$0xf]  ;;  %v2276_v30 = vor.u32 %v2811_v19, %v2275_v18 }
  0x2e   : > { %760 = vmatpush.bf16.msrb.mxu0 %v2228_v51  ;;  %570 = vmatmul.bf16.vlgmr.msra.gmra.mxu2 %v352_v10  ;;  %v355_v21 = vsel %vm349_vm0, %v353_v12, %v354_v15  ;;  %v2269_v27 = vld [vmem:[%s4266_s1 + $0xc8] sm:$0xf0]  ;;  %v2793_v29 = vld [vmem:[%s4266_s1 + $0x44] sm:$0xf0]  ;;  %v2208_v31 = vor.u32 %v2792_v24, %v2205_v25  ;;  %v2267_v32 = vld [vmem:[%s4266_s1 + $0xc0] sm:$0xf]  ;;  %v3371_v34 = vpack.c.b16 %v246_v20, %v246_v20 }
  0x2f   : > { %798 = vmatpush.bf16.msrb.mxu2 %v2232_v48  ;;  %779 = vmatpush.bf16.msrb.mxu1 %v2292_v52  ;;  %v2809_v33 = vld [vmem:[%s4266_s1 + $0xc4] sm:$0xf0]  ;;  %v2272_v35 = vor.u32 %v2808_v26, %v2269_v27  ;;  %v2204_v36 = vor.u32 %v2793_v29, %v2203_v28  ;;  %v2790_v37 = vld [vmem:[%s4266_s1 + $0x34] sm:$0xf]  ;;  %v2197_v38 = vld [vmem:[%s4266_s1 + $0x38] sm:$0xf0]  ;;  %v359_v10 = vsel %vm349_vm0, %v354_v15, %v358_v63 }
  0x30   : > { %817 = vmatpush.bf16.msrb.mxu3 %v2296_v50  ;;  %551 = vmatmul.bf16.vlgmr.msra.gmra.mxu1 %v355_v21  ;;  %v2806_v39 = vld [vmem:[%s4266_s1 + $0xb4] sm:$0xf]  ;;  %v2261_v43 = vld [vmem:[%s4266_s1 + $0xb8] sm:$0xf0]  ;;  %v2195_v44 = vld [vmem:[%s4266_s1 + $0x30] sm:$0xf]  ;;  %v2268_v48 = vor.u32 %v2809_v33, %v2267_v32  ;;  %v2200_v50 = vor.u32 %v2790_v37, %v2197_v38 }
  0x31   : > { %589 = vmatmul.bf16.vlgmr.msra.gmra.mxu3 %v355_v21  ;;  %v2791_v45 = vld [vmem:[%s4266_s1 + $0x34] sm:$0xf0]  ;;  %v356_v49 = vrot.slane %v3371_v34, 1  ;;  %v2259_v51 = vld [vmem:[%s4266_s1 + $0xb0] sm:$0xf]  ;;  %v2264_v53 = vor.u32 %v2806_v39, %v2261_v43  ;;  %v252_v21 = vshll.u32 %v3267_v40, 16 }
  0x32   : > { %761 = vmatpush.bf16.msrb.mxu0 %v2220_v6  ;;  %v2807_v52 = vld [vmem:[%s4266_s1 + $0xb4] sm:$0xf0]  ;;  %v2196_v54 = vor.u32 %v2791_v45, %v2195_v44  ;;  %v2788_v55 = vld [vmem:[%s4266_s1 + $0x24] sm:$0xf]  ;;  %v2189_v56 = vld [vmem:[%s4266_s1 + $0x28] sm:$0xf0] }
  0x33   : > { %799 = vmatpush.bf16.msrb.mxu2 %v2224_v2  ;;  %780 = vmatpush.bf16.msrb.mxu1 %v2284_v16  ;;  %v2804_v58 = vld [vmem:[%s4266_s1 + $0xa4] sm:$0xf]  ;;  %v2253_v60 = vld [vmem:[%s4266_s1 + $0xa8] sm:$0xf0]  ;;  %v2187_v61 = vld [vmem:[%s4266_s1 + $0x20] sm:$0xf]  ;;  %v357_v0 = vsel %vm349_vm0, %v351_v57, %v356_v49  ;;  %v2260_v1 = vor.u32 %v2807_v52, %v2259_v51  ;;  %v2192_v2 = vor.u32 %v2788_v55, %v2189_v56 }
  0x34   : > { %818 = vmatpush.bf16.msrb.mxu3 %v2288_v5  ;;  %v2789_v62 = vld [vmem:[%s4266_s1 + $0x24] sm:$0xf0]  ;;  %v2251_v3 = vld [vmem:[%s4266_s1 + $0xa0] sm:$0xf]  ;;  %v2256_v5 = vor.u32 %v2804_v58, %v2253_v60  ;;  %v2786_v59 = vld [vmem:[%s4266_s1 + $0x14] sm:$0xf] }
  0x35   : > { %v2805_v4 = vld [vmem:[%s4266_s1 + $0xa4] sm:$0xf0]  ;;  %v2188_v47 = vor.u32 %v2789_v62, %v2187_v61  ;;  %v2181_v57 = vld [vmem:[%s4266_s1 + $0x18] sm:$0xf0]  ;;  %v2802_v6 = vld [vmem:[%s4266_s1 + $0x94] sm:$0xf] }
  0x36   : > { %762 = vmatpush.bf16.msrb.mxu0 %v2212_v23  ;;  %v2245_v7 = vld [vmem:[%s4266_s1 + $0x98] sm:$0xf0]  ;;  %v2179_v8 = vld [vmem:[%s4266_s1 + $0x10] sm:$0xf]  ;;  %v2787_v9 = vld [vmem:[%s4266_s1 + $0x14] sm:$0xf0]  ;;  %v2252_v13 = vor.u32 %v2805_v4, %v2251_v3  ;;  %v2184_v14 = vor.u32 %v2786_v59, %v2181_v57 }
  0x37   : > { %800 = vmatpush.bf16.msrb.mxu2 %v2216_v17  ;;  %781 = vmatpush.bf16.msrb.mxu1 %v2276_v30  ;;  %v2243_v12 = vld [vmem:[%s4266_s1 + $0x90] sm:$0xf]  ;;  %v2803_v16 = vld [vmem:[%s4266_s1 + $0x94] sm:$0xf0]  ;;  %v2784_v17 = vld [vmem:[%s4266_s1 + $0x4] sm:$0xf]  ;;  %v2248_v15 = vor.u32 %v2802_v6, %v2245_v7  ;;  %v2180_v18 = vor.u32 %v2787_v9, %v2179_v8 }
  0x38   : > { %819 = vmatpush.bf16.msrb.mxu3 %v2280_v22  ;;  %v2173_v11 = vld [vmem:[%s4266_s1 + $0x8] sm:$0xf0]  ;;  %v2800_v19 = vld [vmem:[%s4266_s1 + $0x84] sm:$0xf]  ;;  %v2171_v22 = vld [vmem:[%s4266_s1] sm:$0xf]  ;;  %v2244_v28 = vor.u32 %v2803_v16, %v2243_v12 }
  0x39   : > { %v2237_v20 = vld [vmem:[%s4266_s1 + $0x88] sm:$0xf0]  ;;  %v2785_v23 = vld [vmem:[%s4266_s1 + $0x4] sm:$0xf0]  ;;  %v2862_v24 = vld [vmem:[%s4266_s1 + $0x274] sm:$0xf]  ;;  %v2176_v29 = vor.u32 %v2784_v17, %v2173_v11 }
  0x3a   : > { %763 = vmatpush.bf16.msrb.mxu0 %v2204_v36  ;;  %v2389_v25 = vld [vmem:[%s4266_s1 + $0x278] sm:$0xf0]  ;;  %v2878_v26 = vld [vmem:[%s4266_s1 + $0x2f4] sm:$0xf]  ;;  %v250_v30 = vshrl.u32 %v3267_v40, 16  ;;  %v2240_v33 = vor.u32 %v2800_v19, %v2237_v20  ;;  %v254_v38 = vrot.slane %v252_v21, 1 }
  0x3b   : > { %801 = vmatpush.bf16.msrb.mxu2 %v2208_v31  ;;  %782 = vmatpush.bf16.msrb.mxu1 %v2268_v48  ;;  %v2453_v27 = vld [vmem:[%s4266_s1 + $0x2f8] sm:$0xf0]  ;;  %v2387_v31 = vld [vmem:[%s4266_s1 + $0x270] sm:$0xf]  ;;  %v2863_v32 = vld [vmem:[%s4266_s1 + $0x274] sm:$0xf0]  ;;  %v2392_v43 = vor.u32 %v2862_v24, %v2389_v25 }
  0x3c   : > { %820 = vmatpush.bf16.msrb.mxu3 %v2272_v35  ;;  %v2172_v35 = vor.u32 %v2785_v23, %v2171_v22  ;;  %v2235_v36 = vld [vmem:[%s4266_s1 + $0x80] sm:$0xf]  ;;  %v2801_v37 = vld [vmem:[%s4266_s1 + $0x84] sm:$0xf0]  ;;  %v257_v39 = vshll.u32 %v3270_v41, 16  ;;  %v2456_v44 = vor.u32 %v2878_v26, %v2453_v27  ;;  %v3550_v7 = vld [vmem:[%s3255_s23 + $0x10] sm:$0xff]  }
  0x3d   : > { %537 = vmatmul.bf16.gmra.mxu0 %v357_v0  ;;  %v2451_v45 = vld [vmem:[%s4266_s1 + $0x2f0] sm:$0xf]  ;;  %v2879_v48 = vld [vmem:[%s4266_s1 + $0x2f4] sm:$0xf0]  ;;  %v2860_v49 = vld [vmem:[%s4266_s1 + $0x264] sm:$0xf] }
  0x3e   : > { %764 = vmatpush.bf16.msrb.mxu0 %v2196_v54  ;;  %575 = vmatmul.bf16.gmra.mxu2 %v357_v0  ;;  %v2381_v51 = vld [vmem:[%s4266_s1 + $0x268] sm:$0xf0]  ;;  %v2876_v52 = vld [vmem:[%s4266_s1 + $0x2e4] sm:$0xf]  ;;  %v2236_v54 = vor.u32 %v2801_v37, %v2235_v36  ;;  %v2452_v55 = vor.u32 %v2879_v48, %v2451_v45  ;;  %v2379_v56 = vld [vmem:[%s4266_s1 + $0x260] sm:$0xf]  ;;  %v255_v0 = vor.u32 %v254_v38, %v250_v30 }
  0x3f   : > { %802 = vmatpush.bf16.msrb.mxu2 %v2200_v50  ;;  %783 = vmatpush.bf16.msrb.mxu1 %v2260_v1  ;;  %v2388_v50 = vor.u32 %v2863_v32, %v2387_v31  ;;  %v2861_v58 = vld [vmem:[%s4266_s1 + $0x264] sm:$0xf0]  ;;  %v2384_v60 = vor.u32 %v2860_v49, %v2381_v51  ;;  %v2443_v62 = vld [vmem:[%s4266_s1 + $0x2e0] sm:$0xf]  ;;  %vm248_vm2 = vsmask.f32 7424 }
  0x40   : > { %821 = vmatpush.bf16.msrb.mxu3 %v2264_v53  ;;  %556 = vmatmul.bf16.gmra.mxu1 %v359_v10  ;;  %v2445_v53 = vld [vmem:[%s4266_s1 + $0x2e8] sm:$0xf0]  ;;  %v2877_v63 = vld [vmem:[%s4266_s1 + $0x2e4] sm:$0xf0]  ;;  %v3529_v1 = vrot.slane %v257_v39, 1  ;;  %v2380_v3 = vor.u32 %v2861_v58, %v2379_v56  ;;  %v265_v45 = vshll.u32 %v3371_v34, 16 }
  0x41   : > { %594 = vmatmul.bf16.gmra.mxu3 %v359_v10  ;;  %v2448_v61 = vor.u32 %v2876_v52, %v2445_v53  ;;  %v2373_v4 = vld [vmem:[%s4266_s1 + $0x258] sm:$0xf0]  ;;  %v2444_v59 = vor.u32 %v2877_v63, %v2443_v62  ;;  %v2371_v57 = vld [vmem:[%s4266_s1 + $0x250] sm:$0xf]  ;;  %v2859_v6 = vld [vmem:[%s4266_s1 + $0x254] sm:$0xf0] }
  0x42   : > { %765 = vmatpush.bf16.msrb.mxu0 %v2188_v47  ;;  %v2437_v47 = vld [vmem:[%s4266_s1 + $0x2d8] sm:$0xf0]  ;;  %v2995_v8 = vld [vmem:[%s3255_s23 + $0xc] sm:$0xf0]   ;;  %v2875_v10 = vld [vmem:[%s4266_s1 + $0x2d4] sm:$0xf0]  ;;  %v260_v12 = vsel %vm248_vm2, %v255_v0, %v3529_v1  ;;  %v2372_v17 = vor.u32 %v2859_v6, %v2371_v57 }
  0x43   : > { %803 = vmatpush.bf16.msrb.mxu2 %v2192_v2  ;;  %784 = vmatpush.bf16.msrb.mxu1 %v2252_v13  ;;  %v2858_v2 = vld [vmem:[%s4266_s1 + $0x254] sm:$0xf]  ;;  %v2435_v9 = vld [vmem:[%s4266_s1 + $0x2d0] sm:$0xf]  ;;  %v2856_v16 = vld [vmem:[%s4266_s1 + $0x244] sm:$0xf]  ;;  %v3608_v36 = vor.u32 %v2995_v8, %v3273_v42 }
  0x44   : > { %822 = vmatpush.bf16.msrb.mxu3 %v2256_v5  ;;  %v2874_v5 = vld [vmem:[%s4266_s1 + $0x2d4] sm:$0xf]  ;;  %v2376_v13 = vor.u32 %v2858_v2, %v2373_v4  ;;  %v2365_v11 = vld [vmem:[%s4266_s1 + $0x248] sm:$0xf0]  ;;  %v2363_v19 = vld [vmem:[%s4266_s1 + $0x240] sm:$0xf] }
  0x45   : > { %v2857_v20 = vld [vmem:[%s4266_s1 + $0x244] sm:$0xf0]  ;;  %v841_v21 = vld [vmem:[%s3255_s23 + $0x4] sm:$0xe]  ;;  %v2427_v22 = vld [vmem:[%s4266_s1 + $0x2c0] sm:$0xf]  ;;  %v2368_v26 = vor.u32 %v2856_v16, %v2365_v11 }
  0x46   : > { %766 = vmatpush.bf16.msrb.mxu0 %v2180_v18  ;;  %v2436_v18 = vor.u32 %v2875_v10, %v2435_v9  ;;  %v2873_v23 = vld [vmem:[%s4266_s1 + $0x2c4] sm:$0xf0]  ;;  %v856_v24 = vunpack.c.l.b16 %v841_v21  ;;  %v840_v25 = vld [vmem:[%s3255_s23 + $0x14] sm:$0x1]  ;;  %v2364_v31 = vor.u32 %v2857_v20, %v2363_v19  ;;  %v2421_v32 = vld [vmem:[%s4266_s1 + $0x2b8] sm:$0xf0] }
  0x47   : > { %804 = vmatpush.bf16.msrb.mxu2 %v2184_v14  ;;  %785 = vmatpush.bf16.msrb.mxu1 %v2244_v28  ;;  %v2440_v14 = vor.u32 %v2874_v5, %v2437_v47  ;;  %v2854_v28 = vld [vmem:[%s4266_s1 + $0x234] sm:$0xf]  ;;  %v851_v38 = vunpack.c.l.b16 %v840_v25  ;;  %v2428_v39 = vor.u32 %v2873_v23, %v2427_v22  ;;  %v2419_v48 = vld [vmem:[%s4266_s1 + $0x2b0] sm:$0xf]  ;;  %v2871_v49 = vld [vmem:[%s4266_s1 + $0x2b4] sm:$0xf0] }
  0x48   : > { %823 = vmatpush.bf16.msrb.mxu3 %v2248_v15  ;;  %v2872_v15 = vld [vmem:[%s4266_s1 + $0x2c4] sm:$0xf]  ;;  %v2870_v30 = vld [vmem:[%s4266_s1 + $0x2b4] sm:$0xf]  ;;  %v857_v37 = vpack.c.b16 %v3278_v46, %v856_v24  ;;  %v2349_v34 = vld [vmem:[%s4266_s1 + $0x228] sm:$0xf0]  ;;  %v2420_v62 = vor.u32 %v2871_v49, %v2419_v48 }
  0x49   : > { %v2852_v52 = vld [vmem:[%s4266_s1 + $0x224] sm:$0xf]  ;;  %v866_v58 = vshll.u32 %v3608_v36, 16  ;;  %v2347_v63 = vld [vmem:[%s4266_s1 + $0x220] sm:$0xf]  ;;  %v267_v47 = vrot.slane %v265_v45, 1 }
  0x4a   : > { %767 = vmatpush.bf16.msrb.mxu0 %v2172_v35  ;;  %v2855_v35 = vld [vmem:[%s4266_s1 + $0x234] sm:$0xf0]  ;;  %v861_v53 = vshll.u32 %v857_v37, 16  ;;  %v2411_v4 = vld [vmem:[%s4266_s1 + $0x2a0] sm:$0xf]  ;;  %v870_v8 = vshrl.u32 %v3608_v36, 16 }
  0x4b   : > { %805 = vmatpush.bf16.msrb.mxu2 %v2176_v29  ;;  %786 = vmatpush.bf16.msrb.mxu1 %v2236_v54  ;;  %v2357_v29 = vld [vmem:[%s4266_s1 + $0x238] sm:$0xf0]  ;;  %v2868_v54 = vld [vmem:[%s4266_s1 + $0x2a4] sm:$0xf]  ;;  %v2869_v5 = vld [vmem:[%s4266_s1 + $0x2a4] sm:$0xf0] }
  0x4c   : > { %824 = vmatpush.bf16.msrb.mxu3 %v2240_v33  ;;  %v2355_v33 = vld [vmem:[%s4266_s1 + $0x230] sm:$0xf]  ;;  %v2360_v42 = vor.u32 %v2854_v28, %v2357_v29  ;;  %v863_v0 = vrot.slane %v861_v53, 1  ;;  %v2341_v6 = vld [vmem:[%s4266_s1 + $0x218] sm:$0xf0]  ;;  %v2412_v11 = vor.u32 %v2869_v5, %v2411_v4 }
  0x4d   : > { %768 = vmatmul.bf16.vlgmr.msrb.gmra.mxu0 %v3267_v40  ;;  %v2356_v51 = vor.u32 %v2855_v35, %v2355_v33  ;;  %v2866_v9 = vld [vmem:[%s4266_s1 + $0x294] sm:$0xf]  ;;  %v2405_v10 = vld [vmem:[%s4266_s1 + $0x298] sm:$0xf0]  ;;  %v2848_v19 = vld [vmem:[%s4266_s1 + $0x204] sm:$0xf] }
  0x4e   : > { %1105 = vmatpush.bf16.msra.mxu0 %v2388_v50  ;;  %806 = vmatmul.bf16.vlgmr.msrb.gmra.mxu2 %v3267_v40  ;;  %v2429_v40 = vld [vmem:[%s4266_s1 + $0x2c8] sm:$0xf0]  ;;  %v2424_v50 = vor.u32 %v2870_v30, %v2421_v32  ;;  %v2408_v22 = vor.u32 %v2866_v9, %v2405_v10  ;;  %v2864_v24 = vld [vmem:[%s4266_s1 + $0x284] sm:$0xf]  ;;  %v2395_v33 = vld [vmem:[%s4266_s1 + $0x280] sm:$0xf] }
  0x4f   : > { %1143 = vmatpush.bf16.msra.mxu2 %v2392_v43  ;;  %1124 = vmatpush.bf16.msra.mxu1 %v2452_v55  ;;  %v2432_v27 = vor.u32 %v2872_v15, %v2429_v40  ;;  %v836_v43 = vld [vmem:[%s3255_s23 + $0x4] sm:$0xf]  ;;  %v2413_v55 = vld [vmem:[%s4266_s1 + $0x2a8] sm:$0xf0]  ;;  %v2339_v15 = vld [vmem:[%s4266_s1 + $0x210] sm:$0xf] }
  0x50   : > { %1162 = vmatpush.bf16.msra.mxu3 %v2456_v44  ;;  %787 = vmatmul.bf16.vlgmr.msrb.gmra.mxu1 %v260_v12  ;;  %v261_v44 = vshrl.u32 %v3270_v41, 16  ;;  %v847_v56 = vunpack.c.l.b16 %v836_v43  ;;  %v2416_v57 = vor.u32 %v2868_v54, %v2413_v55  ;;  %v2851_v40 = vld [vmem:[%s4266_s1 + $0x214] sm:$0xf0]  ;;  %v2333_v23 = vld [vmem:[%s4266_s1 + $0x208] sm:$0xf0] }
  0x51   : > { %825 = vmatmul.bf16.vlgmr.msrb.gmra.mxu3 %v260_v12  ;;  %v2397_v25 = vld [vmem:[%s4266_s1 + $0x288] sm:$0xf0]  ;;  %v2865_v35 = vld [vmem:[%s4266_s1 + $0x284] sm:$0xf0]  ;;  %v2895_v36 = vld [vmem:[%s4266_s1 + $0x374] sm:$0xf]  ;;  %v2336_v43 = vor.u32 %v2848_v19, %v2333_v23 }
  0x52   : > { %1106 = vmatpush.bf16.msra.mxu0 %v2380_v3  ;;  %v3639_v2 = vor.u32 %v261_v44, %v3529_v1  ;;  %v2853_v3 = vld [vmem:[%s4266_s1 + $0x224] sm:$0xf0]  ;;  %v2850_v1 = vld [vmem:[%s4266_s1 + $0x214] sm:$0xf]  ;;  %v3664_v12 = vpack.c.b16 %v3278_v46, %v847_v56  ;;  %v2403_v46 = vld [vmem:[%s4266_s1 + $0x290] sm:$0xf]  ;;  %v2400_v49 = vor.u32 %v2864_v24, %v2397_v25  ;;  %v2396_v54 = vor.u32 %v2865_v35, %v2395_v33 }
  0x53   : > { %1144 = vmatpush.bf16.msra.mxu2 %v2384_v60  ;;  %1125 = vmatpush.bf16.msra.mxu1 %v2444_v59  ;;  %v3633_v60 = vpack.c.b16 %v851_v38, %v851_v38  ;;  %v2352_v59 = vor.u32 %v2852_v52, %v2349_v34  ;;  %v2344_v21 = vor.u32 %v2850_v1, %v2341_v6  ;;  %v2911_v38 = vld [vmem:[%s4266_s1 + $0x3f4] sm:$0xf]  ;;  %v2551_v45 = vld [vmem:[%s4266_s1 + $0x370] sm:$0xf]  ;;  %v2896_v48 = vld [vmem:[%s4266_s1 + $0x374] sm:$0xf0] }
  0x54   : > { %1163 = vmatpush.bf16.msra.mxu3 %v2448_v61  ;;  %v859_v61 = vshrl.u32 %v857_v37, 16  ;;  %v268_v20 = vsel %vm248_vm2, %v3639_v2, %v267_v47  ;;  %v916_v28 = vshll.u32 %v3664_v12, 16  ;;  %v2553_v37 = vld [vmem:[%s4266_s1 + $0x378] sm:$0xf0]  ;;  %v2615_v52 = vld [vmem:[%s4266_s1 + $0x3f0] sm:$0xf] }
  0x55   : > { %v874_v16 = vshll.u32 %v3633_v60, 16  ;;  %v2912_v34 = vld [vmem:[%s4266_s1 + $0x3f4] sm:$0xf0]  ;;  %v2556_v55 = vor.u32 %v2895_v36, %v2553_v37  ;;  %v2609_v47 = vld [vmem:[%s4266_s1 + $0x3e8] sm:$0xf0]  ;;  %v878_v37 = vshrl.u32 %v3633_v60, 16 }
  0x56   : > { %1107 = vmatpush.bf16.msra.mxu0 %v2372_v17  ;;  %v2348_v17 = vor.u32 %v2853_v3, %v2347_v63  ;;  %v2909_v63 = vld [vmem:[%s4266_s1 + $0x3e4] sm:$0xf]  ;;  %v2616_v5 = vor.u32 %v2912_v34, %v2615_v52  ;;  %v2894_v1 = vld [vmem:[%s4266_s1 + $0x364] sm:$0xf0]  ;;  %v2607_v6 = vld [vmem:[%s4266_s1 + $0x3e0] sm:$0xf] }
  0x57   : > { %1145 = vmatpush.bf16.msra.mxu2 %v2376_v13  ;;  %1126 = vmatpush.bf16.msra.mxu1 %v2436_v18  ;;  %v3666_v13 = vrot.slane %v866_v58, 1  ;;  %v2867_v18 = vld [vmem:[%s4266_s1 + $0x294] sm:$0xf0]  ;;  %v876_v30 = vrot.slane %v874_v16, 1  ;;  %v2552_v58 = vor.u32 %v2896_v48, %v2551_v45  ;;  %v2612_v10 = vor.u32 %v2909_v63, %v2609_v47  ;;  %v2891_v16 = vld [vmem:[%s4266_s1 + $0x354] sm:$0xf] }
  0x58   : > { %1164 = vmatpush.bf16.msra.mxu3 %v2440_v14  ;;  %v864_v14 = vor.u32 %v863_v0, %v859_v61  ;;  %v2404_v32 = vor.u32 %v2867_v18, %v2403_v46  ;;  %v2893_v61 = vld [vmem:[%s4266_s1 + $0x364] sm:$0xf]  ;;  %v2907_v46 = vld [vmem:[%s4266_s1 + $0x3d4] sm:$0xf]  ;;  %v2601_v18 = vld [vmem:[%s4266_s1 + $0x3d8] sm:$0xf0] }
  0x59   : > { %v2535_v19 = vld [vmem:[%s4266_s1 + $0x350] sm:$0xf]  ;;  %v2604_v24 = vor.u32 %v2907_v46, %v2601_v18  ;;  %v2889_v25 = vld [vmem:[%s4266_s1 + $0x344] sm:$0xf]  ;;  %v2906_v33 = vld [vmem:[%s4266_s1 + $0x3c4] sm:$0xf0] }
  0x5a   : > { %1108 = vmatpush.bf16.msra.mxu0 %v2364_v31  ;;  %v869_v29 = vsel %vm248_vm2, %v864_v14, %v3666_v13  ;;  %v2340_v31 = vor.u32 %v2851_v40, %v2339_v15  ;;  %v2903_v45 = vld [vmem:[%s4266_s1 + $0x3b4] sm:$0xf]  ;;  %v2585_v60 = vld [vmem:[%s4266_s1 + $0x3b8] sm:$0xf0]  ;;  %v2519_v48 = vld [vmem:[%s4266_s1 + $0x330] sm:$0xf] }
  0x5b   : > { %1146 = vmatpush.bf16.msra.mxu2 %v2368_v26  ;;  %1127 = vmatpush.bf16.msra.mxu1 %v2428_v39  ;;  %v2849_v26 = vld [vmem:[%s4266_s1 + $0x204] sm:$0xf0]  ;;  %v2617_v39 = vld [vmem:[%s4266_s1 + $0x3f8] sm:$0xf0]  ;;  %v924_v44 = vshll.u32 %v869_v29, 16  ;;  %v922_v0 = vshrl.u32 %v869_v29, 16 }
  0x5c   : > { %1165 = vmatpush.bf16.msra.mxu3 %v2432_v27  ;;  %v872_v27 = vor.u32 %v870_v8, %v3666_v13  ;;  %v2620_v56 = vor.u32 %v2911_v38, %v2617_v39  ;;  %v2910_v8 = vld [vmem:[%s4266_s1 + $0x3e4] sm:$0xf0]  ;;  %v2593_v29 = vld [vmem:[%s4266_s1 + $0x3c8] sm:$0xf0]  ;;  %v2887_v38 = vld [vmem:[%s4266_s1 + $0x334] sm:$0xf] }
  0x5d   : > { %773 = vmatmul.bf16.gmra.mxu0 %v3270_v41  ;;  %v926_v3 = vrot.slane %v924_v44, 1  ;;  %v2608_v40 = vor.u32 %v2910_v8, %v2607_v6  ;;  %v2521_v39 = vld [vmem:[%s4266_s1 + $0x338] sm:$0xf0]  ;;  %v937_v34 = vshll.u32 %v878_v37, 16  ;;  %v2577_v63 = vld [vmem:[%s4266_s1 + $0x3a8] sm:$0xf0] }
  0x5e   : > { %1109 = vmatpush.bf16.msra.mxu0 %v2356_v51  ;;  %811 = vmatmul.bf16.gmra.mxu2 %v3270_v41  ;;  %v2331_v41 = vld [vmem:[%s4266_s1 + $0x200] sm:$0xf]  ;;  %v3733_v51 = vsel %vm248_vm2, %v872_v27, %v876_v30  ;;  %v2883_v6 = vld [vmem:[%s4266_s1 + $0x314] sm:$0xf]  ;;  %v2505_v8 = vld [vmem:[%s4266_s1 + $0x318] sm:$0xf0] }
  0x5f   : > { %1147 = vmatpush.bf16.msra.mxu2 %v2360_v42  ;;  %1128 = vmatpush.bf16.msra.mxu1 %v2420_v62  ;;  %v914_v42 = vshrl.u32 %v3664_v12, 16  ;;  %v2332_v53 = vor.u32 %v2849_v26, %v2331_v41  ;;  %v2545_v62 = vld [vmem:[%s4266_s1 + $0x368] sm:$0xf0]  ;;  %v929_v4 = vshll.u32 %v3733_v51, 16  ;;  %v927_v12 = vor.u32 %v926_v3, %v922_v0  ;;  %v2527_v30 = vld [vmem:[%s4266_s1 + $0x340] sm:$0xf] }
  0x60   : > { %1166 = vmatpush.bf16.msra.mxu3 %v2424_v50  ;;  %792 = vmatmul.bf16.gmra.mxu1 %v268_v20  ;;  %v918_v50 = vrot.slane %v916_v28, 1  ;;  %v2548_v9 = vor.u32 %v2893_v61, %v2545_v62  ;;  %v2529_v41 = vld [vmem:[%s4266_s1 + $0x348] sm:$0xf0]  ;;  %v2905_v28 = vld [vmem:[%s4266_s1 + $0x3c4] sm:$0xf]  ;;  %v933_v52 = vshrl.u32 %v3733_v51, 16 }
  0x61   : > { %830 = vmatmul.bf16.gmra.mxu3 %v268_v20  ;;  %v3766_v14 = vrot.slane %v929_v4, 1  ;;  %v2892_v20 = vld [vmem:[%s4266_s1 + $0x354] sm:$0xf0]  ;;  %v2532_v35 = vor.u32 %v2889_v25, %v2529_v41  ;;  %v2596_v36 = vor.u32 %v2905_v28, %v2593_v29  ;;  %v2513_v61 = vld [vmem:[%s4266_s1 + $0x328] sm:$0xf0] }
  0x62   : > { %1110 = vmatpush.bf16.msra.mxu0 %v2348_v17  ;;  %v2537_v17 = vld [vmem:[%s4266_s1 + $0x358] sm:$0xf0]  ;;  %v2536_v26 = vor.u32 %v2892_v20, %v2535_v19  ;;  %v2901_v62 = vld [vmem:[%s4266_s1 + $0x3a4] sm:$0xf]  ;;  %v2511_v0 = vld [vmem:[%s4266_s1 + $0x320] sm:$0xf]  ;;  %v2508_v19 = vor.u32 %v2883_v6, %v2505_v8 }
  0x63   : > { %1148 = vmatpush.bf16.msra.mxu2 %v2352_v59  ;;  %1129 = vmatpush.bf16.msra.mxu1 %v2412_v11  ;;  %v919_v59 = vor.u32 %v918_v50, %v914_v42  ;;  %v2540_v23 = vor.u32 %v2891_v16, %v2537_v17  ;;  %v2583_v42 = vld [vmem:[%s4266_s1 + $0x3b0] sm:$0xf]  ;;  %v2904_v50 = vld [vmem:[%s4266_s1 + $0x3b4] sm:$0xf0]  ;;  %v2886_v3 = vld [vmem:[%s4266_s1 + $0x324] sm:$0xf0]  ;;  %v935_v47 = vor.u32 %v933_v52, %v3766_v14 }
  0x64   : > { %1167 = vmatpush.bf16.msra.mxu3 %v2416_v57  ;;  %v2543_v57 = vld [vmem:[%s4266_s1 + $0x360] sm:$0xf]  ;;  %v2503_v16 = vld [vmem:[%s4266_s1 + $0x310] sm:$0xf]  ;;  %v2884_v17 = vld [vmem:[%s4266_s1 + $0x314] sm:$0xf0] }
  0x65   : > { %v920_v11 = vsel %vm248_vm2, %v919_v59, %v3666_v13  ;;  %v2544_v15 = vor.u32 %v2894_v1, %v2543_v57  ;;  %v2599_v13 = vld [vmem:[%s4266_s1 + $0x3d0] sm:$0xf]  ;;  %v2575_v4 = vld [vmem:[%s4266_s1 + $0x3a0] sm:$0xf]  ;;  %v939_v59 = vrot.slane %v937_v34, 1  ;;  %v2580_v1 = vor.u32 %v2901_v62, %v2577_v63  ;;  %v4002_v8 = vld [vmem:[%s3255_s23 + $0x8] sm:$0xff]  }
  0x66   : > { %1111 = vmatpush.bf16.msra.mxu0 %v2340_v31  ;;  %v2890_v31 = vld [vmem:[%s4266_s1 + $0x344] sm:$0xf0]  ;;  %v2881_v46 = vld [vmem:[%s4266_s1 + $0x304] sm:$0xf]  ;;  %v2497_v18 = vld [vmem:[%s4266_s1 + $0x308] sm:$0xf0] }
  0x67   : > { %1149 = vmatpush.bf16.msra.mxu2 %v2344_v21  ;;  %1130 = vmatpush.bf16.msra.mxu1 %v2404_v32  ;;  %v2908_v21 = vld [vmem:[%s4266_s1 + $0x3d4] sm:$0xf0]  ;;  %v2591_v32 = vld [vmem:[%s4266_s1 + $0x3c0] sm:$0xf]  ;;  %v2898_v41 = vld [vmem:[%s4266_s1 + $0x384] sm:$0xf0] }
  0x68   : > { %1168 = vmatpush.bf16.msra.mxu3 %v2408_v22  ;;  %v932_v22 = vsel %vm248_vm2, %v927_v12, %v3766_v14  ;;  %v2600_v27 = vor.u32 %v2908_v21, %v2599_v13  ;;  %v2592_v44 = vor.u32 %v2906_v33, %v2591_v32  ;;  %v2899_v12 = vld [vmem:[%s4266_s1 + $0x394] sm:$0xf]  ;;  %v2569_v14 = vld [vmem:[%s4266_s1 + $0x398] sm:$0xf0]  ;;  %v2897_v13 = vld [vmem:[%s4266_s1 + $0x384] sm:$0xf]  ;;  %v2500_v32 = vor.u32 %v2881_v46, %v2497_v18 }
  0x69   : > { %v2572_v20 = vor.u32 %v2899_v12, %v2569_v14  ;;  %v2495_v21 = vld [vmem:[%s4266_s1 + $0x300] sm:$0xf]  ;;  %v2713_v28 = vld [vmem:[%s4266_s1 + $0x478] sm:$0xf0]  ;;  %v2943_v29 = vld [vmem:[%s4266_s1 + $0x4f4] sm:$0xf] }
  0x6a   : > { %1112 = vmatpush.bf16.msra.mxu0 %v2332_v53  ;;  %v2524_v53 = vor.u32 %v2887_v38, %v2521_v39  ;;  %v2559_v25 = vld [vmem:[%s4266_s1 + $0x380] sm:$0xf]  ;;  %v2944_v37 = vld [vmem:[%s4266_s1 + $0x4f4] sm:$0xf0]  ;;  %v2769_v52 = vld [vmem:[%s4266_s1 + $0x4e8] sm:$0xf0] }
  0x6b   : > { %1150 = vmatpush.bf16.msra.mxu2 %v2336_v43  ;;  %1131 = vmatpush.bf16.msra.mxu1 %v2396_v54  ;;  %v2528_v43 = vor.u32 %v2890_v31, %v2527_v30  ;;  %v2588_v54 = vor.u32 %v2903_v45, %v2585_v60  ;;  %v2777_v30 = vld [vmem:[%s4266_s1 + $0x4f8] sm:$0xf0]  ;;  %v2711_v31 = vld [vmem:[%s4266_s1 + $0x470] sm:$0xf]  ;;  %v2560_v39 = vor.u32 %v2898_v41, %v2559_v25  ;;  %v2925_v60 = vld [vmem:[%s4266_s1 + $0x464] sm:$0xf] }
  0x6c   : > { %1169 = vmatpush.bf16.msra.mxu3 %v2400_v49  ;;  %v2888_v49 = vld [vmem:[%s4266_s1 + $0x334] sm:$0xf0]  ;;  %v2780_v45 = vor.u32 %v2943_v29, %v2777_v30  ;;  %v2703_v34 = vld [vmem:[%s4266_s1 + $0x460] sm:$0xf]  ;;  %v2923_v62 = vld [vmem:[%s4266_s1 + $0x454] sm:$0xf] }
  0x6d   : > { %1113 = vmatmul.bf16.vlgmr.msra.gmra.mxu0 %v920_v11  ;;  %v2697_v63 = vld [vmem:[%s4266_s1 + $0x458] sm:$0xf0]  ;;  %v2940_v6 = vld [vmem:[%s4266_s1 + $0x4d4] sm:$0xf0]  ;;  %v2921_v14 = vld [vmem:[%s4266_s1 + $0x444] sm:$0xf] }
  0x6e   : > { %1429 = vmatpush.bf16.msrb.mxu0 %v2552_v58  ;;  %1151 = vmatmul.bf16.vlgmr.msra.gmra.mxu2 %v920_v11  ;;  %v2885_v58 = vld [vmem:[%s4266_s1 + $0x324] sm:$0xf]  ;;  %v2567_v11 = vld [vmem:[%s4266_s1 + $0x390] sm:$0xf]  ;;  %v2687_v46 = vld [vmem:[%s4266_s1 + $0x440] sm:$0xf] }
  0x6f   : > { %1467 = vmatpush.bf16.msrb.mxu2 %v2556_v55  ;;  %1448 = vmatpush.bf16.msrb.mxu1 %v2616_v5  ;;  %v2520_v55 = vor.u32 %v2888_v49, %v2519_v48  ;;  %v2902_v5 = vld [vmem:[%s4266_s1 + $0x3a4] sm:$0xf0]  ;;  %v2516_v57 = vor.u32 %v2885_v58, %v2513_v61  ;;  %v2935_v41 = vld [vmem:[%s4266_s1 + $0x4b4] sm:$0xf]  ;;  %v2920_v29 = vld [vmem:[%s4266_s1 + $0x434] sm:$0xf0] }
  0x70   : > { %1486 = vmatpush.bf16.msrb.mxu3 %v2620_v56  ;;  %1132 = vmatmul.bf16.vlgmr.msra.gmra.mxu1 %v932_v22  ;;  %v2584_v56 = vor.u32 %v2904_v50, %v2583_v42  ;;  %v2705_v42 = vld [vmem:[%s4266_s1 + $0x468] sm:$0xf0]  ;;  %v2941_v50 = vld [vmem:[%s4266_s1 + $0x4e4] sm:$0xf]  ;;  %v2922_v18 = vld [vmem:[%s4266_s1 + $0x444] sm:$0xf0] }
  0x71   : > { %1170 = vmatmul.bf16.vlgmr.msra.gmra.mxu3 %v932_v22  ;;  %v2504_v22 = vor.u32 %v2884_v17, %v2503_v16  ;;  %v2708_v58 = vor.u32 %v2925_v60, %v2705_v42  ;;  %v2772_v61 = vor.u32 %v2941_v50, %v2769_v52  ;;  %v2689_v16 = vld [vmem:[%s4266_s1 + $0x448] sm:$0xf0]  ;;  %v2743_v30 = vld [vmem:[%s4266_s1 + $0x4b0] sm:$0xf]  ;;  %v2671_v60 = vld [vmem:[%s4266_s1 + $0x420] sm:$0xf] }
  0x72   : > { %1430 = vmatpush.bf16.msrb.mxu0 %v2544_v15  ;;  %v2900_v15 = vld [vmem:[%s4266_s1 + $0x394] sm:$0xf0]  ;;  %v2934_v42 = vld [vmem:[%s4266_s1 + $0x4a4] sm:$0xf0] }
  0x73   : > { %1468 = vmatpush.bf16.msrb.mxu2 %v2548_v9  ;;  %1449 = vmatpush.bf16.msrb.mxu1 %v2608_v40  ;;  %v2512_v9 = vor.u32 %v2886_v3, %v2511_v0  ;;  %v940_v40 = vsel %vm248_vm2, %v935_v47, %v939_v59  ;;  %v2939_v0 = vld [vmem:[%s4266_s1 + $0x4d4] sm:$0xf]  ;;  %v2695_v47 = vld [vmem:[%s4266_s1 + $0x450] sm:$0xf]  ;;  %v1194_v59 = vld [vmem:[%s3255_s23 + $0x18] sm:$0x1] }
  0x74   : > { %1487 = vmatpush.bf16.msrb.mxu3 %v2612_v10  ;;  %v2576_v10 = vor.u32 %v2902_v5, %v2575_v4  ;;  %v2761_v5 = vld [vmem:[%s4266_s1 + $0x4d8] sm:$0xf0]  ;;  %v1210_v17 = vunpack.c.l.b16 %v1194_v59 }
  0x75   : > { %v2764_v12 = vor.u32 %v2939_v0, %v2761_v5  ;;  %v2916_v0 = vld [vmem:[%s4266_s1 + $0x414] sm:$0xf0] }
  0x76   : > { %1431 = vmatpush.bf16.msrb.mxu0 %v2536_v26  ;;  %v3923_v26 = vld [vmem:[%s3255_s23 + $0x10] sm:$0xff] }
  0x77   : > { %1469 = vmatpush.bf16.msrb.mxu2 %v2540_v23  ;;  %1450 = vmatpush.bf16.msrb.mxu1 %v2600_v27  ;;  %v2568_v23 = vor.u32 %v2900_v15, %v2567_v11  ;;  %v2927_v27 = vld [vmem:[%s4266_s1 + $0x474] sm:$0xf] }
  0x78   : > { %1488 = vmatpush.bf16.msrb.mxu3 %v2604_v24  ;;  %v2882_v24 = vld [vmem:[%s4266_s1 + $0x304] sm:$0xf0] }
  0x79   : > { %v2496_v38 = vor.u32 %v2882_v24, %v2495_v21  ;;  %v4033_v21 = vpack.c.b16 %v1210_v17, %v1210_v17  ;;  %v2688_v24 = vor.u32 %v2922_v18, %v2687_v46  ;;  %v2914_v17 = vld [vmem:[%s4266_s1 + $0x404] sm:$0xf0]  ;;  %v2984_v18 = vld [vmem:[%s3255_s23] sm:$0xff]  }
  0x7a   : > { %1432 = vmatpush.bf16.msrb.mxu0 %v2528_v43  ;;  %v1222_v43 = vshll.u32 %v3923_v26, 16 }
  0x7b   : > { %1470 = vmatpush.bf16.msrb.mxu2 %v2532_v35  ;;  %1451 = vmatpush.bf16.msrb.mxu1 %v2592_v44  ;;  %v2928_v35 = vld [vmem:[%s4266_s1 + $0x474] sm:$0xf0]  ;;  %v2716_v44 = vor.u32 %v2927_v27, %v2713_v28  ;;  %v2745_v27 = vld [vmem:[%s4266_s1 + $0x4b8] sm:$0xf0]  ;;  %v2679_v28 = vld [vmem:[%s4266_s1 + $0x430] sm:$0xf] }
  0x7c   : > { %1489 = vmatpush.bf16.msrb.mxu3 %v2596_v36  ;;  %v2775_v36 = vld [vmem:[%s4266_s1 + $0x4f0] sm:$0xf]  ;;  %v2712_v48 = vor.u32 %v2928_v35, %v2711_v31  ;;  %v2936_v31 = vld [vmem:[%s4266_s1 + $0x4b4] sm:$0xf0] }
  0x7d   : > { %1118 = vmatmul.bf16.gmra.mxu0 %v3733_v51  ;;  %v2776_v49 = vor.u32 %v2944_v37, %v2775_v36  ;;  %v2748_v36 = vor.u32 %v2935_v41, %v2745_v27  ;;  %v2680_v37 = vor.u32 %v2920_v29, %v2679_v28 }
  0x7e   : > { %1433 = vmatpush.bf16.msrb.mxu0 %v2520_v55  ;;  %1156 = vmatmul.bf16.gmra.mxu2 %v3733_v51  ;;  %v2561_v51 = vld [vmem:[%s4266_s1 + $0x388] sm:$0xf0]  ;;  %v2942_v55 = vld [vmem:[%s4266_s1 + $0x4e4] sm:$0xf0] }
  0x7f   : > { %1471 = vmatpush.bf16.msrb.mxu2 %v2524_v53  ;;  %1452 = vmatpush.bf16.msrb.mxu1 %v2584_v56  ;;  %v2564_v33 = vor.u32 %v2897_v13, %v2561_v51  ;;  %v2926_v53 = vld [vmem:[%s4266_s1 + $0x464] sm:$0xf0]  ;;  %v3974_v56 = vrot.slane %v1222_v43, 1  ;;  %v2692_v13 = vor.u32 %v2921_v14, %v2689_v16  ;;  %v2673_v43 = vld [vmem:[%s4266_s1 + $0x428] sm:$0xf0] }
  0x80   : > { %1490 = vmatpush.bf16.msrb.mxu3 %v2588_v54  ;;  %1137 = vmatmul.bf16.gmra.mxu1 %v940_v40  ;;  %v2767_v54 = vld [vmem:[%s4266_s1 + $0x4e0] sm:$0xf]  ;;  %v2704_v3 = vor.u32 %v2926_v53, %v2703_v34  ;;  %v2969_v14 = vld [vmem:[%s3255_s23 + $0x8] sm:$0xf0]  ;;  %v2970_v16 = vld [vmem:[%s3255_s23 + $0x8] sm:$0xe] }
  0x81   : > { %1175 = vmatmul.bf16.gmra.mxu3 %v940_v40  ;;  %v2768_v4 = vor.u32 %v2942_v55, %v2767_v54  ;;  %v2753_v40 = vld [vmem:[%s4266_s1 + $0x4c8] sm:$0xf0]  ;;  %v2915_v54 = vld [vmem:[%s4266_s1 + $0x414] sm:$0xf]  ;;  %v2665_v55 = vld [vmem:[%s4266_s1 + $0x418] sm:$0xf0]  ;;  %v2971_v46 = vor.u32 %v2970_v16, %v2969_v14 }
  0x82   : > { %1434 = vmatpush.bf16.msrb.mxu0 %v2512_v9  ;;  %v1225_v9 = vsel %vm248_vm2, %v3639_v2, %v3974_v56  ;;  %v2937_v2 = vld [vmem:[%s4266_s1 + $0x4c4] sm:$0xf]  ;;  %v2668_v59 = vor.u32 %v2915_v54, %v2665_v55 }
  0x83   : > { %1472 = vmatpush.bf16.msrb.mxu2 %v2516_v57  ;;  %1453 = vmatpush.bf16.msrb.mxu1 %v2576_v10  ;;  %v2924_v57 = vld [vmem:[%s4266_s1 + $0x454] sm:$0xf0]  ;;  %v2700_v10 = vor.u32 %v2923_v62, %v2697_v63  ;;  %v2756_v51 = vor.u32 %v2937_v2, %v2753_v40  ;;  %v2729_v62 = vld [vmem:[%s4266_s1 + $0x498] sm:$0xf0]  ;;  %v2663_v63 = vld [vmem:[%s4266_s1 + $0x410] sm:$0xf] }
  0x84   : > { %1491 = vmatpush.bf16.msrb.mxu3 %v2580_v1  ;;  %v2759_v1 = vld [vmem:[%s4266_s1 + $0x4d0] sm:$0xf]  ;;  %v2696_v11 = vor.u32 %v2924_v57, %v2695_v47  ;;  %v2913_v47 = vld [vmem:[%s4266_s1 + $0x404] sm:$0xf] }
  0x85   : > { %v2760_v15 = vor.u32 %v2940_v6, %v2759_v1  ;;  %v2657_v1 = vld [vmem:[%s4266_s1 + $0x408] sm:$0xf0]  ;;  %v2929_v6 = vld [vmem:[%s4266_s1 + $0x484] sm:$0xf] }
  0x86   : > { %1435 = vmatpush.bf16.msrb.mxu0 %v2504_v22  ;;  %v2919_v22 = vld [vmem:[%s4266_s1 + $0x434] sm:$0xf]  ;;  %v2660_v2 = vor.u32 %v2913_v47, %v2657_v1 }
  0x87   : > { %1473 = vmatpush.bf16.msrb.mxu2 %v2508_v19  ;;  %1454 = vmatpush.bf16.msrb.mxu1 %v2568_v23  ;;  %v2751_v19 = vld [vmem:[%s4266_s1 + $0x4c0] sm:$0xf]  ;;  %v2681_v23 = vld [vmem:[%s4266_s1 + $0x438] sm:$0xf0] }
  0x88   : > { %1492 = vmatpush.bf16.msrb.mxu3 %v2572_v20  ;;  %v2938_v20 = vld [vmem:[%s4266_s1 + $0x4c4] sm:$0xf0]  ;;  %v2684_v35 = vor.u32 %v2919_v22, %v2681_v23  ;;  %v1553_v22 = vrot.slane %v2971_v46, 1  ;;  %v1554_v23 = vrot.slane %v3923_v26, 1 }
  0x89   : > { %v2752_v25 = vor.u32 %v2938_v20, %v2751_v19  ;;  %v1517_v19 = vrot.slane %v2984_v18, 7  ;;  %v1518_v20 = vrot.slane %v4002_v8, 7 }
  0x8a   : > { %1436 = vmatpush.bf16.msrb.mxu0 %v2496_v38  ;;  %v2744_v38 = vor.u32 %v2936_v31, %v2743_v30  ;;  %v1555_v28 = vsel %vm349_vm0, %v1553_v22, %v1554_v23 }
  0x8b   : > { %1474 = vmatpush.bf16.msrb.mxu2 %v2500_v32  ;;  %1455 = vmatpush.bf16.msrb.mxu1 %v2560_v39  ;;  %v1226_v32 = vshrl.u32 %v3923_v26, 16  ;;  %v2917_v39 = vld [vmem:[%s4266_s1 + $0x424] sm:$0xf] }
  0x8c   : > { %1493 = vmatpush.bf16.msrb.mxu3 %v2564_v33  ;;  %v1230_v33 = vshll.u32 %v4033_v21, 16  ;;  %v2676_v34 = vor.u32 %v2917_v39, %v2673_v43  ;;  %v1561_v39 = vrot.slane %v1518_v20, 1 }
  0x8d   : > { %1437 = vmatmul.bf16.vlgmr.msrb.gmra.mxu0 %v4002_v8  ;;  %v1228_v50 = vor.u32 %v1226_v32, %v3974_v56  ;;  %v2931_v56 = vld [vmem:[%s4266_s1 + $0x494] sm:$0xf] }
  0x8e   : > { %1727 = vmatpush.bf16.msra.mxu0 %v2712_v48  ;;  %1475 = vmatmul.bf16.vlgmr.msrb.gmra.mxu2 %v4002_v8  ;;  %v2918_v48 = vld [vmem:[%s4266_s1 + $0x424] sm:$0xf0]  ;;  %v1232_v52 = vrot.slane %v1230_v33, 1  ;;  %v2732_v57 = vor.u32 %v2931_v56, %v2729_v62 }
  0x8f   : > { %1765 = vmatpush.bf16.msra.mxu2 %v2716_v44  ;;  %1746 = vmatpush.bf16.msra.mxu1 %v2776_v49  ;;  %v2933_v44 = vld [vmem:[%s4266_s1 + $0x4a4] sm:$0xf]  ;;  %v2735_v49 = vld [vmem:[%s4266_s1 + $0x4a0] sm:$0xf] }
  0x90   : > { %1784 = vmatpush.bf16.msra.mxu3 %v2780_v45  ;;  %1456 = vmatmul.bf16.vlgmr.msrb.gmra.mxu1 %v1225_v9  ;;  %v2737_v45 = vld [vmem:[%s4266_s1 + $0x4a8] sm:$0xf0]  ;;  %v1233_v5 = vsel %vm248_vm2, %v1228_v50, %v1232_v52 }
  0x91   : > { %1494 = vmatmul.bf16.vlgmr.msrb.gmra.mxu3 %v1225_v9  ;;  %v2740_v53 = vor.u32 %v2933_v44, %v2737_v45  ;;  %v2664_v9 = vor.u32 %v2916_v0, %v2663_v63 }
  0x92   : > { %1728 = vmatpush.bf16.msra.mxu0 %v2704_v3  ;;  %v2727_v3 = vld [vmem:[%s4266_s1 + $0x490] sm:$0xf] }
  0x93   : > { %1766 = vmatpush.bf16.msra.mxu2 %v2708_v58  ;;  %1747 = vmatpush.bf16.msra.mxu1 %v2768_v4  ;;  %v2672_v58 = vor.u32 %v2918_v48, %v2671_v60  ;;  %v2932_v4 = vld [vmem:[%s4266_s1 + $0x494] sm:$0xf0] }
  0x94   : > { %1785 = vmatpush.bf16.msra.mxu3 %v2772_v61  ;;  %v2736_v61 = vor.u32 %v2934_v42, %v2735_v49 }
  0x96   : > { %1729 = vmatpush.bf16.msra.mxu0 %v2696_v11  ;;  %v2719_v11 = vld [vmem:[%s4266_s1 + $0x480] sm:$0xf] }
  0x97   : > { %1767 = vmatpush.bf16.msra.mxu2 %v2700_v10  ;;  %1748 = vmatpush.bf16.msra.mxu1 %v2760_v15  ;;  %v2728_v10 = vor.u32 %v2932_v4, %v2727_v3  ;;  %v2930_v15 = vld [vmem:[%s4266_s1 + $0x484] sm:$0xf0] }
  0x98   : > { %1786 = vmatpush.bf16.msra.mxu3 %v2764_v12  ;;  %v2655_v12 = vld [vmem:[%s4266_s1 + $0x400] sm:$0xf] }
  0x9a   : > { %1730 = vmatpush.bf16.msra.mxu0 %v2688_v24  ;;  %v1519_v24 = vsel %vm312_vm1, %v1517_v19, %v1518_v20 }
  0x9b   : > { %1768 = vmatpush.bf16.msra.mxu2 %v2692_v13  ;;  %1749 = vmatpush.bf16.msra.mxu1 %v2752_v25  ;;  %v2656_v13 = vor.u32 %v2914_v17, %v2655_v12  ;;  %v1556_v25 = vrot.slane %v1517_v19, 1  ;;  %v1557_v41 = vrot.slane %v1519_v24, 1 }
  0x9c   : > { %1787 = vmatpush.bf16.msra.mxu3 %v2756_v51  ;;  %v2720_v51 = vor.u32 %v2930_v15, %v2719_v11 }
  0x9d   : > { %1442 = vmatmul.bf16.gmra.mxu0 %v3550_v7  ;;  %v1558_v8 = vsel %vm349_vm0, %v1556_v25, %v1557_v41  ;;  %v1562_v49 = vsel %vm349_vm0, %v1557_v41, %v1561_v39 }
  0x9e   : > { %1731 = vmatpush.bf16.msra.mxu0 %v2680_v37  ;;  %1480 = vmatmul.bf16.gmra.mxu2 %v3550_v7  ;;  %v2721_v7 = vld [vmem:[%s4266_s1 + $0x488] sm:$0xf0]  ;;  %v1559_v37 = vrot.slane %v4033_v21, 1 }
  0x9f   : > { %1769 = vmatpush.bf16.msra.mxu2 %v2684_v35  ;;  %1750 = vmatpush.bf16.msra.mxu1 %v2744_v38  ;;  %v2724_v40 = vor.u32 %v2929_v6, %v2721_v7 }
  0xa0   : > { %1788 = vmatpush.bf16.msra.mxu3 %v2748_v36  ;;  %1461 = vmatmul.bf16.gmra.mxu1 %v1233_v5  ;;  %v1560_v44 = vsel %vm349_vm0, %v1554_v23, %v1559_v37 }
  0xa1   : > { %1499 = vmatmul.bf16.gmra.mxu3 %v1233_v5 }
  0xa2   : > { %1732 = vmatpush.bf16.msra.mxu0 %v2672_v58 }
  0xa3   : > { %1770 = vmatpush.bf16.msra.mxu2 %v2676_v34  ;;  %1751 = vmatpush.bf16.msra.mxu1 %v2736_v61 }
  0xa4   : > { %1789 = vmatpush.bf16.msra.mxu3 %v2740_v53 }
  0xa6   : > { %1733 = vmatpush.bf16.msra.mxu0 %v2664_v9 }
  0xa7   : > { %1771 = vmatpush.bf16.msra.mxu2 %v2668_v59  ;;  %1752 = vmatpush.bf16.msra.mxu1 %v2728_v10 }
  0xa8   : > { %1790 = vmatpush.bf16.msra.mxu3 %v2732_v57 }
  0xaa   : > { %1734 = vmatpush.bf16.msra.mxu0 %v2656_v13  ;;  %v533_v27 = vpop.f32.mrf.mxu0 }
  0xab   : > { %1772 = vmatpush.bf16.msra.mxu2 %v2660_v2  ;;  %1753 = vmatpush.bf16.msra.mxu1 %v2720_v51 }
  0xac   : > { %1791 = vmatpush.bf16.msra.mxu3 %v2724_v40 }
  0xad   : > { %v552_v29 = vpop.f32.mrf.mxu1  ;;  %1735 = vmatmul.bf16.vlgmr.msra.gmra.mxu0 %v1555_v28 }
  0xae   : > { %1773 = vmatmul.bf16.vlgmr.msra.gmra.mxu2 %v1555_v28  ;;  %v553_v30 = vadd.f32 %v552_v29, %v533_v27 }
  0xb0   : > { %1754 = vmatmul.bf16.vlgmr.msra.gmra.mxu1 %v1558_v8 }
  0xb1   : > { %1792 = vmatmul.bf16.vlgmr.msra.gmra.mxu3 %v1558_v8  ;;  %v571_v31 = vpop.f32.mrf.mxu2 }
  0xb2   : > { %v535_v32 = vpop.f32.mrf.mxu0 }
  0xb4   : > { %v590_v26 = vpop.f32.mrf.mxu3 }
  0xb5   : > { %v591_v33 = vadd.f32 %v590_v26, %v571_v31  ;;  %v554_v35 = vpop.f32.mrf.mxu1 }
  0xb6   : > { %v555_v36 = vadd.f32 %v554_v35, %v535_v32 }
  0xb9   : > { %v573_v38 = vpop.f32.mrf.mxu2 }
  0xba   : > { %v538_v43 = vpop.f32.mrf.mxu0 }
  0xbc   : > { %v592_v45 = vpop.f32.mrf.mxu3 }
  0xbd   : > { %v593_v60 = vadd.f32 %v592_v45, %v573_v38  ;;  %v557_v48 = vpop.f32.mrf.mxu1  ;;  %1740 = vmatmul.bf16.gmra.mxu0 %v1560_v44 }
  0xbe   : > { %1778 = vmatmul.bf16.gmra.mxu2 %v1560_v44  ;;  %v558_v42 = vadd.f32 %v557_v48, %v538_v43 }
  0xc0   : > { %1759 = vmatmul.bf16.gmra.mxu1 %v1562_v49 }
  0xc1   : > { %1797 = vmatmul.bf16.gmra.mxu3 %v1562_v49  ;;  %v576_v50 = vpop.f32.mrf.mxu2 }
  0xc2   : > { %v540_v52 = vpop.f32.mrf.mxu0 }
  0xc4   : > { %v595_v34 = vpop.f32.mrf.mxu3 }
  0xc5   : > { %v596_v53 = vadd.f32 %v595_v34, %v576_v50  ;;  %v559_v21 = vpop.f32.mrf.mxu1 }
  0xc6   : > { %v560_v54 = vadd.f32 %v559_v21, %v540_v52 }
  0xc9   : > { %v578_v55 = vpop.f32.mrf.mxu2 }
  0xca   : > { %v769_v58 = vpop.f32.mrf.mxu0 }
  0xcb   : > { %v770_v56 = vadd.f32 %v769_v58, %v553_v30 }
  0xcc   : > { %v597_v61 = vpop.f32.mrf.mxu3 }
  0xcd   : > { %v598_v62 = vadd.f32 %v597_v61, %v578_v55  ;;  %v788_v63 = vpop.f32.mrf.mxu1 }
  0xce   : > { %v4148_v0 = vadd.f32 %v788_v63, %v770_v56 }
  0xd1   : > { %v807_v3 = vpop.f32.mrf.mxu2 }
  0xd2   : > { %v808_v4 = vadd.f32 %v807_v3, %v591_v33  ;;  %v771_v5 = vpop.f32.mrf.mxu0  ;;  %v225_v3 = vld [vmem:[%s4267_s2] sm:$0x3] }
  0xd3   : > { %v772_v59 = vadd.f32 %v771_v5, %v555_v36 }
  0xd4   : > { %v826_v47 = vpop.f32.mrf.mxu3 }
  0xd5   : > { %v4150_v57 = vadd.f32 %v826_v47, %v808_v4  ;;  %v790_v1 = vpop.f32.mrf.mxu1 }
  0xd6   : > { %v4152_v6 = vadd.f32 %v790_v1, %v772_v59 }
  0xd9   : > { %v809_v7 = vpop.f32.mrf.mxu2 }
  0xda   : > { %v810_v9 = vadd.f32 %v809_v7, %v593_v60  ;;  %v774_v10 = vpop.f32.mrf.mxu0  ;;  %v4192_v7 = vperm.slane %v225_v3, 0 }
  0xdb   : > { %v775_v14 = vadd.f32 %v774_v10, %v558_v42 }
  0xdc   : > { %v828_v12 = vpop.f32.mrf.mxu3 }
  0xdd   : > { %v4154_v16 = vadd.f32 %v828_v12, %v810_v9  ;;  %v793_v17 = vpop.f32.mrf.mxu1  ;;  %v226_v12 = vld [vmem:[%s4268_s3] sm:$0x3] }
  0xde   : > { %v4156_v11 = vadd.f32 %v793_v17, %v775_v14 }
  0xe1   : > { %v812_v15 = vpop.f32.mrf.mxu2 }
  0xe2   : > { %v813_v2 = vadd.f32 %v812_v15, %v596_v53  ;;  %v776_v40 = vpop.f32.mrf.mxu0 }
  0xe3   : > { %v777_v18 = vadd.f32 %v776_v40, %v560_v54 }
  0xe4   : > { %v831_v46 = vpop.f32.mrf.mxu3 }
  0xe5   : > { %v4158_v19 = vadd.f32 %v831_v46, %v813_v2  ;;  %v795_v20 = vpop.f32.mrf.mxu1  ;;  %v4202_v46 = vperm.slane %v226_v12, 0 }
  0xe6   : > { %v4160_v13 = vadd.f32 %v795_v20, %v777_v18 }
  0xe9   : > { %v814_v51 = vpop.f32.mrf.mxu2 }
  0xea   : > { %v815_v22 = vadd.f32 %v814_v51, %v598_v62  ;;  %v1114_v23 = vpop.f32.mrf.mxu0 }
  0xec   : > { %v833_v24 = vpop.f32.mrf.mxu3 }
  0xed   : > { %v4162_v25 = vadd.f32 %v833_v24, %v815_v22  ;;  %v1133_v41 = vpop.f32.mrf.mxu1 }
  0xee   : > { %v1134_v58 = vadd.f32 %v1133_v41, %v1114_v23 }
  0xf0   : > { %v1181_v4 = vadd.f32 %v1134_v58, %v4148_v0  ;;  %v227_v0 = vld [vmem:[%s4269_s4] sm:$0x3] }
  0xf1   : > { %v1152_v27 = vpop.f32.mrf.mxu2  ;;  %v4205_v24 = vperm.slane %v227_v0, 0 }
  0xf2   : > { %v1116_v28 = vpop.f32.mrf.mxu0 }
  0xf4   : > { %v1171_v29 = vpop.f32.mrf.mxu3 }
  0xf5   : > { %v1135_v8 = vpop.f32.mrf.mxu1  ;;  %v1172_v5 = vadd.f32 %v1171_v29, %v1152_v27  ;;  %v4207_v27 = vperm.slane %v225_v3, 1 }
  0xf6   : > { %v1136_v9 = vadd.f32 %v1135_v8, %v1116_v28 }
  0xf7   : > { %v1182_v15 = vadd.f32 %v1172_v5, %v4150_v57 }
  0xf8   : > { %v1183_v20 = vadd.f32 %v1136_v9, %v4152_v6 }
  0xf9   : > { %v1154_v30 = vpop.f32.mrf.mxu2 }
  0xfa   : > { %v1119_v31 = vpop.f32.mrf.mxu0 }
  0xfc   : > { %v1173_v32 = vpop.f32.mrf.mxu3 }
  0xfd   : > { %v1138_v26 = vpop.f32.mrf.mxu1  ;;  %v1174_v57 = vadd.f32 %v1173_v32, %v1154_v30  ;;  %v4215_v32 = vperm.slane %v227_v0, 1 }
  0xff   : > { %v1184_v3 = vadd.f32 %v1174_v57, %v4154_v16 }
 0x101   : > { %v4164_v33 = vpop.f32.mrf.mxu2 }
 0x102   : > { %v4166_v35 = vpop.f32.mrf.mxu0 }
 0x104   : > { %v4168_v36 = vpop.f32.mrf.mxu3 }
 0x105   : > { %v4170_v37 = vpop.f32.mrf.mxu1 }
 0x109   : > { %v4172_v38 = vpop.f32.mrf.mxu2 }
 0x10a   : > { %v1438_v39 = vpop.f32.mrf.mxu0 }
 0x10c   : > { %v4174_v43 = vpop.f32.mrf.mxu3 }
 0x10d   : > { %v1457_v44 = vpop.f32.mrf.mxu1 }
 0x10e   : > { %v1458_v56 = vadd.f32 %v1457_v44, %v1438_v39 }
 0x110   : > { %v1505_v59 = vadd.f32 %v1458_v56, %v1181_v4 }
 0x111   : > { %v1476_v45 = vpop.f32.mrf.mxu2 }
 0x112   : > { %v1440_v60 = vpop.f32.mrf.mxu0 }
 0x114   : > { %v1495_v48 = vpop.f32.mrf.mxu3 }
 0x115   : > { %v1459_v49 = vpop.f32.mrf.mxu1  ;;  %v1496_v10 = vadd.f32 %v1495_v48, %v1476_v45  ;;  %v1139_v45 = vadd.f32 %v1138_v26, %v1119_v31 }
 0x116   : > { %v1460_v2 = vadd.f32 %v1459_v49, %v1440_v60  ;;  %v4210_v60 = vperm.slane %v226_v12, 1 }
 0x117   : > { %v1506_v51 = vadd.f32 %v1496_v10, %v1182_v15  ;;  %v1185_v31 = vadd.f32 %v1139_v45, %v4156_v11  ;;  %v1141_v11 = vadd.f32 %v4170_v37, %v4166_v35 }
 0x118   : > { %v1507_v29 = vadd.f32 %v1460_v2, %v1183_v20 }
 0x119   : > { %v1478_v42 = vpop.f32.mrf.mxu2  ;;  %v1187_v35 = vadd.f32 %v1141_v11, %v4160_v13 }
 0x11a   : > { %v1443_v50 = vpop.f32.mrf.mxu0 }
 0x11c   : > { %v1497_v52 = vpop.f32.mrf.mxu3 }
 0x11d   : > { %v1462_v34 = vpop.f32.mrf.mxu1  ;;  %v1498_v48 = vadd.f32 %v1497_v52, %v1478_v42 }
 0x11f   : > { %v1508_v42 = vadd.f32 %v1498_v48, %v1184_v3 }
 0x121   : > { %v4176_v53 = vpop.f32.mrf.mxu2 }
 0x122   : > { %v4178_v21 = vpop.f32.mrf.mxu0 }
 0x124   : > { %v4180_v54 = vpop.f32.mrf.mxu3 }
 0x125   : > { %v4182_v55 = vpop.f32.mrf.mxu1 }
 0x126   : > { %v1465_v0 = vadd.f32 %v4182_v55, %v4178_v21 }
 0x129   : > { %v4184_v61 = vpop.f32.mrf.mxu2 }
 0x12a   : > { %v1736_v62 = vpop.f32.mrf.mxu0 }
 0x12c   : > { %v4186_v63 = vpop.f32.mrf.mxu3 }
 0x12d   : > { %v1755_v47 = vpop.f32.mrf.mxu1  ;;  %v1503_v13 = vadd.f32 %v4186_v63, %v4184_v61 }
 0x12e   : > { %v1756_v1 = vadd.f32 %v1755_v47, %v1736_v62  ;;  %v1463_v62 = vadd.f32 %v1462_v34, %v1443_v50  ;;  %v1177_v50 = vadd.f32 %v4168_v36, %v4164_v33 }
 0x130   : > { %v1803_v14 = vadd.f32 %v1756_v1, %v1505_v59  ;;  %v1509_v34 = vadd.f32 %v1463_v62, %v1185_v31  ;;  %v1186_v2 = vadd.f32 %v1177_v50, %v4158_v19 }
 0x131   : > { %v1774_v17 = vpop.f32.mrf.mxu2 }
 0x132   : > { %v1816_v40 = vadd.f32 %v4192_v7, %v1803_v14  ;;  %v1738_v18 = vpop.f32.mrf.mxu0  ;;  %v1501_v14 = vadd.f32 %v4180_v54, %v4176_v53 }
 0x134   : > { %v1793_v22 = vpop.f32.mrf.mxu3  ;;  %v1824_v23 = vmax.f32 %v1816_v40, 0.0  ;;  %v1510_v54 = vadd.f32 %v1501_v14, %v1186_v2 }
 0x135   : > { %v1794_v41 = vadd.f32 %v1793_v22, %v1774_v17  ;;  %v1757_v28 = vpop.f32.mrf.mxu1 }
 0x136   : > { %v1837_v8 = vmul.f32 %v4202_v46, %v1824_v23  ;;  %v1758_v44 = vadd.f32 %v1757_v28, %v1738_v18  ;;  %v1179_v23 = vadd.f32 %v4174_v43, %v4172_v38 }
 0x137   : > { %v1804_v39 = vadd.f32 %v1794_v41, %v1506_v51  ;;  %v1511_v41 = vadd.f32 %v1465_v0, %v1187_v35 }
 0x138   : > { %v1850_v6 = vadd.f32 %v4205_v24, %v1837_v8  ;;  %v1805_v58 = vadd.f32 %v1758_v44, %v1507_v29  ;;  %v1188_v38 = vadd.f32 %v1179_v23, %v4162_v25 }
 0x139   : > { %v1817_v49 = vadd.f32 %v4207_v27, %v1804_v39  ;;  %v1776_v56 = vpop.f32.mrf.mxu2 }
 0x13a   : > { %1858 = vst [vmem:[#allocation2] sm:$0xff] %v1850_v6  ;;  %v1818_v4 = vadd.f32 %v4192_v7, %v1805_v58  ;;  %v1741_v5 = vpop.f32.mrf.mxu0  ;;  %v1512_v6 = vadd.f32 %v1503_v13, %v1188_v38 }
 0x13b   : > { %v1825_v30 = vmax.f32 %v1817_v49, 0.0 }
 0x13c   : > { %v1795_v26 = vpop.f32.mrf.mxu3  ;;  %v1826_v47 = vmax.f32 %v1818_v4, 0.0 }
 0x13d   : > { %v1838_v52 = vmul.f32 %v4210_v60, %v1825_v30  ;;  %v1796_v59 = vadd.f32 %v1795_v26, %v1776_v56  ;;  %v1760_v16 = vpop.f32.mrf.mxu1 }
 0x13e   : > { %v1839_v9 = vmul.f32 %v4202_v46, %v1826_v47  ;;  %v1761_v12 = vadd.f32 %v1760_v16, %v1741_v5 }
 0x13f   : > { %v1851_v1 = vadd.f32 %v4215_v32, %v1838_v52  ;;  %v1806_v10 = vadd.f32 %v1796_v59, %v1508_v42 }
 0x140   : > { %v1852_v17 = vadd.f32 %v4205_v24, %v1839_v9  ;;  %v1807_v33 = vadd.f32 %v1761_v12, %v1509_v34 }
 0x141   : > { %1859 = vst [vmem:[#allocation2 + $0x8] sm:$0xff] %v1851_v1  ;;  %v1819_v15 = vadd.f32 %v4207_v27, %v1806_v10  ;;  %v1779_v36 = vpop.f32.mrf.mxu2 }
 0x142   : > { %1860 = vst [vmem:[#allocation2 + $0x10] sm:$0xff] %v1852_v17  ;;  %v1820_v18 = vadd.f32 %v4192_v7, %v1807_v33  ;;  %v1743_v53 = vpop.f32.mrf.mxu0 }
 0x143   : > { %v1827_v40 = vmax.f32 %v1819_v15, 0.0 }
 0x144   : > { %v1798_v37 = vpop.f32.mrf.mxu3  ;;  %v1828_v51 = vmax.f32 %v1820_v18, 0.0 }
 0x145   : > { %v1840_v20 = vmul.f32 %v4210_v60, %v1827_v40  ;;  %v1799_v22 = vadd.f32 %v1798_v37, %v1779_v36  ;;  %v1762_v21 = vpop.f32.mrf.mxu1 }
 0x146   : > { %v1841_v55 = vmul.f32 %v4202_v46, %v1828_v51  ;;  %v1763_v28 = vadd.f32 %v1762_v21, %v1743_v53 }
 0x147   : > { %v1853_v19 = vadd.f32 %v4215_v32, %v1840_v20  ;;  %v1808_v57 = vadd.f32 %v1799_v22, %v1510_v54 }
 0x148   : > { %v1854_v29 = vadd.f32 %v4205_v24, %v1841_v55  ;;  %v1809_v39 = vadd.f32 %v1763_v28, %v1511_v41  ;;  %v1866_v5 = vld [vmem:[#allocation2] ss:$8 sm:$0x3]  ;;  %v1868_v31 = vld [vmem:[#allocation2 + $0x1] ss:$8 sm:$0x3] }
 0x149   : > { %v1821_v8 = vadd.f32 %v4207_v27, %v1808_v57  ;;  %1861 = vst [vmem:[#allocation2 + $0x18] sm:$0xff] %v1853_v19  ;;  %v1781_v44 = vpop.f32.mrf.mxu2  ;;  %v1869_v52 = vmax.f32 %v1866_v5, %v1868_v31  ;;  %v1877_v50 = vld [vmem:[#allocation2 + $0x2] ss:$8 sm:$0x3] }
 0x14a   : > { %1862 = vst [vmem:[#allocation2 + $0x20] sm:$0xff] %v1854_v29  ;;  %v1822_v45 = vadd.f32 %v4192_v7, %v1809_v39  ;;  %v1879_v34 = vld [vmem:[#allocation2 + $0x3] ss:$8 sm:$0x3] }
 0x14b   : > { %v1829_v43 = vmax.f32 %v1821_v8, 0.0  ;;  %v1880_v16 = vmax.f32 %v1877_v50, %v1879_v34 }
 0x14c   : > { %v1800_v48 = vpop.f32.mrf.mxu3  ;;  %v1830_v58 = vmax.f32 %v1822_v45, 0.0 }
 0x14d   : > { %v1842_v49 = vmul.f32 %v4210_v60, %v1829_v43  ;;  %v1801_v56 = vadd.f32 %v1800_v48, %v1781_v44 }
 0x14e   : > { %v1843_v63 = vmul.f32 %v4202_v46, %v1830_v58 }
 0x14f   : > { %v1855_v61 = vadd.f32 %v4215_v32, %v1842_v49  ;;  %v1810_v62 = vadd.f32 %v1801_v56, %v1512_v6 }
 0x150   : > { %v1856_v3 = vadd.f32 %v4205_v24, %v1843_v63  ;;  %v1871_v25 = vld [vmem:[#allocation2 + $0x10] ss:$8 sm:$0x3]  ;;  %v1873_v4 = vld [vmem:[#allocation2 + $0x11] ss:$8 sm:$0x3] }
 0x151   : > { %v1823_v30 = vadd.f32 %v4207_v27, %v1810_v62  ;;  %1863 = vst [vmem:[#allocation2 + $0x28] sm:$0xff] %v1855_v61  ;;  %v1874_v26 = vmax.f32 %v1871_v25, %v1873_v4  ;;  %v1882_v47 = vld [vmem:[#allocation2 + $0x12] ss:$8 sm:$0x3] }
 0x152   : > { %1864 = vst [vmem:[#allocation2 + $0x30] sm:$0xff] %v1856_v3  ;;  %v1884_v59 = vld [vmem:[#allocation2 + $0x13] ss:$8 sm:$0x3] }
 0x153   : > { %v1831_v7 = vmax.f32 %v1823_v30, 0.0  ;;  %v1875_v24 = vmax.f32 %v1869_v52, %v1874_v26  ;;  %v1885_v27 = vmax.f32 %v1882_v47, %v1884_v59 }
 0x155   : > { %v1844_v42 = vmul.f32 %v4210_v60, %v1831_v7  ;;  %v1910_v1 = vperm.slane %v1875_v24, 0  ;;  %v1911_v9 = vperm.slane %v1875_v24, 1  ;;  %v1886_v10 = vmax.f32 %v1880_v16, %v1885_v27 }
 0x157   : > { %v1857_v46 = vadd.f32 %v4215_v32, %v1844_v42  ;;  %v1915_v32 = vperm.slane %v1886_v10, 0  ;;  %v1916_v40 = vperm.slane %v1886_v10, 1 }
 0x158   : > { %v1888_v12 = vld [vmem:[#allocation2 + $0x20] ss:$8 sm:$0x3]  ;;  %v1890_v11 = vld [vmem:[#allocation2 + $0x21] ss:$8 sm:$0x3] }
 0x159   : > { %1865 = vst [vmem:[#allocation2 + $0x38] sm:$0xff] %v1857_v46  ;;  %v1899_v14 = vld [vmem:[#allocation2 + $0x22] ss:$8 sm:$0x3]  ;;  %v1891_v33 = vmax.f32 %v1888_v12, %v1890_v11  ;;  %v1930_v51 = vsel %vm312_vm1, %v1910_v1, %v1915_v32  ;;  %v1931_v22 = vsel %vm312_vm1, %v1911_v9, %v1916_v40 }
 0x15a   : > { %v1901_v17 = vld [vmem:[#allocation2 + $0x23] ss:$8 sm:$0x3] }
 0x15b   : > { %v1902_v18 = vmax.f32 %v1899_v14, %v1901_v17 }
 0x160   : > { %v1893_v15 = vld [vmem:[#allocation2 + $0x30] ss:$8 sm:$0x3]  ;;  %v1895_v60 = vld [vmem:[#allocation2 + $0x31] ss:$8 sm:$0x3] }
 0x161   : > { %v1896_v36 = vmax.f32 %v1893_v15, %v1895_v60  ;;  %v1904_v0 = vld [vmem:[#allocation2 + $0x32] ss:$8 sm:$0x3]  ;;  %v1906_v2 = vld [vmem:[#allocation2 + $0x33] ss:$8 sm:$0x3] }
 0x162   : > { %v1907_v35 = vmax.f32 %v1904_v0, %v1906_v2 }
 0x163   : > { %v1897_v37 = vmax.f32 %v1891_v33, %v1896_v36 }
 0x164   : > { %v1908_v53 = vmax.f32 %v1902_v18, %v1907_v35 }
 0x165   : > { %v1920_v54 = vperm.slane %v1897_v37, 0  ;;  %v1921_v20 = vperm.slane %v1897_v37, 1 }
 0x166   : > { %v1925_v23 = vperm.slane %v1908_v53, 0  ;;  %v1926_v41 = vperm.slane %v1908_v53, 1 }
 0x167   : > { %v1933_v21 = vsel %vm1932_vm3, %v1930_v51, %v1920_v54  ;;  %v1934_v19 = vsel %vm1932_vm3, %v1931_v22, %v1921_v20 }
 0x168   : > { %v1936_v55 = vsel %vm1935_vm4, %v1933_v21, %v1925_v23  ;;  %v1937_v57 = vsel %vm1935_vm4, %v1934_v19, %v1926_v41 }
 0x169   : > { %v1938_v28 = vpack.c.bf16 %v1937_v57, %v1936_v55 }
 0x16b   : > { %v1940_v13 = vrot.slane %v1938_v28, 2 }
 0x16d   : > { %v1943_v29 = vsel %vm1932_vm3, %v1938_v28, %v1940_v13 }
 0x16e   : > { %1945 = vst [vmem:[%s224_s28] sm:$0xf] %v1943_v29 }
 0x16f PF: > { %s15_s18 = sadd.s32 1, %s2998_s18  }
 0x170   : > { %p12_p4 = scmp.ge.s32.totalorder %s15_s18, 4  }
 0x172   :  { %14 = sbr.rel (!%p12_p4) target bundleno = 1 (0x1), region = 89 }

// kernel: tf_cifar_forward.4
= control target key start
LH: loop header
LB: loop body
LE: loop exit
PB: predicated region body
PF: predicated region fallthrough
CT: control target
= control target key end

     0   :  { %s2950_s18 = smov 0   ;;  %s3753_s0 = inlined_call_operand.vmem [shape: bf16[2,960,32], index: 0, kind: input, shape index: {}]   ;;  %s3754_s1 = inlined_call_operand.vmem [shape: bf16[1,32,64], index: 1, kind: input, shape index: {}]   ;;  %s3755_s2 = inlined_call_operand.vmem [shape: f32[1,64], index: 2, kind: input, shape index: {}]   ;;  %s3756_s3 = inlined_call_operand.vmem [shape: f32[1,64], index: 3, kind: input, shape index: {}]   ;;  %s3757_s4 = inlined_call_operand.vmem [shape: f32[1,64], index: 4, kind: input, shape index: {}]   ;;  %s3758_s5 = inlined_call_operand.vmem [shape: bf16[2,256,64], index: 5, kind: output, shape index: {}]  }
   0x1 LB: > { %s2457_s19 = sadd.s32 4294967295, %s2917_s18   ;;  %p2461_p0 = scmp.ge.s32.totalorder %s2917_s18, 1  ;;  %s2917_s18 = sphi %s2950_s18, %s15_s18  }
   0x2   : > { %p187_p1 = scmp.lt.s32.totalorder %s2917_s18, 3 }
   0x4   : > { %p188_p2 = pnand %p2461_p0, %p187_p1 }
   0x5   : > { %p215_p3 = scmp.lt.s32.totalorder (!%p188_p2), %s2457_s19, 1 }
   0x6   : > { %191 = sbr.rel (%p188_p2) target bundleno = 422 (0x1a6), region = 40 }
   0xb   : > { %v2828_v0 = vld [vmem:[%s3754_s1 + $0x8] sm:$0xff]  ;;  %v2827_v4 = vld [vmem:[%s3754_s1] sm:$0xff]  ;;  %s3760_s19 = smov (!%p215_p3, %s2457_s19), 1  ;;  %vm301_vm0 = vcmask 261120   ;;  %vm425_vm1 = vcmask 523264   ;;  %vm2369_vm2 = vcmask 519168  }
   0xc   : > { %v2837_v1 = vld [vmem:[%s3754_s1 + $0x8] sm:$0xff]  ;;  %332 = vmatpush.bf16.msra.mxu0 %v2828_v0  ;;  %v2836_v5 = vld [vmem:[%s3754_s1] sm:$0xff]  ;;  %s2892_s13 = smul.u32 480, %s3760_s19  ;;  %s2819_s14 = sshll.u32 %s3760_s19, 7 }
   0xd   : > { %v2846_v2 = vld [vmem:[%s3754_s1 + $0x8] sm:$0xff]  ;;  %540 = vmatpush.bf16.msra.mxu1 %v2837_v1  ;;  %v2845_v6 = vld [vmem:[%s3754_s1] sm:$0xff]  ;;  %s3185_s16 = scalar_lea.vmem %s3758_s5, %s2819_s14 }
   0xe   : > { %v2855_v3 = vld [vmem:[%s3754_s1 + $0x8] sm:$0xff]  ;;  %741 = vmatpush.bf16.msra.mxu2 %v2846_v2  ;;  %v2854_v7 = vld [vmem:[%s3754_s1] sm:$0xff]  ;;  %s2994_s20 = scalar_lea.vmem %s3753_s0, %s2892_s13 }
   0xf   : > { %942 = vmatpush.bf16.msra.mxu3 %v2855_v3  ;;  %v2891_v8 = vld [vmem:[%s3754_s1 + $0x8] sm:$0xff]  ;;  %v2820_v12 = vld [vmem:[%s2994_s20] sm:$0xff]  ;;  %v2838_v14 = vld [vmem:[%s2994_s20 + $0x78] sm:$0xff] }
  0x10   : > { %v2882_v9 = vld [vmem:[%s3754_s1 + $0x8] sm:$0xff]  ;;  %333 = vmatpush.bf16.msra.mxu0 %v2827_v4  ;;  %v2829_v13 = vld [vmem:[%s2994_s20 + $0x3c] sm:$0xff]  ;;  %v2847_v15 = vld [vmem:[%s2994_s20 + $0xb4] sm:$0xff] }
  0x11   : > { %541 = vmatpush.bf16.msra.mxu1 %v2836_v5  ;;  %v2864_v10 = vld [vmem:[%s3754_s1 + $0x8] sm:$0xff]  ;;  %v2839_v18 = vld [vmem:[%s2994_s20 + $0x80] sm:$0xff]  ;;  %v2822_v20 = vld [vmem:[%s2994_s20 + $0x10] sm:$0xff] }
  0x12   : > { %v2873_v11 = vld [vmem:[%s3754_s1 + $0x8] sm:$0xff]  ;;  %742 = vmatpush.bf16.msra.mxu2 %v2845_v6  ;;  %v2848_v19 = vld [vmem:[%s2994_s20 + $0xbc] sm:$0xff]  ;;  %v2832_v29 = vld [vmem:[%s2994_s20 + $0x54] sm:$0xff] }
  0x13   : > { %943 = vmatpush.bf16.msra.mxu3 %v2854_v7  ;;  %2501 = vmatmul.msk.bf16.vlgmr.msra.gmra.mxu0 %vm301_vm0, %v2820_v12  ;;  %v2821_v16 = vld [vmem:[%s2994_s20 + $0x8] sm:$0xff]  ;;  %v2890_v24 = vld [vmem:[%s3754_s1] sm:$0xff]  ;;  %v2823_v28 = vld [vmem:[%s2994_s20 + $0x18] sm:$0xff] }
  0x14   : > { %2545 = vmatmul.msk.bf16.vlgmr.msra.gmra.mxu1 %vm301_vm0, %v2829_v13  ;;  %1143 = vmatpush.bf16.msrb.mxu0 %v2864_v10  ;;  %v2830_v17 = vld [vmem:[%s2994_s20 + $0x44] sm:$0xff]  ;;  %v2831_v21 = vld [vmem:[%s2994_s20 + $0x4c] sm:$0xff]  ;;  %v2833_v33 = vld [vmem:[%s2994_s20 + $0x5c] sm:$0xff] }
  0x15   : > { %2589 = vmatmul.msk.bf16.vlgmr.msra.gmra.mxu2 %vm301_vm0, %v2838_v14  ;;  %1344 = vmatpush.bf16.msrb.mxu1 %v2873_v11  ;;  %v2840_v22 = vld [vmem:[%s2994_s20 + $0x88] sm:$0xff]  ;;  %v2881_v25 = vld [vmem:[%s3754_s1] sm:$0xff]  ;;  %v2841_v30 = vld [vmem:[%s2994_s20 + $0x90] sm:$0xff] }
  0x16   : > { %1545 = vmatpush.bf16.msrb.mxu2 %v2882_v9  ;;  %2633 = vmatmul.msk.bf16.vlgmr.msra.gmra.mxu3 %vm301_vm0, %v2847_v15  ;;  %v2849_v23 = vld [vmem:[%s2994_s20 + $0xc4] sm:$0xff]  ;;  %v2850_v31 = vld [vmem:[%s2994_s20 + $0xcc] sm:$0xff]  ;;  %v2842_v34 = vld [vmem:[%s2994_s20 + $0x98] sm:$0xff] }
  0x17   : > { %1746 = vmatpush.bf16.msrb.mxu3 %v2891_v8  ;;  %v2863_v26 = vld [vmem:[%s3754_s1] sm:$0xff]  ;;  %v2851_v35 = vld [vmem:[%s2994_s20 + $0xd4] sm:$0xff]  ;;  %v2825_v36 = vld [vmem:[%s2994_s20 + $0x28] sm:$0xff] }
  0x18   : > { %v2872_v27 = vld [vmem:[%s3754_s1] sm:$0xff]  ;;  %1144 = vmatpush.bf16.msrb.mxu0 %v2863_v26  ;;  %v2826_v40 = vld [vmem:[%s2994_s20 + $0x30] sm:$0xff]  ;;  %v2844_v42 = vld [vmem:[%s2994_s20 + $0xa8] sm:$0xff] }
  0x19   : > { %1345 = vmatpush.bf16.msrb.mxu1 %v2872_v27  ;;  %v2824_v32 = vld [vmem:[%s2994_s20 + $0x20] sm:$0xff]  ;;  %v2835_v41 = vld [vmem:[%s2994_s20 + $0x6c] sm:$0xff]  ;;  %v243_v44 = vld [vmem:[%s2994_s20 + $0x38] sm:$0xf] }
  0x1a   : > { %1546 = vmatpush.bf16.msrb.mxu2 %v2881_v25  ;;  %v2834_v37 = vld [vmem:[%s2994_s20 + $0x64] sm:$0xff]  ;;  %v2852_v39 = vld [vmem:[%s2994_s20 + $0xdc] sm:$0xff]  ;;  %v455_v45 = vld [vmem:[%s2994_s20 + $0x74] sm:$0xf]  ;;  %v280_v48 = vunpack.c.l.b16 %v243_v44 }
  0x1b   : > { %1747 = vmatpush.bf16.msrb.mxu3 %v2890_v24  ;;  %v2843_v38 = vld [vmem:[%s2994_s20 + $0xa0] sm:$0xff]  ;;  %v656_v46 = vld [vmem:[%s2994_s20 + $0xb0] sm:$0xf]  ;;  %v857_v47 = vld [vmem:[%s2994_s20 + $0xec] sm:$0xf]  ;;  %v489_v49 = vunpack.c.l.b16 %v455_v45 }
  0x1c   : > { %v2853_v43 = vld [vmem:[%s2994_s20 + $0xe4] sm:$0xff]  ;;  %v690_v50 = vunpack.c.l.b16 %v656_v46  ;;  %v891_v51 = vunpack.c.l.b16 %v857_v47  ;;  %v288_v52 = vpack.c.b16 %v280_v48, %v280_v48  ;;  %v3081_v56 = vld [vmem:[%s3755_s2] ss:$0 sm:$0xff]  ;;  %v2856_v57 = vld [vmem:[%s2994_s20 + $0xf0] sm:$0xff] }
  0x1d   : > { %v497_v53 = vpack.c.b16 %v489_v49, %v489_v49  ;;  %v2865_v58 = vld [vmem:[%s2994_s20 + $0x12c] sm:$0xff]  ;;  %v2883_v62 = vld [vmem:[%s2994_s20 + $0x1a4] sm:$0xff]  ;;  %v3091_v0 = vld [vmem:[%s3756_s3] ss:$0 sm:$0xff] }
  0x1e   : > { %v698_v54 = vpack.c.b16 %v690_v50, %v690_v50  ;;  %v899_v55 = vpack.c.b16 %v891_v51, %v891_v51  ;;  %v2874_v61 = vld [vmem:[%s2994_s20 + $0x168] sm:$0xff]  ;;  %v3097_v3 = vld [vmem:[%s3757_s4] ss:$0 sm:$0xff] }
  0x23   : > { %2502 = vmatmul.msk.bf16.gmra.mxu0 %vm301_vm0, %v2821_v16 }
  0x24   : > { %2546 = vmatmul.msk.bf16.gmra.mxu1 %vm301_vm0, %v2830_v17 }
  0x25   : > { %2590 = vmatmul.msk.bf16.gmra.mxu2 %vm301_vm0, %v2839_v18 }
  0x26   : > { %2634 = vmatmul.msk.bf16.gmra.mxu3 %vm301_vm0, %v2848_v19 }
  0x33   : > { %2503 = vmatmul.msk.bf16.gmra.mxu0 %vm301_vm0, %v2822_v20 }
  0x34   : > { %2547 = vmatmul.msk.bf16.gmra.mxu1 %vm301_vm0, %v2831_v21 }
  0x35   : > { %2591 = vmatmul.msk.bf16.gmra.mxu2 %vm301_vm0, %v2840_v22 }
  0x36   : > { %2635 = vmatmul.msk.bf16.gmra.mxu3 %vm301_vm0, %v2849_v23 }
  0x43   : > { %2504 = vmatmul.msk.bf16.gmra.mxu0 %vm301_vm0, %v2823_v28 }
  0x44   : > { %2548 = vmatmul.msk.bf16.gmra.mxu1 %vm301_vm0, %v2832_v29 }
  0x45   : > { %2592 = vmatmul.msk.bf16.gmra.mxu2 %vm301_vm0, %v2841_v30 }
  0x46   : > { %2636 = vmatmul.msk.bf16.gmra.mxu3 %vm301_vm0, %v2850_v31  ;;  %v2857_v31 = vld [vmem:[%s2994_s20 + $0xf8] sm:$0xff] }
  0x53   : > { %2505 = vmatmul.msk.bf16.gmra.mxu0 %vm301_vm0, %v2824_v32  ;;  %v2866_v32 = vld [vmem:[%s2994_s20 + $0x134] sm:$0xff] }
  0x54   : > { %2549 = vmatmul.msk.bf16.gmra.mxu1 %vm301_vm0, %v2833_v33 }
  0x55   : > { %2593 = vmatmul.msk.bf16.gmra.mxu2 %vm301_vm0, %v2842_v34 }
  0x56   : > { %2637 = vmatmul.msk.bf16.gmra.mxu3 %vm301_vm0, %v2851_v35 }
  0x63   : > { %2506 = vmatmul.msk.bf16.gmra.mxu0 %vm301_vm0, %v2825_v36 }
  0x64   : > { %2550 = vmatmul.msk.bf16.gmra.mxu1 %vm301_vm0, %v2834_v37  ;;  %v2875_v37 = vld [vmem:[%s2994_s20 + $0x170] sm:$0xff] }
  0x65   : > { %2594 = vmatmul.msk.bf16.gmra.mxu2 %vm301_vm0, %v2843_v38  ;;  %v2884_v38 = vld [vmem:[%s2994_s20 + $0x1ac] sm:$0xff] }
  0x66   : > { %2638 = vmatmul.msk.bf16.gmra.mxu3 %vm301_vm0, %v2852_v39 }
  0x73   : > { %2507 = vmatmul.msk.bf16.gmra.mxu0 %vm301_vm0, %v2826_v40 }
  0x74   : > { %2551 = vmatmul.msk.bf16.gmra.mxu1 %vm301_vm0, %v2835_v41 }
  0x75   : > { %2595 = vmatmul.msk.bf16.gmra.mxu2 %vm301_vm0, %v2844_v42 }
  0x76   : > { %2639 = vmatmul.msk.bf16.gmra.mxu3 %vm301_vm0, %v2853_v43 }
  0x83   : > { %2508 = vmatmul.msk.bf16.gmra.mxu0 %vm301_vm0, %v288_v52 }
  0x84   : > { %2552 = vmatmul.msk.bf16.gmra.mxu1 %vm301_vm0, %v497_v53 }
  0x85   : > { %2596 = vmatmul.msk.bf16.gmra.mxu2 %vm301_vm0, %v698_v54 }
  0x86   : > { %2640 = vmatmul.msk.bf16.gmra.mxu3 %vm301_vm0, %v899_v55 }
  0x90   : > { %v335_v59 = vpop.f32.mrf.mxu0 }
  0x91   : > { %v543_v60 = vpop.f32.mrf.mxu1  ;;  %v336_v63 = vadd.f32 %v3081_v56, %v335_v59 }
  0x92   : > { %v544_v1 = vadd.f32 %v3081_v56, %v543_v60 }
  0x93   : > { %v374_v2 = vmax.f32 %v336_v63, 0.0  ;;  %2677 = vmatmul.msk.bf16.vlgmr.msrb.gmra.mxu0 %vm301_vm0, %v2856_v57 }
  0x94   : > { %v582_v4 = vmax.f32 %v544_v1, 0.0  ;;  %2721 = vmatmul.msk.bf16.vlgmr.msrb.gmra.mxu1 %vm301_vm0, %v2865_v58 }
  0x95   : > { %2765 = vmatmul.msk.bf16.vlgmr.msrb.gmra.mxu2 %vm301_vm0, %v2874_v61  ;;  %v392_v5 = vmul.f32 %v3091_v0, %v374_v2 }
  0x96   : > { %2809 = vmatmul.msk.bf16.vlgmr.msrb.gmra.mxu3 %vm301_vm0, %v2883_v62  ;;  %v597_v6 = vmul.f32 %v3091_v0, %v582_v4 }
  0x97   : > { %v410_v7 = vadd.f32 %v3097_v3, %v392_v5 }
  0x98   : > { %v612_v8 = vadd.f32 %v3097_v3, %v597_v6  ;;  %v744_v9 = vpop.f32.mrf.mxu2  ;;  %v337_v13 = vpop.f32.mrf.mxu0 }
  0x99   : > { %v945_v10 = vpop.f32.mrf.mxu3  ;;  %v745_v11 = vadd.f32 %v3081_v56, %v744_v9  ;;  %v545_v14 = vpop.f32.mrf.mxu1  ;;  %426 = vst.msk [vmem:[#allocation2] sm:$0xff] %vm425_vm1, %v410_v7  ;;  %v338_v15 = vadd.f32 %v3081_v56, %v337_v13 }
  0x9a   : > { %v946_v12 = vadd.f32 %v3081_v56, %v945_v10  ;;  %v546_v16 = vadd.f32 %v3081_v56, %v545_v14  ;;  %627 = vst.msk [vmem:[#allocation2 + $0x78] sm:$0xff] %vm425_vm1, %v612_v8  ;;  %v2858_v14 = vld [vmem:[%s2994_s20 + $0x100] sm:$0xff] }
  0x9b   : > { %v783_v17 = vmax.f32 %v745_v11, 0.0  ;;  %v375_v19 = vmax.f32 %v338_v15, 0.0  ;;  %v2867_v15 = vld [vmem:[%s2994_s20 + $0x13c] sm:$0xff] }
  0x9c   : > { %v984_v18 = vmax.f32 %v946_v12, 0.0  ;;  %v583_v20 = vmax.f32 %v546_v16, 0.0 }
  0x9d   : > { %v798_v21 = vmul.f32 %v3091_v0, %v783_v17  ;;  %v393_v23 = vmul.f32 %v3091_v0, %v375_v19 }
  0x9e   : > { %v999_v22 = vmul.f32 %v3091_v0, %v984_v18  ;;  %v598_v24 = vmul.f32 %v3091_v0, %v583_v20  ;;  %v2876_v20 = vld [vmem:[%s2994_s20 + $0x178] sm:$0xff] }
  0x9f   : > { %v813_v25 = vadd.f32 %v3097_v3, %v798_v21  ;;  %v411_v27 = vadd.f32 %v3097_v3, %v393_v23  ;;  %v2885_v21 = vld [vmem:[%s2994_s20 + $0x1b4] sm:$0xff] }
  0xa0   : > { %v1014_v26 = vadd.f32 %v3097_v3, %v999_v22  ;;  %v613_v28 = vadd.f32 %v3097_v3, %v598_v24  ;;  %v746_v29 = vpop.f32.mrf.mxu2  ;;  %v340_v35 = vpop.f32.mrf.mxu0  ;;  %v2919_v24 = vmov 0  }
  0xa1   : > { %v947_v30 = vpop.f32.mrf.mxu3  ;;  %828 = vst.msk [vmem:[#allocation2 + $0xf0] sm:$0xff] %vm425_vm1, %v813_v25  ;;  %v747_v33 = vadd.f32 %v3081_v56, %v746_v29  ;;  %v548_v36 = vpop.f32.mrf.mxu1  ;;  %v341_v39 = vadd.f32 %v3081_v56, %v340_v35  ;;  %v2303_v25 = vunpack.c.l.b16 %v2919_v24 }
  0xa2   : > { %v948_v34 = vadd.f32 %v3081_v56, %v947_v30  ;;  %1029 = vst.msk [vmem:[#allocation2 + $0x168] sm:$0xff] %vm425_vm1, %v1014_v26  ;;  %v549_v40 = vadd.f32 %v3081_v56, %v548_v36  ;;  %v2304_v26 = vunpack.c.h.b16 %v2919_v24 }
  0xa3   : > { %427 = vst.msk [vmem:[#allocation2 + $0x8] sm:$0xff] %vm425_vm1, %v411_v27  ;;  %v784_v41 = vmax.f32 %v747_v33, 0.0  ;;  %v376_v43 = vmax.f32 %v341_v39, 0.0  ;;  %2678 = vmatmul.msk.bf16.gmra.mxu0 %vm301_vm0, %v2857_v31 }
  0xa4   : > { %v985_v42 = vmax.f32 %v948_v34, 0.0  ;;  %628 = vst.msk [vmem:[#allocation2 + $0x80] sm:$0xff] %vm425_vm1, %v613_v28  ;;  %v584_v44 = vmax.f32 %v549_v40, 0.0  ;;  %2722 = vmatmul.msk.bf16.gmra.mxu1 %vm301_vm0, %v2866_v32  ;;  %v2335_v32 = vpack.c.b16 %v2303_v25, %v2303_v25  ;;  %v2336_v33 = vpack.c.b16 %v2304_v26, %v2304_v26 }
  0xa5   : > { %v799_v45 = vmul.f32 %v3091_v0, %v784_v41  ;;  %2766 = vmatmul.msk.bf16.gmra.mxu2 %vm301_vm0, %v2875_v37  ;;  %v394_v47 = vmul.f32 %v3091_v0, %v376_v43 }
  0xa6   : > { %v1000_v46 = vmul.f32 %v3091_v0, %v985_v42  ;;  %2810 = vmatmul.msk.bf16.gmra.mxu3 %vm301_vm0, %v2884_v38  ;;  %v599_v48 = vmul.f32 %v3091_v0, %v584_v44  ;;  %2400 = vst.msk [vmem:[%s3185_s16 + $0x78] sm:$0xf] %vm2369_vm2, %v2335_v32 }
  0xa7   : > { %v814_v49 = vadd.f32 %v3097_v3, %v799_v45  ;;  %v412_v51 = vadd.f32 %v3097_v3, %v394_v47  ;;  %2401 = vst.msk [vmem:[%s3185_s16 + $0x7c] sm:$0xf] %vm2369_vm2, %v2336_v33 }
  0xa8   : > { %v1015_v50 = vadd.f32 %v3097_v3, %v1000_v46  ;;  %v614_v52 = vadd.f32 %v3097_v3, %v599_v48  ;;  %v749_v53 = vpop.f32.mrf.mxu2  ;;  %v342_v58 = vpop.f32.mrf.mxu0 }
  0xa9   : > { %v950_v54 = vpop.f32.mrf.mxu3  ;;  %829 = vst.msk [vmem:[#allocation2 + $0xf8] sm:$0xff] %vm425_vm1, %v814_v49  ;;  %v750_v55 = vadd.f32 %v3081_v56, %v749_v53  ;;  %v550_v59 = vpop.f32.mrf.mxu1  ;;  %v343_v60 = vadd.f32 %v3081_v56, %v342_v58 }
  0xaa   : > { %v951_v57 = vadd.f32 %v3081_v56, %v950_v54  ;;  %1030 = vst.msk [vmem:[#allocation2 + $0x170] sm:$0xff] %vm425_vm1, %v1015_v50  ;;  %v551_v61 = vadd.f32 %v3081_v56, %v550_v59 }
  0xab   : > { %428 = vst.msk [vmem:[#allocation2 + $0x10] sm:$0xff] %vm425_vm1, %v412_v51  ;;  %v785_v62 = vmax.f32 %v750_v55, 0.0  ;;  %v377_v1 = vmax.f32 %v343_v60, 0.0 }
  0xac   : > { %v986_v63 = vmax.f32 %v951_v57, 0.0  ;;  %629 = vst.msk [vmem:[#allocation2 + $0x88] sm:$0xff] %vm425_vm1, %v614_v52  ;;  %v585_v2 = vmax.f32 %v551_v61, 0.0 }
  0xad   : > { %v800_v4 = vmul.f32 %v3091_v0, %v785_v62  ;;  %v395_v6 = vmul.f32 %v3091_v0, %v377_v1  ;;  %v2859_v1 = vld [vmem:[%s2994_s20 + $0x108] sm:$0xff] }
  0xae   : > { %v1001_v5 = vmul.f32 %v3091_v0, %v986_v63  ;;  %v600_v7 = vmul.f32 %v3091_v0, %v585_v2  ;;  %v2868_v2 = vld [vmem:[%s2994_s20 + $0x144] sm:$0xff] }
  0xaf   : > { %v815_v8 = vadd.f32 %v3097_v3, %v800_v4  ;;  %v413_v10 = vadd.f32 %v3097_v3, %v395_v6 }
  0xb0   : > { %v1016_v9 = vadd.f32 %v3097_v3, %v1001_v5  ;;  %v615_v11 = vadd.f32 %v3097_v3, %v600_v7  ;;  %v751_v12 = vpop.f32.mrf.mxu2  ;;  %v345_v18 = vpop.f32.mrf.mxu0 }
  0xb1   : > { %v952_v13 = vpop.f32.mrf.mxu3  ;;  %830 = vst.msk [vmem:[#allocation2 + $0x100] sm:$0xff] %vm425_vm1, %v815_v8  ;;  %v752_v16 = vadd.f32 %v3081_v56, %v751_v12  ;;  %v553_v19 = vpop.f32.mrf.mxu1  ;;  %v346_v22 = vadd.f32 %v3081_v56, %v345_v18  ;;  %v2877_v8 = vld [vmem:[%s2994_s20 + $0x180] sm:$0xff] }
  0xb2   : > { %v953_v17 = vadd.f32 %v3081_v56, %v952_v13  ;;  %1031 = vst.msk [vmem:[#allocation2 + $0x178] sm:$0xff] %vm425_vm1, %v1016_v9  ;;  %v554_v23 = vadd.f32 %v3081_v56, %v553_v19  ;;  %v2886_v9 = vld [vmem:[%s2994_s20 + $0x1bc] sm:$0xff] }
  0xb3   : > { %429 = vst.msk [vmem:[#allocation2 + $0x18] sm:$0xff] %vm425_vm1, %v413_v10  ;;  %v786_v27 = vmax.f32 %v752_v16, 0.0  ;;  %v378_v29 = vmax.f32 %v346_v22, 0.0  ;;  %2679 = vmatmul.msk.bf16.gmra.mxu0 %vm301_vm0, %v2858_v14  ;;  %v1857_v22 = vld [vmem:[#allocation2 + $0x1] ss:$2 sm:$0xff] }
  0xb4   : > { %630 = vst.msk [vmem:[#allocation2 + $0x90] sm:$0xff] %vm425_vm1, %v615_v11  ;;  %v987_v28 = vmax.f32 %v953_v17, 0.0  ;;  %v586_v30 = vmax.f32 %v554_v23, 0.0  ;;  %2723 = vmatmul.msk.bf16.gmra.mxu1 %vm301_vm0, %v2867_v15 }
  0xb5   : > { %v801_v31 = vmul.f32 %v3091_v0, %v786_v27  ;;  %2767 = vmatmul.msk.bf16.gmra.mxu2 %vm301_vm0, %v2876_v20  ;;  %v396_v35 = vmul.f32 %v3091_v0, %v378_v29 }
  0xb6   : > { %2811 = vmatmul.msk.bf16.gmra.mxu3 %vm301_vm0, %v2885_v21  ;;  %v1002_v34 = vmul.f32 %v3091_v0, %v987_v28  ;;  %v601_v36 = vmul.f32 %v3091_v0, %v586_v30  ;;  %v1853_v21 = vld [vmem:[#allocation2] ss:$2 sm:$0xff] }
  0xb7   : > { %v816_v37 = vadd.f32 %v3097_v3, %v801_v31  ;;  %v414_v39 = vadd.f32 %v3097_v3, %v396_v35 }
  0xb8   : > { %v1017_v38 = vadd.f32 %v3097_v3, %v1002_v34  ;;  %v616_v40 = vadd.f32 %v3097_v3, %v601_v36  ;;  %v754_v41 = vpop.f32.mrf.mxu2  ;;  %v347_v45 = vpop.f32.mrf.mxu0  ;;  %v1868_v36 = vmax.f32 %v1853_v21, %v1857_v22 }
  0xb9   : > { %v955_v42 = vpop.f32.mrf.mxu3  ;;  %831 = vst.msk [vmem:[#allocation2 + $0x108] sm:$0xff] %vm425_vm1, %v816_v37  ;;  %v755_v43 = vadd.f32 %v3081_v56, %v754_v41  ;;  %v555_v46 = vpop.f32.mrf.mxu1  ;;  %v348_v47 = vadd.f32 %v3081_v56, %v347_v45 }
  0xba   : > { %v956_v44 = vadd.f32 %v3081_v56, %v955_v42  ;;  %1032 = vst.msk [vmem:[#allocation2 + $0x180] sm:$0xff] %vm425_vm1, %v1017_v38  ;;  %v556_v48 = vadd.f32 %v3081_v56, %v555_v46  ;;  %v1848_v46 = vlaneseq }
  0xbb   : > { %430 = vst.msk [vmem:[#allocation2 + $0x20] sm:$0xff] %vm425_vm1, %v414_v39  ;;  %v787_v49 = vmax.f32 %v755_v43, 0.0  ;;  %v379_v51 = vmax.f32 %v348_v47, 0.0 }
  0xbc   : > { %v988_v50 = vmax.f32 %v956_v44, 0.0  ;;  %631 = vst.msk [vmem:[#allocation2 + $0x98] sm:$0xff] %vm425_vm1, %v616_v40  ;;  %v587_v52 = vmax.f32 %v556_v48, 0.0  ;;  %v1905_v48 = vld [vmem:[#allocation2 + $0x80] ss:$2 sm:$0xff] }
  0xbd   : > { %v802_v53 = vmul.f32 %v3091_v0, %v787_v49  ;;  %v397_v55 = vmul.f32 %v3091_v0, %v379_v51 }
  0xbe   : > { %v1003_v54 = vmul.f32 %v3091_v0, %v988_v50  ;;  %v602_v57 = vmul.f32 %v3091_v0, %v587_v52  ;;  %v1909_v52 = vld [vmem:[#allocation2 + $0x81] ss:$2 sm:$0xff] }
  0xbf   : > { %v817_v58 = vadd.f32 %v3097_v3, %v802_v53  ;;  %v415_v60 = vadd.f32 %v3097_v3, %v397_v55 }
  0xc0   : > { %v1018_v59 = vadd.f32 %v3097_v3, %v1003_v54  ;;  %v617_v61 = vadd.f32 %v3097_v3, %v602_v57  ;;  %v756_v62 = vpop.f32.mrf.mxu2  ;;  %v350_v6 = vpop.f32.mrf.mxu0 }
  0xc1   : > { %v957_v63 = vpop.f32.mrf.mxu3  ;;  %832 = vst.msk [vmem:[#allocation2 + $0x110] sm:$0xff] %vm425_vm1, %v817_v58  ;;  %v757_v4 = vadd.f32 %v3081_v56, %v756_v62  ;;  %v558_v7 = vpop.f32.mrf.mxu1  ;;  %v351_v10 = vadd.f32 %v3081_v56, %v350_v6  ;;  %v2860_v58 = vld [vmem:[%s2994_s20 + $0x110] sm:$0xff] }
  0xc2   : > { %v958_v5 = vadd.f32 %v3081_v56, %v957_v63  ;;  %1033 = vst.msk [vmem:[#allocation2 + $0x188] sm:$0xff] %vm425_vm1, %v1018_v59  ;;  %v559_v11 = vadd.f32 %v3081_v56, %v558_v7  ;;  %v2869_v59 = vld [vmem:[%s2994_s20 + $0x14c] sm:$0xff] }
  0xc3   : > { %431 = vst.msk [vmem:[#allocation2 + $0x28] sm:$0xff] %vm425_vm1, %v415_v60  ;;  %v788_v12 = vmax.f32 %v757_v4, 0.0  ;;  %v380_v14 = vmax.f32 %v351_v10, 0.0  ;;  %2680 = vmatmul.msk.bf16.gmra.mxu0 %vm301_vm0, %v2859_v1  ;;  %v2887_v4 = vld [vmem:[%s2994_s20 + $0x1c4] sm:$0xff] }
  0xc4   : > { %632 = vst.msk [vmem:[#allocation2 + $0xa0] sm:$0xff] %vm425_vm1, %v617_v61  ;;  %v989_v13 = vmax.f32 %v958_v5, 0.0  ;;  %v588_v15 = vmax.f32 %v559_v11, 0.0  ;;  %2724 = vmatmul.msk.bf16.gmra.mxu1 %vm301_vm0, %v2868_v2  ;;  %v2878_v2 = vld [vmem:[%s2994_s20 + $0x188] sm:$0xff]  ;;  %v1849_v5 = vshrl.u32 %v1848_v46, 7 }
  0xc5   : > { %v803_v16 = vmul.f32 %v3091_v0, %v788_v12  ;;  %2768 = vmatmul.msk.bf16.gmra.mxu2 %vm301_vm0, %v2877_v8  ;;  %v398_v18 = vmul.f32 %v3091_v0, %v380_v14  ;;  %v1920_v8 = vmax.f32 %v1905_v48, %v1909_v52  ;;  %v1961_v52 = vld [vmem:[#allocation2 + $0x101] ss:$2 sm:$0xff] }
  0xc6   : > { %2812 = vmatmul.msk.bf16.gmra.mxu3 %vm301_vm0, %v2886_v9  ;;  %v1004_v17 = vmul.f32 %v3091_v0, %v989_v13  ;;  %v603_v19 = vmul.f32 %v3091_v0, %v588_v15  ;;  %v3273_v22 = vadd.s32 8, %v1849_v5 }
  0xc7   : > { %v818_v20 = vadd.f32 %v3097_v3, %v803_v16  ;;  %v416_v24 = vadd.f32 %v3097_v3, %v398_v18 }
  0xc8   : > { %v1019_v23 = vadd.f32 %v3097_v3, %v1004_v17  ;;  %v618_v25 = vadd.f32 %v3097_v3, %v603_v19  ;;  %v759_v26 = vpop.f32.mrf.mxu2  ;;  %v352_v30 = vpop.f32.mrf.mxu0  ;;  %vm1852_vm3 = vcmp.lt.s32.totalorder %v3273_v22, 15 }
  0xc9   : > { %v960_v27 = vpop.f32.mrf.mxu3  ;;  %833 = vst.msk [vmem:[#allocation2 + $0x118] sm:$0xff] %vm425_vm1, %v818_v20  ;;  %v760_v28 = vadd.f32 %v3081_v56, %v759_v26  ;;  %v560_v31 = vpop.f32.mrf.mxu1  ;;  %v353_v34 = vadd.f32 %v3081_v56, %v352_v30 }
  0xca   : > { %v961_v29 = vadd.f32 %v3081_v56, %v960_v27  ;;  %v1861_v32 = vld [vmem:[#allocation2 + $0x20] ss:$2 sm:$0xff]  ;;  %v1865_v33 = vld [vmem:[#allocation2 + $0x21] ss:$2 sm:$0xff]  ;;  %1034 = vst.msk [vmem:[#allocation2 + $0x190] sm:$0xff] %vm425_vm1, %v1019_v23  ;;  %v561_v35 = vadd.f32 %v3081_v56, %v560_v31 }
  0xcb   : > { %v1870_v37 = vmax.f32 %v1861_v32, %v1865_v33  ;;  %432 = vst.msk [vmem:[#allocation2 + $0x30] sm:$0xff] %vm425_vm1, %v416_v24  ;;  %v789_v38 = vmax.f32 %v760_v28, 0.0  ;;  %v381_v40 = vmax.f32 %v353_v34, 0.0  ;;  %v1855_v24 = vld [vmem:[#allocation2 + $0x10] ss:$2 sm:$0xff] }
  0xcc   : > { %v990_v39 = vmax.f32 %v961_v29, 0.0  ;;  %633 = vst.msk [vmem:[#allocation2 + $0xa8] sm:$0xff] %vm425_vm1, %v618_v25  ;;  %v589_v41 = vmax.f32 %v561_v35, 0.0  ;;  %v1859_v25 = vld [vmem:[#allocation2 + $0x11] ss:$2 sm:$0xff] }
  0xcd   : > { %v1872_v42 = vmax.f32 %v1868_v36, %v1870_v37  ;;  %v804_v43 = vmul.f32 %v3091_v0, %v789_v38  ;;  %v399_v45 = vmul.f32 %v3091_v0, %v381_v40 }
  0xce   : > { %v1005_v44 = vmul.f32 %v3091_v0, %v990_v39  ;;  %v604_v47 = vmul.f32 %v3091_v0, %v589_v41  ;;  %v1869_v41 = vmax.f32 %v1855_v24, %v1859_v25 }
  0xcf   : > { %v1876_v49 = vpack.c.bf16 %v1872_v42, %v1872_v42  ;;  %v819_v50 = vadd.f32 %v3097_v3, %v804_v43  ;;  %v417_v53 = vadd.f32 %v3097_v3, %v399_v45 }
  0xd0   : > { %v1020_v51 = vadd.f32 %v3097_v3, %v1005_v44  ;;  %v619_v54 = vadd.f32 %v3097_v3, %v604_v47  ;;  %v761_v55 = vpop.f32.mrf.mxu2  ;;  %v355_v63 = vpop.f32.mrf.mxu0 }
  0xd1   : > { %v962_v57 = vpop.f32.mrf.mxu3  ;;  %v2244_v60 = vunpack.c.l.b16 %v1876_v49  ;;  %834 = vst.msk [vmem:[#allocation2 + $0x120] sm:$0xff] %vm425_vm1, %v819_v50  ;;  %v762_v61 = vadd.f32 %v3081_v56, %v761_v55  ;;  %v563_v1 = vpop.f32.mrf.mxu1  ;;  %v356_v6 = vadd.f32 %v3081_v56, %v355_v63  ;;  %v1907_v55 = vld [vmem:[#allocation2 + $0x90] ss:$2 sm:$0xff] }
  0xd2   : > { %v963_v62 = vadd.f32 %v3081_v56, %v962_v57  ;;  %1035 = vst.msk [vmem:[#allocation2 + $0x198] sm:$0xff] %vm425_vm1, %v1020_v51  ;;  %v564_v7 = vadd.f32 %v3081_v56, %v563_v1  ;;  %v1957_v51 = vld [vmem:[#allocation2 + $0x100] ss:$2 sm:$0xff]  ;;  %v1911_v57 = vld [vmem:[#allocation2 + $0x91] ss:$2 sm:$0xff] }
  0xd3   : > { %v2305_v9 = vpack.c.b16 %v2244_v60, %v2244_v60  ;;  %v1913_v10 = vld [vmem:[#allocation2 + $0xa0] ss:$2 sm:$0xff]  ;;  %v1917_v11 = vld [vmem:[#allocation2 + $0xa1] ss:$2 sm:$0xff]  ;;  %433 = vst.msk [vmem:[#allocation2 + $0x38] sm:$0xff] %vm425_vm1, %v417_v53  ;;  %v790_v12 = vmax.f32 %v762_v61, 0.0  ;;  %2681 = vmatmul.msk.bf16.gmra.mxu0 %vm301_vm0, %v2860_v58 }
  0xd4   : > { %v1922_v13 = vmax.f32 %v1913_v10, %v1917_v11  ;;  %634 = vst.msk [vmem:[#allocation2 + $0xb0] sm:$0xff] %vm425_vm1, %v619_v54  ;;  %v991_v14 = vmax.f32 %v963_v62, 0.0  ;;  %v382_v15 = vmax.f32 %v356_v6, 0.0  ;;  %v590_v16 = vmax.f32 %v564_v7, 0.0  ;;  %2725 = vmatmul.msk.bf16.gmra.mxu1 %vm301_vm0, %v2869_v59  ;;  %v2861_v61 = vld [vmem:[%s2994_s20 + $0x118] sm:$0xff] }
  0xd5   : > { %2370 = vst.msk [vmem:[%s3185_s16] sm:$0xf] %vm2369_vm2, %v2305_v9  ;;  %v805_v17 = vmul.f32 %v3091_v0, %v790_v12  ;;  %2769 = vmatmul.msk.bf16.gmra.mxu2 %vm301_vm0, %v2878_v2  ;;  %v2870_v7 = vld [vmem:[%s2994_s20 + $0x154] sm:$0xff] }
  0xd6   : > { %2813 = vmatmul.msk.bf16.gmra.mxu3 %vm301_vm0, %v2887_v4  ;;  %v1924_v18 = vmax.f32 %v1920_v8, %v1922_v13  ;;  %v1006_v19 = vmul.f32 %v3091_v0, %v991_v14  ;;  %v400_v20 = vmul.f32 %v3091_v0, %v382_v15  ;;  %v605_v21 = vmul.f32 %v3091_v0, %v590_v16  ;;  %v2879_v14 = vld [vmem:[%s2994_s20 + $0x190] sm:$0xff] }
  0xd7   : > { %v820_v23 = vadd.f32 %v3097_v3, %v805_v17  ;;  %v1972_v8 = vmax.f32 %v1957_v51, %v1961_v52  ;;  %v2888_v15 = vld [vmem:[%s2994_s20 + $0x1cc] sm:$0xff] }
  0xd8   : > { %v1928_v26 = vpack.c.bf16 %v1924_v18, %v1924_v18  ;;  %v1021_v27 = vadd.f32 %v3097_v3, %v1006_v19  ;;  %v418_v28 = vadd.f32 %v3097_v3, %v400_v20  ;;  %v620_v29 = vadd.f32 %v3097_v3, %v605_v21  ;;  %v764_v30 = vpop.f32.mrf.mxu2  ;;  %v357_v34 = vpop.f32.mrf.mxu0 }
  0xd9   : > { %v965_v31 = vpop.f32.mrf.mxu3  ;;  %835 = vst.msk [vmem:[#allocation2 + $0x128] sm:$0xff] %vm425_vm1, %v820_v23  ;;  %v765_v32 = vadd.f32 %v3081_v56, %v764_v30  ;;  %v565_v35 = vpop.f32.mrf.mxu1  ;;  %v358_v39 = vadd.f32 %v3081_v56, %v357_v34  ;;  %v1921_v19 = vmax.f32 %v1907_v55, %v1911_v57  ;;  %v2013_v30 = vld [vmem:[#allocation2 + $0x181] ss:$2 sm:$0xff] }
  0xda   : > { %v966_v33 = vadd.f32 %v3081_v56, %v965_v31  ;;  %v2252_v36 = vunpack.c.l.b16 %v1928_v26  ;;  %v1863_v37 = vld [vmem:[#allocation2 + $0x30] ss:$2 sm:$0xff]  ;;  %v1867_v38 = vld [vmem:[#allocation2 + $0x31] ss:$2 sm:$0xff]  ;;  %1036 = vst.msk [vmem:[#allocation2 + $0x1a0] sm:$0xff] %vm425_vm1, %v1021_v27  ;;  %v566_v40 = vadd.f32 %v3081_v56, %v565_v35 }
  0xdb   : > { %v1871_v42 = vmax.f32 %v1863_v37, %v1867_v38  ;;  %434 = vst.msk [vmem:[#allocation2 + $0x40] sm:$0xff] %vm425_vm1, %v418_v28  ;;  %v791_v43 = vmax.f32 %v765_v32, 0.0  ;;  %v383_v46 = vmax.f32 %v358_v39, 0.0 }
  0xdc   : > { %v992_v44 = vmax.f32 %v966_v33, 0.0  ;;  %v2309_v45 = vpack.c.b16 %v2252_v36, %v2252_v36  ;;  %635 = vst.msk [vmem:[#allocation2 + $0xb8] sm:$0xff] %vm425_vm1, %v620_v29  ;;  %v591_v47 = vmax.f32 %v566_v40, 0.0  ;;  %v2009_v29 = vld [vmem:[#allocation2 + $0x180] ss:$2 sm:$0xff] }
  0xdd   : > { %v1873_v48 = vmax.f32 %v1869_v41, %v1871_v42  ;;  %v806_v49 = vmul.f32 %v3091_v0, %v791_v43  ;;  %v401_v53 = vmul.f32 %v3091_v0, %v383_v46  ;;  %v2024_v40 = vmax.f32 %v2009_v29, %v2013_v30  ;;  %v2880_v29 = vld [vmem:[%s2994_s20 + $0x198] sm:$0xff] }
  0xde   : > { %v1007_v50 = vmul.f32 %v3091_v0, %v992_v44  ;;  %2374 = vst.msk [vmem:[%s3185_s16 + $0x10] sm:$0xf] %vm2369_vm2, %v2309_v45  ;;  %v606_v54 = vmul.f32 %v3091_v0, %v591_v47 }
  0xdf   : > { %v1875_v58 = vsel %vm1852_vm3, %v1873_v48, 0.0  ;;  %v821_v59 = vadd.f32 %v3097_v3, %v806_v49  ;;  %v419_v2 = vadd.f32 %v3097_v3, %v401_v53 }
  0xe0   : > { %v1022_v60 = vadd.f32 %v3097_v3, %v1007_v50  ;;  %v1877_v62 = vpack.c.bf16 %v1875_v58, %v1875_v58  ;;  %v1965_v63 = vld [vmem:[#allocation2 + $0x120] ss:$2 sm:$0xff]  ;;  %v1969_v1 = vld [vmem:[#allocation2 + $0x121] ss:$2 sm:$0xff]  ;;  %v621_v4 = vadd.f32 %v3097_v3, %v606_v54  ;;  %v766_v5 = vpop.f32.mrf.mxu2  ;;  %v360_v12 = vpop.f32.mrf.mxu0 }
  0xe1   : > { %v967_v6 = vpop.f32.mrf.mxu3  ;;  %v1974_v9 = vmax.f32 %v1965_v63, %v1969_v1  ;;  %836 = vst.msk [vmem:[#allocation2 + $0x130] sm:$0xff] %vm425_vm1, %v821_v59  ;;  %v767_v10 = vadd.f32 %v3081_v56, %v766_v5  ;;  %v568_v13 = vpop.f32.mrf.mxu1  ;;  %v361_v17 = vadd.f32 %v3081_v56, %v360_v12  ;;  %v2862_v12 = vld [vmem:[%s2994_s20 + $0x120] sm:$0xff] }
  0xe2   : > { %v968_v11 = vadd.f32 %v3081_v56, %v967_v6  ;;  %v2245_v16 = vunpack.c.l.b16 %v1877_v62  ;;  %1037 = vst.msk [vmem:[#allocation2 + $0x1a8] sm:$0xff] %vm425_vm1, %v1022_v60  ;;  %v569_v18 = vadd.f32 %v3081_v56, %v568_v13 }
  0xe3   : > { %v1976_v20 = vmax.f32 %v1972_v8, %v1974_v9  ;;  %v1915_v21 = vld [vmem:[#allocation2 + $0xb0] ss:$2 sm:$0xff]  ;;  %v1919_v23 = vld [vmem:[#allocation2 + $0xb1] ss:$2 sm:$0xff]  ;;  %435 = vst.msk [vmem:[#allocation2 + $0x48] sm:$0xff] %vm425_vm1, %v419_v2  ;;  %v792_v24 = vmax.f32 %v767_v10, 0.0  ;;  %2682 = vmatmul.msk.bf16.gmra.mxu0 %vm301_vm0, %v2861_v61 }
  0xe4   : > { %v2306_v25 = vpack.c.b16 %v2245_v16, %v2245_v16  ;;  %v1923_v26 = vmax.f32 %v1915_v21, %v1919_v23  ;;  %636 = vst.msk [vmem:[#allocation2 + $0xc0] sm:$0xff] %vm425_vm1, %v621_v4  ;;  %v993_v27 = vmax.f32 %v968_v11, 0.0  ;;  %v384_v28 = vmax.f32 %v361_v17, 0.0  ;;  %2726 = vmatmul.msk.bf16.gmra.mxu1 %vm301_vm0, %v2870_v7  ;;  %v1959_v2 = vld [vmem:[#allocation2 + $0x110] ss:$2 sm:$0xff] }
  0xe5   : > { %v1980_v31 = vpack.c.bf16 %v1976_v20, %v1976_v20  ;;  %v807_v32 = vmul.f32 %v3091_v0, %v792_v24  ;;  %v592_v33 = vmax.f32 %v569_v18, 0.0  ;;  %2770 = vmatmul.msk.bf16.gmra.mxu2 %vm301_vm0, %v2879_v14  ;;  %v1963_v4 = vld [vmem:[#allocation2 + $0x111] ss:$2 sm:$0xff] }
  0xe6   : > { %2814 = vmatmul.msk.bf16.gmra.mxu3 %vm301_vm0, %v2888_v15  ;;  %2371 = vst.msk [vmem:[%s3185_s16 + $0x4] sm:$0xf] %vm2369_vm2, %v2306_v25  ;;  %v1925_v34 = vmax.f32 %v1921_v19, %v1923_v26  ;;  %v1008_v35 = vmul.f32 %v3091_v0, %v993_v27  ;;  %v402_v36 = vmul.f32 %v3091_v0, %v384_v28  ;;  %v2871_v21 = vld [vmem:[%s2994_s20 + $0x15c] sm:$0xff] }
  0xe7   : > { %v2260_v37 = vunpack.c.l.b16 %v1980_v31  ;;  %v822_v38 = vadd.f32 %v3097_v3, %v807_v32  ;;  %v607_v39 = vmul.f32 %v3091_v0, %v592_v33  ;;  %v1973_v13 = vmax.f32 %v1959_v2, %v1963_v4  ;;  %v2889_v33 = vld [vmem:[%s2994_s20 + $0x1d4] sm:$0xff] }
  0xe8   : > { %v1927_v41 = vsel %vm1852_vm3, %v1925_v34, 0.0  ;;  %v1023_v42 = vadd.f32 %v3097_v3, %v1008_v35  ;;  %v420_v43 = vadd.f32 %v3097_v3, %v402_v36  ;;  %v769_v44 = vpop.f32.mrf.mxu2  ;;  %v362_v52 = vpop.f32.mrf.mxu0 }
  0xe9   : > { %v970_v45 = vpop.f32.mrf.mxu3  ;;  %v2313_v46 = vpack.c.b16 %v2260_v37, %v2260_v37  ;;  %v1929_v47 = vpack.c.bf16 %v1927_v41, %v1927_v41  ;;  %v2017_v48 = vld [vmem:[#allocation2 + $0x1a0] ss:$2 sm:$0xff]  ;;  %v2021_v49 = vld [vmem:[#allocation2 + $0x1a1] ss:$2 sm:$0xff]  ;;  %837 = vst.msk [vmem:[#allocation2 + $0x138] sm:$0xff] %vm425_vm1, %v822_v38  ;;  %v622_v50 = vadd.f32 %v3097_v3, %v607_v39  ;;  %v770_v51 = vadd.f32 %v3081_v56, %v769_v44  ;;  %v570_v53 = vpop.f32.mrf.mxu1 }
  0xea   : > { %v2026_v54 = vmax.f32 %v2017_v48, %v2021_v49  ;;  %1038 = vst.msk [vmem:[#allocation2 + $0x1b0] sm:$0xff] %vm425_vm1, %v1023_v42  ;;  %v971_v55 = vadd.f32 %v3081_v56, %v970_v45  ;;  %v363_v57 = vadd.f32 %v3081_v56, %v362_v52  ;;  %v571_v58 = vadd.f32 %v3081_v56, %v570_v53  ;;  %v2015_v41 = vld [vmem:[#allocation2 + $0x191] ss:$2 sm:$0xff]  ;;  %v1058_v52 = vld [vmem:[%s2994_s20 + $0x128] sm:$0xf] }
  0xeb   : > { %2378 = vst.msk [vmem:[%s3185_s16 + $0x20] sm:$0xf] %vm2369_vm2, %v2313_v46  ;;  %v2253_v59 = vunpack.c.l.b16 %v1929_v47  ;;  %v793_v60 = vmax.f32 %v770_v51, 0.0  ;;  %v1259_v53 = vld [vmem:[%s2994_s20 + $0x164] sm:$0xf] }
  0xec   : > { %v2028_v61 = vmax.f32 %v2024_v40, %v2026_v54  ;;  %436 = vst.msk [vmem:[#allocation2 + $0x50] sm:$0xff] %vm425_vm1, %v420_v43  ;;  %v994_v62 = vmax.f32 %v971_v55, 0.0  ;;  %v385_v63 = vmax.f32 %v363_v57, 0.0  ;;  %v593_v1 = vmax.f32 %v571_v58, 0.0  ;;  %v2011_v40 = vld [vmem:[#allocation2 + $0x190] ss:$2 sm:$0xff] }
  0xed   : > { %v2310_v5 = vpack.c.b16 %v2253_v59, %v2253_v59  ;;  %637 = vst.msk [vmem:[#allocation2 + $0xc8] sm:$0xff] %vm425_vm1, %v622_v50  ;;  %v808_v6 = vmul.f32 %v3091_v0, %v793_v60  ;;  %v1460_v54 = vld [vmem:[%s2994_s20 + $0x1a0] sm:$0xf]  ;;  %v2025_v55 = vmax.f32 %v2011_v40, %v2015_v41 }
  0xee   : > { %v2032_v7 = vpack.c.bf16 %v2028_v61, %v2028_v61  ;;  %v1009_v8 = vmul.f32 %v3091_v0, %v994_v62  ;;  %v403_v9 = vmul.f32 %v3091_v0, %v385_v63  ;;  %v608_v10 = vmul.f32 %v3091_v0, %v593_v1 }
  0xef   : > { %2375 = vst.msk [vmem:[%s3185_s16 + $0x14] sm:$0xf] %vm2369_vm2, %v2310_v5  ;;  %v823_v11 = vadd.f32 %v3097_v3, %v808_v6  ;;  %v1661_v5 = vld [vmem:[%s2994_s20 + $0x1dc] sm:$0xf] }
  0xf0   : > { %v2268_v14 = vunpack.c.l.b16 %v2032_v7  ;;  %v1967_v15 = vld [vmem:[#allocation2 + $0x130] ss:$2 sm:$0xff]  ;;  %v1971_v16 = vld [vmem:[#allocation2 + $0x131] ss:$2 sm:$0xff]  ;;  %v1024_v17 = vadd.f32 %v3097_v3, %v1009_v8  ;;  %v421_v18 = vadd.f32 %v3097_v3, %v403_v9  ;;  %v771_v19 = vpop.f32.mrf.mxu2  ;;  %v623_v24 = vadd.f32 %v3097_v3, %v608_v10  ;;  %v365_v27 = vpop.f32.mrf.mxu0 }
  0xf1   : > { %v972_v20 = vpop.f32.mrf.mxu3  ;;  %v1975_v23 = vmax.f32 %v1967_v15, %v1971_v16  ;;  %838 = vst.msk [vmem:[#allocation2 + $0x140] sm:$0xff] %vm425_vm1, %v823_v11  ;;  %v772_v25 = vadd.f32 %v3081_v56, %v771_v19  ;;  %v573_v28 = vpop.f32.mrf.mxu1  ;;  %v366_v31 = vadd.f32 %v3081_v56, %v365_v27  ;;  %v1092_v9 = vunpack.c.l.b16 %v1058_v52 }
  0xf2   : > { %v973_v26 = vadd.f32 %v3081_v56, %v972_v20  ;;  %v2317_v30 = vpack.c.b16 %v2268_v14, %v2268_v14  ;;  %1039 = vst.msk [vmem:[#allocation2 + $0x1b8] sm:$0xff] %vm425_vm1, %v1024_v17  ;;  %v574_v32 = vadd.f32 %v3081_v56, %v573_v28  ;;  %v1695_v17 = vunpack.c.l.b16 %v1661_v5 }
  0xf3   : > { %v1977_v34 = vmax.f32 %v1973_v13, %v1975_v23  ;;  %437 = vst.msk [vmem:[#allocation2 + $0x58] sm:$0xff] %vm425_vm1, %v421_v18  ;;  %v794_v35 = vmax.f32 %v772_v25, 0.0  ;;  %2683 = vmatmul.msk.bf16.gmra.mxu0 %vm301_vm0, %v2862_v12  ;;  %v386_v43 = vmax.f32 %v366_v31, 0.0  ;;  %v1293_v12 = vunpack.c.l.b16 %v1259_v53 }
  0xf4   : > { %v995_v36 = vmax.f32 %v973_v26, 0.0  ;;  %2382 = vst.msk [vmem:[%s3185_s16 + $0x30] sm:$0xf] %vm2369_vm2, %v2317_v30  ;;  %2727 = vmatmul.msk.bf16.gmra.mxu1 %vm301_vm0, %v2871_v21  ;;  %v594_v44 = vmax.f32 %v574_v32, 0.0  ;;  %v1494_v13 = vunpack.c.l.b16 %v1460_v54  ;;  %v1100_v28 = vpack.c.b16 %v1092_v9, %v1092_v9  ;;  %v1879_v54 = vld [vmem:[#allocation2 + $0x40] ss:$2 sm:$0xff] }
  0xf5   : > { %v1979_v37 = vsel %vm1852_vm3, %v1977_v34, 0.0  ;;  %638 = vst.msk [vmem:[#allocation2 + $0xd0] sm:$0xff] %vm425_vm1, %v623_v24  ;;  %v809_v38 = vmul.f32 %v3091_v0, %v794_v35  ;;  %2771 = vmatmul.msk.bf16.gmra.mxu2 %vm301_vm0, %v2880_v29  ;;  %v404_v48 = vmul.f32 %v3091_v0, %v386_v43  ;;  %v1301_v29 = vpack.c.b16 %v1293_v12, %v1293_v12 }
  0xf6   : > { %v1010_v39 = vmul.f32 %v3091_v0, %v995_v36  ;;  %v1981_v42 = vpack.c.bf16 %v1979_v37, %v1979_v37  ;;  %2815 = vmatmul.msk.bf16.gmra.mxu3 %vm301_vm0, %v2889_v33  ;;  %v609_v49 = vmul.f32 %v3091_v0, %v594_v44  ;;  %v1502_v30 = vpack.c.b16 %v1494_v13, %v1494_v13  ;;  %v1941_v37 = vld [vmem:[#allocation2 + $0xf0] ss:$2 sm:$0xff] }
  0xf7   : > { %v824_v45 = vadd.f32 %v3097_v3, %v809_v38  ;;  %v422_v2 = vadd.f32 %v3097_v3, %v404_v48  ;;  %v1703_v36 = vpack.c.b16 %v1695_v17, %v1695_v17  ;;  %v1945_v38 = vld [vmem:[#allocation2 + $0xf1] ss:$2 sm:$0xff] }
  0xf8   : > { %v1025_v46 = vadd.f32 %v3097_v3, %v1010_v39  ;;  %v2261_v47 = vunpack.c.l.b16 %v1981_v42  ;;  %v774_v50 = vpop.f32.mrf.mxu2  ;;  %v367_v61 = vpop.f32.mrf.mxu0  ;;  %v624_v4 = vadd.f32 %v3097_v3, %v609_v49 }
  0xf9   : > { %v975_v51 = vpop.f32.mrf.mxu3  ;;  %v2019_v57 = vld [vmem:[#allocation2 + $0x1b0] ss:$2 sm:$0xff]  ;;  %v2023_v58 = vld [vmem:[#allocation2 + $0x1b1] ss:$2 sm:$0xff]  ;;  %839 = vst.msk [vmem:[#allocation2 + $0x148] sm:$0xff] %vm425_vm1, %v824_v45  ;;  %v775_v59 = vadd.f32 %v3081_v56, %v774_v50  ;;  %v575_v62 = vpop.f32.mrf.mxu1  ;;  %v368_v8 = vadd.f32 %v3081_v56, %v367_v61 }
  0xfa   : > { %v976_v60 = vadd.f32 %v3081_v56, %v975_v51  ;;  %v2314_v63 = vpack.c.b16 %v2261_v47, %v2261_v47  ;;  %v2027_v1 = vmax.f32 %v2019_v57, %v2023_v58  ;;  %1040 = vst.msk [vmem:[#allocation2 + $0x1c0] sm:$0xff] %vm425_vm1, %v1025_v46  ;;  %v576_v11 = vadd.f32 %v3081_v56, %v575_v62  ;;  %v3426_v57 = vld [vmem:[%s3757_s4] ss:$0 sm:$0xff] }
  0xfb   : > { %v795_v6 = vmax.f32 %v775_v59, 0.0  ;;  %438 = vst.msk [vmem:[#allocation2 + $0x60] sm:$0xff] %vm425_vm1, %v422_v2  ;;  %v387_v16 = vmax.f32 %v368_v8, 0.0  ;;  %v3436_v2 = vld [vmem:[%s3755_s2] ss:$0 sm:$0xff] }
  0xfc   : > { %v996_v7 = vmax.f32 %v976_v60, 0.0  ;;  %2379 = vst.msk [vmem:[%s3185_s16 + $0x24] sm:$0xf] %vm2369_vm2, %v2314_v63  ;;  %v2029_v10 = vmax.f32 %v2025_v55, %v2027_v1  ;;  %v595_v19 = vmax.f32 %v576_v11, 0.0  ;;  %v1883_v55 = vld [vmem:[#allocation2 + $0x41] ss:$2 sm:$0xff] }
  0xfd   : > { %v810_v14 = vmul.f32 %v3091_v0, %v795_v6  ;;  %639 = vst.msk [vmem:[#allocation2 + $0xd8] sm:$0xff] %vm425_vm1, %v624_v4  ;;  %v405_v24 = vmul.f32 %v3091_v0, %v387_v16  ;;  %v1894_v8 = vmax.f32 %v1879_v54, %v1883_v55 }
  0xfe   : > { %v1011_v15 = vmul.f32 %v3091_v0, %v996_v7  ;;  %v2031_v18 = vsel %vm1852_vm3, %v2029_v10, 0.0  ;;  %v610_v25 = vmul.f32 %v3091_v0, %v595_v19 }
  0xff   : > { %v2033_v20 = vpack.c.bf16 %v2031_v18, %v2031_v18  ;;  %v825_v21 = vadd.f32 %v3097_v3, %v810_v14  ;;  %v423_v32 = vadd.f32 %v3097_v3, %v405_v24 }
 0x100   : > { %v1026_v23 = vadd.f32 %v3097_v3, %v1011_v15  ;;  %v776_v26 = vpop.f32.mrf.mxu2  ;;  %v370_v34 = vpop.f32.mrf.mxu0  ;;  %v625_v0 = vadd.f32 %v3097_v3, %v610_v25  ;;  %v1949_v3 = vmax.f32 %v1941_v37, %v1945_v38  ;;  %v1983_v54 = vld [vmem:[#allocation2 + $0x140] ss:$2 sm:$0xff]  ;;  %v1987_v55 = vld [vmem:[#allocation2 + $0x141] ss:$2 sm:$0xff] }
 0x101   : > { %v977_v27 = vpop.f32.mrf.mxu3  ;;  %v2269_v31 = vunpack.c.l.b16 %v2033_v20  ;;  %840 = vst.msk [vmem:[#allocation2 + $0x150] sm:$0xff] %vm425_vm1, %v825_v21  ;;  %v777_v33 = vadd.f32 %v3081_v56, %v776_v26  ;;  %v578_v35 = vpop.f32.mrf.mxu1  ;;  %v371_v40 = vadd.f32 %v3081_v56, %v370_v34  ;;  %v1993_v20 = vld [vmem:[#allocation2 + $0x170] ss:$2 sm:$0xff]  ;;  %v1997_v21 = vld [vmem:[#allocation2 + $0x171] ss:$2 sm:$0xff] }
 0x102   : > { %1041 = vst.msk [vmem:[#allocation2 + $0x1c8] sm:$0xff] %vm425_vm1, %v1026_v23  ;;  %v978_v39 = vadd.f32 %v3081_v56, %v977_v27  ;;  %v579_v41 = vadd.f32 %v3081_v56, %v578_v35  ;;  %v3415_v56 = vld [vmem:[%s3756_s3] ss:$0 sm:$0xff]  ;;  %v1881_v23 = vld [vmem:[#allocation2 + $0x50] ss:$2 sm:$0xff] }
 0x103   : > { %v2318_v42 = vpack.c.b16 %v2269_v31, %v2269_v31  ;;  %439 = vst.msk [vmem:[#allocation2 + $0x68] sm:$0xff] %vm425_vm1, %v423_v32  ;;  %v796_v43 = vmax.f32 %v777_v33, 0.0  ;;  %v388_v45 = vmax.f32 %v371_v40, 0.0  ;;  %2684 = vmatmul.msk.bf16.gmra.mxu0 %vm301_vm0, %v1100_v28  ;;  %v1885_v28 = vld [vmem:[#allocation2 + $0x51] ss:$2 sm:$0xff]  ;;  %v2001_v33 = vmax.f32 %v1993_v20, %v1997_v21 }
 0x104   : > { %640 = vst.msk [vmem:[#allocation2 + $0xe0] sm:$0xff] %vm425_vm1, %v625_v0  ;;  %v997_v44 = vmax.f32 %v978_v39, 0.0  ;;  %v596_v46 = vmax.f32 %v579_v41, 0.0  ;;  %2728 = vmatmul.msk.bf16.gmra.mxu1 %vm301_vm0, %v1301_v29  ;;  %v1933_v47 = vld [vmem:[#allocation2 + $0xd0] ss:$2 sm:$0xff] }
 0x105   : > { %2383 = vst.msk [vmem:[%s3185_s16 + $0x34] sm:$0xf] %vm2369_vm2, %v2318_v42  ;;  %v1937_v48 = vld [vmem:[#allocation2 + $0xd1] ss:$2 sm:$0xff]  ;;  %v811_v49 = vmul.f32 %v3415_v56, %v796_v43  ;;  %2772 = vmatmul.msk.bf16.gmra.mxu2 %vm301_vm0, %v1502_v30  ;;  %v406_v52 = vmul.f32 %v3415_v56, %v388_v45  ;;  %v1931_v34 = vld [vmem:[#allocation2 + $0xc0] ss:$2 sm:$0xff]  ;;  %v1895_v43 = vmax.f32 %v1881_v23, %v1885_v28 }
 0x106   : > { %v1947_v50 = vmax.f32 %v1933_v47, %v1937_v48  ;;  %v1012_v51 = vmul.f32 %v3415_v56, %v997_v44  ;;  %v611_v53 = vmul.f32 %v3415_v56, %v596_v46  ;;  %2816 = vmatmul.msk.bf16.gmra.mxu3 %vm301_vm0, %v1703_v36  ;;  %v1935_v35 = vld [vmem:[#allocation2 + $0xc1] ss:$2 sm:$0xff] }
 0x107   : > { %v826_v58 = vadd.f32 %v3426_v57, %v811_v49  ;;  %v424_v61 = vadd.f32 %v3426_v57, %v406_v52  ;;  %v1946_v48 = vmax.f32 %v1931_v34, %v1935_v35 }
 0x108   : > { %v1951_v59 = vmax.f32 %v1947_v50, %v1949_v3  ;;  %v1027_v60 = vadd.f32 %v3426_v57, %v1012_v51  ;;  %v626_v62 = vadd.f32 %v3426_v57, %v611_v53  ;;  %v779_v63 = vpop.f32.mrf.mxu2  ;;  %v372_v6 = vpop.f32.mrf.mxu0 }
 0x109   : > { %v980_v1 = vpop.f32.mrf.mxu3  ;;  %841 = vst.msk [vmem:[#allocation2 + $0x158] sm:$0xff] %vm425_vm1, %v826_v58  ;;  %v780_v4 = vadd.f32 %v3436_v2, %v779_v63  ;;  %v580_v7 = vpop.f32.mrf.mxu1 }
 0x10a   : > { %v981_v5 = vadd.f32 %v3436_v2, %v980_v1  ;;  %v1953_v9 = vsel %vm1852_vm3, %v1951_v59, 0.0  ;;  %v1887_v10 = vld [vmem:[#allocation2 + $0x60] ss:$2 sm:$0xff]  ;;  %v1891_v11 = vld [vmem:[#allocation2 + $0x61] ss:$2 sm:$0xff]  ;;  %1042 = vst.msk [vmem:[#allocation2 + $0x1d0] sm:$0xff] %vm425_vm1, %v1027_v60 }
 0x10b   : > { %v1955_v12 = vpack.c.bf16 %v1953_v9, %v1953_v9  ;;  %v1896_v13 = vmax.f32 %v1887_v10, %v1891_v11  ;;  %440 = vst.msk [vmem:[#allocation2 + $0x70] sm:$0xff] %vm425_vm1, %v424_v61  ;;  %v797_v14 = vmax.f32 %v780_v4, 0.0 }
 0x10c   : > { %v998_v15 = vmax.f32 %v981_v5, 0.0  ;;  %641 = vst.msk [vmem:[#allocation2 + $0xe8] sm:$0xff] %vm425_vm1, %v626_v62 }
 0x10d   : > { %v2257_v16 = vunpack.c.l.b16 %v1955_v12  ;;  %v1898_v17 = vmax.f32 %v1894_v8, %v1896_v13  ;;  %v812_v18 = vmul.f32 %v3415_v56, %v797_v14  ;;  %v1998_v8 = vmax.f32 %v1983_v54, %v1987_v55 }
 0x10e   : > { %v1013_v19 = vmul.f32 %v3415_v56, %v998_v15 }
 0x10f   : > { %v2312_v24 = vpack.c.b16 %v2257_v16, %v2257_v16  ;;  %v1902_v25 = vpack.c.bf16 %v1898_v17, %v1898_v17  ;;  %v827_v26 = vadd.f32 %v3426_v57, %v812_v18 }
 0x110   : > { %v1028_v27 = vadd.f32 %v3426_v57, %v1013_v19  ;;  %v1985_v29 = vld [vmem:[#allocation2 + $0x150] ss:$2 sm:$0xff]  ;;  %v1989_v30 = vld [vmem:[#allocation2 + $0x151] ss:$2 sm:$0xff]  ;;  %v781_v31 = vpop.f32.mrf.mxu2  ;;  %v1146_v38 = vpop.f32.mrf.mxu0 }
 0x111   : > { %v982_v32 = vpop.f32.mrf.mxu3  ;;  %2377 = vst.msk [vmem:[%s3185_s16 + $0x1c] sm:$0xf] %vm2369_vm2, %v2312_v24  ;;  %v2248_v36 = vunpack.c.l.b16 %v1902_v25  ;;  %v1999_v37 = vmax.f32 %v1985_v29, %v1989_v30  ;;  %v1347_v0 = vpop.f32.mrf.mxu1  ;;  %v1147_v41 = vadd.f32 %v3436_v2, %v1146_v38 }
 0x112   : > { %v1889_v39 = vld [vmem:[#allocation2 + $0x70] ss:$2 sm:$0xff]  ;;  %v1893_v40 = vld [vmem:[#allocation2 + $0x71] ss:$2 sm:$0xff]  ;;  %842 = vst.msk [vmem:[#allocation2 + $0x160] sm:$0xff] %vm425_vm1, %v827_v26  ;;  %v1348_v42 = vadd.f32 %v3436_v2, %v1347_v0 }
 0x113   : > { %v2307_v44 = vpack.c.b16 %v2248_v36, %v2248_v36  ;;  %v2003_v45 = vmax.f32 %v1999_v37, %v2001_v33  ;;  %v1897_v46 = vmax.f32 %v1889_v39, %v1893_v40  ;;  %v1939_v3 = vld [vmem:[#allocation2 + $0xe0] ss:$2 sm:$0xff]  ;;  %v1943_v47 = vld [vmem:[#allocation2 + $0xe1] ss:$2 sm:$0xff]  ;;  %1043 = vst.msk [vmem:[#allocation2 + $0x1d8] sm:$0xff] %vm425_vm1, %v1028_v27  ;;  %v1185_v50 = vmax.f32 %v1147_v41, 0.0 }
 0x114   : > { %v1948_v49 = vmax.f32 %v1939_v3, %v1943_v47  ;;  %v1386_v51 = vmax.f32 %v1348_v42, 0.0 }
 0x115   : > { %2372 = vst.msk [vmem:[%s3185_s16 + $0x8] sm:$0xf] %vm2369_vm2, %v2307_v44  ;;  %v2005_v52 = vsel %vm1852_vm3, %v2003_v45, 0.0  ;;  %v1899_v53 = vmax.f32 %v1895_v43, %v1897_v46  ;;  %v1200_v60 = vmul.f32 %v3415_v56, %v1185_v50 }
 0x116   : > { %v2007_v58 = vpack.c.bf16 %v2005_v52, %v2005_v52  ;;  %v1950_v59 = vmax.f32 %v1946_v48, %v1948_v49  ;;  %v1401_v61 = vmul.f32 %v3415_v56, %v1386_v51 }
 0x117   : > { %v1901_v62 = vsel %vm1852_vm3, %v1899_v53, 0.0  ;;  %v1215_v5 = vadd.f32 %v3426_v57, %v1200_v60  ;;  %v2039_v60 = vld [vmem:[#allocation2 + $0x1c1] ss:$2 sm:$0xff] }
 0x118   : > { %v2265_v63 = vunpack.c.l.b16 %v2007_v58  ;;  %v1903_v1 = vpack.c.bf16 %v1901_v62, %v1901_v62  ;;  %v1954_v4 = vpack.c.bf16 %v1950_v59, %v1950_v59  ;;  %v1548_v6 = vpop.f32.mrf.mxu2  ;;  %v1416_v11 = vadd.f32 %v3426_v57, %v1401_v61  ;;  %v1148_v14 = vpop.f32.mrf.mxu0  ;;  %v2035_v59 = vld [vmem:[#allocation2 + $0x1c0] ss:$2 sm:$0xff] }
 0x119   : > { %v1749_v7 = vpop.f32.mrf.mxu3  ;;  %v1991_v9 = vld [vmem:[#allocation2 + $0x160] ss:$2 sm:$0xff]  ;;  %v1995_v10 = vld [vmem:[#allocation2 + $0x161] ss:$2 sm:$0xff]  ;;  %v1549_v12 = vadd.f32 %v3436_v2, %v1548_v6  ;;  %v1349_v15 = vpop.f32.mrf.mxu1  ;;  %1230 = vst.msk [vmem:[#allocation2 + $0x1e0] sm:$0xff] %vm425_vm1, %v1215_v5  ;;  %v1149_v23 = vadd.f32 %v3436_v2, %v1148_v14 }
 0x11a   : > { %v1750_v13 = vadd.f32 %v3436_v2, %v1749_v7  ;;  %v2316_v16 = vpack.c.b16 %v2265_v63, %v2265_v63  ;;  %v2249_v17 = vunpack.c.l.b16 %v1903_v1  ;;  %v2256_v18 = vunpack.c.l.b16 %v1954_v4  ;;  %1431 = vst.msk [vmem:[#allocation2 + $0x258] sm:$0xff] %vm425_vm1, %v1416_v11 }
 0x11b   : > { %v2000_v19 = vmax.f32 %v1991_v9, %v1995_v10  ;;  %v1587_v20 = vmax.f32 %v1549_v12, 0.0  ;;  %v1350_v27 = vadd.f32 %v3436_v2, %v1349_v15  ;;  %v1186_v30 = vmax.f32 %v1149_v23, 0.0 }
 0x11c   : > { %v1788_v21 = vmax.f32 %v1750_v13, 0.0  ;;  %2381 = vst.msk [vmem:[%s3185_s16 + $0x2c] sm:$0xf] %vm2369_vm2, %v2316_v16  ;;  %v2308_v24 = vpack.c.b16 %v2249_v17, %v2249_v17  ;;  %v2311_v25 = vpack.c.b16 %v2256_v18, %v2256_v18  ;;  %v2050_v12 = vmax.f32 %v2035_v59, %v2039_v60 }
 0x11d   : > { %v2002_v26 = vmax.f32 %v1998_v8, %v2000_v19  ;;  %v1602_v28 = vmul.f32 %v3415_v56, %v1587_v20  ;;  %v1387_v32 = vmax.f32 %v1350_v27, 0.0  ;;  %v1201_v35 = vmul.f32 %v3415_v56, %v1186_v30 }
 0x11e   : > { %v1803_v29 = vmul.f32 %v3415_v56, %v1788_v21  ;;  %2373 = vst.msk [vmem:[%s3185_s16 + $0xc] sm:$0xf] %vm2369_vm2, %v2308_v24 }
 0x11f   : > { %v2006_v31 = vpack.c.bf16 %v2002_v26, %v2002_v26  ;;  %2376 = vst.msk [vmem:[%s3185_s16 + $0x18] sm:$0xf] %vm2369_vm2, %v2311_v25  ;;  %v1617_v33 = vadd.f32 %v3426_v57, %v1602_v28  ;;  %v1402_v37 = vmul.f32 %v3415_v56, %v1387_v32  ;;  %v1216_v39 = vadd.f32 %v3426_v57, %v1201_v35 }
 0x120   : > { %v1818_v34 = vadd.f32 %v3426_v57, %v1803_v29  ;;  %v1550_v38 = vpop.f32.mrf.mxu2  ;;  %v1151_v42 = vpop.f32.mrf.mxu0 }
 0x121   : > { %v2264_v36 = vunpack.c.l.b16 %v2006_v31  ;;  %v1751_v0 = vpop.f32.mrf.mxu3  ;;  %1632 = vst.msk [vmem:[#allocation2 + $0x2d0] sm:$0xff] %vm425_vm1, %v1617_v33  ;;  %v1551_v40 = vadd.f32 %v3436_v2, %v1550_v38  ;;  %v1352_v43 = vpop.f32.mrf.mxu1  ;;  %v1417_v45 = vadd.f32 %v3426_v57, %v1402_v37  ;;  %v1152_v46 = vadd.f32 %v3436_v2, %v1151_v42 }
 0x122   : > { %v1752_v41 = vadd.f32 %v3436_v2, %v1751_v0  ;;  %1833 = vst.msk [vmem:[#allocation2 + $0x348] sm:$0xff] %vm425_vm1, %v1818_v34  ;;  %v1353_v3 = vadd.f32 %v3436_v2, %v1352_v43 }
 0x123   : > { %v2315_v44 = vpack.c.b16 %v2264_v36, %v2264_v36  ;;  %1231 = vst.msk [vmem:[#allocation2 + $0x1e8] sm:$0xff] %vm425_vm1, %v1216_v39  ;;  %v1588_v47 = vmax.f32 %v1551_v40, 0.0  ;;  %v1187_v49 = vmax.f32 %v1152_v46, 0.0 }
 0x124   : > { %v1789_v48 = vmax.f32 %v1752_v41, 0.0  ;;  %v1388_v50 = vmax.f32 %v1353_v3, 0.0  ;;  %1432 = vst.msk [vmem:[#allocation2 + $0x260] sm:$0xff] %vm425_vm1, %v1417_v45  ;;  %v2037_v3 = vld [vmem:[#allocation2 + $0x1d0] ss:$2 sm:$0xff] }
 0x125   : > { %2380 = vst.msk [vmem:[%s3185_s16 + $0x28] sm:$0xf] %vm2369_vm2, %v2315_v44  ;;  %v1603_v51 = vmul.f32 %v3415_v56, %v1588_v47  ;;  %v1202_v53 = vmul.f32 %v3415_v56, %v1187_v49  ;;  %v2041_v47 = vld [vmem:[#allocation2 + $0x1d1] ss:$2 sm:$0xff] }
 0x126   : > { %v1804_v52 = vmul.f32 %v3415_v56, %v1789_v48  ;;  %v1403_v54 = vmul.f32 %v3415_v56, %v1388_v50 }
 0x127   : > { %v1618_v55 = vadd.f32 %v3426_v57, %v1603_v51  ;;  %v1217_v61 = vadd.f32 %v3426_v57, %v1202_v53 }
 0x128   : > { %v1819_v58 = vadd.f32 %v3426_v57, %v1804_v52  ;;  %v1418_v62 = vadd.f32 %v3426_v57, %v1403_v54  ;;  %v1553_v63 = vpop.f32.mrf.mxu2  ;;  %v1153_v6 = vpop.f32.mrf.mxu0 }
 0x129   : > { %v1754_v1 = vpop.f32.mrf.mxu3  ;;  %1633 = vst.msk [vmem:[#allocation2 + $0x2d8] sm:$0xff] %vm425_vm1, %v1618_v55  ;;  %v1554_v4 = vadd.f32 %v3436_v2, %v1553_v63  ;;  %v1354_v7 = vpop.f32.mrf.mxu1  ;;  %v1154_v10 = vadd.f32 %v3436_v2, %v1153_v6  ;;  %v2051_v63 = vmax.f32 %v2037_v3, %v2041_v47 }
 0x12a   : > { %v1755_v5 = vadd.f32 %v3436_v2, %v1754_v1  ;;  %v2043_v8 = vld [vmem:[#allocation2 + $0x1e0] ss:$2 sm:$0xff]  ;;  %v2047_v9 = vld [vmem:[#allocation2 + $0x1e1] ss:$2 sm:$0xff]  ;;  %1834 = vst.msk [vmem:[#allocation2 + $0x350] sm:$0xff] %vm425_vm1, %v1819_v58  ;;  %v1355_v11 = vadd.f32 %v3436_v2, %v1354_v7 }
 0x12b   : > { %v2052_v13 = vmax.f32 %v2043_v8, %v2047_v9  ;;  %1232 = vst.msk [vmem:[#allocation2 + $0x1f0] sm:$0xff] %vm425_vm1, %v1217_v61  ;;  %v1589_v14 = vmax.f32 %v1554_v4, 0.0  ;;  %v1188_v16 = vmax.f32 %v1154_v10, 0.0 }
 0x12c   : > { %v1790_v15 = vmax.f32 %v1755_v5, 0.0  ;;  %1433 = vst.msk [vmem:[#allocation2 + $0x268] sm:$0xff] %vm425_vm1, %v1418_v62  ;;  %v1389_v17 = vmax.f32 %v1355_v11, 0.0 }
 0x12d   : > { %v2054_v18 = vmax.f32 %v2050_v12, %v2052_v13  ;;  %v1604_v19 = vmul.f32 %v3415_v56, %v1589_v14  ;;  %v1203_v21 = vmul.f32 %v3415_v56, %v1188_v16 }
 0x12e   : > { %v1805_v20 = vmul.f32 %v3415_v56, %v1790_v15  ;;  %v1404_v23 = vmul.f32 %v3415_v56, %v1389_v17 }
 0x12f   : > { %v2058_v24 = vpack.c.bf16 %v2054_v18, %v2054_v18  ;;  %v1619_v25 = vadd.f32 %v3426_v57, %v1604_v19  ;;  %v1218_v27 = vadd.f32 %v3426_v57, %v1203_v21 }
 0x130   : > { %v1820_v26 = vadd.f32 %v3426_v57, %v1805_v20  ;;  %v1419_v28 = vadd.f32 %v3426_v57, %v1404_v23  ;;  %v1555_v29 = vpop.f32.mrf.mxu2  ;;  %v1156_v34 = vpop.f32.mrf.mxu0 }
 0x131   : > { %v1756_v30 = vpop.f32.mrf.mxu3  ;;  %v2272_v31 = vunpack.c.l.b16 %v2058_v24  ;;  %1634 = vst.msk [vmem:[#allocation2 + $0x2e0] sm:$0xff] %vm425_vm1, %v1619_v25  ;;  %v1556_v32 = vadd.f32 %v3436_v2, %v1555_v29  ;;  %v1357_v35 = vpop.f32.mrf.mxu1  ;;  %v1157_v36 = vadd.f32 %v3436_v2, %v1156_v34 }
 0x132   : > { %v1757_v33 = vadd.f32 %v3436_v2, %v1756_v30  ;;  %1835 = vst.msk [vmem:[#allocation2 + $0x358] sm:$0xff] %vm425_vm1, %v1820_v26  ;;  %v1358_v37 = vadd.f32 %v3436_v2, %v1357_v35 }
 0x133   : > { %v2319_v38 = vpack.c.b16 %v2272_v31, %v2272_v31  ;;  %1233 = vst.msk [vmem:[#allocation2 + $0x1f8] sm:$0xff] %vm425_vm1, %v1218_v27  ;;  %v1590_v0 = vmax.f32 %v1556_v32, 0.0  ;;  %v1189_v40 = vmax.f32 %v1157_v36, 0.0 }
 0x134   : > { %1434 = vst.msk [vmem:[#allocation2 + $0x270] sm:$0xff] %vm425_vm1, %v1419_v28  ;;  %v1791_v39 = vmax.f32 %v1757_v33, 0.0  ;;  %v1390_v41 = vmax.f32 %v1358_v37, 0.0 }
 0x135   : > { %2384 = vst.msk [vmem:[%s3185_s16 + $0x38] sm:$0xf] %vm2369_vm2, %v2319_v38  ;;  %v1605_v42 = vmul.f32 %v3415_v56, %v1590_v0  ;;  %v1204_v44 = vmul.f32 %v3415_v56, %v1189_v40 }
 0x136   : > { %v1806_v43 = vmul.f32 %v3415_v56, %v1791_v39  ;;  %v1405_v45 = vmul.f32 %v3415_v56, %v1390_v41 }
 0x137   : > { %v1620_v46 = vadd.f32 %v3426_v57, %v1605_v42  ;;  %v1219_v49 = vadd.f32 %v3426_v57, %v1204_v44 }
 0x138   : > { %v1821_v48 = vadd.f32 %v3426_v57, %v1806_v43  ;;  %v1420_v50 = vadd.f32 %v3426_v57, %v1405_v45  ;;  %v1558_v51 = vpop.f32.mrf.mxu2  ;;  %v1158_v55 = vpop.f32.mrf.mxu0 }
 0x139   : > { %v1759_v52 = vpop.f32.mrf.mxu3  ;;  %1635 = vst.msk [vmem:[#allocation2 + $0x2e8] sm:$0xff] %vm425_vm1, %v1620_v46  ;;  %v1559_v53 = vadd.f32 %v3436_v2, %v1558_v51  ;;  %v1359_v58 = vpop.f32.mrf.mxu1  ;;  %v1159_v61 = vadd.f32 %v3436_v2, %v1158_v55  ;;  %v2145_v55 = vld [vmem:[#allocation2 + $0x2d1] ss:$2 sm:$0xff] }
 0x13a   : > { %v1760_v54 = vadd.f32 %v3436_v2, %v1759_v52  ;;  %v2045_v59 = vld [vmem:[#allocation2 + $0x1f0] ss:$2 sm:$0xff]  ;;  %v2049_v60 = vld [vmem:[#allocation2 + $0x1f1] ss:$2 sm:$0xff]  ;;  %1836 = vst.msk [vmem:[#allocation2 + $0x360] sm:$0xff] %vm425_vm1, %v1821_v48  ;;  %v1360_v62 = vadd.f32 %v3436_v2, %v1359_v58 }
 0x13b   : > { %v2053_v1 = vmax.f32 %v2045_v59, %v2049_v60  ;;  %1234 = vst.msk [vmem:[#allocation2 + $0x200] sm:$0xff] %vm425_vm1, %v1219_v49  ;;  %v1591_v4 = vmax.f32 %v1559_v53, 0.0  ;;  %v1190_v6 = vmax.f32 %v1159_v61, 0.0 }
 0x13c   : > { %v1792_v5 = vmax.f32 %v1760_v54, 0.0  ;;  %1435 = vst.msk [vmem:[#allocation2 + $0x278] sm:$0xff] %vm425_vm1, %v1420_v50  ;;  %v1391_v7 = vmax.f32 %v1360_v62, 0.0  ;;  %v2141_v54 = vld [vmem:[#allocation2 + $0x2d0] ss:$2 sm:$0xff] }
 0x13d   : > { %v2055_v8 = vmax.f32 %v2051_v63, %v2053_v1  ;;  %v1606_v9 = vmul.f32 %v3415_v56, %v1591_v4  ;;  %v1205_v11 = vmul.f32 %v3415_v56, %v1190_v6 }
 0x13e   : > { %v1807_v10 = vmul.f32 %v3415_v56, %v1792_v5  ;;  %v1406_v12 = vmul.f32 %v3415_v56, %v1391_v7  ;;  %v2155_v7 = vmax.f32 %v2141_v54, %v2145_v55 }
 0x13f   : > { %v2057_v13 = vsel %vm1852_vm3, %v2055_v8, 0.0  ;;  %v1621_v14 = vadd.f32 %v3426_v57, %v1606_v9  ;;  %v1220_v17 = vadd.f32 %v3426_v57, %v1205_v11 }
 0x140   : > { %v1822_v15 = vadd.f32 %v3426_v57, %v1807_v10  ;;  %v2059_v16 = vpack.c.bf16 %v2057_v13, %v2057_v13  ;;  %v1421_v18 = vadd.f32 %v3426_v57, %v1406_v12  ;;  %v1560_v19 = vpop.f32.mrf.mxu2  ;;  %v1161_v24 = vpop.f32.mrf.mxu0 }
 0x141   : > { %v1761_v20 = vpop.f32.mrf.mxu3  ;;  %1636 = vst.msk [vmem:[#allocation2 + $0x2f0] sm:$0xff] %vm425_vm1, %v1621_v14  ;;  %v1561_v21 = vadd.f32 %v3436_v2, %v1560_v19  ;;  %v1362_v25 = vpop.f32.mrf.mxu1  ;;  %v1162_v27 = vadd.f32 %v3436_v2, %v1161_v24  ;;  %v2197_v24 = vld [vmem:[#allocation2 + $0x351] ss:$2 sm:$0xff] }
 0x142   : > { %v1762_v23 = vadd.f32 %v3436_v2, %v1761_v20  ;;  %v2273_v26 = vunpack.c.l.b16 %v2059_v16  ;;  %1837 = vst.msk [vmem:[#allocation2 + $0x368] sm:$0xff] %vm425_vm1, %v1822_v15  ;;  %v1363_v28 = vadd.f32 %v3436_v2, %v1362_v25 }
 0x143   : > { %1235 = vst.msk [vmem:[#allocation2 + $0x208] sm:$0xff] %vm425_vm1, %v1220_v17  ;;  %v1592_v29 = vmax.f32 %v1561_v21, 0.0  ;;  %v1191_v32 = vmax.f32 %v1162_v27, 0.0 }
 0x144   : > { %v2320_v30 = vpack.c.b16 %v2273_v26, %v2273_v26  ;;  %1436 = vst.msk [vmem:[#allocation2 + $0x280] sm:$0xff] %vm425_vm1, %v1421_v18  ;;  %v1793_v31 = vmax.f32 %v1762_v23, 0.0  ;;  %v1392_v34 = vmax.f32 %v1363_v28, 0.0  ;;  %v2193_v23 = vld [vmem:[#allocation2 + $0x350] ss:$2 sm:$0xff] }
 0x145   : > { %v1607_v33 = vmul.f32 %v3415_v56, %v1592_v29  ;;  %v1206_v36 = vmul.f32 %v3415_v56, %v1191_v32 }
 0x146   : > { %2385 = vst.msk [vmem:[%s3185_s16 + $0x3c] sm:$0xf] %vm2369_vm2, %v2320_v30  ;;  %v1808_v35 = vmul.f32 %v3415_v56, %v1793_v31  ;;  %v1407_v38 = vmul.f32 %v3415_v56, %v1392_v34 }
 0x147   : > { %v1622_v37 = vadd.f32 %v3426_v57, %v1607_v33  ;;  %v1221_v39 = vadd.f32 %v3426_v57, %v1206_v36 }
 0x148   : > { %v1823_v0 = vadd.f32 %v3426_v57, %v1808_v35  ;;  %v1563_v40 = vpop.f32.mrf.mxu2  ;;  %v1422_v42 = vadd.f32 %v3426_v57, %v1407_v38  ;;  %v1163_v45 = vpop.f32.mrf.mxu0  ;;  %v2207_v35 = vmax.f32 %v2193_v23, %v2197_v24 }
 0x149   : > { %v1764_v41 = vpop.f32.mrf.mxu3  ;;  %1637 = vst.msk [vmem:[#allocation2 + $0x2f8] sm:$0xff] %vm425_vm1, %v1622_v37  ;;  %v1564_v43 = vadd.f32 %v3436_v2, %v1563_v40  ;;  %v1364_v46 = vpop.f32.mrf.mxu1  ;;  %v1164_v3 = vadd.f32 %v3436_v2, %v1163_v45 }
 0x14a   : > { %v1765_v44 = vadd.f32 %v3436_v2, %v1764_v41  ;;  %1838 = vst.msk [vmem:[#allocation2 + $0x370] sm:$0xff] %vm425_vm1, %v1823_v0  ;;  %v1365_v47 = vadd.f32 %v3436_v2, %v1364_v46  ;;  %v2065_v23 = vld [vmem:[#allocation2 + $0x201] ss:$2 sm:$0xff] }
 0x14b   : > { %1236 = vst.msk [vmem:[#allocation2 + $0x210] sm:$0xff] %vm425_vm1, %v1221_v39  ;;  %v1593_v48 = vmax.f32 %v1564_v43, 0.0  ;;  %v1192_v50 = vmax.f32 %v1164_v3, 0.0 }
 0x14c   : > { %v1794_v49 = vmax.f32 %v1765_v44, 0.0  ;;  %1437 = vst.msk [vmem:[#allocation2 + $0x288] sm:$0xff] %vm425_vm1, %v1422_v42  ;;  %v1393_v51 = vmax.f32 %v1365_v47, 0.0 }
 0x14d   : > { %v1608_v52 = vmul.f32 %v3415_v56, %v1593_v48  ;;  %v1207_v58 = vmul.f32 %v3415_v56, %v1192_v50 }
 0x14e   : > { %v1809_v53 = vmul.f32 %v3415_v56, %v1794_v49  ;;  %v1408_v59 = vmul.f32 %v3415_v56, %v1393_v51 }
 0x14f   : > { %v1623_v60 = vadd.f32 %v3426_v57, %v1608_v52  ;;  %v1222_v1 = vadd.f32 %v3426_v57, %v1207_v58 }
 0x150   : > { %v1824_v61 = vadd.f32 %v3426_v57, %v1809_v53  ;;  %v2149_v62 = vld [vmem:[#allocation2 + $0x2f0] ss:$2 sm:$0xff]  ;;  %v2153_v63 = vld [vmem:[#allocation2 + $0x2f1] ss:$2 sm:$0xff]  ;;  %v1423_v4 = vadd.f32 %v3426_v57, %v1408_v59  ;;  %v1565_v5 = vpop.f32.mrf.mxu2  ;;  %v1166_v11 = vpop.f32.mrf.mxu0 }
 0x151   : > { %v1766_v6 = vpop.f32.mrf.mxu3  ;;  %v2157_v8 = vmax.f32 %v2149_v62, %v2153_v63  ;;  %1638 = vst.msk [vmem:[#allocation2 + $0x300] sm:$0xff] %vm425_vm1, %v1623_v60  ;;  %v1566_v9 = vadd.f32 %v3436_v2, %v1565_v5  ;;  %v1367_v12 = vpop.f32.mrf.mxu1  ;;  %v1167_v13 = vadd.f32 %v3436_v2, %v1166_v11 }
 0x152   : > { %v1767_v10 = vadd.f32 %v3436_v2, %v1766_v6  ;;  %1839 = vst.msk [vmem:[#allocation2 + $0x378] sm:$0xff] %vm425_vm1, %v1824_v61  ;;  %v1368_v14 = vadd.f32 %v3436_v2, %v1367_v12 }
 0x153   : > { %v2159_v15 = vmax.f32 %v2155_v7, %v2157_v8  ;;  %1237 = vst.msk [vmem:[#allocation2 + $0x218] sm:$0xff] %vm425_vm1, %v1222_v1  ;;  %v1594_v16 = vmax.f32 %v1566_v9, 0.0  ;;  %v1193_v18 = vmax.f32 %v1167_v13, 0.0 }
 0x154   : > { %1438 = vst.msk [vmem:[#allocation2 + $0x290] sm:$0xff] %vm425_vm1, %v1423_v4  ;;  %v1795_v17 = vmax.f32 %v1767_v10, 0.0  ;;  %v1394_v19 = vmax.f32 %v1368_v14, 0.0 }
 0x155   : > { %v2161_v20 = vsel %vm1852_vm3, %v2159_v15, 0.0  ;;  %v1609_v21 = vmul.f32 %v3415_v56, %v1594_v16  ;;  %v1208_v27 = vmul.f32 %v3415_v56, %v1193_v18 }
 0x156   : > { %v2163_v25 = vpack.c.bf16 %v2161_v20, %v2161_v20  ;;  %v1810_v26 = vmul.f32 %v3415_v56, %v1795_v17  ;;  %v1409_v28 = vmul.f32 %v3415_v56, %v1394_v19 }
 0x157   : > { %v1624_v29 = vadd.f32 %v3426_v57, %v1609_v21  ;;  %v1223_v32 = vadd.f32 %v3426_v57, %v1208_v27  ;;  %v2061_v21 = vld [vmem:[#allocation2 + $0x200] ss:$2 sm:$0xff] }
 0x158   : > { %v2289_v30 = vunpack.c.l.b16 %v2163_v25  ;;  %v1825_v31 = vadd.f32 %v3426_v57, %v1810_v26  ;;  %v1568_v33 = vpop.f32.mrf.mxu2  ;;  %v1424_v38 = vadd.f32 %v3426_v57, %v1409_v28  ;;  %v1168_v40 = vpop.f32.mrf.mxu0 }
 0x159   : > { %v1769_v34 = vpop.f32.mrf.mxu3  ;;  %v2201_v36 = vld [vmem:[#allocation2 + $0x370] ss:$2 sm:$0xff]  ;;  %v2205_v37 = vld [vmem:[#allocation2 + $0x371] ss:$2 sm:$0xff]  ;;  %1639 = vst.msk [vmem:[#allocation2 + $0x308] sm:$0xff] %vm425_vm1, %v1624_v29  ;;  %v1569_v0 = vadd.f32 %v3436_v2, %v1568_v33  ;;  %v1369_v41 = vpop.f32.mrf.mxu1  ;;  %v1169_v44 = vadd.f32 %v3436_v2, %v1168_v40 }
 0x15a   : > { %v1770_v39 = vadd.f32 %v3436_v2, %v1769_v34  ;;  %v2328_v42 = vpack.c.b16 %v2289_v30, %v2289_v30  ;;  %v2209_v43 = vmax.f32 %v2201_v36, %v2205_v37  ;;  %1840 = vst.msk [vmem:[#allocation2 + $0x380] sm:$0xff] %vm425_vm1, %v1825_v31  ;;  %v1370_v45 = vadd.f32 %v3436_v2, %v1369_v41 }
 0x15b   : > { %1238 = vst.msk [vmem:[#allocation2 + $0x220] sm:$0xff] %vm425_vm1, %v1223_v32  ;;  %v1595_v46 = vmax.f32 %v1569_v0, 0.0  ;;  %v1194_v48 = vmax.f32 %v1169_v44, 0.0  ;;  %v2076_v36 = vmax.f32 %v2061_v21, %v2065_v23 }
 0x15c   : > { %v1796_v3 = vmax.f32 %v1770_v39, 0.0  ;;  %2393 = vst.msk [vmem:[%s3185_s16 + $0x5c] sm:$0xf] %vm2369_vm2, %v2328_v42  ;;  %v2211_v47 = vmax.f32 %v2207_v35, %v2209_v43  ;;  %v1395_v49 = vmax.f32 %v1370_v45, 0.0 }
 0x15d   : > { %1439 = vst.msk [vmem:[#allocation2 + $0x298] sm:$0xff] %vm425_vm1, %v1424_v38  ;;  %v1610_v50 = vmul.f32 %v3415_v56, %v1595_v46  ;;  %v1209_v53 = vmul.f32 %v3415_v56, %v1194_v48  ;;  %v2113_v48 = vld [vmem:[#allocation2 + $0x280] ss:$2 sm:$0xff] }
 0x15e   : > { %v1811_v51 = vmul.f32 %v3415_v56, %v1796_v3  ;;  %v2213_v52 = vsel %vm1852_vm3, %v2211_v47, 0.0  ;;  %v1410_v54 = vmul.f32 %v3415_v56, %v1395_v49  ;;  %v2117_v49 = vld [vmem:[#allocation2 + $0x281] ss:$2 sm:$0xff] }
 0x15f   : > { %v2215_v55 = vpack.c.bf16 %v2213_v52, %v2213_v52  ;;  %v1625_v58 = vadd.f32 %v3426_v57, %v1610_v50  ;;  %v1224_v60 = vadd.f32 %v3426_v57, %v1209_v53 }
 0x160   : > { %v1826_v59 = vadd.f32 %v3426_v57, %v1811_v51  ;;  %v1425_v61 = vadd.f32 %v3426_v57, %v1410_v54  ;;  %v1570_v62 = vpop.f32.mrf.mxu2  ;;  %v1171_v6 = vpop.f32.mrf.mxu0 }
 0x161   : > { %v1771_v63 = vpop.f32.mrf.mxu3  ;;  %v2297_v1 = vunpack.c.l.b16 %v2215_v55  ;;  %1640 = vst.msk [vmem:[#allocation2 + $0x310] sm:$0xff] %vm425_vm1, %v1625_v58  ;;  %v1571_v4 = vadd.f32 %v3436_v2, %v1570_v62  ;;  %v1372_v7 = vpop.f32.mrf.mxu1  ;;  %v1172_v8 = vadd.f32 %v3436_v2, %v1171_v6 }
 0x162   : > { %v1772_v5 = vadd.f32 %v3436_v2, %v1771_v63  ;;  %1841 = vst.msk [vmem:[#allocation2 + $0x388] sm:$0xff] %vm425_vm1, %v1826_v59  ;;  %v1373_v9 = vadd.f32 %v3436_v2, %v1372_v7  ;;  %v2128_v63 = vmax.f32 %v2113_v48, %v2117_v49 }
 0x163   : > { %v2332_v10 = vpack.c.b16 %v2297_v1, %v2297_v1  ;;  %1239 = vst.msk [vmem:[#allocation2 + $0x228] sm:$0xff] %vm425_vm1, %v1224_v60  ;;  %v1596_v11 = vmax.f32 %v1571_v4, 0.0  ;;  %v1195_v13 = vmax.f32 %v1172_v8, 0.0 }
 0x164   : > { %v1797_v12 = vmax.f32 %v1772_v5, 0.0  ;;  %1440 = vst.msk [vmem:[#allocation2 + $0x2a0] sm:$0xff] %vm425_vm1, %v1425_v61  ;;  %v1396_v16 = vmax.f32 %v1373_v9, 0.0 }
 0x165   : > { %2397 = vst.msk [vmem:[%s3185_s16 + $0x6c] sm:$0xf] %vm2369_vm2, %v2332_v10  ;;  %v1611_v14 = vmul.f32 %v3415_v56, %v1596_v11  ;;  %v1210_v17 = vmul.f32 %v3415_v56, %v1195_v13 }
 0x166   : > { %v1812_v15 = vmul.f32 %v3415_v56, %v1797_v12  ;;  %v1411_v20 = vmul.f32 %v3415_v56, %v1396_v16 }
 0x167   : > { %v1626_v18 = vadd.f32 %v3426_v57, %v1611_v14  ;;  %v1225_v24 = vadd.f32 %v3426_v57, %v1210_v17  ;;  %v2063_v17 = vld [vmem:[#allocation2 + $0x210] ss:$2 sm:$0xff] }
 0x168   : > { %v1827_v19 = vadd.f32 %v3426_v57, %v1812_v15  ;;  %v1573_v25 = vpop.f32.mrf.mxu2  ;;  %v1426_v27 = vadd.f32 %v3426_v57, %v1411_v20  ;;  %v1173_v30 = vpop.f32.mrf.mxu0 }
 0x169   : > { %v1774_v26 = vpop.f32.mrf.mxu3  ;;  %1641 = vst.msk [vmem:[#allocation2 + $0x318] sm:$0xff] %vm425_vm1, %v1626_v18  ;;  %v1574_v28 = vadd.f32 %v3436_v2, %v1573_v25  ;;  %v1374_v31 = vpop.f32.mrf.mxu1  ;;  %v1174_v34 = vadd.f32 %v3436_v2, %v1173_v30  ;;  %v2067_v18 = vld [vmem:[#allocation2 + $0x211] ss:$2 sm:$0xff] }
 0x16a   : > { %v1775_v29 = vadd.f32 %v3436_v2, %v1774_v26  ;;  %v2069_v32 = vld [vmem:[#allocation2 + $0x220] ss:$2 sm:$0xff]  ;;  %v2073_v33 = vld [vmem:[#allocation2 + $0x221] ss:$2 sm:$0xff]  ;;  %1842 = vst.msk [vmem:[#allocation2 + $0x390] sm:$0xff] %vm425_vm1, %v1827_v19  ;;  %v1375_v35 = vadd.f32 %v3436_v2, %v1374_v31 }
 0x16b   : > { %v2078_v37 = vmax.f32 %v2069_v32, %v2073_v33  ;;  %1240 = vst.msk [vmem:[#allocation2 + $0x230] sm:$0xff] %vm425_vm1, %v1225_v24  ;;  %v1597_v38 = vmax.f32 %v1574_v28, 0.0  ;;  %v1196_v39 = vmax.f32 %v1174_v34, 0.0  ;;  %v2077_v34 = vmax.f32 %v2063_v17, %v2067_v18  ;;  %v2908_v17 = vld [vmem:[%s3756_s3] ss:$0 sm:$0xff] }
 0x16c   : > { %v1798_v0 = vmax.f32 %v1775_v29, 0.0  ;;  %1441 = vst.msk [vmem:[#allocation2 + $0x2a8] sm:$0xff] %vm425_vm1, %v1426_v27  ;;  %v1397_v40 = vmax.f32 %v1375_v35, 0.0 }
 0x16d   : > { %v2080_v41 = vmax.f32 %v2076_v36, %v2078_v37  ;;  %v1612_v42 = vmul.f32 %v3415_v56, %v1597_v38  ;;  %v1211_v44 = vmul.f32 %v3415_v56, %v1196_v39 }
 0x16e   : > { %v1813_v43 = vmul.f32 %v3415_v56, %v1798_v0  ;;  %v1412_v45 = vmul.f32 %v3415_v56, %v1397_v40 }
 0x16f   : > { %v2084_v46 = vpack.c.bf16 %v2080_v41, %v2080_v41  ;;  %v1627_v3 = vadd.f32 %v3426_v57, %v1612_v42  ;;  %v1226_v50 = vadd.f32 %v3426_v57, %v1211_v44  ;;  %v2169_v44 = vld [vmem:[#allocation2 + $0x301] ss:$2 sm:$0xff] }
 0x170   : > { %v1828_v47 = vadd.f32 %v3426_v57, %v1813_v43  ;;  %v1427_v51 = vadd.f32 %v3426_v57, %v1412_v45  ;;  %v1575_v52 = vpop.f32.mrf.mxu2  ;;  %v1176_v59 = vpop.f32.mrf.mxu0  ;;  %v2165_v43 = vld [vmem:[#allocation2 + $0x300] ss:$2 sm:$0xff] }
 0x171   : > { %v1776_v53 = vpop.f32.mrf.mxu3  ;;  %v2276_v54 = vunpack.c.l.b16 %v2084_v46  ;;  %1642 = vst.msk [vmem:[#allocation2 + $0x320] sm:$0xff] %vm425_vm1, %v1627_v3  ;;  %v1576_v55 = vadd.f32 %v3436_v2, %v1575_v52  ;;  %v1377_v60 = vpop.f32.mrf.mxu1  ;;  %v1177_v61 = vadd.f32 %v3436_v2, %v1176_v59  ;;  %v2115_v3 = vld [vmem:[#allocation2 + $0x290] ss:$2 sm:$0xff]  ;;  %v2180_v59 = vmax.f32 %v2165_v43, %v2169_v44 }
 0x172   : > { %v1777_v58 = vadd.f32 %v3436_v2, %v1776_v53  ;;  %1843 = vst.msk [vmem:[#allocation2 + $0x398] sm:$0xff] %vm425_vm1, %v1828_v47  ;;  %v1378_v62 = vadd.f32 %v3436_v2, %v1377_v60 }
 0x173   : > { %v2321_v1 = vpack.c.b16 %v2276_v54, %v2276_v54  ;;  %v2121_v4 = vld [vmem:[#allocation2 + $0x2a0] ss:$2 sm:$0xff]  ;;  %v2125_v5 = vld [vmem:[#allocation2 + $0x2a1] ss:$2 sm:$0xff]  ;;  %1241 = vst.msk [vmem:[#allocation2 + $0x238] sm:$0xff] %vm425_vm1, %v1226_v50  ;;  %v1598_v6 = vmax.f32 %v1576_v55, 0.0 }
 0x174   : > { %v2130_v7 = vmax.f32 %v2121_v4, %v2125_v5  ;;  %1442 = vst.msk [vmem:[#allocation2 + $0x2b0] sm:$0xff] %vm425_vm1, %v1427_v51  ;;  %v1799_v8 = vmax.f32 %v1777_v58, 0.0  ;;  %v1197_v9 = vmax.f32 %v1177_v61, 0.0  ;;  %v1398_v10 = vmax.f32 %v1378_v62, 0.0  ;;  %v2119_v50 = vld [vmem:[#allocation2 + $0x291] ss:$2 sm:$0xff] }
 0x175   : > { %2386 = vst.msk [vmem:[%s3185_s16 + $0x40] sm:$0xf] %vm2369_vm2, %v2321_v1  ;;  %v1613_v11 = vmul.f32 %v3415_v56, %v1598_v6 }
 0x176   : > { %v2132_v12 = vmax.f32 %v2128_v63, %v2130_v7  ;;  %v1814_v13 = vmul.f32 %v3415_v56, %v1799_v8  ;;  %v1212_v14 = vmul.f32 %v3415_v56, %v1197_v9  ;;  %v1413_v15 = vmul.f32 %v3415_v56, %v1398_v10 }
 0x177   : > { %v1628_v16 = vadd.f32 %v3426_v57, %v1613_v11  ;;  %v2129_v7 = vmax.f32 %v2115_v3, %v2119_v50 }
 0x178   : > { %v2136_v19 = vpack.c.bf16 %v2132_v12, %v2132_v12  ;;  %v1829_v20 = vadd.f32 %v3426_v57, %v1814_v13  ;;  %v1227_v21 = vadd.f32 %v3426_v57, %v1212_v14  ;;  %v1428_v23 = vadd.f32 %v3426_v57, %v1413_v15  ;;  %v1578_v24 = vpop.f32.mrf.mxu2  ;;  %v1178_v27 = vpop.f32.mrf.mxu0 }
 0x179   : > { %1643 = vst.msk [vmem:[#allocation2 + $0x328] sm:$0xff] %vm425_vm1, %v1628_v16  ;;  %v1579_v25 = vadd.f32 %v3436_v2, %v1578_v24  ;;  %v1779_v26 = vpop.f32.mrf.mxu3  ;;  %v1179_v32 = vadd.f32 %v3436_v2, %v1178_v27  ;;  %v1379_v33 = vpop.f32.mrf.mxu1  ;;  %v2217_v24 = vld [vmem:[#allocation2 + $0x380] ss:$2 sm:$0xff] }
 0x17a   : > { %v2284_v28 = vunpack.c.l.b16 %v2136_v19  ;;  %v2071_v29 = vld [vmem:[#allocation2 + $0x230] ss:$2 sm:$0xff]  ;;  %v2075_v30 = vld [vmem:[#allocation2 + $0x231] ss:$2 sm:$0xff]  ;;  %1844 = vst.msk [vmem:[#allocation2 + $0x3a0] sm:$0xff] %vm425_vm1, %v1829_v20  ;;  %v1780_v31 = vadd.f32 %v3436_v2, %v1779_v26  ;;  %v1380_v37 = vadd.f32 %v3436_v2, %v1379_v33 }
 0x17b   : > { %v2079_v35 = vmax.f32 %v2071_v29, %v2075_v30  ;;  %1242 = vst.msk [vmem:[#allocation2 + $0x240] sm:$0xff] %vm425_vm1, %v1227_v21  ;;  %v1599_v36 = vmax.f32 %v1579_v25, 0.0  ;;  %v1198_v39 = vmax.f32 %v1179_v32, 0.0  ;;  %v2909_v26 = vld [vmem:[%s3757_s4] ss:$0 sm:$0xff] }
 0x17c   : > { %v2325_v38 = vpack.c.b16 %v2284_v28, %v2284_v28  ;;  %1443 = vst.msk [vmem:[#allocation2 + $0x2b8] sm:$0xff] %vm425_vm1, %v1428_v23  ;;  %v1800_v0 = vmax.f32 %v1780_v31, 0.0  ;;  %v1399_v42 = vmax.f32 %v1380_v37, 0.0  ;;  %v2095_v29 = vld [vmem:[#allocation2 + $0x260] ss:$2 sm:$0xff] }
 0x17d   : > { %v2081_v40 = vmax.f32 %v2077_v34, %v2079_v35  ;;  %v1614_v41 = vmul.f32 %v3415_v56, %v1599_v36  ;;  %v1213_v46 = vmul.f32 %v3415_v56, %v1198_v39  ;;  %v2099_v30 = vld [vmem:[#allocation2 + $0x261] ss:$2 sm:$0xff]  ;;  %v2910_v39 = vld [vmem:[%s3755_s2] ss:$0 sm:$0xff] }
 0x17e   : > { %2390 = vst.msk [vmem:[%s3185_s16 + $0x50] sm:$0xf] %vm2369_vm2, %v2325_v38  ;;  %v1815_v45 = vmul.f32 %v3415_v56, %v1800_v0  ;;  %v1414_v49 = vmul.f32 %v3415_v56, %v1399_v42 }
 0x17f   : > { %v2083_v47 = vsel %vm1852_vm3, %v2081_v40, 0.0  ;;  %v1629_v48 = vadd.f32 %v3426_v57, %v1614_v41  ;;  %v1228_v55 = vadd.f32 %v3426_v57, %v1213_v46 }
 0x180   : > { %v2085_v51 = vpack.c.bf16 %v2083_v47, %v2083_v47  ;;  %v2173_v52 = vld [vmem:[#allocation2 + $0x320] ss:$2 sm:$0xff]  ;;  %v2177_v53 = vld [vmem:[#allocation2 + $0x321] ss:$2 sm:$0xff]  ;;  %v1830_v54 = vadd.f32 %v3426_v57, %v1815_v45  ;;  %v1580_v58 = vpop.f32.mrf.mxu2  ;;  %v1429_v61 = vadd.f32 %v3426_v57, %v1414_v49  ;;  %v1181_v1 = vpop.f32.mrf.mxu0 }
 0x181   : > { %v2182_v60 = vmax.f32 %v2173_v52, %v2177_v53  ;;  %1644 = vst.msk [vmem:[#allocation2 + $0x330] sm:$0xff] %vm425_vm1, %v1629_v48  ;;  %v1581_v62 = vadd.f32 %v3436_v2, %v1580_v58  ;;  %v1781_v63 = vpop.f32.mrf.mxu3  ;;  %v1182_v5 = vadd.f32 %v3436_v2, %v1181_v1  ;;  %v1382_v6 = vpop.f32.mrf.mxu1  ;;  %v2104_v48 = vmax.f32 %v2095_v29, %v2099_v30 }
 0x182   : > { %v2277_v56 = vunpack.c.l.b16 %v2085_v51  ;;  %1845 = vst.msk [vmem:[#allocation2 + $0x3a8] sm:$0xff] %vm425_vm1, %v1830_v54  ;;  %v1782_v4 = vadd.f32 %v3436_v2, %v1781_v63  ;;  %v1383_v11 = vadd.f32 %v3436_v2, %v1382_v6  ;;  %v2221_v2 = vld [vmem:[#allocation2 + $0x381] ss:$2 sm:$0xff] }
 0x183   : > { %v2184_v8 = vmax.f32 %v2180_v59, %v2182_v60  ;;  %v2123_v9 = vld [vmem:[#allocation2 + $0x2b0] ss:$2 sm:$0xff]  ;;  %v2127_v10 = vld [vmem:[#allocation2 + $0x2b1] ss:$2 sm:$0xff]  ;;  %1243 = vst.msk [vmem:[#allocation2 + $0x248] sm:$0xff] %vm425_vm1, %v1228_v55  ;;  %v1600_v57 = vmax.f32 %v1581_v62, 0.0  ;;  %v2232_v43 = vmax.f32 %v2217_v24, %v2221_v2 }
 0x184   : > { %v2322_v12 = vpack.c.b16 %v2277_v56, %v2277_v56  ;;  %v2131_v13 = vmax.f32 %v2123_v9, %v2127_v10  ;;  %1444 = vst.msk [vmem:[#allocation2 + $0x2c0] sm:$0xff] %vm425_vm1, %v1429_v61  ;;  %v1801_v14 = vmax.f32 %v1782_v4, 0.0  ;;  %v1199_v15 = vmax.f32 %v1182_v5, 0.0  ;;  %v2167_v59 = vld [vmem:[#allocation2 + $0x310] ss:$2 sm:$0xff] }
 0x185   : > { %v2188_v16 = vpack.c.bf16 %v2184_v8, %v2184_v8  ;;  %v1615_v18 = vmul.f32 %v2908_v17, %v1600_v57  ;;  %v1400_v19 = vmax.f32 %v1383_v11, 0.0  ;;  %v2171_v60 = vld [vmem:[#allocation2 + $0x311] ss:$2 sm:$0xff]  ;;  %v2097_v8 = vld [vmem:[#allocation2 + $0x270] ss:$2 sm:$0xff] }
 0x186   : > { %2387 = vst.msk [vmem:[%s3185_s16 + $0x44] sm:$0xf] %vm2369_vm2, %v2322_v12  ;;  %v2133_v20 = vmax.f32 %v2129_v7, %v2131_v13  ;;  %v1816_v21 = vmul.f32 %v2908_v17, %v1801_v14  ;;  %v1214_v23 = vmul.f32 %v2908_v17, %v1199_v15  ;;  %v2101_v9 = vld [vmem:[#allocation2 + $0x271] ss:$2 sm:$0xff]  ;;  %v2181_v10 = vmax.f32 %v2167_v59, %v2171_v60  ;;  %v2147_v13 = vld [vmem:[#allocation2 + $0x2e0] ss:$2 sm:$0xff] }
 0x187   : > { %v2292_v25 = vunpack.c.l.b16 %v2188_v16  ;;  %v1630_v27 = vadd.f32 %v2909_v26, %v1615_v18  ;;  %v1415_v28 = vmul.f32 %v2908_v17, %v1400_v19  ;;  %v2151_v14 = vld [vmem:[#allocation2 + $0x2e1] ss:$2 sm:$0xff] }
 0x188   : > { %v2135_v31 = vsel %vm1852_vm3, %v2133_v20, 0.0  ;;  %v1831_v32 = vadd.f32 %v2909_v26, %v1816_v21  ;;  %v1229_v33 = vadd.f32 %v2909_v26, %v1214_v23  ;;  %v1583_v34 = vpop.f32.mrf.mxu2  ;;  %v1183_v42 = vpop.f32.mrf.mxu0  ;;  %v2105_v20 = vmax.f32 %v2097_v8, %v2101_v9 }
 0x189   : > { %v2329_v35 = vpack.c.b16 %v2292_v25, %v2292_v25  ;;  %v2137_v36 = vpack.c.bf16 %v2135_v31, %v2135_v31  ;;  %v2225_v37 = vld [vmem:[#allocation2 + $0x3a0] ss:$2 sm:$0xff]  ;;  %v2229_v38 = vld [vmem:[#allocation2 + $0x3a1] ss:$2 sm:$0xff]  ;;  %1645 = vst.msk [vmem:[#allocation2 + $0x338] sm:$0xff] %vm425_vm1, %v1630_v27  ;;  %v1430_v0 = vadd.f32 %v2909_v26, %v1415_v28  ;;  %v1584_v40 = vadd.f32 %v2910_v39, %v1583_v34  ;;  %v1784_v41 = vpop.f32.mrf.mxu3  ;;  %v1384_v47 = vpop.f32.mrf.mxu1 }
 0x18a   : > { %v2234_v44 = vmax.f32 %v2225_v37, %v2229_v38  ;;  %v2087_v45 = vld [vmem:[#allocation2 + $0x240] ss:$2 sm:$0xff]  ;;  %v2091_v46 = vld [vmem:[#allocation2 + $0x241] ss:$2 sm:$0xff]  ;;  %1846 = vst.msk [vmem:[#allocation2 + $0x3b0] sm:$0xff] %vm425_vm1, %v1831_v32  ;;  %v1785_v3 = vadd.f32 %v2910_v39, %v1784_v41  ;;  %v2156_v2 = vmax.f32 %v2147_v13, %v2151_v14 }
 0x18b   : > { %2394 = vst.msk [vmem:[%s3185_s16 + $0x60] sm:$0xf] %vm2369_vm2, %v2329_v35  ;;  %v2285_v49 = vunpack.c.l.b16 %v2137_v36  ;;  %v2102_v50 = vmax.f32 %v2087_v45, %v2091_v46  ;;  %v1601_v51 = vmax.f32 %v1584_v40, 0.0  ;;  %v2199_v27 = vld [vmem:[#allocation2 + $0x360] ss:$2 sm:$0xff] }
 0x18c   : > { %v2236_v52 = vmax.f32 %v2232_v43, %v2234_v44  ;;  %1244 = vst.msk [vmem:[#allocation2 + $0x250] sm:$0xff] %vm425_vm1, %v1229_v33  ;;  %v1802_v53 = vmax.f32 %v1785_v3, 0.0  ;;  %v2203_v28 = vld [vmem:[#allocation2 + $0x361] ss:$2 sm:$0xff]  ;;  %v2219_v31 = vld [vmem:[#allocation2 + $0x390] ss:$2 sm:$0xff] }
 0x18d   : > { %v2326_v54 = vpack.c.b16 %v2285_v49, %v2285_v49  ;;  %v2106_v55 = vmax.f32 %v2102_v50, %v2104_v48  ;;  %1445 = vst.msk [vmem:[#allocation2 + $0x2c8] sm:$0xff] %vm425_vm1, %v1430_v0  ;;  %v1616_v58 = vmul.f32 %v2908_v17, %v1601_v51  ;;  %v2223_v32 = vld [vmem:[#allocation2 + $0x391] ss:$2 sm:$0xff]  ;;  %v2208_v38 = vmax.f32 %v2199_v27, %v2203_v28 }
 0x18e   : > { %v2240_v61 = vpack.c.bf16 %v2236_v52, %v2236_v52  ;;  %v1817_v62 = vmul.f32 %v2908_v17, %v1802_v53  ;;  %v2233_v43 = vmax.f32 %v2219_v31, %v2223_v32 }
 0x18f   : > { %2391 = vst.msk [vmem:[%s3185_s16 + $0x54] sm:$0xf] %vm2369_vm2, %v2326_v54  ;;  %v2110_v63 = vpack.c.bf16 %v2106_v55, %v2106_v55  ;;  %v1631_v1 = vadd.f32 %v2909_v26, %v1616_v58 }
 0x190   : > { %v2300_v56 = vunpack.c.l.b16 %v2240_v61  ;;  %v2175_v4 = vld [vmem:[#allocation2 + $0x330] ss:$2 sm:$0xff]  ;;  %v2179_v5 = vld [vmem:[#allocation2 + $0x331] ss:$2 sm:$0xff]  ;;  %v1832_v6 = vadd.f32 %v2909_v26, %v1817_v62  ;;  %v1585_v7 = vpop.f32.mrf.mxu2 }
 0x191   : > { %v2280_v57 = vunpack.c.l.b16 %v2110_v63  ;;  %v2183_v11 = vmax.f32 %v2175_v4, %v2179_v5  ;;  %1646 = vst.msk [vmem:[#allocation2 + $0x340] sm:$0xff] %vm425_vm1, %v1631_v1  ;;  %v1786_v12 = vpop.f32.mrf.mxu3 }
 0x192   : > { %v2333_v15 = vpack.c.b16 %v2300_v56, %v2300_v56  ;;  %1847 = vst.msk [vmem:[#allocation2 + $0x3b8] sm:$0xff] %vm425_vm1, %v1832_v6 }
 0x193   : > { %v2323_v16 = vpack.c.b16 %v2280_v57, %v2280_v57  ;;  %v2185_v17 = vmax.f32 %v2181_v10, %v2183_v11  ;;  %v2089_v18 = vld [vmem:[#allocation2 + $0x250] ss:$2 sm:$0xff]  ;;  %v2093_v19 = vld [vmem:[#allocation2 + $0x251] ss:$2 sm:$0xff] }
 0x194   : > { %2398 = vst.msk [vmem:[%s3185_s16 + $0x70] sm:$0xf] %vm2369_vm2, %v2333_v15  ;;  %v2103_v21 = vmax.f32 %v2089_v18, %v2093_v19  ;;  %v2139_v23 = vld [vmem:[#allocation2 + $0x2c0] ss:$2 sm:$0xff]  ;;  %v2143_v24 = vld [vmem:[#allocation2 + $0x2c1] ss:$2 sm:$0xff] }
 0x195   : > { %2388 = vst.msk [vmem:[%s3185_s16 + $0x48] sm:$0xf] %vm2369_vm2, %v2323_v16  ;;  %v2187_v25 = vsel %vm1852_vm3, %v2185_v17, 0.0  ;;  %v2154_v26 = vmax.f32 %v2139_v23, %v2143_v24 }
 0x196   : > { %v2189_v29 = vpack.c.bf16 %v2187_v25, %v2187_v25  ;;  %v2107_v30 = vmax.f32 %v2103_v21, %v2105_v20 }
 0x197   : > { %v2158_v33 = vmax.f32 %v2154_v26, %v2156_v2 }
 0x198   : > { %v2293_v34 = vunpack.c.l.b16 %v2189_v29  ;;  %v2109_v35 = vsel %vm1852_vm3, %v2107_v30, 0.0  ;;  %v2191_v36 = vld [vmem:[#allocation2 + $0x340] ss:$2 sm:$0xff]  ;;  %v2195_v37 = vld [vmem:[#allocation2 + $0x341] ss:$2 sm:$0xff] }
 0x199   : > { %v2111_v0 = vpack.c.bf16 %v2109_v35, %v2109_v35  ;;  %v2162_v39 = vpack.c.bf16 %v2158_v33, %v2158_v33  ;;  %v2206_v40 = vmax.f32 %v2191_v36, %v2195_v37  ;;  %v2227_v41 = vld [vmem:[#allocation2 + $0x3b0] ss:$2 sm:$0xff]  ;;  %v2231_v42 = vld [vmem:[#allocation2 + $0x3b1] ss:$2 sm:$0xff] }
 0x19a   : > { %v2330_v44 = vpack.c.b16 %v2293_v34, %v2293_v34  ;;  %v2235_v45 = vmax.f32 %v2227_v41, %v2231_v42 }
 0x19b   : > { %v2281_v46 = vunpack.c.l.b16 %v2111_v0  ;;  %v2288_v3 = vunpack.c.l.b16 %v2162_v39  ;;  %v2210_v47 = vmax.f32 %v2206_v40, %v2208_v38 }
 0x19c   : > { %2395 = vst.msk [vmem:[%s3185_s16 + $0x64] sm:$0xf] %vm2369_vm2, %v2330_v44  ;;  %v2237_v48 = vmax.f32 %v2233_v43, %v2235_v45 }
 0x19d   : > { %v2324_v49 = vpack.c.b16 %v2281_v46, %v2281_v46  ;;  %v2327_v50 = vpack.c.b16 %v2288_v3, %v2288_v3  ;;  %v2214_v51 = vpack.c.bf16 %v2210_v47, %v2210_v47 }
 0x19e   : > { %v2239_v52 = vsel %vm1852_vm3, %v2237_v48, 0.0 }
 0x19f   : > { %2389 = vst.msk [vmem:[%s3185_s16 + $0x4c] sm:$0xf] %vm2369_vm2, %v2324_v49  ;;  %v2296_v53 = vunpack.c.l.b16 %v2214_v51  ;;  %v2241_v54 = vpack.c.bf16 %v2239_v52, %v2239_v52 }
 0x1a0   : > { %2392 = vst.msk [vmem:[%s3185_s16 + $0x58] sm:$0xf] %vm2369_vm2, %v2327_v50 }
 0x1a1   : > { %v2331_v55 = vpack.c.b16 %v2296_v53, %v2296_v53  ;;  %v2301_v58 = vunpack.c.l.b16 %v2241_v54 }
 0x1a3   : > { %2396 = vst.msk [vmem:[%s3185_s16 + $0x68] sm:$0xf] %vm2369_vm2, %v2331_v55  ;;  %v2334_v59 = vpack.c.b16 %v2301_v58, %v2301_v58 }
 0x1a5   : > { %2399 = vst.msk [vmem:[%s3185_s16 + $0x74] sm:$0xf] %vm2369_vm2, %v2334_v59 }
 0x1a6 PF: > { %s15_s18 = sadd.s32 1, %s2917_s18  }
 0x1a7   : > { %p12_p4 = scmp.ge.s32.totalorder %s15_s18, 4  }
 0x1a9   :  { %14 = sbr.rel (!%p12_p4) target bundleno = 1 (0x1), region = 189 }

// kernel: tf_cifar_forward.5
= control target key start
LH: loop header
LB: loop body
LE: loop exit
PB: predicated region body
PF: predicated region fallthrough
CT: control target
= control target key end

     0   :  { %s3715_s18 = smov 0   ;;  %s5252_s0 = inlined_call_operand.vmem [shape: bf16[2,256,64], index: 0, kind: input, shape index: {}]   ;;  %s5253_s1 = inlined_call_operand.vmem [shape: bf16[3,256,128], index: 1, kind: input, shape index: {}]   ;;  %s5254_s2 = inlined_call_operand.vmem [shape: f32[1,128], index: 2, kind: input, shape index: {}]   ;;  %s5255_s3 = inlined_call_operand.vmem [shape: f32[1,128], index: 3, kind: input, shape index: {}]   ;;  %s5256_s4 = inlined_call_operand.vmem [shape: f32[1,128], index: 4, kind: input, shape index: {}]   ;;  %s5257_s5 = inlined_call_operand.vmem [shape: bf16[2,56,128], index: 5, kind: output, shape index: {}]  }
   0x1 LB: > { %s2957_s19 = sadd.s32 4294967295, %s3681_s18   ;;  %p2961_p0 = scmp.ge.s32.totalorder %s3681_s18, 1  ;;  %s3681_s18 = sphi %s3715_s18, %s15_s18  }
   0x2   : > { %p187_p1 = scmp.lt.s32.totalorder %s3681_s18, 3 }
   0x4   : > { %p188_p2 = pnand %p2961_p0, %p187_p1 }
   0x6   : > { %191 = sbr.rel (%p188_p2) target bundleno = 627 (0x273), region = 40 }
   0xb   : > { %p215_p3 = scmp.lt.s32.totalorder %s2957_s19, 1  ;;  %s3683_s24 = smov 64   ;;  %vm282_vm0 = vsmask.f32 7424  ;;  %v3522_v29 = vld [vmem:[%s5253_s1 + $0x78] sm:$0xff]  ;;  %v3521_v36 = vld [vmem:[%s5253_s1 + $0x70] sm:$0xff] }
   0xc   : > { %1047 = vmatpush.bf16.msra.mxu3 %v3522_v29  ;;  %v3520_v46 = vld [vmem:[%s5253_s1 + $0x68] sm:$0xff]  ;;  %v3538_v52 = vld [vmem:[%s5253_s1 + $0xf8] sm:$0xff]  ;;  %v3519_v55 = vld [vmem:[%s5253_s1 + $0x60] sm:$0xff]  ;;  %vm1094_vm1 = vcmask 1040384   ;;  %vm355_vm2 = vcmask 1046528   ;;  %vm389_vm3 = vcmask 523264  }
   0xd   : > { %s5308_s19 = smov (!%p215_p3, %s2957_s19), 1  ;;  %865 = vmatpush.bf16.msra.mxu1 %v3538_v52  ;;  %v3518_v63 = vld [vmem:[%s5253_s1 + $0x58] sm:$0xff]  ;;  %vm521_vm4 = vsmask.f32 256  ;;  %vm2860_vm6 = vcmask 1043456  }
   0xe   : > { %s3503_s20 = sshll.u32 %s5308_s19, 7  ;;  %v3530_v52 = vld [vmem:[%s5253_s1 + $0xb8] sm:$0xff]  ;;  %s3654_s7 = smul.u32 28, %s5308_s19 }
   0xf   : > { %s3729_s23 = scalar_lea.vmem %s5252_s0, %s3503_s20  ;;  %822 = vmatpush.bf16.msra.mxu0 %v3530_v52 }
  0x10   : > { %v3732_v0 = vld [vmem:[%s3729_s23 + $0x10] sm:$0xff]   ;;  %v3735_v1 = vld [vmem:[%s3729_s23 + $0x8] sm:$0xff]   ;;  %v3738_v2 = vld [vmem:[%s3729_s23] sm:$0xff]   ;;  %1048 = vmatpush.bf16.msra.mxu3 %v3521_v36  ;;  %s5123_s10 = scalar_lea.vmem %s5257_s5, %s3654_s7 }
  0x11   : > { %377 = vrot.lane.b32.xlu1 %v3732_v0, %s3683_s24  ;;  %375 = vrot.lane.b32.xlu2 %v3735_v1, %s3683_s24  ;;  %v284_v3 = vshrl.u32 %v3738_v2, 16  ;;  %v286_v4 = vshll.u32 %v3738_v2, 16  ;;  %v291_v5 = vshll.u32 %v3735_v1, 16  ;;  %v3644_v6 = vld [vmem:[%s3729_s23 + $0x8] sm:$0xf0]  ;;  %v299_v10 = vshll.u32 %v3732_v0, 16 }
  0x12   : > { %v3645_v7 = vld [vmem:[%s3729_s23 + $0x8] sm:$0xe]  ;;  %v3751_v15 = vld [vmem:[%s3729_s23 + $0x18] sm:$0xff]  ;;  %v295_v16 = vshrl.u32 %v3735_v1, 16  ;;  %v303_v22 = vshrl.u32 %v3732_v0, 16  ;;  %v3780_v32 = vld [vmem:[%s3729_s23 + $0x20] sm:$0xff] }
  0x13   : > { %v288_v8 = vrot.slane %v286_v4, 1  ;;  %v293_v9 = vrot.slane %v291_v5, 1  ;;  %v3646_v11 = vor.u32 %v3645_v7, %v3644_v6  ;;  %v301_v18 = vrot.slane %v299_v10, 1  ;;  %v3758_v20 = vld [vmem:[%s3729_s23 + $0x28] sm:$0xff]  ;;  %v3769_v27 = vld [vmem:[%s3729_s23 + $0x38] sm:$0xff]   ;;  %v3791_v38 = vld [vmem:[%s3729_s23 + $0x30] sm:$0xff]  }
  0x14   : > { %v307_v23 = vshll.u32 %v3751_v15, 16  ;;  %v323_v26 = vshll.u32 %v3758_v20, 16  ;;  %v472_v28 = vld [vmem:[%s3729_s23 + $0x3c] sm:$0x1]  ;;  %v3784_v34 = vunpack.c.l.b16 %v3769_v27  ;;  %v327_v37 = vshrl.u32 %v3758_v20, 16  ;;  %1049 = vmatpush.bf16.msra.mxu3 %v3520_v46  ;;  %v3537_v4 = vld [vmem:[%s5253_s1 + $0xf0] sm:$0xff] }
  0x15   : > { %v289_v12 = vor.u32 %v288_v8, %v284_v3  ;;  %v484_v13 = vshrl.u32 %v3646_v11, 16  ;;  %v486_v14 = vshll.u32 %v3646_v11, 16  ;;  %v297_v24 = vor.u32 %v295_v16, %v293_v9  ;;  %v242_v48 = vld [vmem:[%s3729_s23 + $0x34] sm:$0x1]  ;;  %v3514_v3 = vld [vmem:[%s5253_s1 + $0x38] sm:$0xff]  ;;  %866 = vmatpush.bf16.msra.mxu1 %v3537_v4  ;;  %v3515_v16 = vld [vmem:[%s5253_s1 + $0x40] sm:$0xff] }
  0x16   : > { %v305_v30 = vor.u32 %v303_v22, %v301_v18  ;;  %v309_v31 = vrot.slane %v307_v23, 1  ;;  %v478_v35 = vunpack.c.l.b16 %v472_v28  ;;  %v325_v39 = vrot.slane %v323_v26, 1  ;;  %v3517_v8 = vld [vmem:[%s5253_s1 + $0x50] sm:$0xff]  ;;  %1004 = vmatpush.bf16.msra.mxu2 %v3514_v3  ;;  %v3885_v28 = vld [vmem:[%s3729_s23 + $0x40] sm:$0xff]   ;;  %v3512_v36 = vld [vmem:[%s5253_s1 + $0x28] sm:$0xff] }
  0x17   : > { %v294_v17 = vsel %vm282_vm0, %v289_v12, %v293_v9  ;;  %v488_v19 = vrot.slane %v486_v14, 1  ;;  %v302_v33 = vsel %vm282_vm0, %v297_v24, %v301_v18  ;;  %v492_v40 = vshll.u32 %v3791_v38, 16  ;;  %v3513_v9 = vld [vmem:[%s5253_s1 + $0x30] sm:$0xff] }
  0x18   : > { %v310_v41 = vsel %vm282_vm0, %v305_v30, %v309_v31  ;;  %v311_v42 = vshrl.u32 %v3751_v15, 16  ;;  %v315_v43 = vshll.u32 %v3780_v32, 16  ;;  %v3803_v44 = vpack.c.b16 %v478_v35, %v3784_v34  ;;  %1050 = vmatpush.bf16.msra.mxu3 %v3519_v55 }
  0x19   : > { %338 = vrot.lane.b32.xlu1 %v294_v17, %s3683_s24  ;;  %v489_v21 = vor.u32 %v488_v19, %v484_v13  ;;  %379 = vrot.lane.b32.xlu2 %v3751_v15, %s3683_s24  ;;  %v329_v45 = vor.u32 %v327_v37, %v325_v39  ;;  %v494_v47 = vrot.slane %v492_v40, 1  ;;  %v496_v51 = vshrl.u32 %v3791_v38, 16  ;;  %v3516_v13 = vld [vmem:[%s5253_s1 + $0x48] sm:$0xff] }
  0x1a   : > { %v313_v49 = vor.u32 %v311_v42, %v309_v31  ;;  %v317_v50 = vrot.slane %v315_v43, 1  ;;  %v500_v53 = vshll.u32 %v3803_v44, 16  ;;  %v3828_v56 = vunpack.c.l.b16 %v3791_v38  ;;  %1005 = vmatpush.bf16.msra.mxu2 %v3513_v9  ;;  %v3891_v31 = vld [vmem:[%s3729_s23 + $0x48] sm:$0xf] }
  0x1b   : > { %v490_v25 = vsel %vm282_vm0, %v489_v21, %v301_v18  ;;  %v495_v54 = vsel %vm282_vm0, %v329_v45, %v494_v47  ;;  %v280_v57 = vunpack.c.l.b16 %v242_v48  ;;  %v319_v59 = vshrl.u32 %v3780_v32, 16  ;;  %v3511_v48 = vld [vmem:[%s5253_s1 + $0x20] sm:$0xff] }
  0x1c   : > { %507 = vrot.lane.b32.xlu0 %v490_v25, %s3683_s24  ;;  %v318_v58 = vsel %vm282_vm0, %v313_v49, %v317_v50  ;;  %v498_v60 = vor.u32 %v496_v51, %v494_v47  ;;  %v502_v61 = vrot.slane %v500_v53, 1  ;;  %1051 = vmatpush.bf16.msra.mxu3 %v3518_v63  ;;  %v504_v17 = vshrl.u32 %v3803_v44, 16  ;;  %v3536_v25 = vld [vmem:[%s5253_s1 + $0xe8] sm:$0xff] }
  0x1d   : > { %v3838_v62 = vpack.c.b16 %v280_v57, %v3828_v56  ;;  %v321_v5 = vor.u32 %v319_v59, %v317_v50  ;;  %v374_v18 = vpack.c.b16 %v3784_v34, %v3784_v34  ;;  %v3628_v29 = vunpack.c.l.b16 %v3885_v28  ;;  %867 = vmatpush.bf16.msra.mxu1 %v3536_v25  ;;  %v3918_v53 = vld [vmem:[%s3729_s23 + $0x4c] sm:$0xff] }
  0x1e   : > { %v503_v6 = vsel %vm282_vm0, %v498_v60, %v502_v61  ;;  %v506_v19 = vor.u32 %v504_v17, %v502_v61  ;;  %v3629_v30 = vunpack.c.h.b16 %v3885_v28  ;;  %v5258_v34 = vunpack.c.l.b16 %v3891_v31  ;;  %1006 = vmatpush.bf16.msra.mxu2 %v3512_v36  ;;  %v3529_v60 = vld [vmem:[%s5253_s1 + $0xb0] sm:$0xff]  ;;  %v3641_v17 = vld [vmem:[%s3729_s23] sm:$0xf0] }
  0x1f   : > { %v331_v7 = vshll.u32 %v3838_v62, 16  ;;  %v326_v11 = vsel %vm282_vm0, %v321_v5, %v325_v39  ;;  %v335_v21 = vshrl.u32 %v3838_v62, 16  ;;  %v3535_v39 = vld [vmem:[%s5253_s1 + $0xe0] sm:$0xff]  ;;  %v1585_v3 = vshll.u32 %v3918_v53, 16  ;;  %823 = vmatpush.bf16.msra.mxu0 %v3529_v60  ;;  %v3525_v60 = vld [vmem:[%s5253_s1 + $0x90] sm:$0xff] }
  0x20   : > { %1052 = vmatpush.bf16.msra.mxu3 %v3517_v8  ;;  %v3905_v46 = vpack.c.b16 %v5258_v34, %v3629_v30  ;;  %v357_v30 = vrot.slane %v3735_v1, 1  ;;  %v3541_v28 = vld [vmem:[%s5253_s1 + $0x110] sm:$0xff] }
  0x21   : > { %340 = vrot.lane.b32.xlu1 %v302_v33, %s3683_s24  ;;  %381 = vrot.lane.b32.xlu2 %v3780_v32, %s3683_s24  ;;  %v333_v12 = vrot.slane %v331_v7, 1  ;;  %v1749_v33 = vld [vmem:[%s3729_s23 + $0x3c] sm:$0xe]  ;;  %v3943_v7 = vrot.slane %v1585_v3, 1 }
  0x22   : > { %v1757_v35 = vunpack.c.l.b16 %v1749_v33  ;;  %868 = vmatpush.bf16.msra.mxu1 %v3535_v39  ;;  %v1581_v63 = vshrl.u32 %v3905_v46, 16  ;;  %1007 = vmatpush.bf16.msra.mxu2 %v3511_v48  ;;  %v3532_v33 = vld [vmem:[%s5253_s1 + $0xc8] sm:$0xff]  ;;  %v3531_v48 = vld [vmem:[%s5253_s1 + $0xc0] sm:$0xff] }
  0x23   : > { %v334_v14 = vsel %vm282_vm0, %v329_v45, %v333_v12  ;;  %v337_v24 = vor.u32 %v335_v21, %v333_v12  ;;  %v476_v45 = vld [vmem:[%s3729_s23 + $0x44] sm:$0x1]  ;;  %v3528_v21 = vld [vmem:[%s5253_s1 + $0xa8] sm:$0xff] }
  0x24   : > { %342 = vrot.lane.b32.xlu0 %v310_v41, %s3683_s24  ;;  %1053 = vmatpush.bf16.msra.mxu3 %v3516_v13  ;;  %v475_v41 = vld [vmem:[%s3729_s23 + $0x40] sm:$0xf]  ;;  %v1758_v47 = vpack.c.b16 %v3628_v29, %v1757_v35  ;;  %v553_v50 = vunpack.c.l.b16 %v476_v45  ;;  %v3980_v35 = vld [vmem:[%s3729_s23 + $0x54] sm:$0xff]  ;;  %v3508_v39 = vld [vmem:[%s5253_s1 + $0x8] sm:$0xff]  ;;  %v524_v45 = vrot.slane %v311_v42, 7 }
  0x25   : > { %v3912_v49 = vunpack.c.l.b16 %v475_v41  ;;  %824 = vmatpush.bf16.msra.mxu0 %v3528_v21  ;;  %v3527_v41 = vld [vmem:[%s5253_s1 + $0xa0] sm:$0xff]  ;;  %v3526_v42 = vld [vmem:[%s5253_s1 + $0x98] sm:$0xff] }
  0x26   : > { %v1760_v55 = vshrl.u32 %v1758_v47, 16  ;;  %v1762_v57 = vshll.u32 %v1758_v47, 16 }
  0x27   : > { %v3928_v61 = vpack.c.b16 %v553_v50, %v3912_v49  ;;  %v3507_v50 = vld [vmem:[%s5253_s1] sm:$0xff] }
  0x28   : > { %1054 = vmatpush.bf16.msra.mxu3 %v3515_v16  ;;  %v1764_v5 = vrot.slane %v1762_v57, 1  ;;  %v3961_v16 = vrot.slane %v3738_v2, 7  ;;  %v525_v57 = vor.u32 %v524_v45, %v307_v23 }
  0x29   : > { %383 = vrot.lane.b32.xlu1 %v3758_v20, %s3683_s24  ;;  %509 = vrot.lane.b32.xlu2 %v495_v54, %s3683_s24  ;;  %v5262_v54 = vshll.u32 %v3905_v46, 16 }
  0x2a   : > { %v1765_v8 = vor.u32 %v1764_v5, %v1760_v55  ;;  %825 = vmatpush.bf16.msra.mxu0 %v3527_v41  ;;  %v527_v5 = vrot.slane %v319_v59, 7 }
  0x2b   : > { %v3934_v4 = vrot.slane %v5262_v54, 1 }
  0x2c   : > { %344 = vrot.lane.b32.xlu0 %v318_v58, %s3683_s24  ;;  %v3534_v58 = vld [vmem:[%s5253_s1 + $0xd8] sm:$0xff]  ;;  %v528_v59 = vor.u32 %v527_v5, %v315_v43 }
  0x2d   : > { %869 = vmatpush.bf16.msra.mxu1 %v3534_v58  ;;  %v1583_v9 = vor.u32 %v1581_v63, %v3934_v4  ;;  %v1766_v12 = vsel %vm282_vm0, %v1765_v8, %v3934_v4  ;;  %v522_v58 = vrot.slane %v303_v22, 7  ;;  %v3524_v22 = vld [vmem:[%s5253_s1 + $0x88] sm:$0xff]  ;;  %v3581_v43 = vld [vmem:[%s5253_s1 + $0xb8] sm:$0xff] }
  0x2e   : > { %826 = vmatpush.bf16.msra.mxu0 %v3526_v42  ;;  %v1589_v42 = vshrl.u32 %v3918_v53, 16 }
  0x2f   : > { %v1588_v13 = vsel %vm282_vm0, %v1583_v9, %v3943_v7  ;;  %v1098_v9 = vrot.slane %v3732_v0, 7 }
  0x31   : > { %511 = vrot.lane.b32.xlu1 %v503_v6, %s3683_s24  ;;  %555 = vrot.lane.b32.xlu2 %v3769_v27, %s3683_s24  ;;  %v3510_v6 = vld [vmem:[%s5253_s1 + $0x18] sm:$0xff] }
  0x32   : > { %1008 = vmatpush.bf16.msra.mxu2 %v3510_v6  ;;  %v526_v6 = vsel %vm521_vm4, %v522_v58, %v525_v57  ;;  %827 = vmatpush.bf16.msra.mxu0 %v3525_v60  ;;  %v530_v57 = vrot.slane %v327_v37, 7 }
  0x34   : > { %346 = vrot.lane.b32.xlu0 %v326_v11, %s3683_s24  ;;  %v3533_v11 = vld [vmem:[%s5253_s1 + $0xd0] sm:$0xff] }
  0x35   : > { %870 = vmatpush.bf16.msra.mxu1 %v3533_v11 }
  0x36   : > { %828 = vmatpush.bf16.msra.mxu0 %v3524_v22 }
  0x39   : > { %348 = vrot.lane.b32.xlu1 %v334_v14, %s3683_s24  ;;  %557 = vrot.lane.b32.xlu2 %v3928_v61, %s3683_s24  ;;  %v3509_v14 = vld [vmem:[%s5253_s1 + $0x10] sm:$0xff] }
  0x3a   : > { %1009 = vmatpush.bf16.msra.mxu2 %v3509_v14  ;;  %871 = vmatpush.bf16.msra.mxu1 %v3532_v33  ;;  %v529_v14 = vsel %vm521_vm4, %v524_v45, %v528_v59  ;;  %v3546_v45 = vld [vmem:[%s5253_s1 + $0x138] sm:$0xff] }
  0x3c   : > { %385 = vrot.lane.b32.xlu0 %v3791_v38, %s3683_s24 }
  0x3e   : > { %1010 = vmatpush.bf16.msra.mxu2 %v3508_v39  ;;  %872 = vmatpush.bf16.msra.mxu1 %v3531_v48  ;;  %v359_v39 = vrot.slane %v3732_v0, 1  ;;  %v523_v48 = vor.u32 %v522_v58, %v299_v10  ;;  %v3554_v10 = vld [vmem:[%s5253_s1 + $0x178] sm:$0xff] }
  0x41   : > { %387 = vrot.lane.b32.xlu1 %v374_v18, %s3683_s24  ;;  %1654 = vrot.lane.b32.xlu2 %v3905_v46, %s3683_s24  ;;  %v3642_v18 = vld [vmem:[%s3729_s23] sm:$0xe] }
  0x42   : > { %1011 = vmatpush.bf16.msra.mxu2 %v3507_v50  ;;  %v360_v50 = vsel %vm355_vm2, %v357_v30, %v359_v39  ;;  %1378 = vmatpush.bf16.msrb.mxu1 %v3554_v10  ;;  %v3588_v10 = vld [vmem:[%s5253_s1 + $0xf0] sm:$0xff] }
  0x44   : > { %513 = vrot.lane.b32.xlu0 %v506_v19, %s3683_s24  ;;  %v3643_v19 = vor.u32 %v3642_v18, %v3641_v17  ;;  %v3523_v17 = vld [vmem:[%s5253_s1 + $0x80] sm:$0xff] }
  0x45   : > { %829 = vmatpush.bf16.msra.mxu0 %v3523_v17  ;;  %v3652_v17 = vld [vmem:[%s3729_s23 + $0x68] sm:$0xff]  }
  0x46   : > { %v356_v25 = vrot.slane %v3643_v19, 1  ;;  %v3589_v19 = vld [vmem:[%s5253_s1 + $0xf8] sm:$0xff]  ;;  %2096 = vmatpush.bf16.msrb.mxu2 %v3581_v43  ;;  %v3632_v43 = vunpack.c.l.b16 %v3652_v17 }
  0x47   : > { %2139 = vmatpush.bf16.msrb.mxu3 %v3589_v19 }
  0x48   : > { %v358_v47 = vsel %vm355_vm2, %v356_v25, %v357_v30  ;;  %v1591_v30 = vor.u32 %v1589_v42, %v3943_v7  ;;  %v1520_v7 = vld [vmem:[%s3729_s23 + $0x64] sm:$0xf] }
  0x49   : > { %1620 = vrot.lane.b32.xlu1 %v1588_v13, %s3683_s24  ;;  %1656 = vrot.lane.b32.xlu2 %v3918_v53, %s3683_s24  ;;  %v4102_v19 = vunpack.c.l.b16 %v1520_v7  ;;  %v3553_v7 = vld [vmem:[%s5253_s1 + $0x170] sm:$0xff] }
  0x4a   : > { %1335 = vmatpush.bf16.msrb.mxu0 %v3546_v45  ;;  %1379 = vmatpush.bf16.msrb.mxu1 %v3553_v7  ;;  %v3653_v7 = vld [vmem:[%s3729_s23 + $0x70] sm:$0xff]  }
  0x4b   : > { %v4109_v45 = vpack.c.b16 %v3632_v43, %v4102_v19  ;;  %2140 = vmatpush.bf16.msrb.mxu3 %v3588_v10  ;;  %v1102_v43 = vrot.slane %v3780_v32, 7 }
  0x4c   : > { %350 = vrot.lane.b32.xlu0 %v337_v24, %s3683_s24  ;;  %v1096_v24 = vrot.slane %v3735_v1, 7 }
  0x4e   : > { %v3984_v36 = vsel %vm1094_vm1, %v3961_v16, %v1096_v24  ;;  %v4030_v11 = vsel %vm1094_vm1, %v1096_v24, %v1098_v9 }
  0x51   : > { %1110 = vrot.lane.b32.xlu1 %v3984_v36, %s3683_s24 }
  0x54   : > { %1783 = vrot.lane.b32.xlu0 %v1766_v12, %s3683_s24  ;;  %v4035_v12 = vld [vmem:[%s3729_s23 + $0x5c] sm:$0xff] }
  0x59   : > { %1112 = vrot.lane.b32.xlu1 %v4030_v11, %s3683_s24 }
  0x5c   : > { %1108 = vrot.lane.b32.xlu0 %v3961_v16, %s3683_s24 }
  0x64   : > { %1658 = vrot.lane.b32.xlu0 %v3980_v35, %s3683_s24 }
  0x6b   : > { %v376_v52 = vpop.permute.xlu2 %375 }
  0x6c   : > { %v414_v55 = vsel %vm389_vm3, %v358_v47, %v376_v52  ;;  %1660 = vrot.lane.b32.xlu0 %v4035_v12, %s3683_s24 }
  0x6d   : > { %1055 = vmatmul.bf16.vlgmr.msra.gmra.mxu3 %v414_v55  ;;  %v5263_v55 = vshll.u32 %v3980_v35, 16 }
  0x6f   : > { %v4085_v60 = vrot.slane %v5263_v55, 1  ;;  %v5266_v55 = vshrl.u32 %v4109_v45, 16 }
  0x73   : > { %v4021_v8 = vpop.permute.xlu2 %379 }
  0x74   : > { %v570_v23 = vsel %vm389_vm3, %v526_v6, %v4021_v8  ;;  %v1100_v6 = vrot.slane %v3751_v15, 7 }
  0x75   : > { %v632_v13 = vshll.u32 %v570_v23, 16  ;;  %v643_v18 = vshrl.u32 %v570_v23, 16 }
  0x77   : > { %v634_v21 = vrot.slane %v632_v13, 1  ;;  %v1596_v13 = vsel %vm282_vm0, %v1591_v30, %v4085_v60  ;;  %v5261_v30 = vshrl.u32 %v4035_v12, 16 }
  0x78   : > { %1622 = vrot.lane.b32.xlu2 %v1596_v13, %s3683_s24 }
  0x79   : > { %v645_v33 = vor.u32 %v643_v18, %v634_v21  ;;  %v531_v18 = vor.u32 %v530_v57, %v323_v26  ;;  %v3580_v26 = vld [vmem:[%s5253_s1 + $0xb0] sm:$0xff] }
  0x7a   : > { %2097 = vmatpush.bf16.msrb.mxu2 %v3580_v26 }
  0x7b   : > { %v4051_v24 = vpop.permute.xlu2 %381 }
  0x7c   : > { %v4055_v25 = vsel %vm389_vm3, %v529_v14, %v4051_v24  ;;  %v4093_v14 = vsel %vm1094_vm1, %v1098_v9, %v1100_v6  ;;  %v5260_v9 = vshll.u32 %v4035_v12, 16 }
  0x7d   : > { %v646_v41 = vshll.u32 %v4055_v25, 16  ;;  %1114 = vrot.lane.b32.xlu1 %v4093_v14, %s3683_s24 }
  0x7f   : > { %v4062_v47 = vrot.slane %v646_v41, 1  ;;  %v4105_v41 = vsel %vm521_vm4, %v527_v5, %v531_v18  ;;  %v3545_v5 = vld [vmem:[%s5253_s1 + $0x130] sm:$0xff]  ;;  %v3579_v18 = vld [vmem:[%s5253_s1 + $0xa8] sm:$0xff] }
  0x80   : > { %1336 = vmatpush.bf16.msrb.mxu0 %v3545_v5  ;;  %2098 = vmatpush.bf16.msrb.mxu2 %v3579_v18 }
  0x81   : > { %v4071_v52 = vsel %vm282_vm0, %v645_v33, %v4062_v47 }
  0x83   : > { %v378_v58 = vpop.permute.xlu1 %377 }
  0x84   : > { %v568_v23 = vsel %vm389_vm3, %v523_v48, %v378_v58  ;;  %v418_v22 = vsel %vm389_vm3, %v360_v50, %v378_v58  ;;  %v4113_v48 = vrot.slane %v496_v51, 7  ;;  %v1603_v58 = vrot.slane %v5260_v9, 1 }
  0x85   : > { %v626_v37 = vshrl.u32 %v568_v23, 16  ;;  %v628_v59 = vshll.u32 %v568_v23, 16  ;;  %1060 = vmatmul.bf16.gmra.mxu3 %v418_v22  ;;  %v361_v22 = vrot.slane %v3751_v15, 1 }
  0x86   : > { %v4134_v13 = vor.u32 %v5261_v30, %v1603_v58  ;;  %v365_v30 = vrot.slane %v3758_v20, 1 }
  0x87   : > { %v630_v33 = vrot.slane %v628_v59, 1  ;;  %v362_v10 = vsel %vm355_vm2, %v359_v39, %v361_v22 }
  0x89   : > { %v631_v50 = vor.u32 %v630_v33, %v626_v37  ;;  %v5259_v37 = vshll.u32 %v4109_v45, 16  ;;  %v534_v33 = vor.u32 %v4113_v48, %v492_v40  ;;  %v4165_v40 = vsel %vm1094_vm1, %v1100_v6, %v1102_v43 }
  0x8a   : > { %1116 = vrot.lane.b32.xlu1 %v4165_v40, %s3683_s24 }
  0x8b   : > { %v339_v51 = vpop.permute.xlu1 %338  ;;  %v635_v23 = vsel %vm282_vm0, %v631_v50, %v634_v21  ;;  %v4141_v21 = vrot.slane %v5259_v37, 1  ;;  %v4168_v5 = vsel %vm521_vm4, %v530_v57, %v534_v33 }
  0x8c   : > { %873 = vmatmul.bf16.vlgmr.msra.gmra.mxu1 %v635_v23  ;;  %v391_v59 = vsel %vm389_vm3, %v3738_v2, %v339_v51  ;;  %v3587_v2 = vld [vmem:[%s5253_s1 + $0xe8] sm:$0xff]  ;;  %v422_v23 = vsel %vm389_vm3, %v362_v10, %v4021_v8 }
  0x8d   : > { %1012 = vmatmul.bf16.vlgmr.msra.gmra.mxu2 %v391_v59  ;;  %v1771_v51 = vsel %vm282_vm0, %v4134_v13, %v4141_v21  ;;  %2141 = vmatpush.bf16.msrb.mxu3 %v3587_v2  ;;  %v1597_v59 = vshrl.u32 %v3980_v35, 16  ;;  %v3544_v2 = vld [vmem:[%s5253_s1 + $0x128] sm:$0xff] }
  0x8e   : > { %v508_v50 = vpop.permute.xlu0 %507  ;;  %1785 = vrot.lane.b32.xlu0 %v1771_v51, %s3683_s24  ;;  %v3636_v51 = vunpack.c.l.b16 %v3653_v7  ;;  %v3552_v8 = vld [vmem:[%s5253_s1 + $0x168] sm:$0xff]  ;;  %1337 = vmatpush.bf16.msrb.mxu0 %v3544_v2 }
  0x8f   : > { %v560_v26 = vsel %vm389_vm3, %v3735_v1, %v508_v50  ;;  %v4176_v50 = vunpack.c.h.b16 %v3652_v17  ;;  %v1599_v57 = vor.u32 %v1597_v59, %v4085_v60  ;;  %1380 = vmatpush.bf16.msrb.mxu1 %v3552_v8 }
  0x90   : > { %v618_v39 = vshll.u32 %v560_v26, 16  ;;  %v616_v60 = vshrl.u32 %v560_v26, 16 }
  0x91   : > { %v4182_v6 = vpack.c.b16 %v3636_v51, %v4176_v50  ;;  %v1604_v10 = vsel %vm282_vm0, %v1599_v57, %v1603_v58  ;;  %v657_v51 = vshrl.u32 %v4055_v25, 16 }
  0x92   : > { %v620_v33 = vrot.slane %v618_v39, 1  ;;  %1624 = vrot.lane.b32.xlu2 %v1604_v10, %s3683_s24  ;;  %v1752_v10 = vld [vmem:[%s3729_s23 + $0x78] sm:$0x1] }
  0x93   : > { %v341_v18 = vpop.permute.xlu1 %340  ;;  %5278 = vst [vmem:[#allocation3_spill] sm:$0xff] %v4182_v6  ;;  %v659_v25 = vor.u32 %v657_v51, %v4062_v47  ;;  %v537_v47 = vshrl.u32 %v3769_v27, 16  ;;  %v4230_v51 = vpop.permute.xlu2 %509 }
  0x94   : > { %v621_v39 = vor.u32 %v620_v33, %v616_v60  ;;  %v394_v58 = vsel %vm389_vm3, %v3735_v1, %v341_v18  ;;  %v3578_v1 = vld [vmem:[%s5253_s1 + $0xa0] sm:$0xff]  ;;  %v1104_v33 = vrot.slane %v3758_v20, 7 }
  0x95   : > { %1065 = vmatmul.bf16.gmra.mxu3 %v422_v23  ;;  %v3586_v18 = vld [vmem:[%s5253_s1 + $0xe0] sm:$0xff]  ;;  %2099 = vmatpush.bf16.msrb.mxu2 %v3578_v1 }
  0x96   : > { %v343_v17 = vpop.permute.xlu0 %342  ;;  %1830 = vrot.lane.b32.xlu0 %v4182_v6, %s3683_s24  ;;  %2142 = vmatpush.bf16.msrb.mxu3 %v3586_v18 }
  0x97   : > { %v4193_v34 = vsel %vm389_vm3, %v3732_v0, %v343_v17  ;;  %v363_v0 = vrot.slane %v3780_v32, 1  ;;  %v4222_v17 = vunpack.c.h.b16 %v3653_v7  ;;  %v4239_v7 = vsel %vm1094_vm1, %v1102_v43, %v1104_v33 }
  0x98   : > { %v622_v23 = vshll.u32 %v4193_v34, 16  ;;  %1118 = vrot.lane.b32.xlu1 %v4239_v7, %s3683_s24 }
  0x99   : > { %v364_v60 = vsel %vm355_vm2, %v361_v22, %v363_v0  ;;  %v540_v22 = vshll.u32 %v3769_v27, 16 }
  0x9a   : > { %v624_v37 = vrot.slane %v622_v23, 1  ;;  %1662 = vrot.lane.b32.xlu2 %v4109_v45, %s3683_s24  ;;  %v426_v1 = vsel %vm389_vm3, %v364_v60, %v4051_v24  ;;  %v636_v24 = vshrl.u32 %v4193_v34, 16 }
  0x9b   : > { %v4203_v57 = vpop.permute.xlu1 %383 }
  0x9c   : > { %v625_v26 = vsel %vm282_vm0, %v621_v39, %v624_v37  ;;  %878 = vmatmul.bf16.gmra.mxu1 %v4071_v52  ;;  %v574_v2 = vsel %vm389_vm3, %v4105_v41, %v4203_v57  ;;  %v3543_v52 = vld [vmem:[%s5253_s1 + $0x120] sm:$0xff]  ;;  %v539_v39 = vrot.slane %v537_v47, 7  ;;  %v520_v47 = vpack.c.b16 %v3912_v49, %v3912_v49 }
  0x9d   : > { %830 = vmatmul.bf16.vlgmr.msra.gmra.mxu0 %v625_v26  ;;  %1017 = vmatmul.bf16.gmra.mxu2 %v394_v58  ;;  %v660_v8 = vshll.u32 %v574_v2, 16  ;;  %v1828_v58 = vunpack.c.l.b16 %v1752_v10 }
  0x9e   : > { %v345_v41 = vpop.permute.xlu0 %344  ;;  %1338 = vmatpush.bf16.msrb.mxu0 %v3543_v52  ;;  %v542_v9 = vor.u32 %v540_v22, %v539_v39  ;;  %v556_v52 = vpop.permute.xlu2 %555  ;;  %v545_v60 = vshrl.u32 %v520_v47, 16  ;;  %v671_v22 = vshrl.u32 %v574_v2, 16  ;;  %v548_v49 = vshll.u32 %v520_v47, 16 }
  0x9f   : > { %v662_v23 = vrot.slane %v660_v8, 1  ;;  %v4246_v26 = vsel %vm389_vm3, %v3751_v15, %v345_v41  ;;  %v4252_v43 = vpack.c.b16 %v1828_v58, %v4222_v17  ;;  %v3551_v15 = vld [vmem:[%s5253_s1 + $0x160] sm:$0xff]  ;;  %v638_v58 = vor.u32 %v636_v24, %v624_v37 }
  0xa0   : > { %v639_v18 = vshll.u32 %v4246_v26, 16  ;;  %1381 = vmatpush.bf16.msrb.mxu1 %v3551_v15  ;;  %v543_v10 = vsel %vm521_vm4, %v4113_v48, %v542_v9  ;;  %v3585_v9 = vld [vmem:[%s5253_s1 + $0xd8] sm:$0xff]  ;;  %v4280_v37 = vpack.c.b16 %v3828_v56, %v3828_v56  ;;  %v547_v2 = vrot.slane %v545_v60, 7 }
  0xa1   : > { %v663_v8 = vsel %vm282_vm0, %v659_v25, %v662_v23  ;;  %5279 = vst [vmem:[#allocation4_spill] sm:$0xff] %v4252_v43  ;;  %1832 = vrot.lane.b32.xlu0 %v4252_v43, %s3683_s24  ;;  %v3542_v48 = vld [vmem:[%s5253_s1 + $0x118] sm:$0xff]  ;;  %2143 = vmatpush.bf16.msrb.mxu3 %v3585_v9 }
  0xa2   : > { %v641_v41 = vrot.slane %v639_v18, 1  ;;  %v3577_v18 = vld [vmem:[%s5253_s1 + $0x98] sm:$0xff]  ;;  %v1106_v24 = vrot.slane %v4280_v37, 7  ;;  %1339 = vmatpush.bf16.msrb.mxu0 %v3542_v48 }
  0xa3   : > { %v3550_v15 = vld [vmem:[%s5253_s1 + $0x158] sm:$0xff]  ;;  %2100 = vmatpush.bf16.msrb.mxu2 %v3577_v18 }
  0xa4   : > { %v642_v54 = vsel %vm282_vm0, %v638_v58, %v641_v41  ;;  %1382 = vmatpush.bf16.msrb.mxu1 %v3550_v15 }
  0xa5   : > { %1070 = vmatmul.bf16.gmra.mxu3 %v426_v1  ;;  %v579_v1 = vsel %vm389_vm3, %v543_v10, %v556_v52  ;;  %v1748_v52 = vld [vmem:[%s3729_s23 + $0x70] sm:$0x1]  ;;  %v550_v10 = vor.u32 %v548_v49, %v547_v2 }
  0xa6   : > { %v347_v25 = vpop.permute.xlu0 %346  ;;  %v688_v47 = vshll.u32 %v579_v1, 16  ;;  %v1754_v58 = vunpack.c.l.b16 %v1748_v52  ;;  %v699_v15 = vshrl.u32 %v579_v1, 16  ;;  %v367_v1 = vrot.slane %v3838_v62, 1  ;;  %1340 = vmatpush.bf16.msrb.mxu0 %v3541_v28 }
  0xa7   : > { %v4295_v56 = vsel %vm389_vm3, %v3780_v32, %v347_v25  ;;  %v551_v25 = vsel %vm521_vm4, %v539_v39, %v550_v10  ;;  %v1774_v39 = vor.u32 %v5266_v55, %v4141_v21 }
  0xa8   : > { %v690_v18 = vrot.slane %v688_v47, 1  ;;  %v4316_v48 = vpack.c.b16 %v1754_v58, %v4176_v50  ;;  %v653_v2 = vshll.u32 %v4295_v56, 16 }
  0xaa   : > { %v1776_v47 = vshll.u32 %v4316_v48, 16  ;;  %v701_v21 = vor.u32 %v699_v15, %v690_v18  ;;  %v3583_v15 = vld [vmem:[%s5253_s1 + $0xc8] sm:$0xff] }
  0xac   : > { %883 = vmatmul.bf16.gmra.mxu1 %v663_v8  ;;  %v1778_v10 = vrot.slane %v1776_v47, 1 }
  0xad   : > { %835 = vmatmul.bf16.gmra.mxu0 %v642_v54  ;;  %1022 = vmatmul.bf16.gmra.mxu2 %v4193_v34  ;;  %v673_v54 = vor.u32 %v671_v22, %v662_v23  ;;  %v366_v34 = vsel %vm355_vm2, %v363_v0, %v365_v30  ;;  %v558_v0 = vpop.permute.xlu2 %557 }
  0xae   : > { %v4282_v8 = vpop.permute.xlu0 %385  ;;  %v430_v32 = vsel %vm389_vm3, %v366_v34, %v4203_v57  ;;  %v4313_v9 = vsel %vm389_vm3, %v551_v25, %v558_v0  ;;  %v650_v57 = vshrl.u32 %v4246_v26, 16  ;;  %v655_v0 = vrot.slane %v653_v2, 1  ;;  %v3584_v2 = vld [vmem:[%s5253_s1 + $0xd0] sm:$0xff] }
  0xaf   : > { %v576_v23 = vsel %vm389_vm3, %v4168_v5, %v4282_v8  ;;  %v4307_v5 = vsel %vm1094_vm1, %v1104_v33, %v1106_v24  ;;  %v702_v52 = vshll.u32 %v4313_v9, 16  ;;  %2144 = vmatpush.bf16.msrb.mxu3 %v3584_v2 }
  0xb0   : > { %v674_v60 = vshll.u32 %v576_v23, 16  ;;  %v685_v22 = vshrl.u32 %v576_v23, 16  ;;  %1120 = vrot.lane.b32.xlu1 %v4307_v5, %s3683_s24  ;;  %v4327_v23 = vld [vmem:[%s3729_s23 + $0x38] sm:$0xff]  }
  0xb1   : > { %v3625_v58 = vunpack.c.h.b16 %v4327_v23  ;;  %v4334_v25 = vrot.slane %v702_v52, 1 }
  0xb2   : > { %v676_v49 = vrot.slane %v674_v60, 1  ;;  %v652_v60 = vor.u32 %v650_v57, %v641_v41  ;;  %v3576_v57 = vld [vmem:[%s5253_s1 + $0x90] sm:$0xff] }
  0xb3   : > { %v4341_v41 = vpack.c.b16 %v3628_v29, %v3625_v58  ;;  %v1780_v29 = vshrl.u32 %v4316_v48, 16  ;;  %2101 = vmatpush.bf16.msrb.mxu2 %v3576_v57  ;;  %2145 = vmatpush.bf16.msrb.mxu3 %v3583_v15  ;;  %v3582_v15 = vld [vmem:[%s5253_s1 + $0xc0] sm:$0xff] }
  0xb4   : > { %v687_v33 = vor.u32 %v685_v22, %v676_v49  ;;  %v677_v34 = vsel %vm282_vm0, %v673_v54, %v676_v49  ;;  %v1779_v54 = vsel %vm282_vm0, %v1774_v39, %v1778_v10  ;;  %v4344_v49 = vpop.permute.xlu1 %511  ;;  %v368_v39 = vsel %vm355_vm2, %v365_v30, %v367_v1 }
  0xb5   : > { %1075 = vmatmul.bf16.gmra.mxu3 %v430_v32  ;;  %1787 = vrot.lane.b32.xlu2 %v1779_v54, %s3683_s24  ;;  %v656_v32 = vsel %vm282_vm0, %v652_v60, %v655_v0  ;;  %v1782_v47 = vor.u32 %v1780_v29, %v1778_v10  ;;  %v562_v54 = vsel %vm389_vm3, %v3758_v20, %v4230_v51  ;;  %v2369_v10 = vrot.slane %v4341_v41, 7  ;;  %v4394_v28 = vpop.permute.xlu2 %1654 }
  0xb6   : > { %v691_v24 = vsel %vm282_vm0, %v687_v33, %v690_v18  ;;  %v4330_v22 = vpop.permute.xlu0 %513  ;;  %v4348_v18 = vsel %vm282_vm0, %v701_v21, %v4334_v25  ;;  %v1508_v33 = vld [vmem:[%s3729_s23 + $0x34] sm:$0xf]  ;;  %v434_v58 = vsel %vm389_vm3, %v368_v39, %v4282_v8  ;;  %v667_v57 = vshll.u32 %v562_v54, 16 }
  0xb7   : > { %v1538_v52 = vunpack.c.l.b16 %v1508_v33  ;;  %v1799_v8 = vrot.slane %v1589_v42, 7  ;;  %v4402_v33 = vrot.slane %v1597_v59, 7  ;;  %v1797_v39 = vrot.slane %v1581_v63, 7  ;;  %v3575_v59 = vld [vmem:[%s5253_s1 + $0x88] sm:$0xff]  ;;  %2146 = vmatpush.bf16.msrb.mxu3 %v3582_v15 }
  0xb8   : > { %v669_v29 = vrot.slane %v667_v57, 1  ;;  %v3540_v63 = vld [vmem:[%s5253_s1 + $0x108] sm:$0xff]  ;;  %2102 = vmatpush.bf16.msrb.mxu2 %v3575_v59  ;;  %v3547_v59 = vld [vmem:[%s5253_s1 + $0x140] sm:$0xff] }
  0xb9   : > { %1341 = vmatpush.bf16.msrb.mxu0 %v3540_v63  ;;  %v3574_v63 = vld [vmem:[%s5253_s1 + $0x80] sm:$0xff] }
  0xbc   : > { %888 = vmatmul.bf16.gmra.mxu1 %v677_v34  ;;  %v5264_v34 = vunpack.c.l.b16 %v4327_v23  ;;  %v349_v51 = vpop.permute.xlu1 %348  ;;  %2103 = vmatpush.bf16.msrb.mxu2 %v3574_v63 }
  0xbd   : > { %840 = vmatmul.bf16.gmra.mxu0 %v656_v32  ;;  %1027 = vmatmul.bf16.gmra.mxu2 %v4246_v26  ;;  %v3549_v26 = vld [vmem:[%s5253_s1 + $0x150] sm:$0xff]  ;;  %v664_v32 = vshrl.u32 %v4295_v56, 16  ;;  %v406_v43 = vsel %vm389_vm3, %v3758_v20, %v349_v51  ;;  %v3605_v20 = vld [vmem:[%s5253_s1 + $0x178] sm:$0xff]  ;;  %v5283_v51 = vshll.u32 %v4035_v12, 16 }
  0xbe   : > { %v4373_v60 = vpop.permute.xlu0 %350  ;;  %1383 = vmatpush.bf16.msrb.mxu1 %v3549_v26  ;;  %1789 = vrot.lane.b32.xlu2 %v1782_v47, %s3683_s24  ;;  %v4381_v30 = vpack.c.b16 %v5264_v34, %v1538_v52  ;;  %v5265_v52 = vrot.slane %v3905_v46, 7  ;;  %v4438_v34 = vpop.permute.xlu2 %1656 }
  0xbf   : > { %v666_v26 = vor.u32 %v664_v32, %v655_v0  ;;  %v1800_v0 = vor.u32 %v1799_v8, %v1585_v3  ;;  %v5281_v32 = vshll.u32 %v3905_v46, 16  ;;  %2650 = vmatpush.bf16.msra.mxu3 %v3605_v20  ;;  %v709_v20 = vshrl.u32 %v4313_v9, 16 }
  0xc0   : > { %v4387_v21 = vrot.slane %v4381_v30, 7 }
  0xc1   : > { %v670_v42 = vsel %vm282_vm0, %v666_v26, %v669_v29  ;;  %v1798_v3 = vor.u32 %v1797_v39, %v5281_v32  ;;  %v4435_v26 = vsel %vm1094_vm1, %v2369_v10, %v5265_v52 }
  0xc2   : > { %v4392_v2 = vsel %vm1094_vm1, %v4387_v21, %v2369_v10  ;;  %v564_v10 = vsel %vm389_vm3, %v3791_v38, %v4344_v49 }
  0xc3   : > { %2383 = vrot.lane.b32.xlu0 %v4392_v2, %s3683_s24  ;;  %v681_v32 = vshll.u32 %v564_v10, 16 }
  0xc4   : > { %v388_v57 = vpop.permute.xlu1 %387 }
  0xc5   : > { %1080 = vmatmul.bf16.gmra.mxu3 %v434_v58  ;;  %v5280_v58 = vshll.u32 %v3980_v35, 16  ;;  %v683_v52 = vrot.slane %v681_v32, 1  ;;  %v1569_v32 = vshll.u32 %v4341_v41, 16 }
  0xc6   : > { %2381 = vrot.lane.b32.xlu2 %v4387_v21, %s3683_s24  ;;  %v4408_v47 = vpop.permute.xlu0 %1783 }
  0xcb   : > { %2385 = vrot.lane.b32.xlu0 %v4435_v26, %s3683_s24 }
  0xcc   : > { %893 = vmatmul.bf16.gmra.mxu1 %v691_v24  ;;  %v1803_v24 = vor.u32 %v4402_v33, %v5280_v58 }
  0xcd   : > { %845 = vmatmul.bf16.gmra.mxu0 %v670_v42  ;;  %1032 = vmatmul.bf16.gmra.mxu2 %v4295_v56  ;;  %v3548_v56 = vld [vmem:[%s5253_s1 + $0x148] sm:$0xff]  ;;  %v1801_v42 = vsel %vm521_vm4, %v1797_v39, %v1800_v0  ;;  %v438_v39 = vsel %vm389_vm3, %v367_v1, %v388_v57  ;;  %v5282_v1 = vshrl.u32 %v4035_v12, 16 }
  0xce   : > { %1384 = vmatpush.bf16.msrb.mxu1 %v3548_v56  ;;  %v1804_v15 = vsel %vm521_vm4, %v1799_v8, %v1803_v24  ;;  %1652 = vrot.lane.b32.xlu2 %v4341_v41, %s3683_s24  ;;  %v1843_v8 = vsel %vm389_vm3, %v1798_v3, %v4394_v28  ;;  %v4459_v0 = vpop.permute.xlu0 %1108  ;;  %v1845_v58 = vsel %vm389_vm3, %v1801_v42, %v4438_v34  ;;  %v678_v24 = vshrl.u32 %v562_v54, 16 }
  0xcf   : > { %v1902_v38 = vshll.u32 %v1843_v8, 16  ;;  %v1906_v49 = vshll.u32 %v1845_v58, 16  ;;  %v1917_v62 = vshrl.u32 %v1845_v58, 16  ;;  %v4465_v57 = vrot.slane %v5282_v1, 7 }
  0xd0   : > { %v680_v56 = vor.u32 %v678_v24, %v669_v29  ;;  %v1900_v3 = vshrl.u32 %v1843_v8, 16  ;;  %v3539_v8 = vld [vmem:[%s5253_s1 + $0x100] sm:$0xff]  ;;  %v4496_v1 = vsel %vm389_vm3, %v3803_v44, %v4330_v22  ;;  %v711_v44 = vor.u32 %v709_v20, %v4334_v25 }
  0xd1   : > { %v1904_v55 = vrot.slane %v1902_v38, 1  ;;  %v1908_v42 = vrot.slane %v1906_v49, 1  ;;  %1342 = vmatpush.bf16.msrb.mxu0 %v3539_v8  ;;  %v695_v8 = vshll.u32 %v4496_v1, 16  ;;  %v5285_v25 = vshrl.u32 %v4109_v45, 16 }
  0xd2   : > { %1385 = vmatpush.bf16.msrb.mxu1 %v3547_v59  ;;  %v684_v59 = vsel %vm282_vm0, %v680_v56, %v683_v52  ;;  %v4504_v22 = vpop.permute.xlu2 %1622  ;;  %v5287_v20 = vshll.u32 %v4109_v45, 16 }
  0xd3   : > { %v1919_v29 = vor.u32 %v1917_v62, %v1908_v42  ;;  %v1905_v58 = vor.u32 %v1904_v55, %v1900_v3  ;;  %v1564_v55 = vshll.u32 %v4381_v30, 16  ;;  %v1571_v62 = vrot.slane %v1569_v32, 1 }
  0xd5   : > { %1085 = vmatmul.bf16.gmra.mxu3 %v438_v39  ;;  %v1566_v56 = vrot.slane %v1564_v55, 1  ;;  %v1909_v3 = vsel %vm282_vm0, %v1905_v58, %v1908_v42  ;;  %v1835_v58 = vsel %vm389_vm3, %v4341_v41, %v4408_v47  ;;  %v4519_v55 = vrot.slane %v5285_v25, 7 }
  0xd6   : > { %v4469_v63 = vpop.permute.xlu0 %1658  ;;  %v1892_v47 = vshll.u32 %v1835_v58, 16 }
  0xd7   : > { %v1847_v54 = vsel %vm389_vm3, %v1804_v15, %v4469_v63  ;;  %v1806_v15 = vor.u32 %v4465_v57, %v5283_v51 }
  0xd8   : > { %v1920_v39 = vshll.u32 %v1847_v54, 16  ;;  %v1931_v51 = vshrl.u32 %v1847_v54, 16 }
  0xd9   : > { %v1807_v38 = vsel %vm521_vm4, %v4402_v33, %v1806_v15 }
  0xda   : > { %v1922_v24 = vrot.slane %v1920_v39, 1  ;;  %v692_v39 = vshrl.u32 %v564_v10, 16  ;;  %v410_v10 = vsel %vm389_vm3, %v4280_v37, %v4373_v60  ;;  %v3565_v37 = vld [vmem:[%s5253_s1 + $0x38] sm:$0xff] }
  0xdb   : > { %v3573_v60 = vld [vmem:[%s5253_s1 + $0x78] sm:$0xff]  ;;  %2278 = vmatpush.bf16.msra.mxu0 %v3565_v37 }
  0xdc   : > { %898 = vmatmul.bf16.gmra.mxu1 %v4348_v18  ;;  %v3597_v18 = vld [vmem:[%s5253_s1 + $0x138] sm:$0xff]  ;;  %v1923_v49 = vsel %vm282_vm0, %v1919_v29, %v1922_v24  ;;  %v1621_v29 = vpop.permute.xlu1 %1620  ;;  %v694_v15 = vor.u32 %v692_v39, %v683_v52  ;;  %v1933_v54 = vor.u32 %v1931_v51, %v1922_v24  ;;  %v3596_v39 = vld [vmem:[%s5253_s1 + $0x130] sm:$0xff]  ;;  %v2375_v51 = vrot.slane %v3980_v35, 7 }
  0xdd   : > { %850 = vmatmul.bf16.gmra.mxu0 %v684_v59  ;;  %1037 = vmatmul.bf16.gmra.mxu2 %v406_v43  ;;  %v1562_v43 = vshrl.u32 %v4381_v30, 16  ;;  %v4529_v24 = vsel %vm389_vm3, %v3905_v46, %v1621_v29  ;;  %v2373_v29 = vrot.slane %v3918_v53, 7 }
  0xde   : > { %2607 = vmatpush.bf16.msra.mxu2 %v3597_v18  ;;  %v697_v18 = vrot.slane %v695_v8, 1  ;;  %v4506_v42 = vpop.permute.xlu0 %1660  ;;  %5286 = vst [vmem:[#allocation6_spill] sm:$0xff] %v4529_v24  ;;  %2321 = vmatpush.bf16.msra.mxu1 %v3573_v60  ;;  %v3604_v8 = vld [vmem:[%s5253_s1 + $0x170] sm:$0xff] }
  0xdf   : > { %v1567_v59 = vor.u32 %v1566_v56, %v1562_v43  ;;  %5284 = vst [vmem:[#allocation5_spill] sm:$0xff] %v4506_v42  ;;  %v1849_v9 = vsel %vm389_vm3, %v1807_v38, %v4506_v42  ;;  %2651 = vmatpush.bf16.msra.mxu3 %v3604_v8 }
  0xe0   : > { %v1934_v52 = vshll.u32 %v1849_v9, 16  ;;  %v698_v43 = vsel %vm282_vm0, %v694_v15, %v697_v18  ;;  %v1573_v15 = vshrl.u32 %v4341_v41, 16  ;;  %v1945_v8 = vshrl.u32 %v1849_v9, 16  ;;  %v3572_v9 = vld [vmem:[%s5253_s1 + $0x70] sm:$0xff] }
  0xe1   : > { %v1572_v33 = vsel %vm282_vm0, %v1567_v59, %v1571_v62 }
  0xe2   : > { %1616 = vrot.lane.b32.xlu1 %v1572_v33, %s3683_s24  ;;  %v1936_v32 = vrot.slane %v1934_v52, 1  ;;  %v1809_v33 = vor.u32 %v4519_v55, %v5287_v20  ;;  %2608 = vmatpush.bf16.msra.mxu2 %v3596_v39  ;;  %v706_v39 = vshrl.u32 %v4496_v1, 16  ;;  %v3564_v1 = vld [vmem:[%s5253_s1 + $0x30] sm:$0xff] }
  0xe3   : > { %2279 = vmatpush.bf16.msra.mxu0 %v3564_v1  ;;  %2322 = vmatpush.bf16.msra.mxu1 %v3572_v9 }
  0xe4   : > { %v1111_v38 = vpop.permute.xlu1 %1110  ;;  %v1937_v56 = vsel %vm282_vm0, %v1933_v54, %v1936_v32  ;;  %v1810_v52 = vsel %vm521_vm4, %v4465_v57, %v1809_v33 }
  0xe5   : > { %2147 = vmatmul.bf16.vlgmr.msrb.gmra.mxu3 %v1909_v3  ;;  %v1890_v3 = vshrl.u32 %v1835_v58, 16  ;;  %v1896_v58 = vshll.u32 %v4529_v24, 16  ;;  %v4552_v54 = vsel %vm389_vm3, %v3984_v36, %v1111_v38 }
  0xe6   : > { %v1203_v36 = vrot.slane %v4552_v54, 1  ;;  %v5288_v54 = vrot.slane %v3905_v46, 7 }
  0xec   : > { %903 = vmatmul.bf16.gmra.mxu1 %v711_v44  ;;  %v4532_v59 = vpop.permute.xlu2 %1624  ;;  %v1894_v44 = vrot.slane %v1892_v47, 1  ;;  %v1898_v47 = vrot.slane %v1896_v58, 1  ;;  %v3648_v58 = vld [vmem:[%s3729_s23 + $0x10] sm:$0xe] }
  0xed   : > { %855 = vmatmul.bf16.gmra.mxu0 %v698_v43  ;;  %1042 = vmatmul.bf16.gmra.mxu2 %v410_v10  ;;  %v1139_v10 = vsel %vm389_vm3, %v3961_v16, %v4459_v0  ;;  %v4559_v43 = vsel %vm1094_vm1, %v2373_v29, %v2375_v51  ;;  %v1575_v16 = vor.u32 %v1573_v15, %v1571_v62 }
  0xee   : > { %2389 = vrot.lane.b32.xlu0 %v4559_v43, %s3683_s24  ;;  %v1202_v37 = vrot.slane %v1139_v10, 1  ;;  %v1895_v60 = vor.u32 %v1894_v44, %v1890_v3  ;;  %v1947_v3 = vor.u32 %v1945_v8, %v1936_v32  ;;  %v3647_v10 = vld [vmem:[%s3729_s23 + $0x10] sm:$0xf0]  ;;  %v3668_v8 = vld [vmem:[%s3729_s23 + $0x18] sm:$0xff] }
  0xef   : > { %v1580_v57 = vsel %vm282_vm0, %v1575_v16, %v3934_v4  ;;  %v3649_v16 = vor.u32 %v3648_v58, %v3647_v10  ;;  %v5268_v10 = vrot.slane %v4035_v12, 7 }
  0xf0   : > { %v4561_v25 = vpop.f32.mrf.mxu3  ;;  %1618 = vrot.lane.b32.xlu1 %v1580_v57, %s3683_s24  ;;  %v1204_v20 = vsel %vm355_vm2, %v1202_v37, %v1203_v36  ;;  %v1899_v62 = vsel %vm282_vm0, %v1895_v60, %v1898_v47  ;;  %v4601_v60 = vsel %vm389_vm3, %v3918_v53, %v4504_v22 }
  0xf1   : > { %5289 = vst [vmem:[#allocation7_spill] sm:$0xff] %v4601_v60  ;;  %v1913_v53 = vshll.u32 %v4601_v60, 16  ;;  %v4640_v9 = vsel %vm1094_vm1, %v2375_v51, %v5268_v10  ;;  %v1796_v10 = vpack.c.b16 %v4222_v17, %v4222_v17 }
  0xf4   : > { %v4571_v33 = vpop.permute.xlu2 %1662 }
  0xf5   : > { %2152 = vmatmul.bf16.gmra.mxu3 %v1923_v49  ;;  %v1851_v15 = vsel %vm389_vm3, %v1810_v52, %v4571_v33  ;;  %v708_v49 = vor.u32 %v706_v39, %v697_v18  ;;  %v4587_v18 = vsel %vm1094_vm1, %v5288_v54, %v2373_v29  ;;  %v4591_v52 = vpop.permute.xlu1 %1112  ;;  %v1124_v39 = vsel %vm389_vm3, %v3649_v16, %v4459_v0  ;;  %v3603_v0 = vld [vmem:[%s5253_s1 + $0x168] sm:$0xff] }
  0xf6   : > { %v1948_v44 = vshll.u32 %v1851_v15, 16  ;;  %2387 = vrot.lane.b32.xlu2 %v4587_v18, %s3683_s24  ;;  %v4606_v29 = vsel %vm389_vm3, %v4030_v11, %v4591_v52  ;;  %v3595_v11 = vld [vmem:[%s5253_s1 + $0x128] sm:$0xff]  ;;  %v1199_v58 = vrot.slane %v1124_v39, 1  ;;  %2652 = vmatpush.bf16.msra.mxu3 %v3603_v0  ;;  %v1915_v54 = vrot.slane %v1913_v53, 1 }
  0xf7   : > { %v5272_v22 = vrot.slane %v4606_v29, 1  ;;  %2609 = vmatpush.bf16.msra.mxu2 %v3595_v11 }
  0xf8   : > { %v1950_v4 = vrot.slane %v1948_v44, 1  ;;  %v4589_v32 = vpop.f32.mrf.mxu3  ;;  %v1815_v44 = vshll.u32 %v4182_v6, 16  ;;  %2391 = vrot.lane.b32.xlu1 %v4640_v9, %s3683_s24 }
  0xf9   : > { %v1208_v11 = vsel %vm355_vm2, %v1203_v36, %v5272_v22 }
  0xfa   : > { %v4596_v37 = vsel %vm282_vm0, %v1947_v3, %v1950_v4 }
  0xfc   : > { %1386 = vmatmul.bf16.vlgmr.msrb.gmra.mxu1 %v1204_v20  ;;  %v4614_v20 = vsel %vm389_vm3, %v3668_v8, %v1111_v38  ;;  %v3563_v38 = vld [vmem:[%s5253_s1 + $0x28] sm:$0xff] }
  0xfd   : > { %860 = vmatmul.bf16.gmra.mxu0 %v708_v49  ;;  %2104 = vmatmul.bf16.vlgmr.msrb.gmra.mxu2 %v1899_v62  ;;  %v1812_v62 = vshrl.u32 %v4182_v6, 16  ;;  %v1910_v49 = vshrl.u32 %v4529_v24, 16  ;;  %v5292_v24 = vrot.slane %v4606_v29, 1 }
  0xfe   : > { %2280 = vmatpush.bf16.msra.mxu0 %v3563_v38 }
  0xff   : > { %v4629_v3 = vrot.slane %v1812_v62, 7  ;;  %v1912_v8 = vor.u32 %v1910_v49, %v1898_v47  ;;  %v1959_v62 = vshrl.u32 %v1851_v15, 16  ;;  %v1521_v15 = vld [vmem:[%s3729_s23 + $0x68] sm:$0x1] }
 0x100   : > { %v4608_v57 = vpop.permute.xlu0 %1785  ;;  %v1559_v36 = vunpack.c.l.b16 %v1521_v15 }
 0x101   : > { %v1817_v1 = vor.u32 %v1815_v44, %v4629_v3  ;;  %v1916_v49 = vsel %vm282_vm0, %v1912_v8, %v1915_v54  ;;  %v1961_v38 = vor.u32 %v1959_v62, %v1950_v4  ;;  %v1820_v62 = vshrl.u32 %v1796_v10, 16 }
 0x103   : > { %v1818_v0 = vsel %vm521_vm4, %v4519_v55, %v1817_v1  ;;  %v3571_v55 = vld [vmem:[%s5253_s1 + $0x68] sm:$0xff]  ;;  %v4662_v1 = vpop.permute.xlu1 %1114 }
 0x104   : > { %2323 = vmatpush.bf16.msra.mxu1 %v3571_v55 }
 0x105   : > { %2157 = vmatmul.bf16.gmra.mxu3 %v1937_v56  ;;  %v5271_v56 = vrot.slane %v4614_v20, 1 }
 0x107   : > { %v1201_v51 = vsel %vm355_vm2, %v1199_v58, %v5271_v56 }
 0x108   : > { %v4642_v16 = vpop.f32.mrf.mxu3  ;;  %v1831_v53 = vpop.permute.xlu0 %1830 }
 0x109   : > { %v874_v39 = vpop.f32.mrf.mxu1  ;;  %v1854_v47 = vsel %vm389_vm3, %v1818_v0, %v1831_v53  ;;  %v4675_v0 = vsel %vm389_vm3, %v3980_v35, %v4532_v59  ;;  %v5270_v53 = vrot.slane %v4035_v12, 1  ;;  %v1924_v35 = vshrl.u32 %v4601_v60, 16 }
 0x10a   : > { %v1962_v44 = vshll.u32 %v1854_v47, 16  ;;  %v1927_v59 = vshll.u32 %v4675_v0, 16 }
 0x10b   : > { %v1926_v42 = vor.u32 %v1924_v35, %v1915_v54  ;;  %v5293_v35 = vrot.slane %v4614_v20, 1  ;;  %v4740_v20 = vpop.permute.xlu1 %1116 }
 0x10c   : > { %1391 = vmatmul.bf16.gmra.mxu1 %v1208_v11  ;;  %v1964_v58 = vrot.slane %v1962_v44, 1  ;;  %v4665_v11 = vpack.c.b16 %v1559_v36, %v4102_v19  ;;  %v1823_v44 = vshll.u32 %v1796_v10, 16  ;;  %v3669_v36 = vld [vmem:[%s3729_s23 + $0x20] sm:$0xff]  ;;  %v1929_v10 = vrot.slane %v1927_v59, 1 }
 0x10d   : > { %1343 = vmatmul.bf16.vlgmr.msrb.gmra.mxu0 %v1201_v51  ;;  %2109 = vmatmul.bf16.gmra.mxu2 %v1916_v49  ;;  %v4682_v49 = vsel %vm389_vm3, %v4093_v14, %v4662_v1  ;;  %v4698_v14 = vsel %vm389_vm3, %v3669_v36, %v4591_v52  ;;  %v3570_v52 = vld [vmem:[%s5253_s1 + $0x60] sm:$0xff]  ;;  %v1973_v36 = vshrl.u32 %v1854_v47, 16 }
 0x10e   : > { %v4670_v17 = vsel %vm282_vm0, %v1961_v38, %v1964_v58  ;;  %v5269_v15 = vrot.slane %v4665_v11, 1  ;;  %v1205_v22 = vrot.slane %v4698_v14, 1  ;;  %2324 = vmatpush.bf16.msra.mxu1 %v3570_v52  ;;  %v1930_v29 = vsel %vm282_vm0, %v1926_v42, %v1929_v10  ;;  %v4752_v52 = vld [vmem:[%s3729_s23 + $0x5c] sm:$0xff] }
 0x10f   : > { %v1975_v14 = vor.u32 %v1973_v36, %v1964_v58  ;;  %v4757_v36 = vsel %vm389_vm3, %v4752_v52, %v4608_v57 }
 0x110   : > { %v1013_v4 = vpop.f32.mrf.mxu2  ;;  %v4667_v8 = vpop.f32.mrf.mxu3  ;;  %v1645_v38 = vsel %vm355_vm2, %v5270_v53, %v5269_v15  ;;  %v3594_v15 = vld [vmem:[%s5253_s1 + $0x120] sm:$0xff] }
 0x111   : > { %v876_v51 = vpop.f32.mrf.mxu1  ;;  %v4693_v55 = vsel %vm389_vm3, %v1645_v38, %v4571_v33  ;;  %v3602_v53 = vld [vmem:[%s5253_s1 + $0x160] sm:$0xff]  ;;  %v1822_v38 = vrot.slane %v1820_v62, 7  ;;  %2610 = vmatpush.bf16.msra.mxu2 %v3594_v15  ;;  %v5291_v62 = vrot.slane %v4682_v49, 1 }
 0x112   : > { %5290 = vst [vmem:[#allocation8_spill] sm:$0xff] %v4693_v55  ;;  %v3562_v33 = vld [vmem:[%s5253_s1 + $0x20] sm:$0xff]  ;;  %2653 = vmatpush.bf16.msra.mxu3 %v3602_v53 }
 0x113   : > { %v1833_v56 = vpop.permute.xlu0 %1832  ;;  %2281 = vmatpush.bf16.msra.mxu0 %v3562_v33  ;;  %v1212_v47 = vsel %vm355_vm2, %v5292_v24, %v5291_v62  ;;  %v1206_v33 = vsel %vm355_vm2, %v5293_v35, %v1205_v22 }
 0x115   : > { %2162 = vmatmul.bf16.gmra.mxu3 %v4596_v37  ;;  %v1825_v37 = vor.u32 %v1823_v44, %v1822_v38 }
 0x117   : > { %v1826_v53 = vsel %vm521_vm4, %v4629_v3, %v1825_v37 }
 0x118   : > { %v1015_v55 = vpop.f32.mrf.mxu2  ;;  %v4715_v60 = vpop.f32.mrf.mxu3  ;;  %v4725_v44 = vsel %vm389_vm3, %v1826_v53, %v1833_v56  ;;  %v3593_v56 = vld [vmem:[%s5253_s1 + $0x118] sm:$0xff] }
 0x119   : > { %v879_v6 = vpop.f32.mrf.mxu1  ;;  %v1976_v54 = vshll.u32 %v4725_v44, 16  ;;  %2611 = vmatpush.bf16.msra.mxu2 %v3593_v56  ;;  %v5294_v56 = vrot.slane %v4682_v49, 1  ;;  %v3592_v49 = vld [vmem:[%s5253_s1 + $0x110] sm:$0xff] }
 0x11a   : > { %v831_v15 = vpop.f32.mrf.mxu0 }
 0x11b   : > { %v875_v59 = vadd.f32 %v874_v39, %v831_v15  ;;  %v4732_v3 = vrot.slane %v1976_v54, 1  ;;  %v3601_v39 = vld [vmem:[%s5253_s1 + $0x158] sm:$0xff]  ;;  %v1941_v15 = vshll.u32 %v4757_v36, 16 }
 0x11c   : > { %1396 = vmatmul.bf16.gmra.mxu1 %v1212_v47  ;;  %2654 = vmatpush.bf16.msra.mxu3 %v3601_v39  ;;  %v4762_v47 = vsel %vm389_vm3, %v4165_v40, %v4740_v20  ;;  %v3561_v40 = vld [vmem:[%s5253_s1 + $0x18] sm:$0xff] }
 0x11d   : > { %v1014_v24 = vadd.f32 %v1013_v4, %v875_v59  ;;  %1348 = vmatmul.bf16.gmra.mxu0 %v1206_v33  ;;  %2114 = vmatmul.bf16.gmra.mxu2 %v1930_v29  ;;  %v4744_v58 = vsel %vm282_vm0, %v1975_v14, %v4732_v3  ;;  %v3671_v59 = vld [vmem:[%s3729_s23 + $0x28] sm:$0xff]  ;;  %v5277_v57 = vrot.slane %v4762_v47, 1 }
 0x11e   : > { %v4769_v14 = vsel %vm389_vm3, %v3671_v59, %v4662_v1  ;;  %2282 = vmatpush.bf16.msra.mxu0 %v3561_v40  ;;  %2612 = vmatpush.bf16.msra.mxu2 %v3592_v49  ;;  %v5295_v40 = vrot.slane %v4035_v12, 7 }
 0x11f   : > { %v4747_v42 = vadd.f32 %v4561_v25, %v1014_v24  ;;  %v1938_v25 = vshrl.u32 %v4675_v0, 16  ;;  %v1209_v1 = vrot.slane %v4769_v14, 1  ;;  %v1216_v39 = vsel %vm355_vm2, %v5294_v56, %v5277_v57 }
 0x120   : > { %v1018_v4 = vpop.f32.mrf.mxu2  ;;  %v4749_v38 = vpop.f32.mrf.mxu3 }
 0x121   : > { %v881_v37 = vpop.f32.mrf.mxu1  ;;  %v1210_v59 = vsel %vm355_vm2, %v1205_v22, %v1209_v1 }
 0x122   : > { %v833_v62 = vpop.f32.mrf.mxu0 }
 0x123   : > { %v877_v53 = vadd.f32 %v876_v51, %v833_v62  ;;  %v3569_v51 = vld [vmem:[%s5253_s1 + $0x58] sm:$0xff] }
 0x124   : > { %2325 = vmatpush.bf16.msra.mxu1 %v3569_v51 }
 0x125   : > { %v1016_v54 = vadd.f32 %v1015_v55, %v877_v53  ;;  %2167 = vmatmul.bf16.gmra.mxu3 %v4670_v17  ;;  %v1943_v55 = vrot.slane %v1941_v15, 1  ;;  %v1940_v17 = vor.u32 %v1938_v25, %v1929_v10  ;;  %v4794_v15 = vpack.c.b16 %v4102_v19, %v4102_v19  ;;  %v1788_v10 = vpop.permute.xlu2 %1787  ;;  %v4803_v25 = vpop.permute.xlu1 %1118 }
 0x127   : > { %v4780_v35 = vadd.f32 %v4589_v32, %v1016_v54  ;;  %v1944_v32 = vsel %vm282_vm0, %v1940_v17, %v1943_v55  ;;  %v2379_v22 = vrot.slane %v4794_v15, 7  ;;  %v4817_v17 = vsel %vm389_vm3, %v4109_v45, %v1788_v10 }
 0x128   : > { %v1020_v33 = vpop.f32.mrf.mxu2  ;;  %v4783_v29 = vpop.f32.mrf.mxu3 }
 0x129   : > { %v884_v24 = vpop.f32.mrf.mxu1  ;;  %v4813_v51 = vsel %vm1094_vm1, %v5295_v40, %v2379_v22 }
 0x12a   : > { %v836_v62 = vpop.f32.mrf.mxu0  ;;  %2393 = vrot.lane.b32.xlu2 %v4813_v51, %s3683_s24 }
 0x12b   : > { %v880_v53 = vadd.f32 %v879_v6, %v836_v62  ;;  %v3600_v6 = vld [vmem:[%s5253_s1 + $0x150] sm:$0xff] }
 0x12c   : > { %1401 = vmatmul.bf16.gmra.mxu1 %v1216_v39  ;;  %2655 = vmatpush.bf16.msra.mxu3 %v3600_v6 }
 0x12d   : > { %v1019_v14 = vadd.f32 %v1018_v4, %v880_v53  ;;  %1353 = vmatmul.bf16.gmra.mxu0 %v1210_v59  ;;  %2119 = vmatmul.bf16.gmra.mxu2 %v1944_v32  ;;  %v1952_v53 = vshrl.u32 %v4757_v36, 16  ;;  %v1955_v59 = vshll.u32 %v4817_v17, 16  ;;  %v1609_v32 = vshll.u32 %v4665_v11, 16  ;;  %v3568_v36 = vld [vmem:[%s5253_s1 + $0x50] sm:$0xff] }
 0x12e   : > { %2326 = vmatpush.bf16.msra.mxu1 %v3568_v36  ;;  %v3559_v36 = vld [vmem:[%s5253_s1 + $0x8] sm:$0xff] }
 0x12f   : > { %v4806_v19 = vadd.f32 %v4642_v16, %v1019_v14  ;;  %v4824_v16 = vsel %vm389_vm3, %v4239_v7, %v4803_v25  ;;  %v3672_v14 = vld [vmem:[%s3729_s23 + $0x30] sm:$0xff]   ;;  %v1611_v22 = vrot.slane %v1609_v32, 1  ;;  %v1957_v40 = vrot.slane %v1955_v59, 1 }
 0x130   : > { %v1023_v4 = vpop.f32.mrf.mxu2  ;;  %v4808_v54 = vpop.f32.mrf.mxu3  ;;  %v4832_v49 = vsel %vm389_vm3, %v3672_v14, %v4740_v20  ;;  %v1219_v10 = vrot.slane %v4824_v16, 1  ;;  %v3560_v7 = vld [vmem:[%s5253_s1 + $0x10] sm:$0xff]  ;;  %v5296_v32 = vrot.slane %v4762_v47, 1 }
 0x131   : > { %v886_v56 = vpop.f32.mrf.mxu1  ;;  %2283 = vmatpush.bf16.msra.mxu0 %v3560_v7  ;;  %v1612_v14 = vsel %vm282_vm0, %v4134_v13, %v1611_v22 }
 0x132   : > { %v838_v39 = vpop.f32.mrf.mxu0  ;;  %v1220_v7 = vsel %vm355_vm2, %v5296_v32, %v1219_v10  ;;  %1626 = vrot.lane.b32.xlu0 %v1612_v14, %s3683_s24  ;;  %v1121_v14 = vpop.permute.xlu1 %1120 }
 0x133   : > { %v882_v62 = vadd.f32 %v881_v37, %v838_v39  ;;  %v3599_v37 = vld [vmem:[%s5253_s1 + $0x148] sm:$0xff] }
 0x134   : > { %2656 = vmatpush.bf16.msra.mxu3 %v3599_v37  ;;  %v1790_v37 = vpop.permute.xlu2 %1789 }
 0x135   : > { %v1021_v6 = vadd.f32 %v1020_v33, %v882_v62  ;;  %2172 = vmatmul.bf16.gmra.mxu3 %v4744_v58  ;;  %v1954_v33 = vor.u32 %v1952_v53, %v1943_v55  ;;  %v1213_v58 = vrot.slane %v4832_v49, 1  ;;  %v3598_v53 = vld [vmem:[%s5253_s1 + $0x140] sm:$0xff]  ;;  %2284 = vmatpush.bf16.msra.mxu0 %v3559_v36 }
 0x137   : > { %v4846_v20 = vadd.f32 %v4667_v8, %v1021_v6  ;;  %v1214_v59 = vsel %vm355_vm2, %v1209_v1, %v1213_v58  ;;  %v1958_v13 = vsel %vm282_vm0, %v1954_v33, %v1957_v40  ;;  %v1983_v6 = vshrl.u32 %v4725_v44, 16 }
 0x138   : > { %v1025_v39 = vpop.f32.mrf.mxu2  ;;  %v4849_v62 = vpop.f32.mrf.mxu3  ;;  %2657 = vmatpush.bf16.msra.mxu3 %v3598_v53  ;;  %v4880_v33 = vsel %vm389_vm3, %v4316_v48, %v1790_v37 }
 0x139   : > { %v889_v57 = vpop.f32.mrf.mxu1 }
 0x13a   : > { %v841_v8 = vpop.f32.mrf.mxu0 }
 0x13b   : > { %v885_v55 = vadd.f32 %v884_v24, %v841_v8  ;;  %v3591_v24 = vld [vmem:[%s5253_s1 + $0x108] sm:$0xff] }
 0x13c   : > { %1406 = vmatmul.bf16.gmra.mxu1 %v1220_v7  ;;  %2613 = vmatpush.bf16.msra.mxu2 %v3591_v24  ;;  %v1985_v7 = vor.u32 %v1983_v6, %v4732_v3  ;;  %v3567_v3 = vld [vmem:[%s5253_s1 + $0x48] sm:$0xff] }
 0x13d   : > { %v1024_v47 = vadd.f32 %v1023_v4, %v885_v55  ;;  %1358 = vmatmul.bf16.gmra.mxu0 %v1214_v59  ;;  %2124 = vmatmul.bf16.gmra.mxu2 %v1958_v13  ;;  %v4885_v55 = vsel %vm389_vm3, %v4307_v5, %v1121_v14  ;;  %v1966_v59 = vshrl.u32 %v4817_v17, 16  ;;  %v4892_v13 = vsel %vm389_vm3, %v3769_v27, %v4803_v25  ;;  %v4901_v17 = vpop.permute.xlu0 %2383 }
 0x13e   : > { %v1613_v5 = vshrl.u32 %v4665_v11, 16  ;;  %2327 = vmatpush.bf16.msra.mxu1 %v3567_v3  ;;  %v1217_v25 = vrot.slane %v4892_v13, 1  ;;  %v2414_v16 = vsel %vm389_vm3, %v4392_v2, %v4901_v17 }
 0x13f   : > { %v4874_v1 = vadd.f32 %v4715_v60, %v1024_v47  ;;  %v1969_v60 = vshll.u32 %v4880_v33, 16  ;;  %v1223_v47 = vrot.slane %v4885_v55, 1  ;;  %v1968_v27 = vor.u32 %v1966_v59, %v1957_v40  ;;  %v3590_v40 = vld [vmem:[%s5253_s1 + $0x100] sm:$0xff] }
 0x140   : > { %v1028_v44 = vpop.f32.mrf.mxu2  ;;  %v4876_v4 = vpop.f32.mrf.mxu3  ;;  %v1615_v6 = vor.u32 %v1613_v5, %v1611_v22  ;;  %v3566_v22 = vld [vmem:[%s5253_s1 + $0x40] sm:$0xff]  ;;  %2614 = vmatpush.bf16.msra.mxu2 %v3590_v40  ;;  %v2475_v13 = vrot.slane %v2414_v16, 1 }
 0x141   : > { %v891_v32 = vpop.f32.mrf.mxu1 }
 0x142   : > { %v843_v8 = vpop.f32.mrf.mxu0  ;;  %1628 = vrot.lane.b32.xlu1 %v1615_v6, %s3683_s24  ;;  %2328 = vmatpush.bf16.msra.mxu1 %v3566_v22  ;;  %v1137_v6 = vsel %vm389_vm3, %v3928_v61, %v1121_v14 }
 0x143   : > { %v887_v53 = vadd.f32 %v886_v56, %v843_v8  ;;  %v4899_v56 = vpop.permute.xlu2 %2381  ;;  %v1224_v8 = vsel %vm355_vm2, %v1219_v10, %v1223_v47  ;;  %v1218_v10 = vsel %vm355_vm2, %v1213_v58, %v1217_v25  ;;  %v1221_v40 = vrot.slane %v1137_v6, 1 }
 0x145   : > { %v1026_v48 = vadd.f32 %v1025_v39, %v887_v53  ;;  %2177 = vmatmul.bf16.gmra.mxu3 %v1985_v7  ;;  %v1971_v39 = vrot.slane %v1969_v60, 1  ;;  %v2412_v53 = vsel %vm389_vm3, %v4387_v21, %v4899_v56  ;;  %v3558_v21 = vld [vmem:[%s5253_s1] sm:$0xff]  ;;  %v4941_v22 = vpop.permute.xlu0 %2385 }
 0x146   : > { %2285 = vmatpush.bf16.msra.mxu0 %v3558_v21 }
 0x147   : > { %v4904_v24 = vadd.f32 %v4749_v38, %v1026_v48  ;;  %v1972_v59 = vsel %vm282_vm0, %v1968_v27, %v1971_v39 }
 0x148   : > { %v1030_v36 = vpop.f32.mrf.mxu2  ;;  %v4907_v37 = vpop.f32.mrf.mxu3 }
 0x149   : > { %v894_v7 = vpop.f32.mrf.mxu1 }
 0x14a   : > { %v846_v38 = vpop.f32.mrf.mxu0 }
 0x14b   : > { %v890_v55 = vadd.f32 %v889_v57, %v846_v38  ;;  %v2474_v57 = vrot.slane %v2412_v53, 1  ;;  %v2364_v53 = vld [vmem:[%s3729_s23 + $0x44] sm:$0xe] }
 0x14c   : > { %1411 = vmatmul.bf16.gmra.mxu1 %v1224_v8  ;;  %v1980_v8 = vshrl.u32 %v4880_v33, 16  ;;  %v2366_v61 = vunpack.c.l.b16 %v2364_v53  ;;  %v2416_v33 = vsel %vm389_vm3, %v4435_v26, %v4941_v22  ;;  %v1634_v53 = vrot.slane %v4341_v41, 1 }
 0x14d   : > { %v1029_v60 = vadd.f32 %v1028_v44, %v890_v55  ;;  %1363 = vmatmul.bf16.gmra.mxu0 %v1218_v10  ;;  %2129 = vmatmul.bf16.gmra.mxu2 %v1972_v59  ;;  %v2476_v44 = vsel %vm355_vm2, %v2474_v57, %v2475_v13  ;;  %v2479_v21 = vrot.slane %v2416_v33, 1  ;;  %v5297_v57 = vunpack.c.l.b16 %v4327_v23 }
 0x14e   : > { %v1982_v14 = vor.u32 %v1980_v8, %v1971_v39 }
 0x14f   : > { %v4933_v2 = vadd.f32 %v4783_v29, %v1029_v60  ;;  %v1522_v29 = vld [vmem:[%s3729_s23 + $0x34] sm:$0xe]  ;;  %v2480_v8 = vsel %vm355_vm2, %v2475_v13, %v2479_v21 }
 0x150   : > { %v1033_v49 = vpop.f32.mrf.mxu2  ;;  %v4935_v58 = vpop.f32.mrf.mxu3  ;;  %v1631_v59 = vunpack.c.l.b16 %v1522_v29  ;;  %v4967_v29 = vld [vmem:[%s3729_s23 + $0x4c] sm:$0xff] }
 0x151   : > { %v896_v48 = vpop.f32.mrf.mxu1 }
 0x152   : > { %v848_v3 = vpop.f32.mrf.mxu0 }
 0x153   : > { %v892_v5 = vadd.f32 %v891_v32, %v848_v3  ;;  %v1632_v3 = vpack.c.b16 %v5297_v57, %v1631_v59 }
 0x155   : > { %v1031_v27 = vadd.f32 %v1030_v36, %v892_v5  ;;  %2658 = vmatmul.bf16.vlgmr.msra.gmra.mxu3 %v2476_v44  ;;  %v1222_v36 = vsel %vm355_vm2, %v1217_v25, %v1221_v40  ;;  %v5298_v44 = vunpack.c.l.b16 %v3891_v31  ;;  %v1653_v5 = vpop.permute.xlu2 %1652  ;;  %v2399_v31 = vsel %vm389_vm3, %v4967_v29, %v4901_v17 }
 0x156   : > { %v2472_v59 = vrot.slane %v2399_v31, 1 }
 0x157   : > { %v4945_v38 = vadd.f32 %v4808_v54, %v1031_v27 }
 0x158   : > { %v1035_v55 = vpop.f32.mrf.mxu2  ;;  %v4948_v16 = vpop.f32.mrf.mxu3 }
 0x159   : > { %v899_v10 = vpop.f32.mrf.mxu1 }
 0x15a   : > { %v851_v32 = vpop.f32.mrf.mxu0 }
 0x15b   : > { %v895_v60 = vadd.f32 %v894_v7, %v851_v32  ;;  %v2367_v7 = vpack.c.b16 %v5298_v44, %v2366_v61 }
 0x15c   : > { %1416 = vmatmul.bf16.gmra.mxu1 %v1223_v47  ;;  %v1651_v47 = vpack.c.b16 %v4176_v50, %v4176_v50 }
 0x15d   : > { %v1034_v54 = vadd.f32 %v1033_v49, %v895_v60  ;;  %1368 = vmatmul.bf16.gmra.mxu0 %v1222_v36  ;;  %2134 = vmatmul.bf16.gmra.mxu2 %v1982_v14  ;;  %v1633_v49 = vrot.slane %v1632_v3, 1  ;;  %v2397_v23 = vsel %vm389_vm3, %v2367_v7, %v4899_v56  ;;  %v2388_v60 = vpop.permute.xlu2 %2387 }
 0x15e   : > { %1664 = vrot.lane.b32.xlu2 %v1651_v47, %s3683_s24  ;;  %v2471_v50 = vrot.slane %v2397_v23, 1 }
 0x15f   : > { %v4959_v39 = vadd.f32 %v4849_v62, %v1034_v54  ;;  %v1635_v13 = vsel %vm355_vm2, %v1633_v49, %v1634_v53  ;;  %v4988_v49 = vld [vmem:[%s3729_s23 + $0x54] sm:$0xff] }
 0x160   : > { %v1038_v6 = vpop.f32.mrf.mxu2  ;;  %v1088_v26 = vpop.f32.mrf.mxu3  ;;  %v1690_v17 = vsel %vm389_vm3, %v1635_v13, %v1653_v5  ;;  %v2473_v36 = vsel %vm355_vm2, %v2471_v50, %v2472_v59 }
 0x161   : > { %v901_v27 = vpop.f32.mrf.mxu1 }
 0x162   : > { %v853_v25 = vpop.f32.mrf.mxu0 }
 0x163   : > { %v897_v62 = vadd.f32 %v896_v48, %v853_v25 }
 0x165   : > { %v1036_v32 = vadd.f32 %v1035_v55, %v897_v62  ;;  %2663 = vmatmul.bf16.gmra.mxu3 %v2480_v8  ;;  %v2418_v55 = vsel %vm389_vm3, %v4587_v18, %v2388_v60  ;;  %v2401_v18 = vsel %vm389_vm3, %v4988_v49, %v4941_v22 }
 0x166   : > { %v2483_v3 = vrot.slane %v2418_v55, 1  ;;  %v2477_v23 = vrot.slane %v2401_v18, 1 }
 0x167   : > { %v4976_v56 = vadd.f32 %v4876_v4, %v1036_v32 }
 0x168   : > { %v1040_v61 = vpop.f32.mrf.mxu2  ;;  %v2148_v14 = vpop.f32.mrf.mxu3  ;;  %v2484_v47 = vsel %vm355_vm2, %v2479_v21, %v2483_v3 }
 0x169   : > { %v904_v33 = vpop.f32.mrf.mxu1 }
 0x16a   : > { %v856_v48 = vpop.f32.mrf.mxu0 }
 0x16b   : > { %v900_v54 = vadd.f32 %v899_v10, %v856_v48  ;;  %v1636_v10 = vrot.slane %v3905_v46, 1 }
 0x16c   : > { %2329 = vmatmul.bf16.vlgmr.msra.gmra.mxu1 %v1690_v17 }
 0x16d   : > { %v1039_v57 = vadd.f32 %v1038_v6, %v900_v54  ;;  %1373 = vmatmul.bf16.gmra.mxu0 %v1221_v40  ;;  %2615 = vmatmul.bf16.vlgmr.msra.gmra.mxu2 %v2473_v36  ;;  %v1617_v6 = vpop.permute.xlu1 %1616  ;;  %v1637_v21 = vsel %vm355_vm2, %v1634_v53, %v1636_v10 }
 0x16e   : > { %v1667_v32 = vsel %vm389_vm3, %v4381_v30, %v1617_v6  ;;  %v1694_v22 = vsel %vm389_vm3, %v1637_v21, %v4394_v28 }
 0x16f   : > { %v4983_v4 = vadd.f32 %v4907_v37, %v1039_v57  ;;  %v4993_v37 = vpop.permute.xlu0 %2389 }
 0x170   : > { %v1043_v44 = vpop.f32.mrf.mxu2  ;;  %v2150_v7 = vpop.f32.mrf.mxu3  ;;  %v2420_v13 = vsel %vm389_vm3, %v4559_v43, %v4993_v37  ;;  %v1638_v43 = vrot.slane %v4967_v29, 1  ;;  %v5026_v29 = vld [vmem:[%s5254_s2] ss:$0 sm:$0xff] }
 0x171   : > { %v906_v26 = vpop.f32.mrf.mxu1  ;;  %v2487_v53 = vrot.slane %v2420_v13, 1  ;;  %v1640_v13 = vrot.slane %v4988_v49, 1 }
 0x172   : > { %v858_v5 = vpop.f32.mrf.mxu0 }
 0x173   : > { %v902_v25 = vadd.f32 %v901_v27, %v858_v5  ;;  %v2488_v55 = vsel %vm355_vm2, %v2483_v3, %v2487_v53 }
 0x175   : > { %v1041_v40 = vadd.f32 %v1040_v61, %v902_v25  ;;  %2668 = vmatmul.bf16.gmra.mxu3 %v2484_v47  ;;  %v1619_v17 = vpop.permute.xlu1 %1618 }
 0x176   : > { %v1670_v3 = vsel %vm389_vm3, %v4341_v41, %v1619_v17 }
 0x177   : > { %v4996_v8 = vadd.f32 %v4935_v58, %v1041_v40  ;;  %v2478_v58 = vsel %vm355_vm2, %v2472_v59, %v2477_v23  ;;  %v2403_v59 = vsel %vm389_vm3, %v4752_v52, %v2388_v60 }
 0x178   : > { %v1045_v31 = vpop.f32.mrf.mxu2  ;;  %v2153_v27 = vpop.f32.mrf.mxu3 }
 0x179   : > { %v1387_v46 = vpop.f32.mrf.mxu1  ;;  %v5039_v31 = vld [vmem:[%s5255_s3] ss:$0 sm:$0xff] }
 0x17a   : > { %v861_v62 = vpop.f32.mrf.mxu0 }
 0x17b   : > { %v905_v50 = vadd.f32 %v904_v33, %v861_v62 }
 0x17c   : > { %2334 = vmatmul.bf16.gmra.mxu1 %v1694_v22 }
 0x17d   : > { %v1044_v61 = vadd.f32 %v1043_v44, %v905_v50  ;;  %2286 = vmatmul.bf16.vlgmr.msra.gmra.mxu0 %v1667_v32  ;;  %2620 = vmatmul.bf16.gmra.mxu2 %v2478_v58  ;;  %v5016_v57 = vpop.permute.xlu1 %2391  ;;  %v2481_v44 = vrot.slane %v2403_v59, 1 }
 0x17f   : > { %v5008_v48 = vadd.f32 %v4948_v16, %v1044_v61  ;;  %v1639_v16 = vsel %vm355_vm2, %v1636_v10, %v1638_v43  ;;  %v2422_v10 = vsel %vm389_vm3, %v4640_v9, %v5016_v57  ;;  %v5044_v9 = vld [vmem:[%s5256_s4] ss:$0 sm:$0xff]  ;;  %v2405_v61 = vsel %vm389_vm3, %v4109_v45, %v4993_v37 }
 0x180   : > { %v2105_v30 = vpop.f32.mrf.mxu2  ;;  %v2155_v33 = vpop.f32.mrf.mxu3  ;;  %v1698_v60 = vsel %vm389_vm3, %v1639_v16, %v4438_v34  ;;  %v2491_v41 = vrot.slane %v2422_v10, 1 }
 0x181   : > { %v5010_v36 = vadd.f32 %v2148_v14, %v2105_v30  ;;  %v1389_v28 = vpop.f32.mrf.mxu1 }
 0x182   : > { %v863_v54 = vpop.f32.mrf.mxu0  ;;  %v2492_v32 = vsel %vm355_vm2, %v2487_v53, %v2491_v41  ;;  %v2485_v53 = vrot.slane %v2405_v61, 1  ;;  %v5301_v61 = vrot.slane %v4035_v12, 1 }
 0x184   : > { %v5057_v30 = vpop.permute.xlu2 %2393 }
 0x185   : > { %2673 = vmatmul.bf16.gmra.mxu3 %v2488_v55 }
 0x188   : > { %v2107_v26 = vpop.f32.mrf.mxu2  ;;  %v2158_v5 = vpop.f32.mrf.mxu3 }
 0x189   : > { %v5019_v47 = vadd.f32 %v2150_v7, %v2107_v26  ;;  %v1392_v14 = vpop.f32.mrf.mxu1  ;;  %v2482_v7 = vsel %vm355_vm2, %v2477_v23, %v2481_v44 }
 0x18a   : > { %v1344_v25 = vpop.f32.mrf.mxu0 }
 0x18b   : > { %v1388_v18 = vadd.f32 %v1387_v46, %v1344_v25  ;;  %v2424_v25 = vsel %vm389_vm3, %v4813_v51, %v5057_v30 }
 0x18c   : > { %2339 = vmatmul.bf16.gmra.mxu1 %v1698_v60  ;;  %v2495_v60 = vrot.slane %v2424_v25, 1 }
 0x18d   : > { %v1421_v40 = vadd.f32 %v1388_v18, %v4747_v42  ;;  %2291 = vmatmul.bf16.gmra.mxu0 %v1670_v3  ;;  %2625 = vmatmul.bf16.gmra.mxu2 %v2482_v7  ;;  %v2486_v3 = vsel %vm355_vm2, %v2481_v44, %v2485_v53  ;;  %v5299_v18 = vld [vmem:[#allocation6_spill] sm:$0xff] }
 0x18e   : > { %v2496_v44 = vsel %vm355_vm2, %v2491_v41, %v2495_v60  ;;  %v1643_v41 = vsel %vm355_vm2, %v1640_v13, %v5301_v61 }
 0x18f   : > { %v1437_v6 = vadd.f32 %v5026_v29, %v1421_v40 }
 0x190   : > { %v2110_v34 = vpop.f32.mrf.mxu2  ;;  %v2160_v21 = vpop.f32.mrf.mxu3 }
 0x191   : > { %v1450_v46 = vmax.f32 %v1437_v6, 0.0  ;;  %v5046_v23 = vadd.f32 %v2153_v27, %v2110_v34  ;;  %v1394_v42 = vpop.f32.mrf.mxu1 }
 0x192   : > { %v1346_v62 = vpop.f32.mrf.mxu0 }
 0x193   : > { %v1466_v50 = vmul.f32 %v5039_v31, %v1450_v46  ;;  %v1390_v22 = vadd.f32 %v1389_v28, %v1346_v62  ;;  %v1641_v28 = vsel %vm355_vm2, %v1638_v43, %v1640_v13  ;;  %v5300_v62 = vld [vmem:[#allocation3_spill] sm:$0xff] }
 0x194   : > { %v5303_v13 = vld [vmem:[#allocation7_spill] sm:$0xff] }
 0x195   : > { %v1482_v58 = vadd.f32 %v5044_v9, %v1466_v50  ;;  %v1422_v17 = vadd.f32 %v1390_v22, %v4780_v35  ;;  %2678 = vmatmul.bf16.gmra.mxu3 %v2492_v32  ;;  %v1702_v35 = vsel %vm389_vm3, %v1641_v28, %v4469_v63  ;;  %v2407_v32 = vsel %vm389_vm3, %v5300_v62, %v5016_v57 }
 0x196   : > { %v2489_v22 = vrot.slane %v2407_v32, 1 }
 0x197   : > { %1495 = vst [vmem:[#allocation2] sm:$0xff] %v1482_v58  ;;  %v1438_v27 = vadd.f32 %v5026_v29, %v1422_v17 }
 0x198   : > { %v2112_v54 = vpop.f32.mrf.mxu2  ;;  %v2163_v55 = vpop.f32.mrf.mxu3 }
 0x199   : > { %v1451_v49 = vmax.f32 %v1438_v27, 0.0  ;;  %v5060_v59 = vadd.f32 %v2155_v33, %v2112_v54  ;;  %v1397_v26 = vpop.f32.mrf.mxu1 }
 0x19a   : > { %v1349_v16 = vpop.f32.mrf.mxu0 }
 0x19b   : > { %v1467_v45 = vmul.f32 %v5039_v31, %v1451_v49  ;;  %v1393_v37 = vadd.f32 %v1392_v14, %v1349_v16 }
 0x19c   : > { %2344 = vmatmul.bf16.gmra.mxu1 %v1702_v35 }
 0x19d   : > { %v1483_v43 = vadd.f32 %v5044_v9, %v1467_v45  ;;  %v1423_v33 = vadd.f32 %v1393_v37, %v4806_v19  ;;  %2296 = vmatmul.bf16.gmra.mxu0 %v5299_v18  ;;  %2630 = vmatmul.bf16.gmra.mxu2 %v2486_v3  ;;  %v2490_v45 = vsel %vm355_vm2, %v2485_v53, %v2489_v22 }
 0x19f   : > { %1496 = vst [vmem:[#allocation2 + $0x8] sm:$0xff] %v1483_v43  ;;  %v1439_v14 = vadd.f32 %v5026_v29, %v1423_v33 }
 0x1a0   : > { %v2115_v10 = vpop.f32.mrf.mxu2  ;;  %v2165_v63 = vpop.f32.mrf.mxu3 }
 0x1a1   : > { %v1452_v7 = vmax.f32 %v1439_v14, 0.0  ;;  %v5073_v40 = vadd.f32 %v2158_v5, %v2115_v10  ;;  %v1399_v51 = vpop.f32.mrf.mxu1 }
 0x1a2   : > { %v1351_v6 = vpop.f32.mrf.mxu0 }
 0x1a3   : > { %v1468_v34 = vmul.f32 %v5039_v31, %v1452_v7  ;;  %v1395_v46 = vadd.f32 %v1394_v42, %v1351_v6 }
 0x1a5   : > { %v1484_v19 = vadd.f32 %v5044_v9, %v1468_v34  ;;  %v1424_v50 = vadd.f32 %v1395_v46, %v4846_v20  ;;  %2683 = vmatmul.bf16.gmra.mxu3 %v2496_v44  ;;  %v5302_v20 = vld [vmem:[#allocation5_spill] sm:$0xff] }
 0x1a6   : > { %v1706_v16 = vsel %vm389_vm3, %v1643_v41, %v5302_v20 }
 0x1a7   : > { %1497 = vst [vmem:[#allocation2 + $0x10] sm:$0xff] %v1484_v19  ;;  %v1440_v5 = vadd.f32 %v5026_v29, %v1424_v50 }
 0x1a8   : > { %v2117_v58 = vpop.f32.mrf.mxu2  ;;  %v2168_v17 = vpop.f32.mrf.mxu3 }
 0x1a9   : > { %v1453_v42 = vmax.f32 %v1440_v5, 0.0  ;;  %v5086_v27 = vadd.f32 %v2160_v21, %v2117_v58  ;;  %v1402_v54 = vpop.f32.mrf.mxu1  ;;  %v5305_v5 = vld [vmem:[#allocation8_spill] sm:$0xff] }
 0x1aa   : > { %v1354_v28 = vpop.f32.mrf.mxu0 }
 0x1ab   : > { %v1469_v57 = vmul.f32 %v5039_v31, %v1453_v42  ;;  %v1398_v49 = vadd.f32 %v1397_v26, %v1354_v28 }
 0x1ac   : > { %2349 = vmatmul.bf16.gmra.mxu1 %v1706_v16 }
 0x1ad   : > { %v1485_v37 = vadd.f32 %v5044_v9, %v1469_v57  ;;  %v1425_v12 = vadd.f32 %v1398_v49, %v4874_v1  ;;  %2301 = vmatmul.bf16.gmra.mxu0 %v5303_v13  ;;  %2635 = vmatmul.bf16.gmra.mxu2 %v2490_v45  ;;  %v5304_v1 = vld [vmem:[#allocation4_spill] sm:$0xff]  ;;  %v3684_v49 = vmov 0  }
 0x1ae   : > { %v2410_v10 = vsel %vm389_vm3, %v5304_v1, %v5057_v30  ;;  %v2880_v20 = vunpack.c.l.b16 %v3684_v49 }
 0x1af   : > { %1498 = vst [vmem:[#allocation2 + $0x18] sm:$0xff] %v1485_v37  ;;  %v1441_v21 = vadd.f32 %v5026_v29, %v1425_v12  ;;  %v2493_v44 = vrot.slane %v2410_v10, 1  ;;  %v1627_v37 = vpop.permute.xlu0 %1626 }
 0x1b0   : > { %v2120_v35 = vpop.f32.mrf.mxu2  ;;  %v2170_v25 = vpop.f32.mrf.mxu3  ;;  %v2887_v16 = vpack.c.b16 %v2880_v20, %v2880_v20 }
 0x1b1   : > { %v1454_v3 = vmax.f32 %v1441_v21, 0.0  ;;  %v5096_v26 = vadd.f32 %v2163_v55, %v2120_v35  ;;  %v1404_v43 = vpop.f32.mrf.mxu1 }
 0x1b2   : > { %v1356_v33 = vpop.f32.mrf.mxu0  ;;  %2901 = vst [vmem:[%s5123_s10 + $0x18] sm:$0xf] %v2887_v16 }
 0x1b3   : > { %v1470_v18 = vmul.f32 %v5039_v31, %v1454_v3  ;;  %v1400_v53 = vadd.f32 %v1399_v51, %v1356_v33 }
 0x1b4   : > { %v1629_v20 = vpop.permute.xlu1 %1628 }
 0x1b5   : > { %v1486_v14 = vadd.f32 %v5044_v9, %v1470_v18  ;;  %v1426_v7 = vadd.f32 %v1400_v53, %v4904_v24  ;;  %2688 = vmatmul.bf16.gmra.mxu3 %v2495_v60  ;;  %v2494_v24 = vsel %vm355_vm2, %v2489_v22, %v2493_v44  ;;  %v1682_v18 = vsel %vm389_vm3, %v4752_v52, %v1627_v37 }
 0x1b6   : > { %v2771_v52 = vlaneseq  ;;  %v1686_v37 = vsel %vm389_vm3, %v4794_v15, %v1629_v20 }
 0x1b7   : > { %1499 = vst [vmem:[#allocation2 + $0x20] sm:$0xff] %v1486_v14  ;;  %v1442_v6 = vadd.f32 %v5026_v29, %v1426_v7 }
 0x1b8   : > { %v2122_v55 = vpop.f32.mrf.mxu2  ;;  %v2173_v34 = vpop.f32.mrf.mxu3 }
 0x1b9   : > { %v1455_v46 = vmax.f32 %v1442_v6, 0.0  ;;  %v5105_v19 = vadd.f32 %v2165_v63, %v2122_v55  ;;  %v1407_v62 = vpop.f32.mrf.mxu1  ;;  %v1665_v45 = vpop.permute.xlu2 %1664 }
 0x1ba   : > { %v1359_v51 = vpop.f32.mrf.mxu0 }
 0x1bb   : > { %v1471_v32 = vmul.f32 %v5039_v31, %v1455_v46  ;;  %v1403_v50 = vadd.f32 %v1402_v54, %v1359_v51  ;;  %v2778_v51 = vld [vmem:[#allocation2 + $0x10] ss:$2 sm:$0xff] }
 0x1bc   : > { %2354 = vmatmul.bf16.gmra.mxu1 %v5305_v5 }
 0x1bd   : > { %v1487_v30 = vadd.f32 %v5044_v9, %v1471_v32  ;;  %v1427_v60 = vadd.f32 %v1403_v50, %v4933_v2  ;;  %2306 = vmatmul.bf16.gmra.mxu0 %v4675_v0  ;;  %2640 = vmatmul.bf16.gmra.mxu2 %v2494_v24  ;;  %v2780_v32 = vld [vmem:[#allocation2 + $0x11] ss:$2 sm:$0xff]  ;;  %v2774_v50 = vld [vmem:[#allocation2] ss:$2 sm:$0xff] }
 0x1bf   : > { %1500 = vst [vmem:[#allocation2 + $0x28] sm:$0xff] %v1487_v30  ;;  %v1443_v63 = vadd.f32 %v5026_v29, %v1427_v60  ;;  %v2782_v60 = vmax.f32 %v2778_v51, %v2780_v32 }
 0x1c0   : > { %v2125_v58 = vpop.f32.mrf.mxu2  ;;  %v2175_v61 = vpop.f32.mrf.mxu3 }
 0x1c1   : > { %v1456_v41 = vmax.f32 %v1443_v63, 0.0  ;;  %v5114_v42 = vadd.f32 %v2168_v17, %v2125_v58  ;;  %v1409_v54 = vpop.f32.mrf.mxu1  ;;  %v5143_v61 = vshrl.u32 %v2771_v52, 7 }
 0x1c2   : > { %v1361_v28 = vpop.f32.mrf.mxu0 }
 0x1c3   : > { %v1472_v57 = vmul.f32 %v5039_v31, %v1456_v41  ;;  %v1405_v22 = vadd.f32 %v1404_v43, %v1361_v28  ;;  %vm2773_vm5 = vcmp.lt.s32.totalorder %v5143_v61, 6 }
 0x1c5   : > { %v1488_v2 = vadd.f32 %v5044_v9, %v1472_v57  ;;  %v1428_v0 = vadd.f32 %v1405_v22, %v4945_v38  ;;  %v5306_v38 = vrot.slane %v4665_v11, 1 }
 0x1c6   : > { %v2787_v30 = vld [vmem:[#allocation2 + $0x20] ss:$2 sm:$0xff] }
 0x1c7   : > { %1501 = vst [vmem:[#allocation2 + $0x30] sm:$0xff] %v1488_v2  ;;  %v1444_v17 = vadd.f32 %v5026_v29, %v1428_v0  ;;  %v1714_v43 = vsel %vm389_vm3, %v5306_v38, %v1665_v45 }
 0x1c8   : > { %v2127_v12 = vpop.f32.mrf.mxu2  ;;  %v2178_v13 = vpop.f32.mrf.mxu3 }
 0x1c9   : > { %v1457_v21 = vmax.f32 %v1444_v17, 0.0  ;;  %v5127_v35 = vadd.f32 %v2170_v25, %v2127_v12  ;;  %v1412_v3 = vpop.f32.mrf.mxu1 }
 0x1ca   : > { %v1364_v33 = vpop.f32.mrf.mxu0 }
 0x1cb   : > { %v1473_v53 = vmul.f32 %v5039_v31, %v1457_v21  ;;  %v1408_v14 = vadd.f32 %v1407_v62, %v1364_v33 }
 0x1cc   : > { %2359 = vmatmul.bf16.gmra.mxu1 %v1714_v43 }
 0x1cd   : > { %v1489_v1 = vadd.f32 %v5044_v9, %v1473_v53  ;;  %v1429_v10 = vadd.f32 %v1408_v14, %v4959_v39  ;;  %2311 = vmatmul.bf16.gmra.mxu0 %v1682_v18  ;;  %2645 = vmatmul.bf16.gmra.mxu2 %v2493_v44  ;;  %v2776_v39 = vld [vmem:[#allocation2 + $0x1] ss:$2 sm:$0xff] }
 0x1ce   : > { %v2789_v44 = vld [vmem:[#allocation2 + $0x21] ss:$2 sm:$0xff]  ;;  %v2781_v28 = vmax.f32 %v2774_v50, %v2776_v39 }
 0x1cf   : > { %1502 = vst [vmem:[#allocation2 + $0x38] sm:$0xff] %v1489_v1  ;;  %v1445_v25 = vadd.f32 %v5026_v29, %v1429_v10  ;;  %v2794_v57 = vmax.f32 %v2787_v30, %v2789_v44 }
 0x1d0   : > { %v2130_v11 = vpop.f32.mrf.mxu2  ;;  %v2180_v7 = vpop.f32.mrf.mxu3  ;;  %v2783_v0 = vmax.f32 %v2781_v28, %v2782_v60 }
 0x1d1   : > { %v1458_v6 = vmax.f32 %v1445_v25, 0.0  ;;  %v5138_v55 = vadd.f32 %v2173_v34, %v2130_v11  ;;  %v1414_v46 = vpop.f32.mrf.mxu1 }
 0x1d2   : > { %v1366_v62 = vpop.f32.mrf.mxu0  ;;  %v2784_v43 = vsel %vm2773_vm5, %v2783_v0, 0.0 }
 0x1d3   : > { %v1474_v5 = vmul.f32 %v5039_v31, %v1458_v6  ;;  %v1410_v24 = vadd.f32 %v1409_v54, %v1366_v62  ;;  %v2785_v14 = vpack.c.bf16 %v2784_v43, %v2784_v43 }
 0x1d5   : > { %v1490_v63 = vadd.f32 %v5044_v9, %v1474_v5  ;;  %v1430_v58 = vadd.f32 %v1410_v24, %v4976_v56 }
 0x1d6   : > { %v2791_v34 = vld [vmem:[#allocation2 + $0x30] ss:$2 sm:$0xff]  ;;  %v2793_v41 = vld [vmem:[#allocation2 + $0x31] ss:$2 sm:$0xff] }
 0x1d7   : > { %v2795_v22 = vmax.f32 %v2791_v34, %v2793_v41  ;;  %1503 = vst [vmem:[#allocation2 + $0x40] sm:$0xff] %v1490_v63  ;;  %v1446_v49 = vadd.f32 %v5026_v29, %v1430_v58 }
 0x1d8   : > { %v2132_v54 = vpop.f32.mrf.mxu2  ;;  %v5146_v2 = vpop.f32.mrf.mxu3 }
 0x1d9   : > { %v2796_v16 = vmax.f32 %v2794_v57, %v2795_v22  ;;  %v1459_v45 = vmax.f32 %v1446_v49, 0.0  ;;  %v1417_v17 = vpop.f32.mrf.mxu1 }
 0x1da   : > { %v1369_v56 = vpop.f32.mrf.mxu0 }
 0x1db   : > { %v2797_v12 = vsel %vm2773_vm5, %v2796_v16, 0.0  ;;  %v1475_v13 = vmul.f32 %v5039_v31, %v1459_v45  ;;  %v1413_v21 = vadd.f32 %v1412_v3, %v1369_v56 }
 0x1dc   : > { %v2798_v38 = vpack.c.bf16 %v2797_v12, %v2797_v12 }
 0x1dd   : > { %v1491_v33 = vadd.f32 %v5044_v9, %v1475_v13  ;;  %v1431_v18 = vadd.f32 %v1413_v21, %v4983_v4  ;;  %2316 = vmatmul.bf16.gmra.mxu0 %v1686_v37 }
 0x1de   : > { %v2852_v53 = vunpack.c.l.b16 %v2798_v38 }
 0x1df   : > { %1504 = vst [vmem:[#allocation2 + $0x48] sm:$0xff] %v1491_v33  ;;  %v1447_v15 = vadd.f32 %v5026_v29, %v1431_v18 }
 0x1e0   : > { %v2853_v1 = vpack.c.b16 %v2852_v53, %v2852_v53  ;;  %v2135_v10 = vpop.f32.mrf.mxu2  ;;  %v2661_v3 = vpop.f32.mrf.mxu3 }
 0x1e1   : > { %v1460_v25 = vmax.f32 %v1447_v15, 0.0  ;;  %v1419_v11 = vpop.f32.mrf.mxu1 }
 0x1e2   : > { %v2863_v7 = vsel %vm2860_vm6, %v2785_v14, %v2853_v1  ;;  %v1371_v6 = vpop.f32.mrf.mxu0 }
 0x1e3   : > { %v2874_v52 = vunpack.c.l.b16 %v2863_v7  ;;  %v2875_v51 = vunpack.c.h.b16 %v2863_v7  ;;  %v1476_v4 = vmul.f32 %v5039_v31, %v1460_v25  ;;  %v1415_v32 = vadd.f32 %v1414_v46, %v1371_v6 }
 0x1e5   : > { %v2881_v62 = vpack.c.b16 %v2874_v52, %v2874_v52  ;;  %v2882_v50 = vpack.c.b16 %v2875_v51, %v2875_v51  ;;  %v1492_v5 = vadd.f32 %v5044_v9, %v1476_v4  ;;  %v1432_v24 = vadd.f32 %v1415_v32, %v4996_v8 }
 0x1e7   : > { %2895 = vst [vmem:[%s5123_s10] sm:$0xf] %v2881_v62  ;;  %v1448_v39 = vadd.f32 %v5026_v29, %v1432_v24 }
 0x1e8   : > { %2896 = vst [vmem:[%s5123_s10 + $0x4] sm:$0xf] %v2882_v50  ;;  %v2137_v30 = vpop.f32.mrf.mxu2  ;;  %v2664_v44 = vpop.f32.mrf.mxu3 }
 0x1e9   : > { %1505 = vst [vmem:[#allocation2 + $0x50] sm:$0xff] %v1492_v5  ;;  %v1461_v60 = vmax.f32 %v1448_v39, 0.0  ;;  %v2330_v63 = vpop.f32.mrf.mxu1 }
 0x1ea   : > { %v1374_v58 = vpop.f32.mrf.mxu0 }
 0x1eb   : > { %v1477_v34 = vmul.f32 %v5039_v31, %v1461_v60  ;;  %v1418_v41 = vadd.f32 %v1417_v17, %v1374_v58 }
 0x1ed   : > { %v1493_v46 = vadd.f32 %v5044_v9, %v1477_v34  ;;  %v1433_v28 = vadd.f32 %v1418_v41, %v5008_v48 }
 0x1ef   : > { %1506 = vst [vmem:[#allocation2 + $0x58] sm:$0xff] %v1493_v46  ;;  %v1449_v8 = vadd.f32 %v5026_v29, %v1433_v28 }
 0x1f0   : > { %v2616_v57 = vpop.f32.mrf.mxu2  ;;  %v2666_v22 = vpop.f32.mrf.mxu3 }
 0x1f1   : > { %v1462_v49 = vmax.f32 %v1449_v8, 0.0  ;;  %v2332_v20 = vpop.f32.mrf.mxu1  ;;  %v2660_v12 = vadd.f32 %v5146_v2, %v2616_v57 }
 0x1f2   : > { %v1376_v54 = vpop.f32.mrf.mxu0 }
 0x1f3   : > { %v1478_v0 = vmul.f32 %v5039_v31, %v1462_v49 }
 0x1f5   : > { %v1494_v16 = vadd.f32 %v5044_v9, %v1478_v0 }
 0x1f7   : > { %1507 = vst [vmem:[#allocation2 + $0x60] sm:$0xff] %v1494_v16 }
 0x1f8   : > { %v2618_v45 = vpop.f32.mrf.mxu2  ;;  %v2669_v56 = vpop.f32.mrf.mxu3 }
 0x1f9   : > { %v2335_v17 = vpop.f32.mrf.mxu1  ;;  %v2662_v10 = vadd.f32 %v2661_v3, %v2618_v45  ;;  %v2804_v45 = vld [vmem:[#allocation2 + $0x50] ss:$2 sm:$0xff] }
 0x1fa   : > { %v2287_v37 = vpop.f32.mrf.mxu0 }
 0x1fb   : > { %v2288_v48 = vadd.f32 %v2287_v37, %v5010_v36 }
 0x1fd   : > { %v2331_v13 = vadd.f32 %v2330_v63, %v2288_v48  ;;  %v2802_v48 = vld [vmem:[#allocation2 + $0x41] ss:$2 sm:$0xff] }
 0x1ff   : > { %v2693_v21 = vadd.f32 %v2660_v12, %v2331_v13 }
 0x200   : > { %v2621_v38 = vpop.f32.mrf.mxu2  ;;  %v5174_v43 = vpop.f32.mrf.mxu3 }
 0x201   : > { %v2706_v33 = vadd.f32 %v5026_v29, %v2693_v21  ;;  %v2337_v18 = vpop.f32.mrf.mxu1  ;;  %v2665_v62 = vadd.f32 %v2664_v44, %v2621_v38 }
 0x202   : > { %v2289_v53 = vpop.f32.mrf.mxu0 }
 0x203   : > { %v2719_v15 = vmax.f32 %v2706_v33, 0.0  ;;  %v2290_v14 = vadd.f32 %v2289_v53, %v5019_v47 }
 0x205   : > { %v2732_v1 = vmul.f32 %v5039_v31, %v2719_v15  ;;  %v2333_v25 = vadd.f32 %v2332_v20, %v2290_v14 }
 0x207   : > { %v2745_v2 = vadd.f32 %v5044_v9, %v2732_v1  ;;  %v2694_v11 = vadd.f32 %v2662_v10, %v2333_v25 }
 0x208   : > { %v2623_v36 = vpop.f32.mrf.mxu2  ;;  %v5180_v7 = vpop.f32.mrf.mxu3 }
 0x209   : > { %2758 = vst [vmem:[#allocation2 + $0x68] sm:$0xff] %v2745_v2  ;;  %v2707_v6 = vadd.f32 %v5026_v29, %v2694_v11  ;;  %v2340_v52 = vpop.f32.mrf.mxu1  ;;  %v2667_v41 = vadd.f32 %v2666_v22, %v2623_v36 }
 0x20a   : > { %v2292_v51 = vpop.f32.mrf.mxu0 }
 0x20b   : > { %v2720_v4 = vmax.f32 %v2707_v6, 0.0  ;;  %v2293_v32 = vadd.f32 %v2292_v51, %v5046_v23 }
 0x20d   : > { %v2733_v47 = vmul.f32 %v5039_v31, %v2720_v4  ;;  %v2336_v50 = vadd.f32 %v2335_v17, %v2293_v32  ;;  %v2800_v17 = vld [vmem:[#allocation2 + $0x40] ss:$2 sm:$0xff] }
 0x20f   : > { %v2746_v3 = vadd.f32 %v5044_v9, %v2733_v47  ;;  %v2695_v5 = vadd.f32 %v2665_v62, %v2336_v50 }
 0x210   : > { %v2626_v24 = vpop.f32.mrf.mxu2  ;;  %v5186_v39 = vpop.f32.mrf.mxu3  ;;  %v2813_v13 = vld [vmem:[#allocation2 + $0x60] ss:$2 sm:$0xff]  ;;  %v2815_v21 = vld [vmem:[#allocation2 + $0x61] ss:$2 sm:$0xff] }
 0x211   : > { %2759 = vst [vmem:[#allocation2 + $0x70] sm:$0xff] %v2746_v3  ;;  %v2708_v30 = vadd.f32 %v5026_v29, %v2695_v5  ;;  %v2342_v60 = vpop.f32.mrf.mxu1  ;;  %v2670_v37 = vadd.f32 %v2669_v56, %v2626_v24  ;;  %v2820_v10 = vmax.f32 %v2813_v13, %v2815_v21 }
 0x212   : > { %v2294_v63 = vpop.f32.mrf.mxu0 }
 0x213   : > { %v2721_v58 = vmax.f32 %v2708_v30, 0.0  ;;  %v2295_v34 = vadd.f32 %v2294_v63, %v5060_v59  ;;  %v2806_v59 = vld [vmem:[#allocation2 + $0x51] ss:$2 sm:$0xff] }
 0x214   : > { %v2808_v38 = vmax.f32 %v2804_v45, %v2806_v59 }
 0x215   : > { %v2734_v23 = vmul.f32 %v5039_v31, %v2721_v58  ;;  %v2338_v46 = vadd.f32 %v2337_v18, %v2295_v34 }
 0x217   : > { %v2747_v44 = vadd.f32 %v5044_v9, %v2734_v23  ;;  %v2696_v28 = vadd.f32 %v2667_v41, %v2338_v46 }
 0x218   : > { %v2628_v8 = vpop.f32.mrf.mxu2  ;;  %v5192_v57 = vpop.f32.mrf.mxu3 }
 0x219   : > { %2760 = vst [vmem:[#allocation2 + $0x78] sm:$0xff] %v2747_v44  ;;  %v2709_v49 = vadd.f32 %v5026_v29, %v2696_v28  ;;  %v2345_v20 = vpop.f32.mrf.mxu1  ;;  %v2672_v47 = vadd.f32 %v5174_v43, %v2628_v8 }
 0x21a   : > { %v2297_v54 = vpop.f32.mrf.mxu0 }
 0x21b   : > { %v2722_v0 = vmax.f32 %v2709_v49, 0.0  ;;  %v2298_v16 = vadd.f32 %v2297_v54, %v5073_v40  ;;  %v2807_v40 = vmax.f32 %v2800_v17, %v2802_v48 }
 0x21d   : > { %v2735_v22 = vmul.f32 %v5039_v31, %v2722_v0  ;;  %v2341_v12 = vadd.f32 %v2340_v52, %v2298_v16  ;;  %v2809_v36 = vmax.f32 %v2807_v40, %v2808_v38 }
 0x21f   : > { %v2748_v33 = vadd.f32 %v5044_v9, %v2735_v22  ;;  %v2697_v18 = vadd.f32 %v2670_v37, %v2341_v12  ;;  %v2810_v3 = vsel %vm2773_vm5, %v2809_v36, 0.0 }
 0x220   : > { %v2817_v53 = vld [vmem:[#allocation2 + $0x70] ss:$2 sm:$0xff]  ;;  %v2819_v15 = vld [vmem:[#allocation2 + $0x71] ss:$2 sm:$0xff]  ;;  %v2631_v14 = vpop.f32.mrf.mxu2  ;;  %v5198_v1 = vpop.f32.mrf.mxu3  ;;  %v2811_v23 = vpack.c.bf16 %v2810_v3, %v2810_v3 }
 0x221   : > { %v2821_v25 = vmax.f32 %v2817_v53, %v2819_v15  ;;  %2761 = vst [vmem:[#allocation2 + $0x80] sm:$0xff] %v2748_v33  ;;  %v2710_v2 = vadd.f32 %v5026_v29, %v2697_v18  ;;  %v2347_v56 = vpop.f32.mrf.mxu1  ;;  %v2675_v28 = vadd.f32 %v5180_v7, %v2631_v14 }
 0x222   : > { %v2299_v11 = vpop.f32.mrf.mxu0 }
 0x223   : > { %v2822_v6 = vmax.f32 %v2820_v10, %v2821_v25  ;;  %v2723_v52 = vmax.f32 %v2710_v2, 0.0  ;;  %v2300_v51 = vadd.f32 %v2299_v11, %v5086_v27 }
 0x225   : > { %v2823_v4 = vsel %vm2773_vm5, %v2822_v6, 0.0  ;;  %v2736_v32 = vmul.f32 %v5039_v31, %v2723_v52  ;;  %v2343_v62 = vadd.f32 %v2342_v60, %v2300_v51 }
 0x226   : > { %v2824_v50 = vpack.c.bf16 %v2823_v4, %v2823_v4 }
 0x227   : > { %v2749_v5 = vadd.f32 %v5044_v9, %v2736_v32  ;;  %v2698_v24 = vadd.f32 %v2672_v47, %v2343_v62 }
 0x228   : > { %v2855_v30 = vunpack.c.l.b16 %v2824_v50  ;;  %v2633_v63 = vpop.f32.mrf.mxu2  ;;  %v5209_v58 = vpop.f32.mrf.mxu3 }
 0x229   : > { %2762 = vst [vmem:[#allocation2 + $0x88] sm:$0xff] %v2749_v5  ;;  %v2711_v27 = vadd.f32 %v5026_v29, %v2698_v24  ;;  %v2350_v34 = vpop.f32.mrf.mxu1 }
 0x22a   : > { %v2856_v41 = vpack.c.b16 %v2855_v30, %v2855_v30  ;;  %v2302_v43 = vpop.f32.mrf.mxu0 }
 0x22b   : > { %v2724_v60 = vmax.f32 %v2711_v27, 0.0  ;;  %v2303_v46 = vadd.f32 %v2302_v43, %v5096_v26 }
 0x22c   : > { %v2866_v44 = vsel %vm2860_vm6, %v2811_v23, %v2856_v41 }
 0x22d   : > { %v2876_v8 = vunpack.c.l.b16 %v2866_v44  ;;  %v2877_v49 = vunpack.c.h.b16 %v2866_v44  ;;  %v2737_v54 = vmul.f32 %v5039_v31, %v2724_v60  ;;  %v2346_v0 = vadd.f32 %v2345_v20, %v2303_v46 }
 0x22e   : > { %v2677_v20 = vadd.f32 %v5186_v39, %v2633_v63 }
 0x22f   : > { %v2883_v16 = vpack.c.b16 %v2876_v8, %v2876_v8  ;;  %v2884_v45 = vpack.c.b16 %v2877_v49, %v2877_v49  ;;  %v2750_v59 = vadd.f32 %v5044_v9, %v2737_v54  ;;  %v2699_v17 = vadd.f32 %v2675_v28, %v2346_v0 }
 0x230   : > { %v2636_v22 = vpop.f32.mrf.mxu2  ;;  %v2686_v37 = vpop.f32.mrf.mxu3 }
 0x231   : > { %2897 = vst [vmem:[%s5123_s10 + $0x8] sm:$0xf] %v2883_v16  ;;  %v2712_v26 = vadd.f32 %v5026_v29, %v2699_v17  ;;  %v2352_v12 = vpop.f32.mrf.mxu1  ;;  %v2680_v11 = vadd.f32 %v5192_v57, %v2636_v22  ;;  %v2828_v17 = vld [vmem:[#allocation2 + $0x81] ss:$2 sm:$0xff] }
 0x232   : > { %2898 = vst [vmem:[%s5123_s10 + $0xc] sm:$0xf] %v2884_v45  ;;  %v2304_v48 = vpop.f32.mrf.mxu0 }
 0x233   : > { %2763 = vst [vmem:[#allocation2 + $0x90] sm:$0xff] %v2750_v59  ;;  %v2725_v7 = vmax.f32 %v2712_v26, 0.0  ;;  %v2305_v13 = vadd.f32 %v2304_v48, %v5105_v19  ;;  %v2826_v59 = vld [vmem:[#allocation2 + $0x80] ss:$2 sm:$0xff] }
 0x235   : > { %v2738_v21 = vmul.f32 %v5039_v31, %v2725_v7  ;;  %v2348_v38 = vadd.f32 %v2347_v56, %v2305_v13 }
 0x237   : > { %v2751_v33 = vadd.f32 %v5044_v9, %v2738_v21  ;;  %v2700_v18 = vadd.f32 %v2677_v20, %v2348_v38 }
 0x238   : > { %v2638_v53 = vpop.f32.mrf.mxu2  ;;  %v2689_v15 = vpop.f32.mrf.mxu3 }
 0x239   : > { %2764 = vst [vmem:[#allocation2 + $0x98] sm:$0xff] %v2751_v33  ;;  %v2713_v14 = vadd.f32 %v5026_v29, %v2700_v18  ;;  %v2355_v40 = vpop.f32.mrf.mxu1  ;;  %v2682_v50 = vadd.f32 %v5198_v1, %v2638_v53 }
 0x23a   : > { %v2307_v10 = vpop.f32.mrf.mxu0 }
 0x23b   : > { %v2726_v25 = vmax.f32 %v2713_v14, 0.0  ;;  %v2308_v2 = vadd.f32 %v2307_v10, %v5114_v42 }
 0x23d   : > { %v2739_v19 = vmul.f32 %v5039_v31, %v2726_v25  ;;  %v2351_v36 = vadd.f32 %v2350_v34, %v2308_v2 }
 0x23f   : > { %v2752_v39 = vadd.f32 %v5044_v9, %v2739_v19  ;;  %v2701_v56 = vadd.f32 %v2680_v11, %v2351_v36 }
 0x240   : > { %v2641_v6 = vpop.f32.mrf.mxu2  ;;  %v2691_v52 = vpop.f32.mrf.mxu3  ;;  %v2830_v45 = vld [vmem:[#allocation2 + $0x90] ss:$2 sm:$0xff] }
 0x241   : > { %2765 = vst [vmem:[#allocation2 + $0xa0] sm:$0xff] %v2752_v39  ;;  %v2714_v51 = vadd.f32 %v5026_v29, %v2701_v56  ;;  %v2357_v4 = vpop.f32.mrf.mxu1 }
 0x242   : > { %v2309_v32 = vpop.f32.mrf.mxu0 }
 0x243   : > { %v2727_v47 = vmax.f32 %v2714_v51, 0.0  ;;  %v2310_v62 = vadd.f32 %v2309_v32, %v5127_v35  ;;  %v2685_v35 = vadd.f32 %v5209_v58, %v2641_v6  ;;  %v2832_v58 = vld [vmem:[#allocation2 + $0x91] ss:$2 sm:$0xff] }
 0x244   : > { %v2834_v26 = vmax.f32 %v2830_v45, %v2832_v58 }
 0x245   : > { %v2740_v42 = vmul.f32 %v5039_v31, %v2727_v47  ;;  %v2353_v3 = vadd.f32 %v2352_v12, %v2310_v62 }
 0x247   : > { %v2753_v57 = vadd.f32 %v5044_v9, %v2740_v42  ;;  %v2702_v5 = vadd.f32 %v2682_v50, %v2353_v3 }
 0x248   : > { %v2643_v24 = vpop.f32.mrf.mxu2 }
 0x249   : > { %2766 = vst [vmem:[#allocation2 + $0xa8] sm:$0xff] %v2753_v57  ;;  %v2715_v30 = vadd.f32 %v5026_v29, %v2702_v5  ;;  %v2360_v63 = vpop.f32.mrf.mxu1 }
 0x24a   : > { %v2312_v27 = vpop.f32.mrf.mxu0 }
 0x24b   : > { %v2728_v34 = vmax.f32 %v2715_v30, 0.0  ;;  %v2313_v23 = vadd.f32 %v2312_v27, %v5138_v55 }
 0x24d   : > { %v2741_v41 = vmul.f32 %v5039_v31, %v2728_v34  ;;  %v2356_v43 = vadd.f32 %v2355_v40, %v2313_v23 }
 0x24f   : > { %v2754_v1 = vadd.f32 %v5044_v9, %v2741_v41  ;;  %v2703_v60 = vadd.f32 %v2685_v35, %v2356_v43 }
 0x250   : > { %v2646_v46 = vpop.f32.mrf.mxu2  ;;  %v2839_v22 = vld [vmem:[#allocation2 + $0xa0] ss:$2 sm:$0xff]  ;;  %v2841_v37 = vld [vmem:[#allocation2 + $0xa1] ss:$2 sm:$0xff] }
 0x251   : > { %2767 = vst [vmem:[#allocation2 + $0xb0] sm:$0xff] %v2754_v1  ;;  %v2716_v44 = vadd.f32 %v5026_v29, %v2703_v60  ;;  %v2362_v28 = vpop.f32.mrf.mxu1  ;;  %v2833_v29 = vmax.f32 %v2826_v59, %v2828_v17  ;;  %v2846_v7 = vmax.f32 %v2839_v22, %v2841_v37 }
 0x252   : > { %v2314_v8 = vpop.f32.mrf.mxu0 }
 0x253   : > { %v2729_v49 = vmax.f32 %v2716_v44, 0.0  ;;  %v2835_v21 = vmax.f32 %v2833_v29, %v2834_v26 }
 0x255   : > { %v2742_v54 = vmul.f32 %v5039_v31, %v2729_v49  ;;  %v2836_v33 = vsel %vm2773_vm5, %v2835_v21, 0.0 }
 0x256   : > { %v2837_v53 = vpack.c.bf16 %v2836_v33, %v2836_v33 }
 0x257   : > { %v2755_v0 = vadd.f32 %v5044_v9, %v2742_v54 }
 0x258   : > { %v2648_v55 = vpop.f32.mrf.mxu2 }
 0x259   : > { %2768 = vst [vmem:[#allocation2 + $0xb8] sm:$0xff] %v2755_v0 }
 0x25a   : > { %v2317_v16 = vpop.f32.mrf.mxu0 }
 0x260   : > { %v2843_v12 = vld [vmem:[#allocation2 + $0xb0] ss:$2 sm:$0xff]  ;;  %v2845_v48 = vld [vmem:[#allocation2 + $0xb1] ss:$2 sm:$0xff] }
 0x261   : > { %v2847_v13 = vmax.f32 %v2843_v12, %v2845_v48 }
 0x262   : > { %v2319_v31 = vpop.f32.mrf.mxu0 }
 0x263   : > { %v2848_v9 = vmax.f32 %v2846_v7, %v2847_v13 }
 0x265   : > { %v2849_v20 = vsel %vm2773_vm5, %v2848_v9, 0.0 }
 0x266   : > { %v2850_v38 = vpack.c.bf16 %v2849_v20, %v2849_v20 }
 0x268   : > { %v2858_v18 = vunpack.c.l.b16 %v2850_v38 }
 0x26a   : > { %v2859_v15 = vpack.c.b16 %v2858_v18, %v2858_v18 }
 0x26c   : > { %v2869_v14 = vsel %vm2860_vm6, %v2837_v53, %v2859_v15 }
 0x26d   : > { %v2878_v40 = vunpack.c.l.b16 %v2869_v14  ;;  %v2879_v10 = vunpack.c.h.b16 %v2869_v14 }
 0x26f   : > { %v2885_v25 = vpack.c.b16 %v2878_v40, %v2878_v40  ;;  %v2886_v2 = vpack.c.b16 %v2879_v10, %v2879_v10 }
 0x271   : > { %2899 = vst [vmem:[%s5123_s10 + $0x10] sm:$0xf] %v2885_v25 }
 0x272   : > { %2900 = vst [vmem:[%s5123_s10 + $0x14] sm:$0xf] %v2886_v2 }
 0x273 PF: > { %s15_s18 = sadd.s32 1, %s3681_s18  }
 0x274   : > { %p12_p4 = scmp.ge.s32.totalorder %s15_s18, 4  }
 0x276   :  { %14 = sbr.rel (!%p12_p4) target bundleno = 1 (0x1), region = 95 }

// kernel: tf_cifar_forward.7
= control target key start
LH: loop header
LB: loop body
LE: loop exit
PB: predicated region body
PF: predicated region fallthrough
CT: control target
= control target key end

     0   :  { %vm227_vm0 = vcmask 1041409   ;;  %vm230_vm1 = vcmask 1042434   ;;  %vm233_vm2 = vcmask 1043459   ;;  %vm236_vm3 = vcmask 1044484   ;;  %s5812_s1 = inlined_call_operand.vmem [shape: bf16[4,256,384], index: 1, kind: input, shape index: {}]   ;;  %s5813_s0 = inlined_call_operand.vmem [shape: bf16[8,4,256], index: 0, kind: input, shape index: {}]   ;;  %s5814_s3 = inlined_call_operand.vmem [shape: bf16[384,192], index: 3, kind: input, shape index: {}]   ;;  %s5815_s2 = inlined_call_operand.vmem [shape: f32[1,384], index: 2, kind: input, shape index: {}]   ;;  %s5816_s5 = inlined_call_operand.vmem [shape: bf16[192,128], index: 5, kind: input, shape index: {}]   ;;  %s5817_s4 = inlined_call_operand.vmem [shape: f32[1,192], index: 4, kind: input, shape index: {}]   ;;  %s5818_s6 = inlined_call_operand.vmem [shape: f32[8,128], index: 6, kind: output, shape index: {}]  }
   0x1   :  { %v2710_v0 = vld [vmem:[%s5812_s1 + $0x228] sm:$0xf]  ;;  %v3831_v1 = vld [vmem:[%s5812_s1 + $0x230] sm:$0xf0]  ;;  %v3830_v5 = vld [vmem:[%s5812_s1 + $0x22c] sm:$0xf] }
   0x2   :  { %v2806_v2 = vld [vmem:[%s5812_s1 + $0x2e8] sm:$0xf]  ;;  %v2711_v3 = vor.u32 %v3831_v1, %v2710_v0  ;;  %v3855_v4 = vld [vmem:[%s5812_s1 + $0x2f0] sm:$0xf0]  ;;  %v2712_v6 = vld [vmem:[%s5812_s1 + $0x234] sm:$0xf0] }
   0x3   :  { %v2807_v7 = vor.u32 %v3855_v4, %v2806_v2  ;;  %v2715_v8 = vor.u32 %v3830_v5, %v2712_v6  ;;  %v3854_v9 = vld [vmem:[%s5812_s1 + $0x2ec] sm:$0xf]  ;;  %v2808_v10 = vld [vmem:[%s5812_s1 + $0x2f4] sm:$0xf0]  ;;  %v2698_v11 = vld [vmem:[%s5812_s1 + $0x210] sm:$0xf] }
   0x4   :  { %521 = vmatpush.bf16.msra.mxu0 %v2711_v3  ;;  %v2811_v12 = vor.u32 %v3854_v9, %v2808_v10  ;;  %v3828_v13 = vld [vmem:[%s5812_s1 + $0x218] sm:$0xf0]  ;;  %v2794_v14 = vld [vmem:[%s5812_s1 + $0x2d0] sm:$0xf]  ;;  %v3827_v18 = vld [vmem:[%s5812_s1 + $0x214] sm:$0xf] }
   0x5   :  { %v3852_v15 = vld [vmem:[%s5812_s1 + $0x2d8] sm:$0xf0]  ;;  %534 = vmatpush.bf16.msra.mxu1 %v2807_v7  ;;  %547 = vmatpush.bf16.msra.mxu2 %v2715_v8  ;;  %v2699_v16 = vor.u32 %v3828_v13, %v2698_v11  ;;  %v2700_v19 = vld [vmem:[%s5812_s1 + $0x21c] sm:$0xf0]  ;;  %v3851_v20 = vld [vmem:[%s5812_s1 + $0x2d4] sm:$0xf] }
   0x6   :  { %v2795_v17 = vor.u32 %v3852_v15, %v2794_v14  ;;  %560 = vmatpush.bf16.msra.mxu3 %v2811_v12  ;;  %v2703_v21 = vor.u32 %v3827_v18, %v2700_v19  ;;  %v2796_v22 = vld [vmem:[%s5812_s1 + $0x2dc] sm:$0xf0]  ;;  %v2686_v23 = vld [vmem:[%s5812_s1 + $0x1f8] sm:$0xf]  ;;  %v3825_v24 = vld [vmem:[%s5812_s1 + $0x200] sm:$0xf0] }
   0x7   :  { %v2799_v25 = vor.u32 %v3851_v20, %v2796_v22  ;;  %v2782_v26 = vld [vmem:[%s5812_s1 + $0x2b8] sm:$0xf]  ;;  %v3849_v27 = vld [vmem:[%s5812_s1 + $0x2c0] sm:$0xf0]  ;;  %v3824_v28 = vld [vmem:[%s5812_s1 + $0x1fc] sm:$0xf]  ;;  %v2687_v29 = vor.u32 %v3825_v24, %v2686_v23 }
   0x8   :  { %522 = vmatpush.bf16.msra.mxu0 %v2699_v16  ;;  %v2688_v30 = vld [vmem:[%s5812_s1 + $0x204] sm:$0xf0]  ;;  %v3848_v31 = vld [vmem:[%s5812_s1 + $0x2bc] sm:$0xf]  ;;  %v2783_v33 = vor.u32 %v3849_v27, %v2782_v26  ;;  %v2674_v35 = vld [vmem:[%s5812_s1 + $0x1e0] sm:$0xf] }
   0x9   :  { %v2784_v32 = vld [vmem:[%s5812_s1 + $0x2c4] sm:$0xf0]  ;;  %535 = vmatpush.bf16.msra.mxu1 %v2795_v17  ;;  %548 = vmatpush.bf16.msra.mxu2 %v2703_v21  ;;  %v2691_v34 = vor.u32 %v3824_v28, %v2688_v30  ;;  %v3822_v36 = vld [vmem:[%s5812_s1 + $0x1e8] sm:$0xf0]  ;;  %v2770_v37 = vld [vmem:[%s5812_s1 + $0x2a0] sm:$0xf] }
   0xa   :  { %561 = vmatpush.bf16.msra.mxu3 %v2799_v25  ;;  %v2787_v38 = vor.u32 %v3848_v31, %v2784_v32  ;;  %v3846_v39 = vld [vmem:[%s5812_s1 + $0x2a8] sm:$0xf0]  ;;  %v3821_v40 = vld [vmem:[%s5812_s1 + $0x1e4] sm:$0xf]  ;;  %v2676_v41 = vld [vmem:[%s5812_s1 + $0x1ec] sm:$0xf0]  ;;  %v2675_v44 = vor.u32 %v3822_v36, %v2674_v35 }
   0xb   :  { %v3845_v42 = vld [vmem:[%s5812_s1 + $0x2a4] sm:$0xf]  ;;  %v2772_v43 = vld [vmem:[%s5812_s1 + $0x2ac] sm:$0xf0]  ;;  %v2771_v45 = vor.u32 %v3846_v39, %v2770_v37  ;;  %v2679_v46 = vor.u32 %v3821_v40, %v2676_v41  ;;  %v2662_v47 = vld [vmem:[%s5812_s1 + $0x1c8] sm:$0xf] }
   0xc   :  { %523 = vmatpush.bf16.msra.mxu0 %v2687_v29  ;;  %v3819_v48 = vld [vmem:[%s5812_s1 + $0x1d0] sm:$0xf0]  ;;  %v2758_v49 = vld [vmem:[%s5812_s1 + $0x288] sm:$0xf]  ;;  %v2775_v50 = vor.u32 %v3845_v42, %v2772_v43  ;;  %v3818_v52 = vld [vmem:[%s5812_s1 + $0x1cc] sm:$0xf] }
   0xd   :  { %536 = vmatpush.bf16.msra.mxu1 %v2783_v33  ;;  %549 = vmatpush.bf16.msra.mxu2 %v2691_v34  ;;  %v3843_v51 = vld [vmem:[%s5812_s1 + $0x290] sm:$0xf0]  ;;  %v2664_v53 = vld [vmem:[%s5812_s1 + $0x1d4] sm:$0xf0]  ;;  %v3842_v54 = vld [vmem:[%s5812_s1 + $0x28c] sm:$0xf]  ;;  %v2663_v56 = vor.u32 %v3819_v48, %v2662_v47 }
   0xe   :  { %562 = vmatpush.bf16.msra.mxu3 %v2787_v38  ;;  %v2760_v55 = vld [vmem:[%s5812_s1 + $0x294] sm:$0xf0]  ;;  %v2759_v57 = vor.u32 %v3843_v51, %v2758_v49  ;;  %v2667_v58 = vor.u32 %v3818_v52, %v2664_v53  ;;  %v2650_v59 = vld [vmem:[%s5812_s1 + $0x1b0] sm:$0xf]  ;;  %v3816_v60 = vld [vmem:[%s5812_s1 + $0x1b8] sm:$0xf0] }
   0xf   :  { %v2746_v61 = vld [vmem:[%s5812_s1 + $0x270] sm:$0xf]  ;;  %v2763_v62 = vor.u32 %v3842_v54, %v2760_v55  ;;  %v3840_v63 = vld [vmem:[%s5812_s1 + $0x278] sm:$0xf0]  ;;  %v3815_v0 = vld [vmem:[%s5812_s1 + $0x1b4] sm:$0xf]  ;;  %v2651_v4 = vor.u32 %v3816_v60, %v2650_v59 }
  0x10   :  { %524 = vmatpush.bf16.msra.mxu0 %v2675_v44  ;;  %v2652_v1 = vld [vmem:[%s5812_s1 + $0x1bc] sm:$0xf0]  ;;  %v3839_v2 = vld [vmem:[%s5812_s1 + $0x274] sm:$0xf]  ;;  %v2747_v5 = vor.u32 %v3840_v63, %v2746_v61  ;;  %v2638_v7 = vld [vmem:[%s5812_s1 + $0x198] sm:$0xf] }
  0x11   :  { %537 = vmatpush.bf16.msra.mxu1 %v2771_v45  ;;  %550 = vmatpush.bf16.msra.mxu2 %v2679_v46  ;;  %v2748_v3 = vld [vmem:[%s5812_s1 + $0x27c] sm:$0xf0]  ;;  %v2655_v6 = vor.u32 %v3815_v0, %v2652_v1  ;;  %v3813_v8 = vld [vmem:[%s5812_s1 + $0x1a0] sm:$0xf0]  ;;  %v2734_v9 = vld [vmem:[%s5812_s1 + $0x258] sm:$0xf] }
  0x12   :  { %563 = vmatpush.bf16.msra.mxu3 %v2775_v50  ;;  %v2751_v10 = vor.u32 %v3839_v2, %v2748_v3  ;;  %v3837_v11 = vld [vmem:[%s5812_s1 + $0x260] sm:$0xf0]  ;;  %v3812_v12 = vld [vmem:[%s5812_s1 + $0x19c] sm:$0xf]  ;;  %v2640_v13 = vld [vmem:[%s5812_s1 + $0x1a4] sm:$0xf0]  ;;  %v2639_v16 = vor.u32 %v3813_v8, %v2638_v7 }
  0x13   :  { %v3836_v14 = vld [vmem:[%s5812_s1 + $0x25c] sm:$0xf]  ;;  %v2736_v15 = vld [vmem:[%s5812_s1 + $0x264] sm:$0xf0]  ;;  %v2626_v17 = vld [vmem:[%s5812_s1 + $0x180] sm:$0xf]  ;;  %v2735_v19 = vor.u32 %v3837_v11, %v2734_v9  ;;  %v2643_v20 = vor.u32 %v3812_v12, %v2640_v13 }
  0x14   :  { %525 = vmatpush.bf16.msra.mxu0 %v2663_v56  ;;  %v3810_v18 = vld [vmem:[%s5812_s1 + $0x188] sm:$0xf0]  ;;  %v2722_v21 = vld [vmem:[%s5812_s1 + $0x240] sm:$0xf]  ;;  %v3809_v23 = vld [vmem:[%s5812_s1 + $0x184] sm:$0xf]  ;;  %v2739_v24 = vor.u32 %v3836_v14, %v2736_v15 }
  0x15   :  { %538 = vmatpush.bf16.msra.mxu1 %v2759_v57  ;;  %551 = vmatpush.bf16.msra.mxu2 %v2667_v58  ;;  %v3834_v22 = vld [vmem:[%s5812_s1 + $0x248] sm:$0xf0]  ;;  %v2628_v25 = vld [vmem:[%s5812_s1 + $0x18c] sm:$0xf0]  ;;  %v3833_v26 = vld [vmem:[%s5812_s1 + $0x244] sm:$0xf]  ;;  %v2627_v31 = vor.u32 %v3810_v18, %v2626_v17 }
  0x16   :  { %564 = vmatpush.bf16.msra.mxu3 %v2763_v62  ;;  %v2724_v27 = vld [vmem:[%s5812_s1 + $0x24c] sm:$0xf0]  ;;  %v3832_v29 = vld [vmem:[%s5812_s1 + $0x238] sm:$0xf0]  ;;  %v2902_v33 = vld [vmem:[%s5812_s1 + $0xa8] sm:$0xf]  ;;  %v2723_v35 = vor.u32 %v3834_v22, %v2722_v21  ;;  %v2631_v36 = vor.u32 %v3809_v23, %v2628_v25 }
  0x17   :  { %v2718_v28 = vld [vmem:[%s5812_s1 + $0x230] sm:$0xf]  ;;  %v3856_v32 = vld [vmem:[%s5812_s1 + $0x2f8] sm:$0xf0]  ;;  %v3783_v34 = vld [vmem:[%s5812_s1 + $0xb0] sm:$0xf0]  ;;  %v2727_v39 = vor.u32 %v3833_v26, %v2724_v27 }
  0x18   :  { %526 = vmatpush.bf16.msra.mxu0 %v2651_v4  ;;  %v2814_v30 = vld [vmem:[%s5812_s1 + $0x2f0] sm:$0xf]  ;;  %v2998_v37 = vld [vmem:[%s5812_s1 + $0x168] sm:$0xf]  ;;  %v3807_v38 = vld [vmem:[%s5812_s1 + $0x170] sm:$0xf0]  ;;  %v2719_v40 = vor.u32 %v3832_v29, %v2718_v28  ;;  %v2903_v42 = vor.u32 %v3783_v34, %v2902_v33 }
  0x19   :  { %539 = vmatpush.bf16.msra.mxu1 %v2747_v5  ;;  %552 = vmatpush.bf16.msra.mxu2 %v2655_v6  ;;  %v2815_v41 = vor.u32 %v3856_v32, %v2814_v30  ;;  %v2706_v43 = vld [vmem:[%s5812_s1 + $0x218] sm:$0xf]  ;;  %v3829_v44 = vld [vmem:[%s5812_s1 + $0x220] sm:$0xf0]  ;;  %v2999_v46 = vor.u32 %v3807_v38, %v2998_v37  ;;  %v2890_v48 = vld [vmem:[%s5812_s1 + $0x90] sm:$0xf] }
  0x1a   :  { %565 = vmatpush.bf16.msra.mxu3 %v2751_v10  ;;  %v2802_v45 = vld [vmem:[%s5812_s1 + $0x2d8] sm:$0xf]  ;;  %v3853_v47 = vld [vmem:[%s5812_s1 + $0x2e0] sm:$0xf0]  ;;  %v3780_v49 = vld [vmem:[%s5812_s1 + $0x98] sm:$0xf0]  ;;  %v2707_v52 = vor.u32 %v3829_v44, %v2706_v43 }
  0x1b   :  { %v2986_v50 = vld [vmem:[%s5812_s1 + $0x150] sm:$0xf]  ;;  %v3804_v51 = vld [vmem:[%s5812_s1 + $0x158] sm:$0xf0]  ;;  %v2803_v53 = vor.u32 %v3853_v47, %v2802_v45  ;;  %v2891_v54 = vor.u32 %v3780_v49, %v2890_v48  ;;  %v2694_v55 = vld [vmem:[%s5812_s1 + $0x200] sm:$0xf] }
  0x1c   :  { %527 = vmatpush.bf16.msra.mxu0 %v2639_v16  ;;  %v3826_v56 = vld [vmem:[%s5812_s1 + $0x208] sm:$0xf0]  ;;  %v2790_v57 = vld [vmem:[%s5812_s1 + $0x2c0] sm:$0xf]  ;;  %v2987_v58 = vor.u32 %v3804_v51, %v2986_v50  ;;  %v2878_v60 = vld [vmem:[%s5812_s1 + $0x78] sm:$0xf] }
  0x1d   :  { %540 = vmatpush.bf16.msra.mxu1 %v2735_v19  ;;  %553 = vmatpush.bf16.msra.mxu2 %v2643_v20  ;;  %v3850_v59 = vld [vmem:[%s5812_s1 + $0x2c8] sm:$0xf0]  ;;  %v3777_v61 = vld [vmem:[%s5812_s1 + $0x80] sm:$0xf0]  ;;  %v2974_v62 = vld [vmem:[%s5812_s1 + $0x138] sm:$0xf]  ;;  %v2695_v0 = vor.u32 %v3826_v56, %v2694_v55 }
  0x1e   :  { %566 = vmatpush.bf16.msra.mxu3 %v2739_v24  ;;  %v3801_v63 = vld [vmem:[%s5812_s1 + $0x140] sm:$0xf0]  ;;  %v2682_v1 = vld [vmem:[%s5812_s1 + $0x1e8] sm:$0xf]  ;;  %v4318_v2 = vld [vmem:[%s5813_s0] sm:$0x5]  ;;  %v2791_v3 = vor.u32 %v3850_v59, %v2790_v57  ;;  %v2879_v4 = vor.u32 %v3777_v61, %v2878_v60 }
  0x1f   :  { %v3823_v5 = vld [vmem:[%s5812_s1 + $0x1f0] sm:$0xf0]  ;;  %v2778_v6 = vld [vmem:[%s5812_s1 + $0x2a8] sm:$0xf]  ;;  %v4329_v7 = vld [vmem:[%s5813_s0 + $0x4] sm:$0x5]  ;;  %v2975_v8 = vor.u32 %v3801_v63, %v2974_v62 }
  0x20   :  { %528 = vmatpush.bf16.msra.mxu0 %v2627_v31  ;;  %v3847_v9 = vld [vmem:[%s5812_s1 + $0x2b0] sm:$0xf0]  ;;  %v2866_v10 = vld [vmem:[%s5812_s1 + $0x60] sm:$0xf]  ;;  %v3774_v11 = vld [vmem:[%s5812_s1 + $0x68] sm:$0xf0]  ;;  %v2683_v14 = vor.u32 %v3823_v5, %v2682_v1 }
  0x21   :  { %541 = vmatpush.bf16.msra.mxu1 %v2723_v35  ;;  %554 = vmatpush.bf16.msra.mxu2 %v2631_v36  ;;  %v2962_v12 = vld [vmem:[%s5812_s1 + $0x120] sm:$0xf]  ;;  %v3798_v13 = vld [vmem:[%s5812_s1 + $0x128] sm:$0xf0]  ;;  %162 = vst [vmem:[#allocation1] ss:$4 sm:$0xff] %v4318_v2  ;;  %v2779_v16 = vor.u32 %v3847_v9, %v2778_v6  ;;  %v2867_v17 = vor.u32 %v3774_v11, %v2866_v10 }
  0x22   :  { %567 = vmatpush.bf16.msra.mxu3 %v2727_v39  ;;  %v2670_v15 = vld [vmem:[%s5812_s1 + $0x1d0] sm:$0xf]  ;;  %169 = vst [vmem:[#allocation1 + $0x20] ss:$4 sm:$0xff] %v4329_v7  ;;  %v3820_v18 = vld [vmem:[%s5812_s1 + $0x1d8] sm:$0xf0]  ;;  %v2963_v21 = vor.u32 %v3798_v13, %v2962_v12 }
  0x23   :  { %v2766_v19 = vld [vmem:[%s5812_s1 + $0x290] sm:$0xf]  ;;  %v3844_v20 = vld [vmem:[%s5812_s1 + $0x298] sm:$0xf0]  ;;  %v2854_v22 = vld [vmem:[%s5812_s1 + $0x48] sm:$0xf]  ;;  %v2671_v28 = vor.u32 %v3820_v18, %v2670_v15 }
  0x24   :  { %573 = vmatpush.bf16.msrb.mxu0 %v2719_v40  ;;  %v3771_v23 = vld [vmem:[%s5812_s1 + $0x50] sm:$0xf0]  ;;  %v2950_v24 = vld [vmem:[%s5812_s1 + $0x108] sm:$0xf]  ;;  %v2658_v26 = vld [vmem:[%s5812_s1 + $0x1b8] sm:$0xf]  ;;  %v2767_v33 = vor.u32 %v3844_v20, %v2766_v19 }
  0x25   :  { %586 = vmatpush.bf16.msrb.mxu1 %v2815_v41  ;;  %944 = vmatpush.bf16.msrb.mxu2 %v2903_v42  ;;  %v3795_v25 = vld [vmem:[%s5812_s1 + $0x110] sm:$0xf0]  ;;  %v3817_v27 = vld [vmem:[%s5812_s1 + $0x1c0] sm:$0xf0]  ;;  %v2754_v29 = vld [vmem:[%s5812_s1 + $0x278] sm:$0xf]  ;;  %v2855_v34 = vor.u32 %v3771_v23, %v2854_v22 }
  0x26   :  { %957 = vmatpush.bf16.msrb.mxu3 %v2999_v46  ;;  %v3841_v30 = vld [vmem:[%s5812_s1 + $0x280] sm:$0xf0]  ;;  %v2842_v31 = vld [vmem:[%s5812_s1 + $0x30] sm:$0xf]  ;;  %v3768_v32 = vld [vmem:[%s5812_s1 + $0x38] sm:$0xf0]  ;;  %v2951_v39 = vor.u32 %v3795_v25, %v2950_v24  ;;  %v2659_v44 = vor.u32 %v3817_v27, %v2658_v26 }
  0x27   :  { %v2938_v35 = vld [vmem:[%s5812_s1 + $0xf0] sm:$0xf]  ;;  %v3792_v36 = vld [vmem:[%s5812_s1 + $0xf8] sm:$0xf0]  ;;  %v4399_v37 = vld [vmem:[%s5813_s0 + $0x8] sm:$0x5]  ;;  %v2755_v45 = vor.u32 %v3841_v30, %v2754_v29  ;;  %v2843_v46 = vor.u32 %v3768_v32, %v2842_v31 }
  0x28   :  { %574 = vmatpush.bf16.msrb.mxu0 %v2707_v52  ;;  %v4404_v38 = vld [vmem:[%s5813_s0 + $0xc] sm:$0x5]  ;;  %v163_v40 = vld.sshfl [vmem:[#allocation1] sm:$0xff pattern:$0x73625140]  ;;  %v2939_v47 = vor.u32 %v3792_v36, %v2938_v35  ;;  %vm239_vm4 = vcmask 1045509  }
  0x29   :  { %587 = vmatpush.bf16.msrb.mxu1 %v2803_v53  ;;  %945 = vmatpush.bf16.msrb.mxu2 %v2891_v54  ;;  %v165_v41 = vld.sshfl [vmem:[#allocation1 + $0x8] sm:$0xff pattern:$0x73625140]  ;;  %v4406_v42 = vld.sshfl [vmem:[#allocation1 + $0x20] sm:$0xff pattern:$0x73625140] }
  0x2a   :  { %958 = vmatpush.bf16.msrb.mxu3 %v2987_v58  ;;  %v4408_v43 = vld.sshfl [vmem:[#allocation1 + $0x28] sm:$0xff pattern:$0x73625140]  ;;  %175 = vst [vmem:[#allocation1] ss:$4 sm:$0xff] %v4399_v37  ;;  %v211_v9 = vunpack.c.l.b16 %v165_v41  ;;  %v212_v13 = vunpack.c.l.b16 %v4406_v42  ;;  %vm242_vm5 = vcmask 1046534  }
  0x2b   :  { %181 = vst [vmem:[#allocation1 + $0x20] ss:$4 sm:$0xff] %v4404_v38  ;;  %v2646_v48 = vld [vmem:[%s5812_s1 + $0x1a0] sm:$0xf]  ;;  %v3814_v49 = vld [vmem:[%s5812_s1 + $0x1a8] sm:$0xf0]  ;;  %v213_v23 = vunpack.c.l.b16 %v4408_v43 }
  0x2c   :  { %575 = vmatpush.bf16.msrb.mxu0 %v2695_v0  ;;  %v2742_v50 = vld [vmem:[%s5812_s1 + $0x260] sm:$0xf]  ;;  %v3838_v51 = vld [vmem:[%s5812_s1 + $0x268] sm:$0xf0]  ;;  %v2830_v52 = vld [vmem:[%s5812_s1 + $0x18] sm:$0xf]  ;;  %v2647_v54 = vor.u32 %v3814_v49, %v2646_v48  ;;  %v210_v0 = vunpack.c.l.b16 %v163_v40 }
  0x2d   :  { %588 = vmatpush.bf16.msrb.mxu1 %v2791_v3  ;;  %946 = vmatpush.bf16.msrb.mxu2 %v2879_v4  ;;  %v4430_v53 = vld [vmem:[%s5813_s0 + $0x10] sm:$0x5]  ;;  %v3765_v55 = vld [vmem:[%s5812_s1 + $0x20] sm:$0xf0]  ;;  %v2926_v56 = vld [vmem:[%s5812_s1 + $0xd8] sm:$0xf]  ;;  %v2743_v59 = vor.u32 %v3838_v51, %v2742_v50 }
  0x2e   :  { %959 = vmatpush.bf16.msrb.mxu3 %v2975_v8  ;;  %v3789_v57 = vld [vmem:[%s5812_s1 + $0xe0] sm:$0xf0]  ;;  %v4444_v58 = vld [vmem:[%s5813_s0 + $0x14] sm:$0x5]  ;;  %v2831_v60 = vor.u32 %v3765_v55, %v2830_v52  ;;  %v2634_v61 = vld [vmem:[%s5812_s1 + $0x188] sm:$0xf] }
  0x2f   :  { %v3811_v62 = vld [vmem:[%s5812_s1 + $0x190] sm:$0xf0]  ;;  %v2730_v63 = vld [vmem:[%s5812_s1 + $0x248] sm:$0xf]  ;;  %v2927_v1 = vor.u32 %v3789_v57, %v2926_v56  ;;  %v2818_v4 = vld [vmem:[%s5812_s1] sm:$0xf] }
  0x30   :  { %576 = vmatpush.bf16.msrb.mxu0 %v2683_v14  ;;  %v3835_v3 = vld [vmem:[%s5812_s1 + $0x250] sm:$0xf0]  ;;  %v3762_v5 = vld [vmem:[%s5812_s1 + $0x8] sm:$0xf0]  ;;  %v2635_v12 = vor.u32 %v3811_v62, %v2634_v61  ;;  %v226_v19 = vrot.slane %v210_v0, 1  ;;  %v247_v25 = vrot.slane %v211_v9, 1 }
  0x31   :  { %589 = vmatpush.bf16.msrb.mxu1 %v2779_v16  ;;  %947 = vmatpush.bf16.msrb.mxu2 %v2867_v17  ;;  %v176_v6 = vld.sshfl [vmem:[#allocation1] sm:$0xff pattern:$0x73625140]  ;;  %v178_v8 = vld.sshfl [vmem:[#allocation1 + $0x8] sm:$0xff pattern:$0x73625140]  ;;  %v2731_v14 = vor.u32 %v3835_v3, %v2730_v63  ;;  %v2819_v15 = vor.u32 %v3762_v5, %v2818_v4 }
  0x32   :  { %960 = vmatpush.bf16.msrb.mxu3 %v2963_v21  ;;  %v182_v10 = vld.sshfl [vmem:[#allocation1 + $0x20] sm:$0xff pattern:$0x73625140]  ;;  %v184_v11 = vld.sshfl [vmem:[#allocation1 + $0x28] sm:$0xff pattern:$0x73625140]  ;;  %v214_v18 = vunpack.c.l.b16 %v176_v6  ;;  %v215_v20 = vunpack.c.l.b16 %v178_v8  ;;  %v228_v30 = vsel %vm227_vm0, %v212_v13, %v226_v19  ;;  %v248_v32 = vsel %vm227_vm0, %v213_v23, %v247_v25 }
  0x33   :  { %187 = vst [vmem:[#allocation1] ss:$4 sm:$0xff] %v4430_v53  ;;  %v2914_v16 = vld [vmem:[%s5812_s1 + $0xc0] sm:$0xf]  ;;  %v3786_v17 = vld [vmem:[%s5812_s1 + $0xc8] sm:$0xf0]  ;;  %v216_v22 = vunpack.c.l.b16 %v182_v10  ;;  %v217_v24 = vunpack.c.l.b16 %v184_v11 }
  0x34   :  { %577 = vmatpush.bf16.msrb.mxu0 %v2671_v28  ;;  %193 = vst [vmem:[#allocation1 + $0x20] ss:$4 sm:$0xff] %v4444_v58  ;;  %v2915_v21 = vor.u32 %v3786_v17, %v2914_v16  ;;  %v229_v26 = vrot.slane %v214_v18, 7  ;;  %v249_v27 = vrot.slane %v215_v20, 7  ;;  %v4477_v28 = vld [vmem:[%s5813_s0 + $0x18] sm:$0x5] }
  0x35   :  { %590 = vmatpush.bf16.msrb.mxu1 %v2767_v33  ;;  %948 = vmatpush.bf16.msrb.mxu2 %v2855_v34  ;;  %v4482_v29 = vld [vmem:[%s5813_s0 + $0x1c] sm:$0x5]  ;;  %v232_v31 = vrot.slane %v216_v22, 6  ;;  %v251_v33 = vrot.slane %v217_v24, 6  ;;  %vm245_vm6 = vcmask 1047559   ;;  %vm2525_vm7 = vcmask 523264  }
  0x36   :  { %961 = vmatpush.bf16.msrb.mxu3 %v2951_v39  ;;  %v231_v42 = vsel %vm230_vm1, %v229_v26, %v228_v30  ;;  %v250_v43 = vsel %vm230_vm1, %v249_v27, %v248_v32  ;;  %v3782_v3 = vld [vmem:[%s5812_s1 + $0xac] sm:$0xf]  ;;  %v2904_v4 = vld [vmem:[%s5812_s1 + $0xb4] sm:$0xf0]  ;;  %v2910_v11 = vld [vmem:[%s5812_s1 + $0xb0] sm:$0xf] }
  0x37   :  { %v234_v48 = vsel %vm233_vm2, %v232_v31, %v231_v42  ;;  %v252_v49 = vsel %vm233_vm2, %v251_v33, %v250_v43  ;;  %v3806_v8 = vld [vmem:[%s5812_s1 + $0x16c] sm:$0xf]  ;;  %v3779_v18 = vld [vmem:[%s5812_s1 + $0x94] sm:$0xf]  ;;  %v2892_v19 = vld [vmem:[%s5812_s1 + $0x9c] sm:$0xf0]  ;;  %v2907_v22 = vor.u32 %v3782_v3, %v2904_v4 }
  0x38   :  { %578 = vmatpush.bf16.msrb.mxu0 %v2659_v44  ;;  %v3803_v24 = vld [vmem:[%s5812_s1 + $0x154] sm:$0xf]  ;;  %v2988_v25 = vld [vmem:[%s5812_s1 + $0x15c] sm:$0xf0]  ;;  %v2898_v26 = vld [vmem:[%s5812_s1 + $0x98] sm:$0xf] }
  0x39   :  { %591 = vmatpush.bf16.msrb.mxu1 %v2755_v45  ;;  %949 = vmatpush.bf16.msrb.mxu2 %v2843_v46  ;;  %v3781_v31 = vld [vmem:[%s5812_s1 + $0xa0] sm:$0xf0]  ;;  %v2994_v32 = vld [vmem:[%s5812_s1 + $0x158] sm:$0xf]  ;;  %v2991_v42 = vor.u32 %v3803_v24, %v2988_v25  ;;  %v2880_v43 = vld [vmem:[%s5812_s1 + $0x84] sm:$0xf0] }
  0x3a   :  { %962 = vmatpush.bf16.msrb.mxu3 %v2939_v47  ;;  %v188_v34 = vld.sshfl [vmem:[#allocation1] sm:$0xff pattern:$0x73625140]  ;;  %v190_v35 = vld.sshfl [vmem:[#allocation1 + $0x8] sm:$0xff pattern:$0x73625140] }
  0x3b   :  { %v194_v36 = vld.sshfl [vmem:[#allocation1 + $0x20] sm:$0xff pattern:$0x73625140]  ;;  %v196_v39 = vld.sshfl [vmem:[#allocation1 + $0x28] sm:$0xff pattern:$0x73625140]  ;;  %v218_v40 = vunpack.c.l.b16 %v188_v34  ;;  %v219_v41 = vunpack.c.l.b16 %v190_v35 }
  0x3c   :  { %579 = vmatpush.bf16.msrb.mxu0 %v2647_v54  ;;  %199 = vst [vmem:[#allocation1] ss:$4 sm:$0xff] %v4477_v28  ;;  %v220_v44 = vunpack.c.l.b16 %v194_v36  ;;  %v221_v45 = vunpack.c.l.b16 %v196_v39  ;;  %v3805_v33 = vld [vmem:[%s5812_s1 + $0x160] sm:$0xf0]  ;;  %v3776_v36 = vld [vmem:[%s5812_s1 + $0x7c] sm:$0xf] }
  0x3d   :  { %592 = vmatpush.bf16.msrb.mxu1 %v2743_v59  ;;  %950 = vmatpush.bf16.msrb.mxu2 %v2831_v60  ;;  %205 = vst [vmem:[#allocation1 + $0x20] ss:$4 sm:$0xff] %v4482_v29  ;;  %v235_v46 = vrot.slane %v218_v40, 5  ;;  %v253_v47 = vrot.slane %v219_v41, 5  ;;  %v2895_v41 = vor.u32 %v3779_v18, %v2892_v19  ;;  %v3799_v3 = vld [vmem:[%s5812_s1 + $0x130] sm:$0xf0] }
  0x3e   :  { %963 = vmatpush.bf16.msrb.mxu3 %v2927_v1  ;;  %v238_v50 = vrot.slane %v220_v44, 4  ;;  %v255_v51 = vrot.slane %v221_v45, 4  ;;  %v3800_v44 = vld [vmem:[%s5812_s1 + $0x13c] sm:$0xf]  ;;  %v2899_v45 = vor.u32 %v3781_v31, %v2898_v26  ;;  %v2862_v24 = vld [vmem:[%s5812_s1 + $0x50] sm:$0xf] }
  0x3f   :  { %v237_v52 = vsel %vm236_vm3, %v235_v46, %v234_v48  ;;  %v254_v54 = vsel %vm236_vm3, %v253_v47, %v252_v49  ;;  %v2995_v46 = vor.u32 %v3805_v33, %v2994_v32  ;;  %v2976_v47 = vld [vmem:[%s5812_s1 + $0x144] sm:$0xf0]  ;;  %v2886_v48 = vld [vmem:[%s5812_s1 + $0x80] sm:$0xf]  ;;  %v3778_v49 = vld [vmem:[%s5812_s1 + $0x88] sm:$0xf0] }
  0x40   :  { %580 = vmatpush.bf16.msrb.mxu0 %v2635_v12  ;;  %v240_v63 = vsel %vm239_vm4, %v238_v50, %v237_v52  ;;  %v256_v1 = vsel %vm239_vm4, %v255_v51, %v254_v54  ;;  %v3802_v50 = vld [vmem:[%s5812_s1 + $0x148] sm:$0xf0]  ;;  %v2883_v54 = vor.u32 %v3776_v36, %v2880_v43  ;;  %v3772_v25 = vld [vmem:[%s5812_s1 + $0x58] sm:$0xf0]  ;;  %v2958_v26 = vld [vmem:[%s5812_s1 + $0x110] sm:$0xf] }
  0x41   :  { %593 = vmatpush.bf16.msrb.mxu1 %v2731_v14  ;;  %951 = vmatpush.bf16.msrb.mxu2 %v2819_v15  ;;  %v3006_v14 = vld [vmem:[%s5812_s1 + $0x170] sm:$0xf]  ;;  %v3808_v15 = vld [vmem:[%s5812_s1 + $0x178] sm:$0xf0]  ;;  %v3767_v31 = vld [vmem:[%s5812_s1 + $0x34] sm:$0xf] }
  0x42   :  { %964 = vmatpush.bf16.msrb.mxu3 %v2915_v21  ;;  %v3007_v30 = vor.u32 %v3808_v15, %v3006_v14  ;;  %v3791_v36 = vld [vmem:[%s5812_s1 + $0xf4] sm:$0xf]  ;;  %v2940_v43 = vld [vmem:[%s5812_s1 + $0xfc] sm:$0xf0] }
  0x43   :  { %v200_v55 = vld.sshfl [vmem:[#allocation1] sm:$0xff pattern:$0x73625140]  ;;  %v202_v56 = vld.sshfl [vmem:[#allocation1 + $0x8] sm:$0xff pattern:$0x73625140] }
  0x44   :  { %v206_v57 = vld.sshfl [vmem:[#allocation1 + $0x20] sm:$0xff pattern:$0x73625140]  ;;  %v222_v59 = vunpack.c.l.b16 %v200_v55  ;;  %v208_v60 = vld.sshfl [vmem:[#allocation1 + $0x28] sm:$0xff pattern:$0x73625140]  ;;  %v223_v61 = vunpack.c.l.b16 %v202_v56  ;;  %v2979_v55 = vor.u32 %v3800_v44, %v2976_v47 }
  0x45   :  { %v224_v62 = vunpack.c.l.b16 %v206_v57  ;;  %v225_v0 = vunpack.c.l.b16 %v208_v60  ;;  %599 = vst [vmem:[#allocation1] ss:$4 sm:$0xff] %v4318_v2  ;;  %v3000_v2 = vld [vmem:[%s5812_s1 + $0x174] sm:$0xf0]  ;;  %v2868_v56 = vld [vmem:[%s5812_s1 + $0x6c] sm:$0xf0] }
  0x46   :  { %v241_v5 = vrot.slane %v222_v59, 3  ;;  %v257_v6 = vrot.slane %v223_v61, 3  ;;  %605 = vst [vmem:[#allocation1 + $0x20] ss:$4 sm:$0xff] %v4329_v7  ;;  %v3784_v7 = vld [vmem:[%s5812_s1 + $0xb8] sm:$0xf0]  ;;  %v3003_v23 = vor.u32 %v3806_v8, %v3000_v2  ;;  %v2887_v59 = vor.u32 %v3778_v49, %v2886_v48 }
  0x47   :  { %v244_v9 = vrot.slane %v224_v62, 2  ;;  %v259_v10 = vrot.slane %v225_v0, 2  ;;  %v2911_v27 = vor.u32 %v3784_v7, %v2910_v11  ;;  %v3797_v57 = vld [vmem:[%s5812_s1 + $0x124] sm:$0xf]  ;;  %v2964_v61 = vld [vmem:[%s5812_s1 + $0x12c] sm:$0xf0] }
  0x48   :  { %v243_v12 = vsel %vm242_vm5, %v241_v5, %v240_v63  ;;  %v258_v13 = vsel %vm242_vm5, %v257_v6, %v256_v1  ;;  %v2874_v62 = vld [vmem:[%s5812_s1 + $0x68] sm:$0xf]  ;;  %v3775_v63 = vld [vmem:[%s5812_s1 + $0x70] sm:$0xf0]  ;;  %v2856_v2 = vld [vmem:[%s5812_s1 + $0x54] sm:$0xf0] }
  0x49   :  { %v246_v16 = vsel %vm245_vm6, %v244_v9, %v243_v12  ;;  %v260_v17 = vsel %vm245_vm6, %v259_v10, %v258_v13  ;;  %v2970_v1 = vld [vmem:[%s5812_s1 + $0x128] sm:$0xf]  ;;  %v3770_v10 = vld [vmem:[%s5812_s1 + $0x4c] sm:$0xf]  ;;  %v2952_v12 = vld [vmem:[%s5812_s1 + $0x114] sm:$0xf0]  ;;  %v2875_v19 = vor.u32 %v3775_v63, %v2874_v62 }
  0x4a   :  { %v4532_v20 = vpack.c.b16 %v246_v16, %v246_v16  ;;  %v4534_v21 = vpack.c.b16 %v260_v17, %v260_v17  ;;  %v3794_v11 = vld [vmem:[%s5812_s1 + $0x10c] sm:$0xf]  ;;  %v2967_v16 = vor.u32 %v3797_v57, %v2964_v61  ;;  %v2859_v33 = vor.u32 %v3770_v10, %v2856_v2  ;;  %v2850_v44 = vld [vmem:[%s5812_s1 + $0x38] sm:$0xf]  ;;  %v3793_v47 = vld [vmem:[%s5812_s1 + $0x100] sm:$0xf0] }
  0x4b   :  { %v3764_v49 = vld [vmem:[%s5812_s1 + $0x1c] sm:$0xf] }
  0x4c   :  { %529 = vmatmul.bf16.vlgmr.msra.gmra.mxu0 %v4532_v20  ;;  %542 = vmatmul.bf16.vlgmr.msra.gmra.mxu1 %v4534_v21  ;;  %v4556_v34 = vld.sshfl [vmem:[#allocation1] sm:$0xff pattern:$0x73625140]  ;;  %v4558_v35 = vld.sshfl [vmem:[#allocation1 + $0x8] sm:$0xff pattern:$0x73625140] }
  0x4d   :  { %555 = vmatmul.bf16.vlgmr.msra.gmra.mxu2 %v4532_v20  ;;  %568 = vmatmul.bf16.vlgmr.msra.gmra.mxu3 %v4534_v21  ;;  %v606_v39 = vld.sshfl [vmem:[#allocation1 + $0x20] sm:$0xff pattern:$0x73625140]  ;;  %v608_v40 = vld.sshfl [vmem:[#allocation1 + $0x28] sm:$0xff pattern:$0x73625140]  ;;  %v640_v8 = vunpack.c.l.b16 %v4556_v34  ;;  %v641_v9 = vunpack.c.l.b16 %v4558_v35  ;;  %v2955_v34 = vor.u32 %v3794_v11, %v2952_v12 }
  0x4e   :  { %970 = vmatpush.bf16.msra.mxu0 %v2907_v22  ;;  %983 = vmatpush.bf16.msra.mxu1 %v3003_v23  ;;  %610 = vst [vmem:[#allocation1] ss:$4 sm:$0xff] %v4399_v37  ;;  %v2982_v37 = vld [vmem:[%s5812_s1 + $0x140] sm:$0xf]  ;;  %v642_v51 = vunpack.c.l.b16 %v606_v39  ;;  %v643_v52 = vunpack.c.l.b16 %v608_v40  ;;  %v2971_v22 = vor.u32 %v3799_v3, %v2970_v1  ;;  %v2916_v12 = vld [vmem:[%s5812_s1 + $0xcc] sm:$0xf0] }
  0x4f   :  { %996 = vmatpush.bf16.msra.mxu2 %v2911_v27  ;;  %1009 = vmatpush.bf16.msra.mxu3 %v3007_v30  ;;  %615 = vst [vmem:[#allocation1 + $0x20] ss:$4 sm:$0xff] %v4404_v38  ;;  %v3773_v38 = vld [vmem:[%s5812_s1 + $0x64] sm:$0xf]  ;;  %v2983_v60 = vor.u32 %v3802_v50, %v2982_v37  ;;  %v2844_v35 = vld [vmem:[%s5812_s1 + $0x3c] sm:$0xf0] }
  0x50   :  { %v656_v0 = vrot.slane %v642_v51, 7  ;;  %v670_v4 = vrot.slane %v643_v52, 7  ;;  %v2871_v15 = vor.u32 %v3773_v38, %v2868_v56  ;;  %v2847_v48 = vor.u32 %v3767_v31, %v2844_v35  ;;  %v2928_v37 = vld [vmem:[%s5812_s1 + $0xe4] sm:$0xf0]  ;;  %v2838_v38 = vld [vmem:[%s5812_s1 + $0x20] sm:$0xf] }
  0x51   :  { %v3766_v56 = vld [vmem:[%s5812_s1 + $0x28] sm:$0xf0]  ;;  %v2934_v3 = vld [vmem:[%s5812_s1 + $0xe0] sm:$0xf] }
  0x52   :  { %971 = vmatpush.bf16.msra.mxu0 %v2895_v41  ;;  %984 = vmatpush.bf16.msra.mxu1 %v2991_v42  ;;  %v657_v27 = vsel %vm227_vm0, %v656_v0, %v640_v8  ;;  %v671_v30 = vsel %vm227_vm0, %v670_v4, %v641_v9  ;;  %v2863_v41 = vor.u32 %v3772_v25, %v2862_v24  ;;  %v3790_v4 = vld [vmem:[%s5812_s1 + $0xe8] sm:$0xf0]  ;;  %v2820_v8 = vld [vmem:[%s5812_s1 + $0xc] sm:$0xf0]  ;;  %v3879_v24 = vld [vmem:[%s5812_s1 + $0x3b0] sm:$0xf0] }
  0x53   :  { %997 = vmatpush.bf16.msra.mxu2 %v2899_v45  ;;  %1010 = vmatpush.bf16.msra.mxu3 %v2995_v46  ;;  %v3769_v45 = vld [vmem:[%s5812_s1 + $0x40] sm:$0xf0]  ;;  %v2946_v46 = vld [vmem:[%s5812_s1 + $0xf8] sm:$0xf]  ;;  %v3254_v25 = vld [vmem:[%s5812_s1 + $0x468] sm:$0xf] }
  0x54   :  { %v2851_v62 = vor.u32 %v3769_v45, %v2850_v44  ;;  %v2947_v63 = vor.u32 %v3793_v47, %v2946_v46  ;;  %v3878_v46 = vld [vmem:[%s5812_s1 + $0x3ac] sm:$0xf]  ;;  %v3160_v47 = vld [vmem:[%s5812_s1 + $0x3b4] sm:$0xf0] }
  0x55   :  { %v611_v5 = vld.sshfl [vmem:[#allocation1] sm:$0xff pattern:$0x73625140]  ;;  %v613_v6 = vld.sshfl [vmem:[#allocation1 + $0x8] sm:$0xff pattern:$0x73625140] }
  0x56   :  { %972 = vmatpush.bf16.msra.mxu0 %v2883_v54  ;;  %985 = vmatpush.bf16.msra.mxu1 %v2979_v55  ;;  %v616_v13 = vld.sshfl [vmem:[#allocation1 + $0x20] sm:$0xff pattern:$0x73625140]  ;;  %v618_v7 = vld.sshfl [vmem:[#allocation1 + $0x28] sm:$0xff pattern:$0x73625140]  ;;  %v644_v14 = vunpack.c.l.b16 %v611_v5  ;;  %v645_v17 = vunpack.c.l.b16 %v613_v6  ;;  %v2943_v55 = vor.u32 %v3791_v36, %v2940_v43 }
  0x57   :  { %998 = vmatpush.bf16.msra.mxu2 %v2887_v59  ;;  %1011 = vmatpush.bf16.msra.mxu3 %v2983_v60  ;;  %620 = vst [vmem:[#allocation1] ss:$4 sm:$0xff] %v4430_v53  ;;  %v646_v18 = vunpack.c.l.b16 %v616_v13  ;;  %v647_v23 = vunpack.c.l.b16 %v618_v7  ;;  %v3796_v53 = vld [vmem:[%s5812_s1 + $0x118] sm:$0xf0] }
  0x58   :  { %625 = vst [vmem:[#allocation1 + $0x20] ss:$4 sm:$0xff] %v4444_v58  ;;  %v658_v32 = vrot.slane %v644_v14, 6  ;;  %v672_v58 = vrot.slane %v645_v17, 6  ;;  %v2959_v42 = vor.u32 %v3796_v53, %v2958_v26  ;;  %v2839_v14 = vor.u32 %v3766_v56, %v2838_v38  ;;  %v3763_v17 = vld [vmem:[%s5812_s1 + $0x10] sm:$0xf0] }
  0x59   :  { %v660_v39 = vrot.slane %v646_v18, 5  ;;  %v674_v40 = vrot.slane %v647_v23, 5  ;;  %v2922_v18 = vld [vmem:[%s5812_s1 + $0xc8] sm:$0xf]  ;;  %v3903_v26 = vld [vmem:[%s5812_s1 + $0x470] sm:$0xf0] }
  0x5a   :  { %973 = vmatpush.bf16.msra.mxu0 %v2871_v15  ;;  %986 = vmatpush.bf16.msra.mxu1 %v2967_v16  ;;  %v659_v52 = vsel %vm230_vm1, %v658_v32, %v657_v27  ;;  %v673_v54 = vsel %vm230_vm1, %v672_v58, %v671_v30  ;;  %v2935_v15 = vor.u32 %v3790_v4, %v2934_v3  ;;  %v2826_v16 = vld [vmem:[%s5812_s1 + $0x8] sm:$0xf]  ;;  %v3242_v38 = vld [vmem:[%s5812_s1 + $0x450] sm:$0xf]  ;;  %v3900_v56 = vld [vmem:[%s5812_s1 + $0x458] sm:$0xf0] }
  0x5b   :  { %999 = vmatpush.bf16.msra.mxu2 %v2875_v19  ;;  %1012 = vmatpush.bf16.msra.mxu3 %v2971_v22  ;;  %v661_v5 = vsel %vm233_vm2, %v660_v39, %v659_v52  ;;  %v675_v6 = vsel %vm233_vm2, %v674_v40, %v673_v54  ;;  %v3787_v19 = vld [vmem:[%s5812_s1 + $0xd0] sm:$0xf0]  ;;  %v3158_v22 = vld [vmem:[%s5812_s1 + $0x3a8] sm:$0xf]  ;;  %v2827_v58 = vor.u32 %v3763_v17, %v2826_v16  ;;  %v3244_v4 = vld [vmem:[%s5812_s1 + $0x45c] sm:$0xf0] }
  0x5c   :  { %581 = vmatmul.bf16.vlgmr.msrb.gmra.mxu0 %v4532_v20  ;;  %594 = vmatmul.bf16.vlgmr.msrb.gmra.mxu1 %v4534_v21  ;;  %v2832_v20 = vld [vmem:[%s5812_s1 + $0x24] sm:$0xf0]  ;;  %v3788_v21 = vld [vmem:[%s5812_s1 + $0xdc] sm:$0xf]  ;;  %v3159_v40 = vor.u32 %v3879_v24, %v3158_v22  ;;  %v3899_v3 = vld [vmem:[%s5812_s1 + $0x454] sm:$0xf] }
  0x5d   :  { %v2835_v2 = vor.u32 %v3764_v49, %v2832_v20  ;;  %v2931_v11 = vor.u32 %v3788_v21, %v2928_v37  ;;  %v3902_v20 = vld [vmem:[%s5812_s1 + $0x46c] sm:$0xf]  ;;  %v3256_v21 = vld [vmem:[%s5812_s1 + $0x474] sm:$0xf0]  ;;  %v3122_v16 = vld [vmem:[%s5812_s1 + $0x360] sm:$0xf] }
  0x5e   :  { %v621_v50 = vld.sshfl [vmem:[#allocation1] sm:$0xff pattern:$0x73625140]  ;;  %v623_v51 = vld.sshfl [vmem:[#allocation1 + $0x8] sm:$0xff pattern:$0x73625140]  ;;  %974 = vmatpush.bf16.msra.mxu0 %v2859_v33  ;;  %987 = vmatpush.bf16.msra.mxu1 %v2955_v34  ;;  %v2923_v33 = vor.u32 %v3787_v19, %v2922_v18 }
  0x5f   :  { %v626_v57 = vld.sshfl [vmem:[#allocation1 + $0x20] sm:$0xff pattern:$0x73625140]  ;;  %v628_v59 = vld.sshfl [vmem:[#allocation1 + $0x28] sm:$0xff pattern:$0x73625140]  ;;  %v648_v60 = vunpack.c.l.b16 %v621_v50  ;;  %v649_v61 = vunpack.c.l.b16 %v623_v51  ;;  %1000 = vmatpush.bf16.msra.mxu2 %v2863_v41  ;;  %1013 = vmatpush.bf16.msra.mxu3 %v2959_v42  ;;  %v3255_v41 = vor.u32 %v3903_v26, %v3254_v25 }
  0x60   :  { %630 = vst [vmem:[#allocation1] ss:$4 sm:$0xff] %v4477_v28  ;;  %v650_v0 = vunpack.c.l.b16 %v626_v57  ;;  %v651_v1 = vunpack.c.l.b16 %v628_v59  ;;  %v3761_v28 = vld [vmem:[%s5812_s1 + $0x4] sm:$0xf]  ;;  %v3146_v51 = vld [vmem:[%s5812_s1 + $0x390] sm:$0xf] }
  0x61   :  { %635 = vst [vmem:[#allocation1 + $0x20] ss:$4 sm:$0xff] %v4482_v29  ;;  %v662_v9 = vrot.slane %v648_v60, 4  ;;  %v676_v10 = vrot.slane %v649_v61, 4  ;;  %v3785_v29 = vld [vmem:[%s5812_s1 + $0xc4] sm:$0xf]  ;;  %v2823_v23 = vor.u32 %v3761_v28, %v2820_v8  ;;  %v3163_v60 = vor.u32 %v3878_v46, %v3160_v47 }
  0x62   :  { %975 = vmatpush.bf16.msra.mxu0 %v2847_v48  ;;  %988 = vmatpush.bf16.msra.mxu1 %v2943_v55  ;;  %v664_v13 = vrot.slane %v650_v0, 3  ;;  %v678_v7 = vrot.slane %v651_v1, 3  ;;  %v2919_v30 = vor.u32 %v3785_v29, %v2916_v12  ;;  %v3876_v55 = vld [vmem:[%s5812_s1 + $0x398] sm:$0xf0]  ;;  %v3259_v61 = vor.u32 %v3902_v20, %v3256_v21  ;;  %v3148_v1 = vld [vmem:[%s5812_s1 + $0x39c] sm:$0xf0] }
  0x63   :  { %1001 = vmatpush.bf16.msra.mxu2 %v2851_v62  ;;  %1014 = vmatpush.bf16.msra.mxu3 %v2947_v63  ;;  %v663_v53 = vsel %vm236_vm3, %v662_v9, %v661_v5  ;;  %v677_v27 = vsel %vm236_vm3, %v676_v10, %v675_v6  ;;  %v3875_v62 = vld [vmem:[%s5812_s1 + $0x394] sm:$0xf]  ;;  %v3147_v5 = vor.u32 %v3876_v55, %v3146_v51  ;;  %v3134_v28 = vld [vmem:[%s5812_s1 + $0x378] sm:$0xf]  ;;  %v3873_v8 = vld [vmem:[%s5812_s1 + $0x380] sm:$0xf0] }
  0x64   :  { %v665_v43 = vsel %vm239_vm4, %v664_v13, %v663_v53  ;;  %v679_v45 = vsel %vm239_vm4, %v678_v7, %v677_v27  ;;  %v3243_v6 = vor.u32 %v3900_v56, %v3242_v38  ;;  %v3230_v9 = vld [vmem:[%s5812_s1 + $0x438] sm:$0xf]  ;;  %v3897_v10 = vld [vmem:[%s5812_s1 + $0x440] sm:$0xf0]  ;;  %v3872_v29 = vld [vmem:[%s5812_s1 + $0x37c] sm:$0xf] }
  0x65   :  { %v3136_v12 = vld [vmem:[%s5812_s1 + $0x384] sm:$0xf0]  ;;  %v3896_v13 = vld [vmem:[%s5812_s1 + $0x43c] sm:$0xf]  ;;  %v3870_v17 = vld [vmem:[%s5812_s1 + $0x368] sm:$0xf0] }
  0x66   :  { %976 = vmatpush.bf16.msra.mxu0 %v2835_v2  ;;  %989 = vmatpush.bf16.msra.mxu1 %v2931_v11  ;;  %v3151_v2 = vor.u32 %v3875_v62, %v3148_v1  ;;  %v3247_v11 = vor.u32 %v3899_v3, %v3244_v4  ;;  %v3232_v7 = vld [vmem:[%s5812_s1 + $0x444] sm:$0xf0]  ;;  %v3218_v18 = vld [vmem:[%s5812_s1 + $0x420] sm:$0xf]  ;;  %v3894_v19 = vld [vmem:[%s5812_s1 + $0x428] sm:$0xf0]  ;;  %v3139_v22 = vor.u32 %v3872_v29, %v3136_v12 }
  0x67   :  { %v631_v31 = vld.sshfl [vmem:[#allocation1] sm:$0xff pattern:$0x73625140]  ;;  %v633_v32 = vld.sshfl [vmem:[#allocation1 + $0x8] sm:$0xff pattern:$0x73625140]  ;;  %1002 = vmatpush.bf16.msra.mxu2 %v2839_v14  ;;  %1015 = vmatpush.bf16.msra.mxu3 %v2935_v15  ;;  %v3135_v14 = vor.u32 %v3873_v8, %v3134_v28  ;;  %v3231_v15 = vor.u32 %v3897_v10, %v3230_v9  ;;  %v3123_v27 = vor.u32 %v3870_v17, %v3122_v16 }
  0x68   :  { %v636_v34 = vld.sshfl [vmem:[#allocation1 + $0x20] sm:$0xff pattern:$0x73625140]  ;;  %v652_v35 = vunpack.c.l.b16 %v631_v31  ;;  %v638_v36 = vld.sshfl [vmem:[#allocation1 + $0x28] sm:$0xff pattern:$0x73625140]  ;;  %v653_v39 = vunpack.c.l.b16 %v633_v32 }
  0x69   :  { %v654_v42 = vunpack.c.l.b16 %v636_v34  ;;  %v655_v44 = vunpack.c.l.b16 %v638_v36  ;;  %v3869_v24 = vld [vmem:[%s5812_s1 + $0x364] sm:$0xf]  ;;  %v3124_v25 = vld [vmem:[%s5812_s1 + $0x36c] sm:$0xf0]  ;;  %v3110_v31 = vld [vmem:[%s5812_s1 + $0x348] sm:$0xf] }
  0x6a   :  { %v666_v48 = vrot.slane %v652_v35, 2  ;;  %v680_v49 = vrot.slane %v653_v39, 2  ;;  %977 = vmatpush.bf16.msra.mxu0 %v2823_v23  ;;  %990 = vmatpush.bf16.msra.mxu1 %v2919_v30  ;;  %v3235_v23 = vor.u32 %v3896_v13, %v3232_v7  ;;  %v3893_v26 = vld [vmem:[%s5812_s1 + $0x424] sm:$0xf]  ;;  %v3220_v53 = vld [vmem:[%s5812_s1 + $0x42c] sm:$0xf0]  ;;  %v3219_v30 = vor.u32 %v3894_v19, %v3218_v18 }
  0x6b   :  { %v668_v37 = vrot.slane %v654_v42, 1  ;;  %v682_v50 = vrot.slane %v655_v44, 1  ;;  %1003 = vmatpush.bf16.msra.mxu2 %v2827_v58  ;;  %1016 = vmatpush.bf16.msra.mxu3 %v2923_v33  ;;  %v3867_v32 = vld [vmem:[%s5812_s1 + $0x350] sm:$0xf0]  ;;  %v3206_v58 = vld [vmem:[%s5812_s1 + $0x408] sm:$0xf]  ;;  %v3127_v34 = vor.u32 %v3869_v24, %v3124_v25  ;;  %v3223_v35 = vor.u32 %v3893_v26, %v3220_v53 }
  0x6c   :  { %v667_v52 = vsel %vm242_vm5, %v666_v48, %v665_v43  ;;  %v681_v54 = vsel %vm242_vm5, %v680_v49, %v679_v45  ;;  %v3891_v33 = vld [vmem:[%s5812_s1 + $0x410] sm:$0xf0]  ;;  %v3866_v36 = vld [vmem:[%s5812_s1 + $0x34c] sm:$0xf]  ;;  %v3112_v39 = vld [vmem:[%s5812_s1 + $0x354] sm:$0xf0]  ;;  %v3111_v42 = vor.u32 %v3867_v32, %v3110_v31 }
  0x6d   :  { %v669_v57 = vsel %vm245_vm6, %v668_v37, %v667_v52  ;;  %v683_v59 = vsel %vm245_vm6, %v682_v50, %v681_v54  ;;  %v3207_v43 = vor.u32 %v3891_v33, %v3206_v58  ;;  %v3098_v44 = vld [vmem:[%s5812_s1 + $0x330] sm:$0xf]  ;;  %v3864_v45 = vld [vmem:[%s5812_s1 + $0x338] sm:$0xf0]  ;;  %v3115_v48 = vor.u32 %v3866_v36, %v3112_v39  ;;  %v3863_v20 = vld [vmem:[%s5812_s1 + $0x334] sm:$0xf] }
  0x6e   :  { %1448 = vmatpush.bf16.msrb.mxu0 %v3159_v40  ;;  %1461 = vmatpush.bf16.msrb.mxu1 %v3255_v41  ;;  %v4769_v63 = vpack.c.b16 %v669_v57, %v669_v57  ;;  %v4771_v0 = vpack.c.b16 %v683_v59, %v683_v59  ;;  %v3890_v40 = vld [vmem:[%s5812_s1 + $0x40c] sm:$0xf]  ;;  %v3208_v41 = vld [vmem:[%s5812_s1 + $0x414] sm:$0xf0]  ;;  %v3194_v46 = vld [vmem:[%s5812_s1 + $0x3f0] sm:$0xf]  ;;  %v3099_v54 = vor.u32 %v3864_v45, %v3098_v44 }
  0x6f   :  { %v3888_v47 = vld [vmem:[%s5812_s1 + $0x3f8] sm:$0xf0]  ;;  %v3211_v49 = vor.u32 %v3890_v40, %v3208_v41  ;;  %v3100_v21 = vld [vmem:[%s5812_s1 + $0x33c] sm:$0xf0]  ;;  %v3887_v50 = vld [vmem:[%s5812_s1 + $0x3f4] sm:$0xf] }
  0x70   :  { %952 = vmatmul.bf16.vlgmr.msrb.gmra.mxu2 %v4769_v63  ;;  %965 = vmatmul.bf16.vlgmr.msrb.gmra.mxu3 %v4771_v0  ;;  %v1022_v37 = vld [vmem:[%s5813_s0] sm:$0xa]  ;;  %v1023_v52 = vld [vmem:[%s5813_s0 + $0x4] sm:$0xa]  ;;  %v3195_v55 = vor.u32 %v3888_v47, %v3194_v46  ;;  %v3086_v38 = vld [vmem:[%s5812_s1 + $0x318] sm:$0xf] }
  0x71   :  { %1474 = vmatpush.bf16.msrb.mxu2 %v3163_v60  ;;  %1487 = vmatpush.bf16.msrb.mxu3 %v3259_v61  ;;  %v3196_v51 = vld [vmem:[%s5812_s1 + $0x3fc] sm:$0xf0]  ;;  %v3861_v56 = vld [vmem:[%s5812_s1 + $0x320] sm:$0xf0]  ;;  %v3182_v57 = vld [vmem:[%s5812_s1 + $0x3d8] sm:$0xf]  ;;  %v3103_v61 = vor.u32 %v3863_v20, %v3100_v21 }
  0x72   :  { %978 = vmatmul.bf16.vlgmr.msra.gmra.mxu0 %v4769_v63  ;;  %991 = vmatmul.bf16.vlgmr.msra.gmra.mxu1 %v4771_v0  ;;  %v3885_v59 = vld [vmem:[%s5812_s1 + $0x3e0] sm:$0xf0]  ;;  %v3860_v60 = vld [vmem:[%s5812_s1 + $0x31c] sm:$0xf]  ;;  %1096 = vst [vmem:[#allocation1] ss:$4 sm:$0xff] %v1022_v37  ;;  %v3199_v62 = vor.u32 %v3887_v50, %v3196_v51 }
  0x73   :  { %1449 = vmatpush.bf16.msrb.mxu0 %v3147_v5  ;;  %1462 = vmatpush.bf16.msrb.mxu1 %v3243_v6  ;;  %v3088_v1 = vld [vmem:[%s5812_s1 + $0x324] sm:$0xf0]  ;;  %1103 = vst [vmem:[#allocation1 + $0x20] ss:$4 sm:$0xff] %v1023_v52  ;;  %v3074_v3 = vld [vmem:[%s5812_s1 + $0x300] sm:$0xf]  ;;  %v3087_v5 = vor.u32 %v3861_v56, %v3086_v38  ;;  %v3183_v6 = vor.u32 %v3885_v59, %v3182_v57 }
  0x74   :  { %v3858_v4 = vld [vmem:[%s5812_s1 + $0x308] sm:$0xf0]  ;;  %v3170_v28 = vld [vmem:[%s5812_s1 + $0x3c0] sm:$0xf]  ;;  %v3166_v9 = vld [vmem:[%s5812_s1 + $0x3b0] sm:$0xf] }
  0x75   :  { %1475 = vmatpush.bf16.msrb.mxu2 %v3151_v2  ;;  %1488 = vmatpush.bf16.msrb.mxu3 %v3247_v11  ;;  %v3882_v8 = vld [vmem:[%s5812_s1 + $0x3c8] sm:$0xf0]  ;;  %v3857_v10 = vld [vmem:[%s5812_s1 + $0x304] sm:$0xf]  ;;  %v3076_v2 = vld [vmem:[%s5812_s1 + $0x30c] sm:$0xf0]  ;;  %v3075_v24 = vor.u32 %v3858_v4, %v3074_v3 }
  0x76   :  { %v3881_v11 = vld [vmem:[%s5812_s1 + $0x3c4] sm:$0xf]  ;;  %v3172_v29 = vld [vmem:[%s5812_s1 + $0x3cc] sm:$0xf0]  ;;  %v3880_v12 = vld [vmem:[%s5812_s1 + $0x3b8] sm:$0xf0]  ;;  %v3171_v25 = vor.u32 %v3882_v8, %v3170_v28 }
  0x77   :  { %1450 = vmatpush.bf16.msrb.mxu0 %v3135_v14  ;;  %1463 = vmatpush.bf16.msrb.mxu1 %v3231_v15  ;;  %v3262_v13 = vld [vmem:[%s5812_s1 + $0x470] sm:$0xf]  ;;  %v3904_v7 = vld [vmem:[%s5812_s1 + $0x478] sm:$0xf0]  ;;  %v3091_v14 = vor.u32 %v3860_v60, %v3088_v1  ;;  %v3414_v16 = vld [vmem:[%s5812_s1 + $0x528] sm:$0xf] }
  0x78   :  { %v3927_v17 = vld [vmem:[%s5812_s1 + $0x530] sm:$0xf0]  ;;  %v3510_v18 = vld [vmem:[%s5812_s1 + $0x5e8] sm:$0xf]  ;;  %v3154_v46 = vld [vmem:[%s5812_s1 + $0x398] sm:$0xf] }
  0x79   :  { %1476 = vmatpush.bf16.msrb.mxu2 %v3139_v22  ;;  %1489 = vmatpush.bf16.msrb.mxu3 %v3235_v23  ;;  %v3951_v19 = vld [vmem:[%s5812_s1 + $0x5f0] sm:$0xf0]  ;;  %v1024_v22 = vld [vmem:[%s5813_s0 + $0x8] sm:$0xa]  ;;  %v1025_v23 = vld [vmem:[%s5813_s0 + $0xc] sm:$0xa]  ;;  %v3415_v40 = vor.u32 %v3927_v17, %v3414_v16 }
  0x7a   :  { %v1097_v26 = vld.sshfl [vmem:[#allocation1] sm:$0xff pattern:$0x73625140]  ;;  %v1099_v53 = vld.sshfl [vmem:[#allocation1 + $0x8] sm:$0xff pattern:$0x73625140]  ;;  %v3511_v41 = vor.u32 %v3951_v19, %v3510_v18 }
  0x7b   :  { %1451 = vmatpush.bf16.msrb.mxu0 %v3123_v27  ;;  %1464 = vmatpush.bf16.msrb.mxu1 %v3219_v30  ;;  %v3167_v27 = vor.u32 %v3880_v12, %v3166_v9  ;;  %v3263_v30 = vor.u32 %v3904_v7, %v3262_v13  ;;  %v1104_v31 = vld.sshfl [vmem:[#allocation1 + $0x20] sm:$0xff pattern:$0x73625140]  ;;  %v1106_v32 = vld.sshfl [vmem:[#allocation1 + $0x28] sm:$0xff pattern:$0x73625140]  ;;  %v1144_v58 = vunpack.c.l.b16 %v1097_v26  ;;  %v1145_v33 = vunpack.c.l.b16 %v1099_v53 }
  0x7c   :  { %1109 = vst [vmem:[#allocation1] ss:$4 sm:$0xff] %v1024_v22  ;;  %v1146_v36 = vunpack.c.l.b16 %v1104_v31  ;;  %v1147_v39 = vunpack.c.l.b16 %v1106_v32  ;;  %v3877_v47 = vld [vmem:[%s5812_s1 + $0x3a0] sm:$0xf0]  ;;  %v3402_v37 = vld [vmem:[%s5812_s1 + $0x510] sm:$0xf] }
  0x7d   :  { %1477 = vmatpush.bf16.msrb.mxu2 %v3127_v34  ;;  %1490 = vmatpush.bf16.msrb.mxu3 %v3223_v35  ;;  %v3079_v34 = vor.u32 %v3857_v10, %v3076_v2  ;;  %v3175_v35 = vor.u32 %v3881_v11, %v3172_v29  ;;  %1115 = vst [vmem:[#allocation1 + $0x20] ss:$4 sm:$0xff] %v1025_v23  ;;  %v4972_v44 = vrot.slane %v1145_v33, 2  ;;  %v3901_v21 = vld [vmem:[%s5812_s1 + $0x460] sm:$0xf0] }
  0x7e   :  { %v4974_v45 = vrot.slane %v1147_v39, 1  ;;  %v3155_v20 = vor.u32 %v3877_v47, %v3154_v46  ;;  %v3924_v50 = vld [vmem:[%s5812_s1 + $0x518] sm:$0xf0]  ;;  %v1027_v51 = vld [vmem:[%s5813_s0 + $0x14] sm:$0xa] }
  0x7f   :  { %1452 = vmatpush.bf16.msrb.mxu0 %v3111_v42  ;;  %1465 = vmatpush.bf16.msrb.mxu1 %v3207_v43  ;;  %v4968_v42 = vrot.slane %v1144_v58, 2  ;;  %v4970_v43 = vrot.slane %v1146_v36, 1  ;;  %v3948_v38 = vld [vmem:[%s5812_s1 + $0x5d8] sm:$0xf0]  ;;  %v3142_v56 = vld [vmem:[%s5812_s1 + $0x380] sm:$0xf] }
  0x80   :  { %1004 = vmatmul.bf16.vlgmr.msra.gmra.mxu2 %v4769_v63  ;;  %1017 = vmatmul.bf16.vlgmr.msra.gmra.mxu3 %v4771_v0  ;;  %v3884_v63 = vld [vmem:[%s5812_s1 + $0x3dc] sm:$0xf]  ;;  %v3184_v0 = vld [vmem:[%s5812_s1 + $0x3e4] sm:$0xf0]  ;;  %v3874_v59 = vld [vmem:[%s5812_s1 + $0x388] sm:$0xf0] }
  0x81   :  { %1478 = vmatpush.bf16.msrb.mxu2 %v3115_v48  ;;  %1491 = vmatpush.bf16.msrb.mxu3 %v3211_v49  ;;  %v3187_v15 = vor.u32 %v3884_v63, %v3184_v0  ;;  %v3250_v48 = vld [vmem:[%s5812_s1 + $0x458] sm:$0xf]  ;;  %v1026_v49 = vld [vmem:[%s5813_s0 + $0x10] sm:$0xa]  ;;  %v3238_v60 = vld [vmem:[%s5812_s1 + $0x440] sm:$0xf]  ;;  %v3143_v63 = vor.u32 %v3874_v59, %v3142_v56  ;;  %v1162_v33 = vsel %vm227_vm0, %v4970_v43, %v4968_v42 }
  0x82   :  { %v3251_v52 = vor.u32 %v3901_v21, %v3250_v48  ;;  %v3390_v28 = vld [vmem:[%s5812_s1 + $0x4f8] sm:$0xf]  ;;  %v3921_v8 = vld [vmem:[%s5812_s1 + $0x500] sm:$0xf0]  ;;  %v3130_v13 = vld [vmem:[%s5812_s1 + $0x368] sm:$0xf] }
  0x83   :  { %1453 = vmatpush.bf16.msrb.mxu0 %v3099_v54  ;;  %1466 = vmatpush.bf16.msrb.mxu1 %v3195_v55  ;;  %v3403_v54 = vor.u32 %v3924_v50, %v3402_v37  ;;  %v3498_v55 = vld [vmem:[%s5812_s1 + $0x5d0] sm:$0xf]  ;;  %v5020_v1 = vld.sshfl [vmem:[#allocation1 + $0x8] sm:$0xff pattern:$0x73625140]  ;;  %v3391_v9 = vor.u32 %v3921_v8, %v3390_v28 }
  0x84   :  { %v3499_v57 = vor.u32 %v3948_v38, %v3498_v55  ;;  %v1116_v3 = vld.sshfl [vmem:[#allocation1 + $0x20] sm:$0xff pattern:$0x73625140]  ;;  %v1118_v4 = vld.sshfl [vmem:[#allocation1 + $0x28] sm:$0xff pattern:$0x73625140]  ;;  %v1149_v53 = vunpack.c.l.b16 %v5020_v1 }
  0x85   :  { %1479 = vmatpush.bf16.msrb.mxu2 %v3103_v61  ;;  %1492 = vmatpush.bf16.msrb.mxu3 %v3199_v62  ;;  %v3898_v61 = vld [vmem:[%s5812_s1 + $0x448] sm:$0xf0]  ;;  %v5018_v62 = vld.sshfl [vmem:[#allocation1] sm:$0xff pattern:$0x73625140] }
  0x86   :  { %v3239_v0 = vor.u32 %v3898_v61, %v3238_v60  ;;  %1121 = vst [vmem:[#allocation1] ss:$4 sm:$0xff] %v1026_v49  ;;  %v3486_v10 = vld [vmem:[%s5812_s1 + $0x5b8] sm:$0xf]  ;;  %v3945_v2 = vld [vmem:[%s5812_s1 + $0x5c0] sm:$0xf0]  ;;  %v1148_v26 = vunpack.c.l.b16 %v5018_v62 }
  0x87   :  { %1454 = vmatpush.bf16.msrb.mxu0 %v3087_v5  ;;  %1467 = vmatpush.bf16.msrb.mxu1 %v3183_v6  ;;  %v1150_v5 = vunpack.c.l.b16 %v1116_v3  ;;  %v1151_v6 = vunpack.c.l.b16 %v1118_v4  ;;  %1127 = vst [vmem:[#allocation1 + $0x20] ss:$4 sm:$0xff] %v1027_v51  ;;  %v3487_v12 = vor.u32 %v3945_v2, %v3486_v10  ;;  %v3871_v7 = vld [vmem:[%s5812_s1 + $0x370] sm:$0xf0]  ;;  %v3378_v17 = vld [vmem:[%s5812_s1 + $0x4e0] sm:$0xf] }
  0x88   :  { %v3895_v16 = vld [vmem:[%s5812_s1 + $0x430] sm:$0xf0]  ;;  %v1028_v18 = vld [vmem:[%s5813_s0 + $0x18] sm:$0xa]  ;;  %v3918_v22 = vld [vmem:[%s5812_s1 + $0x4e8] sm:$0xf0] }
  0x89   :  { %1480 = vmatpush.bf16.msrb.mxu2 %v3091_v14  ;;  %1493 = vmatpush.bf16.msrb.mxu3 %v3187_v15  ;;  %v5034_v11 = vrot.slane %v1150_v5, 7  ;;  %v5036_v29 = vrot.slane %v1151_v6, 7  ;;  %v3131_v14 = vor.u32 %v3871_v7, %v3130_v13  ;;  %v3226_v15 = vld [vmem:[%s5812_s1 + $0x428] sm:$0xf]  ;;  %v3474_v23 = vld [vmem:[%s5812_s1 + $0x5a0] sm:$0xf] }
  0x8a   :  { %v3227_v19 = vor.u32 %v3895_v16, %v3226_v15  ;;  %v3118_v31 = vld [vmem:[%s5812_s1 + $0x350] sm:$0xf]  ;;  %v3868_v32 = vld [vmem:[%s5812_s1 + $0x358] sm:$0xf0]  ;;  %v3366_v39 = vld [vmem:[%s5812_s1 + $0x4c8] sm:$0xf] }
  0x8b   :  { %1455 = vmatpush.bf16.msrb.mxu0 %v3075_v24  ;;  %1468 = vmatpush.bf16.msrb.mxu1 %v3171_v25  ;;  %v3942_v24 = vld [vmem:[%s5812_s1 + $0x5a8] sm:$0xf0]  ;;  %v1029_v25 = vld [vmem:[%s5813_s0 + $0x1c] sm:$0xa]  ;;  %v3214_v58 = vld [vmem:[%s5812_s1 + $0x410] sm:$0xf] }
  0x8c   :  { %v3892_v36 = vld [vmem:[%s5812_s1 + $0x418] sm:$0xf0]  ;;  %v3462_v50 = vld [vmem:[%s5812_s1 + $0x588] sm:$0xf]  ;;  %v3939_v51 = vld [vmem:[%s5812_s1 + $0x590] sm:$0xf0] }
  0x8d   :  { %1481 = vmatpush.bf16.msrb.mxu2 %v3079_v34  ;;  %1494 = vmatpush.bf16.msrb.mxu3 %v3175_v35  ;;  %v1176_v34 = vsel %vm227_vm0, %v4974_v45, %v4972_v44  ;;  %v3119_v35 = vor.u32 %v3868_v32, %v3118_v31  ;;  %v1124_v42 = vld.sshfl [vmem:[#allocation1 + $0x8] sm:$0xff pattern:$0x73625140]  ;;  %v3215_v43 = vor.u32 %v3892_v36, %v3214_v58  ;;  %v3106_v38 = vld [vmem:[%s5812_s1 + $0x338] sm:$0xf] }
  0x8e   :  { %v1128_v46 = vld.sshfl [vmem:[#allocation1 + $0x20] sm:$0xff pattern:$0x73625140]  ;;  %v1130_v44 = vld.sshfl [vmem:[#allocation1 + $0x28] sm:$0xff pattern:$0x73625140]  ;;  %v1153_v47 = vunpack.c.l.b16 %v1124_v42  ;;  %v1177_v37 = vsel %vm230_vm1, %v1149_v53, %v1176_v34  ;;  %v3463_v55 = vor.u32 %v3939_v51, %v3462_v50 }
  0x8f   :  { %1500 = vmatpush.bf16.msra.mxu0 %v3167_v27  ;;  %1513 = vmatpush.bf16.msra.mxu1 %v3263_v30  ;;  %v3379_v27 = vor.u32 %v3918_v22, %v3378_v17  ;;  %v3475_v30 = vor.u32 %v3942_v24, %v3474_v23  ;;  %v1154_v49 = vunpack.c.l.b16 %v1128_v46  ;;  %v1155_v21 = vunpack.c.l.b16 %v1130_v44  ;;  %1139 = vst [vmem:[#allocation1 + $0x20] ss:$4 sm:$0xff] %v1029_v25  ;;  %v3865_v59 = vld [vmem:[%s5812_s1 + $0x340] sm:$0xf0]  ;;  %v3202_v60 = vld [vmem:[%s5812_s1 + $0x3f8] sm:$0xf] }
  0x90   :  { %v1179_v62 = vsel %vm233_vm2, %v5036_v29, %v1177_v37  ;;  %v3107_v1 = vor.u32 %v3865_v59, %v3106_v38  ;;  %v3912_v3 = vld [vmem:[%s5812_s1 + $0x4b8] sm:$0xf0]  ;;  %v3450_v6 = vld [vmem:[%s5812_s1 + $0x570] sm:$0xf]  ;;  %v3094_v8 = vld [vmem:[%s5812_s1 + $0x320] sm:$0xf] }
  0x91   :  { %1955 = vmatpush.bf16.msra.mxu2 %v3415_v40  ;;  %1968 = vmatpush.bf16.msra.mxu3 %v3511_v41  ;;  %v3915_v40 = vld [vmem:[%s5812_s1 + $0x4d0] sm:$0xf0]  ;;  %v1122_v41 = vld.sshfl [vmem:[#allocation1] sm:$0xff pattern:$0x73625140]  ;;  %v1168_v56 = vrot.slane %v1154_v49, 5 }
  0x92   :  { %v1152_v45 = vunpack.c.l.b16 %v1122_v41  ;;  %v3367_v48 = vor.u32 %v3915_v40, %v3366_v39  ;;  %1133 = vst [vmem:[#allocation1] ss:$4 sm:$0xff] %v1028_v18  ;;  %v3936_v28 = vld [vmem:[%s5812_s1 + $0x578] sm:$0xf0]  ;;  %v3862_v10 = vld [vmem:[%s5812_s1 + $0x328] sm:$0xf0] }
  0x93   :  { %1501 = vmatpush.bf16.msra.mxu0 %v3155_v20  ;;  %1514 = vmatpush.bf16.msra.mxu1 %v3251_v52  ;;  %v1163_v20 = vsel %vm230_vm1, %v1148_v26, %v1162_v33  ;;  %v3190_v2 = vld [vmem:[%s5812_s1 + $0x3e0] sm:$0xf]  ;;  %v3095_v13 = vor.u32 %v3862_v10, %v3094_v8  ;;  %v3909_v15 = vld [vmem:[%s5812_s1 + $0x4a0] sm:$0xf0]  ;;  %v3438_v16 = vld [vmem:[%s5812_s1 + $0x558] sm:$0xf] }
  0x94   :  { %v1166_v52 = vrot.slane %v1152_v45, 6  ;;  %v1165_v61 = vsel %vm233_vm2, %v5034_v11, %v1163_v20  ;;  %v3886_v11 = vld [vmem:[%s5812_s1 + $0x3e8] sm:$0xf0]  ;;  %v3933_v31 = vld [vmem:[%s5812_s1 + $0x560] sm:$0xf0] }
  0x95   :  { %1956 = vmatpush.bf16.msra.mxu2 %v3403_v54  ;;  %1969 = vmatpush.bf16.msra.mxu3 %v3499_v57  ;;  %v1180_v54 = vrot.slane %v1153_v47, 6  ;;  %v1182_v57 = vrot.slane %v1155_v21, 5  ;;  %v3191_v7 = vor.u32 %v3886_v11, %v3190_v2  ;;  %v3082_v32 = vld [vmem:[%s5812_s1 + $0x308] sm:$0xf]  ;;  %v3859_v58 = vld [vmem:[%s5812_s1 + $0x310] sm:$0xf0] }
  0x96   :  { %v1167_v29 = vsel %vm236_vm3, %v1166_v52, %v1165_v61  ;;  %v1140_v22 = vld.sshfl [vmem:[#allocation1 + $0x20] sm:$0xff pattern:$0x73625140]  ;;  %v1142_v24 = vld.sshfl [vmem:[#allocation1 + $0x28] sm:$0xff pattern:$0x73625140]  ;;  %v3083_v36 = vor.u32 %v3859_v58, %v3082_v32 }
  0x97   :  { %1502 = vmatpush.bf16.msra.mxu0 %v3143_v63  ;;  %1515 = vmatpush.bf16.msra.mxu1 %v3239_v0  ;;  %v3889_v63 = vld [vmem:[%s5812_s1 + $0x400] sm:$0xf0]  ;;  %v3354_v0 = vld [vmem:[%s5812_s1 + $0x4b0] sm:$0xf]  ;;  %v1158_v26 = vunpack.c.l.b16 %v1140_v22  ;;  %v1169_v53 = vsel %vm239_vm4, %v1168_v56, %v1167_v29  ;;  %v3178_v39 = vld [vmem:[%s5812_s1 + $0x3c8] sm:$0xf] }
  0x98   :  { %v3203_v4 = vor.u32 %v3889_v63, %v3202_v60  ;;  %v3355_v5 = vor.u32 %v3912_v3, %v3354_v0  ;;  %v3883_v40 = vld [vmem:[%s5812_s1 + $0x3d0] sm:$0xf0]  ;;  %v3330_v46 = vld [vmem:[%s5812_s1 + $0x480] sm:$0xf]  ;;  %v3906_v44 = vld [vmem:[%s5812_s1 + $0x488] sm:$0xf0] }
  0x99   :  { %1957 = vmatpush.bf16.msra.mxu2 %v3391_v9  ;;  %1970 = vmatpush.bf16.msra.mxu3 %v3487_v12  ;;  %v3451_v9 = vor.u32 %v3936_v28, %v3450_v6  ;;  %v1181_v12 = vsel %vm236_vm3, %v1180_v54, %v1179_v62  ;;  %v1134_v17 = vld.sshfl [vmem:[#allocation1] sm:$0xff pattern:$0x73625140]  ;;  %v1136_v18 = vld.sshfl [vmem:[#allocation1 + $0x8] sm:$0xff pattern:$0x73625140]  ;;  %v3331_v49 = vor.u32 %v3906_v44, %v3330_v46 }
  0x9a   :  { %v1156_v23 = vunpack.c.l.b16 %v1134_v17  ;;  %v1157_v25 = vunpack.c.l.b16 %v1136_v18  ;;  %v1172_v41 = vrot.slane %v1158_v26, 3  ;;  %v1529_v45 = vld [vmem:[%s5813_s0] sm:$0xa]  ;;  %v3930_v21 = vld [vmem:[%s5812_s1 + $0x548] sm:$0xf0] }
  0x9b   :  { %1503 = vmatpush.bf16.msra.mxu0 %v3131_v14  ;;  %1516 = vmatpush.bf16.msra.mxu1 %v3227_v19  ;;  %v3342_v14 = vld [vmem:[%s5812_s1 + $0x498] sm:$0xf]  ;;  %v3426_v20 = vld [vmem:[%s5812_s1 + $0x540] sm:$0xf]  ;;  %v3926_v37 = vld [vmem:[%s5812_s1 + $0x52c] sm:$0xf] }
  0x9c   :  { %v3343_v19 = vor.u32 %v3909_v15, %v3342_v14  ;;  %v1170_v33 = vrot.slane %v1156_v23, 4  ;;  %v1184_v34 = vrot.slane %v1157_v25, 4  ;;  %v1530_v50 = vld [vmem:[%s5813_s0 + $0x4] sm:$0xa]  ;;  %v3416_v54 = vld [vmem:[%s5812_s1 + $0x534] sm:$0xf0]  ;;  %v3427_v59 = vor.u32 %v3930_v21, %v3426_v20 }
  0x9d   :  { %1958 = vmatpush.bf16.msra.mxu2 %v3379_v27  ;;  %1971 = vmatpush.bf16.msra.mxu3 %v3475_v30  ;;  %v1159_v27 = vunpack.c.l.b16 %v1142_v24  ;;  %v1183_v30 = vsel %vm239_vm4, %v1182_v57, %v1181_v12  ;;  %v3512_v38 = vld [vmem:[%s5812_s1 + $0x5f4] sm:$0xf0]  ;;  %v3419_v60 = vor.u32 %v3926_v37, %v3416_v54  ;;  %v3422_v61 = vld [vmem:[%s5812_s1 + $0x530] sm:$0xf]  ;;  %v3928_v62 = vld [vmem:[%s5812_s1 + $0x538] sm:$0xf0] }
  0x9e   :  { %v1171_v47 = vsel %vm242_vm5, %v1170_v33, %v1169_v53  ;;  %v3423_v0 = vor.u32 %v3928_v62, %v3422_v61  ;;  %v3952_v3 = vld [vmem:[%s5812_s1 + $0x5f8] sm:$0xf0]  ;;  %1603 = vst [vmem:[#allocation1] ss:$4 sm:$0xff] %v1529_v45  ;;  %v1532_v6 = vld [vmem:[%s5813_s0 + $0xc] sm:$0xa] }
  0x9f   :  { %1504 = vmatpush.bf16.msra.mxu0 %v3119_v35  ;;  %1517 = vmatpush.bf16.msra.mxu1 %v3215_v43  ;;  %v3439_v35 = vor.u32 %v3933_v31, %v3438_v16  ;;  %v1186_v42 = vrot.slane %v1159_v27, 3  ;;  %v3179_v43 = vor.u32 %v3883_v40, %v3178_v39  ;;  %v1173_v51 = vsel %vm245_vm6, %v1172_v41, %v1171_v47  ;;  %v3923_v14 = vld [vmem:[%s5812_s1 + $0x514] sm:$0xf]  ;;  %v3404_v17 = vld [vmem:[%s5812_s1 + $0x51c] sm:$0xf0] }
  0xa0   :  { %v5204_v56 = vpack.c.b16 %v1173_v51, %v1173_v51  ;;  %1610 = vst [vmem:[#allocation1 + $0x20] ss:$4 sm:$0xff] %v1530_v50  ;;  %v3947_v18 = vld [vmem:[%s5812_s1 + $0x5d4] sm:$0xf]  ;;  %v3500_v22 = vld [vmem:[%s5812_s1 + $0x5dc] sm:$0xf0] }
  0xa1   :  { %1959 = vmatpush.bf16.msra.mxu2 %v3367_v48  ;;  %1972 = vmatpush.bf16.msra.mxu3 %v3463_v55  ;;  %v1185_v48 = vsel %vm242_vm5, %v1184_v34, %v1183_v30  ;;  %v3950_v55 = vld [vmem:[%s5812_s1 + $0x5ec] sm:$0xf]  ;;  %v3410_v23 = vld [vmem:[%s5812_s1 + $0x518] sm:$0xf]  ;;  %v3925_v24 = vld [vmem:[%s5812_s1 + $0x520] sm:$0xf0]  ;;  %v3503_v26 = vor.u32 %v3947_v18, %v3500_v22 }
  0xa2   :  { %v1187_v52 = vsel %vm245_vm6, %v1186_v42, %v1185_v48  ;;  %v3515_v63 = vor.u32 %v3950_v55, %v3512_v38  ;;  %1456 = vmatmul.bf16.vlgmr.msrb.gmra.mxu0 %v5204_v56  ;;  %1482 = vmatmul.bf16.vlgmr.msrb.gmra.mxu2 %v5204_v56  ;;  %v1533_v25 = vld [vmem:[%s5813_s0 + $0x10] sm:$0xa]  ;;  %v3411_v53 = vor.u32 %v3925_v24, %v3410_v23  ;;  %v3506_v27 = vld [vmem:[%s5812_s1 + $0x5d8] sm:$0xf]  ;;  %v3949_v30 = vld [vmem:[%s5812_s1 + $0x5e0] sm:$0xf0] }
  0xa3   :  { %1505 = vmatpush.bf16.msra.mxu0 %v3107_v1  ;;  %1518 = vmatpush.bf16.msra.mxu1 %v3203_v4  ;;  %v5206_v57 = vpack.c.b16 %v1187_v52, %v1187_v52  ;;  %v3518_v1 = vld [vmem:[%s5812_s1 + $0x5f0] sm:$0xf]  ;;  %v3920_v31 = vld [vmem:[%s5812_s1 + $0x4fc] sm:$0xf]  ;;  %v1534_v32 = vld [vmem:[%s5813_s0 + $0x14] sm:$0xa]  ;;  %v3507_v58 = vor.u32 %v3949_v30, %v3506_v27 }
  0xa4   :  { %v3519_v4 = vor.u32 %v3952_v3, %v3518_v1  ;;  %v3392_v33 = vld [vmem:[%s5812_s1 + $0x504] sm:$0xf0]  ;;  %v3944_v34 = vld [vmem:[%s5812_s1 + $0x5bc] sm:$0xf]  ;;  %v3398_v40 = vld [vmem:[%s5812_s1 + $0x500] sm:$0xf] }
  0xa5   :  { %1960 = vmatpush.bf16.msra.mxu2 %v3355_v5  ;;  %1973 = vmatpush.bf16.msra.mxu3 %v3451_v9  ;;  %v1531_v5 = vld [vmem:[%s5813_s0 + $0x8] sm:$0xa]  ;;  %v1604_v28 = vld.sshfl [vmem:[#allocation1] sm:$0xff pattern:$0x73625140] }
  0xa6   :  { %1469 = vmatmul.bf16.vlgmr.msrb.gmra.mxu1 %v5206_v57  ;;  %1495 = vmatmul.bf16.vlgmr.msrb.gmra.mxu3 %v5206_v57  ;;  %v1606_v8 = vld.sshfl [vmem:[#allocation1 + $0x8] sm:$0xff pattern:$0x73625140]  ;;  %v1651_v2 = vunpack.c.l.b16 %v1604_v28  ;;  %v3494_v42 = vld [vmem:[%s5812_s1 + $0x5c0] sm:$0xf] }
  0xa7   :  { %1506 = vmatpush.bf16.msra.mxu0 %v3095_v13  ;;  %1519 = vmatpush.bf16.msra.mxu1 %v3191_v7  ;;  %v1611_v9 = vld.sshfl [vmem:[#allocation1 + $0x20] sm:$0xff pattern:$0x73625140]  ;;  %v1613_v10 = vld.sshfl [vmem:[#allocation1 + $0x28] sm:$0xff pattern:$0x73625140]  ;;  %v1652_v11 = vunpack.c.l.b16 %v1606_v8 }
  0xa8   :  { %1616 = vst [vmem:[#allocation1] ss:$4 sm:$0xff] %v1531_v5  ;;  %v1653_v29 = vunpack.c.l.b16 %v1611_v9  ;;  %v1654_v12 = vunpack.c.l.b16 %v1613_v10  ;;  %v5230_v13 = vrot.slane %v1651_v2, 3  ;;  %v3922_v41 = vld [vmem:[%s5812_s1 + $0x508] sm:$0xf0] }
  0xa9   :  { %1961 = vmatpush.bf16.msra.mxu2 %v3343_v19  ;;  %1974 = vmatpush.bf16.msra.mxu3 %v3439_v35  ;;  %1622 = vst [vmem:[#allocation1 + $0x20] ss:$4 sm:$0xff] %v1532_v6  ;;  %v5232_v7 = vrot.slane %v1652_v11, 3  ;;  %v3407_v19 = vor.u32 %v3923_v14, %v3404_v17  ;;  %v3488_v35 = vld [vmem:[%s5812_s1 + $0x5c4] sm:$0xf0]  ;;  %v3399_v44 = vor.u32 %v3922_v41, %v3398_v40 }
  0xaa   :  { %v5237_v15 = vrot.slane %v1653_v29, 2  ;;  %v5239_v16 = vrot.slane %v1654_v12, 2  ;;  %v3491_v39 = vor.u32 %v3944_v34, %v3488_v35  ;;  %v3946_v20 = vld [vmem:[%s5812_s1 + $0x5c8] sm:$0xf0]  ;;  %v3917_v21 = vld [vmem:[%s5812_s1 + $0x4e4] sm:$0xf] }
  0xab   :  { %1507 = vmatpush.bf16.msra.mxu0 %v3083_v36  ;;  %1520 = vmatpush.bf16.msra.mxu1 %v3179_v43  ;;  %v3395_v36 = vor.u32 %v3920_v31, %v3392_v33  ;;  %v3495_v51 = vor.u32 %v3946_v20, %v3494_v42  ;;  %v3380_v52 = vld [vmem:[%s5812_s1 + $0x4ec] sm:$0xf0]  ;;  %v3941_v55 = vld [vmem:[%s5812_s1 + $0x5a4] sm:$0xf]  ;;  %v3943_v61 = vld [vmem:[%s5812_s1 + $0x5b0] sm:$0xf0] }
  0xac   :  { %v3383_v54 = vor.u32 %v3917_v21, %v3380_v52  ;;  %v3476_v38 = vld [vmem:[%s5812_s1 + $0x5ac] sm:$0xf0]  ;;  %v1535_v62 = vld [vmem:[%s5813_s0 + $0x18] sm:$0xa]  ;;  %v1536_v5 = vld [vmem:[%s5813_s0 + $0x1c] sm:$0xa]  ;;  %v1669_v10 = vsel %vm227_vm0, %v5237_v15, %v5230_v13  ;;  %v1683_v2 = vsel %vm227_vm0, %v5239_v16, %v5232_v7 }
  0xad   :  { %1962 = vmatpush.bf16.msra.mxu2 %v3331_v49  ;;  %1975 = vmatpush.bf16.msra.mxu3 %v3427_v59  ;;  %v3919_v59 = vld [vmem:[%s5812_s1 + $0x4f0] sm:$0xf0]  ;;  %v3368_v3 = vld [vmem:[%s5812_s1 + $0x4d4] sm:$0xf0]  ;;  %v3374_v8 = vld [vmem:[%s5812_s1 + $0x4d0] sm:$0xf] }
  0xae   :  { %v3464_v28 = vld [vmem:[%s5812_s1 + $0x594] sm:$0xf0]  ;;  %v3916_v9 = vld [vmem:[%s5812_s1 + $0x4d8] sm:$0xf0]  ;;  %v3470_v12 = vld [vmem:[%s5812_s1 + $0x590] sm:$0xf] }
  0xaf   :  { %1981 = vmatpush.bf16.msrb.mxu0 %v3419_v60  ;;  %1994 = vmatpush.bf16.msrb.mxu1 %v3515_v63  ;;  %v1617_v43 = vld.sshfl [vmem:[#allocation1] sm:$0xff pattern:$0x73625140]  ;;  %v1619_v46 = vld.sshfl [vmem:[#allocation1 + $0x8] sm:$0xff pattern:$0x73625140]  ;;  %v3375_v29 = vor.u32 %v3916_v9, %v3374_v8 }
  0xb0   :  { %v5291_v45 = vld.sshfl [vmem:[#allocation1 + $0x20] sm:$0xff pattern:$0x73625140]  ;;  %v5293_v47 = vld.sshfl [vmem:[#allocation1 + $0x28] sm:$0xff pattern:$0x73625140]  ;;  %v1655_v48 = vunpack.c.l.b16 %v1617_v43  ;;  %v1656_v49 = vunpack.c.l.b16 %v1619_v46 }
  0xb1   :  { %2007 = vmatpush.bf16.msrb.mxu2 %v3423_v0  ;;  %2020 = vmatpush.bf16.msrb.mxu3 %v3519_v4  ;;  %1628 = vst [vmem:[#allocation1] ss:$4 sm:$0xff] %v1533_v25  ;;  %v3482_v60 = vld [vmem:[%s5812_s1 + $0x5a8] sm:$0xf]  ;;  %v3914_v0 = vld [vmem:[%s5812_s1 + $0x4cc] sm:$0xf]  ;;  %v1658_v23 = vunpack.c.l.b16 %v5293_v47 }
  0xb2   :  { %1508 = vmatmul.bf16.vlgmr.msra.gmra.mxu0 %v5204_v56  ;;  %1634 = vst [vmem:[#allocation1 + $0x20] ss:$4 sm:$0xff] %v1534_v32  ;;  %v1670_v37 = vrot.slane %v1655_v48, 1  ;;  %v1684_v50 = vrot.slane %v1656_v49, 1  ;;  %v3386_v56 = vld [vmem:[%s5812_s1 + $0x4e8] sm:$0xf]  ;;  %v3483_v63 = vor.u32 %v3943_v61, %v3482_v60  ;;  %v3371_v6 = vor.u32 %v3914_v0, %v3368_v3 }
  0xb3   :  { %1982 = vmatpush.bf16.msrb.mxu0 %v3407_v19  ;;  %1995 = vmatpush.bf16.msrb.mxu1 %v3503_v26  ;;  %v3387_v1 = vor.u32 %v3919_v59, %v3386_v56  ;;  %v3938_v4 = vld [vmem:[%s5812_s1 + $0x58c] sm:$0xf]  ;;  %v3940_v14 = vld [vmem:[%s5812_s1 + $0x598] sm:$0xf0]  ;;  %v3911_v17 = vld [vmem:[%s5812_s1 + $0x4b4] sm:$0xf]  ;;  %v1657_v19 = vunpack.c.l.b16 %v5291_v45 }
  0xb4   :  { %v3467_v11 = vor.u32 %v3938_v4, %v3464_v28  ;;  %v3471_v18 = vor.u32 %v3940_v14, %v3470_v12  ;;  %v1671_v26 = vsel %vm230_vm1, %v1670_v37, %v1669_v10  ;;  %v1685_v27 = vsel %vm230_vm1, %v1684_v50, %v1683_v2  ;;  %v3356_v30 = vld [vmem:[%s5812_s1 + $0x4bc] sm:$0xf0]  ;;  %v3935_v31 = vld [vmem:[%s5812_s1 + $0x574] sm:$0xf]  ;;  %v3362_v40 = vld [vmem:[%s5812_s1 + $0x4b8] sm:$0xf] }
  0xb5   :  { %2008 = vmatpush.bf16.msrb.mxu2 %v3411_v53  ;;  %2021 = vmatpush.bf16.msrb.mxu3 %v3507_v58  ;;  %v3359_v33 = vor.u32 %v3911_v17, %v3356_v30  ;;  %v3452_v34 = vld [vmem:[%s5812_s1 + $0x57c] sm:$0xf0]  ;;  %v3913_v41 = vld [vmem:[%s5812_s1 + $0x4c0] sm:$0xf0]  ;;  %v1672_v42 = vsel %vm233_vm2, %v1657_v19, %v1671_v26  ;;  %v1686_v43 = vsel %vm233_vm2, %v1658_v23, %v1685_v27  ;;  %v3908_v47 = vld [vmem:[%s5812_s1 + $0x49c] sm:$0xf] }
  0xb6   :  { %1521 = vmatmul.bf16.vlgmr.msra.gmra.mxu1 %v5206_v57  ;;  %v3479_v57 = vor.u32 %v3941_v55, %v3476_v38  ;;  %v3363_v46 = vor.u32 %v3913_v41, %v3362_v40  ;;  %v3937_v45 = vld [vmem:[%s5812_s1 + $0x580] sm:$0xf0]  ;;  %v3344_v21 = vld [vmem:[%s5812_s1 + $0x4a4] sm:$0xf0]  ;;  %v3932_v37 = vld [vmem:[%s5812_s1 + $0x55c] sm:$0xf] }
  0xb7   :  { %1983 = vmatpush.bf16.msrb.mxu0 %v3395_v36  ;;  %1996 = vmatpush.bf16.msrb.mxu1 %v3491_v39  ;;  %v3455_v39 = vor.u32 %v3935_v31, %v3452_v34  ;;  %v3440_v50 = vld [vmem:[%s5812_s1 + $0x564] sm:$0xf0]  ;;  %v3347_v52 = vor.u32 %v3908_v47, %v3344_v21  ;;  %v3350_v55 = vld [vmem:[%s5812_s1 + $0x4a0] sm:$0xf]  ;;  %v3910_v38 = vld [vmem:[%s5812_s1 + $0x4a8] sm:$0xf0] }
  0xb8   :  { %v1629_v13 = vld.sshfl [vmem:[#allocation1] sm:$0xff pattern:$0x73625140]  ;;  %v1631_v15 = vld.sshfl [vmem:[#allocation1 + $0x8] sm:$0xff pattern:$0x73625140]  ;;  %v3351_v60 = vor.u32 %v3910_v38, %v3350_v55 }
  0xb9   :  { %2009 = vmatpush.bf16.msrb.mxu2 %v3399_v44  ;;  %2022 = vmatpush.bf16.msrb.mxu3 %v3495_v51  ;;  %v1635_v7 = vld.sshfl [vmem:[#allocation1 + $0x20] sm:$0xff pattern:$0x73625140]  ;;  %v1637_v16 = vld.sshfl [vmem:[#allocation1 + $0x28] sm:$0xff pattern:$0x73625140]  ;;  %v1659_v22 = vunpack.c.l.b16 %v1629_v13  ;;  %v1660_v24 = vunpack.c.l.b16 %v1631_v15 }
  0xba   :  { %1640 = vst [vmem:[#allocation1] ss:$4 sm:$0xff] %v1535_v62  ;;  %v1661_v25 = vunpack.c.l.b16 %v1635_v7  ;;  %v1662_v53 = vunpack.c.l.b16 %v1637_v16  ;;  %v3458_v44 = vld [vmem:[%s5812_s1 + $0x578] sm:$0xf]  ;;  %v3446_v56 = vld [vmem:[%s5812_s1 + $0x560] sm:$0xf] }
  0xbb   :  { %1984 = vmatpush.bf16.msrb.mxu0 %v3383_v54  ;;  %1997 = vmatpush.bf16.msrb.mxu1 %v3479_v57  ;;  %1646 = vst [vmem:[#allocation1 + $0x20] ss:$4 sm:$0xff] %v1536_v5  ;;  %v1673_v32 = vrot.slane %v1659_v22, 7  ;;  %v1687_v58 = vrot.slane %v1660_v24, 7  ;;  %v3459_v20 = vor.u32 %v3937_v45, %v3458_v44  ;;  %v3443_v54 = vor.u32 %v3932_v37, %v3440_v50  ;;  %v3934_v61 = vld [vmem:[%s5812_s1 + $0x568] sm:$0xf0] }
  0xbc   :  { %v1675_v35 = vrot.slane %v1661_v25, 6  ;;  %v1689_v36 = vrot.slane %v1662_v53, 6  ;;  %v3905_v62 = vld [vmem:[%s5812_s1 + $0x484] sm:$0xf]  ;;  %v3447_v3 = vor.u32 %v3934_v61, %v3446_v56  ;;  %v3428_v12 = vld [vmem:[%s5812_s1 + $0x54c] sm:$0xf0] }
  0xbd   :  { %2010 = vmatpush.bf16.msrb.mxu2 %v3387_v1  ;;  %2023 = vmatpush.bf16.msrb.mxu3 %v3483_v63  ;;  %v1674_v57 = vsel %vm236_vm3, %v1673_v32, %v1672_v42  ;;  %v1688_v59 = vsel %vm236_vm3, %v1687_v58, %v1686_v43  ;;  %v3332_v1 = vld [vmem:[%s5812_s1 + $0x48c] sm:$0xf0]  ;;  %v3338_v14 = vld [vmem:[%s5812_s1 + $0x488] sm:$0xf]  ;;  %v3931_v25 = vld [vmem:[%s5812_s1 + $0x550] sm:$0xf0] }
  0xbe   :  { %v3335_v4 = vor.u32 %v3905_v62, %v3332_v1  ;;  %v1676_v10 = vsel %vm239_vm4, %v1675_v35, %v1674_v57  ;;  %v3434_v7 = vld [vmem:[%s5812_s1 + $0x548] sm:$0xf]  ;;  %v3578_v62 = vld [vmem:[%s5814_s3 + $0x70] sm:$0xf]  ;;  %v3570_v1 = vld [vmem:[%s5814_s3 + $0x60] sm:$0xf] }
  0xbf   :  { %1985 = vmatpush.bf16.msrb.mxu0 %v3371_v6  ;;  %1998 = vmatpush.bf16.msrb.mxu1 %v3467_v11  ;;  %v1690_v11 = vsel %vm239_vm4, %v1689_v36, %v1688_v59  ;;  %v3435_v32 = vor.u32 %v3931_v25, %v3434_v7 }
  0xc1   :  { %2011 = vmatpush.bf16.msrb.mxu2 %v3375_v29  ;;  %2024 = vmatpush.bf16.msrb.mxu3 %v3471_v18  ;;  %v1641_v63 = vld.sshfl [vmem:[#allocation1] sm:$0xff pattern:$0x73625140]  ;;  %v1643_v0 = vld.sshfl [vmem:[#allocation1 + $0x8] sm:$0xff pattern:$0x73625140] }
  0xc2   :  { %v1647_v5 = vld.sshfl [vmem:[#allocation1 + $0x20] sm:$0xff pattern:$0x73625140]  ;;  %v1663_v6 = vunpack.c.l.b16 %v1641_v63  ;;  %v1649_v28 = vld.sshfl [vmem:[#allocation1 + $0x28] sm:$0xff pattern:$0x73625140]  ;;  %v1664_v8 = vunpack.c.l.b16 %v1643_v0 }
  0xc3   :  { %1986 = vmatpush.bf16.msrb.mxu0 %v3359_v33  ;;  %1999 = vmatpush.bf16.msrb.mxu1 %v3455_v39  ;;  %v1665_v9 = vunpack.c.l.b16 %v1647_v5  ;;  %v1666_v2 = vunpack.c.l.b16 %v1649_v28  ;;  %v3929_v29 = vld [vmem:[%s5812_s1 + $0x544] sm:$0xf]  ;;  %v3907_v18 = vld [vmem:[%s5812_s1 + $0x490] sm:$0xf0]  ;;  %v3966_v0 = vld [vmem:[%s5814_s3 + $0x64] sm:$0xf0] }
  0xc4   :  { %v1677_v17 = vrot.slane %v1663_v6, 5  ;;  %v1691_v13 = vrot.slane %v1664_v8, 5  ;;  %v3431_v15 = vor.u32 %v3929_v29, %v3428_v12  ;;  %v3339_v24 = vor.u32 %v3907_v18, %v3338_v14  ;;  %v3965_v6 = vld [vmem:[%s5814_s3 + $0x64] sm:$0xf]  ;;  %v3572_v8 = vld [vmem:[%s5814_s3 + $0x68] sm:$0xf0] }
  0xc5   :  { %2012 = vmatpush.bf16.msrb.mxu2 %v3363_v46  ;;  %2025 = vmatpush.bf16.msrb.mxu3 %v3459_v20  ;;  %v1679_v22 = vrot.slane %v1665_v9, 4  ;;  %v1693_v23 = vrot.slane %v1666_v2, 4  ;;  %v3571_v28 = vor.u32 %v3966_v0, %v3570_v1  ;;  %v3562_v9 = vld [vmem:[%s5814_s3 + $0x50] sm:$0xf]  ;;  %v3575_v2 = vor.u32 %v3965_v6, %v3572_v8  ;;  %v3564_v29 = vld [vmem:[%s5814_s3 + $0x58] sm:$0xf0] }
  0xc6   :  { %v1678_v30 = vsel %vm242_vm5, %v1677_v17, %v1676_v10  ;;  %v1692_v31 = vsel %vm242_vm5, %v1691_v13, %v1690_v11  ;;  %v3964_v10 = vld [vmem:[%s5814_s3 + $0x54] sm:$0xf0]  ;;  %v3963_v11 = vld [vmem:[%s5814_s3 + $0x54] sm:$0xf]  ;;  %v3642_v12 = vld [vmem:[%s5814_s3 + $0xf0] sm:$0xf] }
  0xc7   :  { %1987 = vmatpush.bf16.msrb.mxu0 %v3347_v52  ;;  %2000 = vmatpush.bf16.msrb.mxu1 %v3443_v54  ;;  %v1680_v58 = vsel %vm245_vm6, %v1679_v22, %v1678_v30  ;;  %v1694_v33 = vsel %vm245_vm6, %v1693_v23, %v1692_v31  ;;  %v3984_v14 = vld [vmem:[%s5814_s3 + $0xf4] sm:$0xf0]  ;;  %v3563_v13 = vor.u32 %v3964_v10, %v3562_v9  ;;  %v3962_v18 = vld [vmem:[%s5814_s3 + $0x44] sm:$0xf0]  ;;  %v3634_v22 = vld [vmem:[%s5814_s3 + $0xe0] sm:$0xf] }
  0xc8   :  { %v1695_v34 = vpack.c.b16 %v1680_v58, %v1680_v58  ;;  %v1696_v35 = vpack.c.b16 %v1694_v33, %v1694_v33  ;;  %v3643_v17 = vor.u32 %v3984_v14, %v3642_v12  ;;  %v3567_v7 = vor.u32 %v3963_v11, %v3564_v29  ;;  %v3982_v23 = vld [vmem:[%s5814_s3 + $0xe4] sm:$0xf0]  ;;  %v3980_v31 = vld [vmem:[%s5814_s3 + $0xd4] sm:$0xf0]  ;;  %v3548_v58 = vld [vmem:[%s5814_s3 + $0x38] sm:$0xf0] }
  0xc9   :  { %v530_v48 = vpop.f32.mrf.mxu0  ;;  %v543_v49 = vpop.f32.mrf.mxu1  ;;  %2013 = vmatpush.bf16.msrb.mxu2 %v3351_v60  ;;  %2026 = vmatpush.bf16.msrb.mxu3 %v3447_v3  ;;  %v3967_v3 = vld [vmem:[%s5814_s3 + $0x74] sm:$0xf]  ;;  %v3635_v25 = vor.u32 %v3982_v23, %v3634_v22  ;;  %v3976_v8 = vld [vmem:[%s5814_s3 + $0xb4] sm:$0xf0]  ;;  %v3981_v10 = vld [vmem:[%s5814_s3 + $0xe4] sm:$0xf] }
  0xca   :  { %v5400_v51 = vadd.f32 %v543_v49, %v530_v48  ;;  %1963 = vmatmul.bf16.vlgmr.msra.gmra.mxu2 %v1695_v34  ;;  %1976 = vmatmul.bf16.vlgmr.msra.gmra.mxu3 %v1696_v35  ;;  %v3983_v1 = vld [vmem:[%s5814_s3 + $0xf4] sm:$0xf]  ;;  %v3953_v29 = vld [vmem:[%s5814_s3 + $0x4] sm:$0xf]  ;;  %v3524_v12 = vld [vmem:[%s5814_s3 + $0x8] sm:$0xf0] }
  0xcb   :  { %1988 = vmatpush.bf16.msrb.mxu0 %v3335_v4  ;;  %2001 = vmatpush.bf16.msrb.mxu1 %v3431_v15  ;;  %v3580_v4 = vld [vmem:[%s5814_s3 + $0x78] sm:$0xf0]  ;;  %v3554_v15 = vld [vmem:[%s5814_s3 + $0x40] sm:$0xf]  ;;  %v3527_v14 = vor.u32 %v3953_v29, %v3524_v12  ;;  %v3979_v23 = vld [vmem:[%s5814_s3 + $0xd4] sm:$0xf] }
  0xcc   :  { %v3583_v5 = vor.u32 %v3967_v3, %v3580_v4  ;;  %v3955_v4 = vld [vmem:[%s5814_s3 + $0x14] sm:$0xf]  ;;  %v3990_v29 = vld [vmem:[%s5814_s3 + $0x124] sm:$0xf0]  ;;  %v3969_v12 = vld [vmem:[%s5814_s3 + $0x84] sm:$0xf] }
  0xcd   :  { %2014 = vmatpush.bf16.msrb.mxu2 %v3339_v24  ;;  %2027 = vmatpush.bf16.msrb.mxu3 %v3435_v32  ;;  %v3555_v24 = vor.u32 %v3962_v18, %v3554_v15  ;;  %v3959_v32 = vld [vmem:[%s5814_s3 + $0x34] sm:$0xf] }
  0xce   :  { %1989 = vmatmul.bf16.vlgmr.msrb.gmra.mxu0 %v1695_v34  ;;  %2002 = vmatmul.bf16.vlgmr.msrb.gmra.mxu1 %v1696_v35 }
  0xcf   :  { %2360 = vmatpush.bf16.msra.mxu1 %v3643_v17  ;;  %v3706_v17 = vld [vmem:[%s5814_s3 + $0x170] sm:$0xf] }
  0xd0   :  { %v556_v16 = vpop.f32.mrf.mxu2  ;;  %v569_v19 = vpop.f32.mrf.mxu3 }
  0xd1   :  { %v532_v26 = vpop.f32.mrf.mxu0  ;;  %v545_v53 = vpop.f32.mrf.mxu1  ;;  %v570_v27 = vadd.f32 %v569_v19, %v556_v16  ;;  %2386 = vmatpush.bf16.msra.mxu3 %v3583_v5  ;;  %v3961_v16 = vld [vmem:[%s5814_s3 + $0x44] sm:$0xf]  ;;  %v3556_v19 = vld [vmem:[%s5814_s3 + $0x48] sm:$0xf0]  ;;  %v3532_v5 = vld [vmem:[%s5814_s3 + $0x18] sm:$0xf0] }
  0xd2   :  { %v3626_v26 = vld [vmem:[%s5814_s3 + $0xd0] sm:$0xf]  ;;  %v3559_v30 = vor.u32 %v3961_v16, %v3556_v19  ;;  %v3535_v6 = vor.u32 %v3955_v4, %v3532_v5  ;;  %v3602_v16 = vld [vmem:[%s5814_s3 + $0xa0] sm:$0xf]  ;;  %v3974_v19 = vld [vmem:[%s5814_s3 + $0xa4] sm:$0xf0] }
  0xd3   :  { %v3546_v53 = vld [vmem:[%s5814_s3 + $0x30] sm:$0xf]  ;;  %2361 = vmatpush.bf16.msra.mxu1 %v3635_v25  ;;  %v3627_v33 = vor.u32 %v3980_v31, %v3626_v26  ;;  %v3603_v22 = vor.u32 %v3974_v19, %v3602_v16  ;;  %v3698_v26 = vld [vmem:[%s5814_s3 + $0x160] sm:$0xf]  ;;  %v3972_v31 = vld [vmem:[%s5814_s3 + $0x94] sm:$0xf0] }
  0xd4   :  { %v3971_v4 = vld [vmem:[%s5814_s3 + $0x94] sm:$0xf]  ;;  %v3596_v5 = vld [vmem:[%s5814_s3 + $0x98] sm:$0xf0]  ;;  %v3658_v16 = vld [vmem:[%s5814_s3 + $0x110] sm:$0xf] }
  0xd5   :  { %2387 = vmatpush.bf16.msra.mxu3 %v3575_v2  ;;  %v3636_v2 = vld [vmem:[%s5814_s3 + $0xe8] sm:$0xf0]  ;;  %v3988_v19 = vld [vmem:[%s5814_s3 + $0x114] sm:$0xf0] }
  0xd6   :  { %v3639_v11 = vor.u32 %v3981_v10, %v3636_v2 }
  0xd7   :  { %2362 = vmatpush.bf16.msra.mxu1 %v3627_v33  ;;  %v3620_v33 = vld [vmem:[%s5814_s3 + $0xc8] sm:$0xf0] }
  0xd8   :  { %v558_v36 = vpop.f32.mrf.mxu2  ;;  %v571_v39 = vpop.f32.mrf.mxu3 }
  0xd9   :  { %v582_v40 = vpop.f32.mrf.mxu0  ;;  %v595_v41 = vpop.f32.mrf.mxu1  ;;  %2388 = vmatpush.bf16.msra.mxu3 %v3567_v7  ;;  %v3958_v36 = vld [vmem:[%s5814_s3 + $0x24] sm:$0xf0]  ;;  %v3551_v39 = vor.u32 %v3959_v32, %v3548_v58  ;;  %v3977_v32 = vld [vmem:[%s5814_s3 + $0xc4] sm:$0xf] }
  0xda   :  { %v596_v42 = vadd.f32 %v595_v41, %v582_v40  ;;  %2015 = vmatmul.bf16.vlgmr.msrb.gmra.mxu2 %v1695_v34  ;;  %2028 = vmatmul.bf16.vlgmr.msrb.gmra.mxu3 %v1696_v35  ;;  %v3538_v35 = vld [vmem:[%s5814_s3 + $0x20] sm:$0xf]  ;;  %v3530_v41 = vld [vmem:[%s5814_s3 + $0x10] sm:$0xf] }
  0xdb   :  { %v3539_v40 = vor.u32 %v3958_v36, %v3538_v35  ;;  %v3996_v35 = vld [vmem:[%s5814_s3 + $0x154] sm:$0xf0]  ;;  %v3623_v36 = vor.u32 %v3977_v32, %v3620_v33  ;;  %v3986_v32 = vld [vmem:[%s5814_s3 + $0x104] sm:$0xf0] }
  0xdd   :  { %2389 = vmatpush.bf16.msra.mxu3 %v3559_v30  ;;  %v3594_v30 = vld [vmem:[%s5814_s3 + $0x90] sm:$0xf] }
  0xde   :  { %v3595_v58 = vor.u32 %v3972_v31, %v3594_v30  ;;  %v3676_v30 = vld [vmem:[%s5814_s3 + $0x138] sm:$0xf0] }
  0xe1   :  { %v584_v43 = vpop.f32.mrf.mxu0  ;;  %v597_v46 = vpop.f32.mrf.mxu1  ;;  %2390 = vmatpush.bf16.msra.mxu3 %v3551_v39 }
  0xef   :  { %v979_v44 = vpop.f32.mrf.mxu0  ;;  %v992_v45 = vpop.f32.mrf.mxu1 }
  0xf0   :  { %v980_v47 = vadd.f32 %v979_v44, %v570_v27  ;;  %v3960_v27 = vld [vmem:[%s5814_s3 + $0x34] sm:$0xf0] }
  0xf1   :  { %v3547_v34 = vor.u32 %v3960_v27, %v3546_v53  ;;  %v3998_v53 = vld [vmem:[%s5814_s3 + $0x164] sm:$0xf0] }
  0xf2   :  { %v5446_v48 = vadd.f32 %v992_v45, %v980_v47  ;;  %v3699_v27 = vor.u32 %v3998_v53, %v3698_v26  ;;  %v3659_v53 = vor.u32 %v3988_v19, %v3658_v16 }
  0xf3   :  { %v953_v49 = vpop.f32.mrf.mxu2  ;;  %v966_v20 = vpop.f32.mrf.mxu3 }
  0xf4   :  { %v954_v21 = vadd.f32 %v953_v49, %v5400_v51  ;;  %v3968_v51 = vld [vmem:[%s5814_s3 + $0x74] sm:$0xf0] }
  0xf5   :  { %v3579_v63 = vor.u32 %v3968_v51, %v3578_v62  ;;  %v3978_v51 = vld [vmem:[%s5814_s3 + $0xc4] sm:$0xf0] }
  0xf6   :  { %v5449_v37 = vadd.f32 %v966_v20, %v954_v21  ;;  %v3957_v21 = vld [vmem:[%s5814_s3 + $0x24] sm:$0xf] }
  0xf7   :  { %v981_v50 = vpop.f32.mrf.mxu0  ;;  %v994_v52 = vpop.f32.mrf.mxu1  ;;  %2347 = vmatpush.bf16.msra.mxu0 %v3579_v63  ;;  %v3644_v63 = vld [vmem:[%s5814_s3 + $0xf8] sm:$0xf0] }
  0xf8   :  { %v3540_v50 = vld [vmem:[%s5814_s3 + $0x28] sm:$0xf0]  ;;  %v3647_v3 = vor.u32 %v3983_v1, %v3644_v63  ;;  %v3674_v1 = vld [vmem:[%s5814_s3 + $0x130] sm:$0xf]  ;;  %v3992_v63 = vld [vmem:[%s5814_s3 + $0x134] sm:$0xf0] }
  0xfb   :  { %v955_v54 = vpop.f32.mrf.mxu2  ;;  %v968_v55 = vpop.f32.mrf.mxu3  ;;  %2348 = vmatpush.bf16.msra.mxu0 %v3571_v28  ;;  %v3610_v28 = vld [vmem:[%s5814_s3 + $0xb0] sm:$0xf] }
  0xfc   :  { %v3543_v55 = vor.u32 %v3957_v21, %v3540_v50  ;;  %v3611_v9 = vor.u32 %v3976_v8, %v3610_v28  ;;  %v3995_v28 = vld [vmem:[%s5814_s3 + $0x154] sm:$0xf]  ;;  %v3692_v8 = vld [vmem:[%s5814_s3 + $0x158] sm:$0xf0] }
  0xfd   :  { %v3695_v2 = vor.u32 %v3995_v28, %v3692_v8 }
  0xfe   :  { %2391 = vmatpush.bf16.msra.mxu3 %v3543_v55 }
  0xff   :  { %2349 = vmatpush.bf16.msra.mxu0 %v3563_v13  ;;  %v4000_v13 = vld [vmem:[%s5814_s3 + $0x174] sm:$0xf0] }
 0x100   :  { %v3707_v7 = vor.u32 %v4000_v13, %v3706_v17  ;;  %v3684_v17 = vld [vmem:[%s5814_s3 + $0x148] sm:$0xf0]  ;;  %v5722_v13 = vld [vmem:[%s5815_s2] sm:$0x7] }
 0x101   :  { %v2040_v28 = vperm.slane %v5722_v13, 2 }
 0x102   :  { %2392 = vmatpush.bf16.msra.mxu3 %v3535_v6  ;;  %2373 = vmatpush.bf16.msra.mxu2 %v3707_v7  ;;  %v3675_v6 = vor.u32 %v3992_v63, %v3674_v1  ;;  %v3652_v1 = vld [vmem:[%s5814_s3 + $0x108] sm:$0xf0] }
 0x103   :  { %v1005_v38 = vpop.f32.mrf.mxu2  ;;  %v1018_v56 = vpop.f32.mrf.mxu3  ;;  %2350 = vmatpush.bf16.msra.mxu0 %v3555_v24  ;;  %v3628_v24 = vld [vmem:[%s5814_s3 + $0xd8] sm:$0xf0] }
 0x104   :  { %v1006_v57 = vadd.f32 %v1005_v38, %v596_v42  ;;  %v3956_v42 = vld [vmem:[%s5814_s3 + $0x14] sm:$0xf0]  ;;  %v3631_v25 = vor.u32 %v3979_v23, %v3628_v24  ;;  %v2039_v24 = vperm.slane %v5722_v13, 1 }
 0x105   :  { %v3531_v44 = vor.u32 %v3956_v42, %v3530_v41  ;;  %v3970_v41 = vld [vmem:[%s5814_s3 + $0x84] sm:$0xf0]  ;;  %v3975_v42 = vld [vmem:[%s5814_s3 + $0xb4] sm:$0xf] }
 0x106   :  { %v5451_v59 = vadd.f32 %v1018_v56, %v1006_v57  ;;  %v3522_v57 = vld [vmem:[%s5814_s3] sm:$0xf]  ;;  %2393 = vmatpush.bf16.msra.mxu3 %v3527_v14  ;;  %2374 = vmatpush.bf16.msra.mxu2 %v3699_v27  ;;  %v3991_v27 = vld [vmem:[%s5814_s3 + $0x134] sm:$0xf] }
 0x107   :  { %2351 = vmatpush.bf16.msra.mxu0 %v3547_v34  ;;  %v3690_v34 = vld [vmem:[%s5814_s3 + $0x150] sm:$0xf]  ;;  %v3679_v33 = vor.u32 %v3991_v27, %v3676_v30 }
 0x108   :  { %v3691_v39 = vor.u32 %v3996_v35, %v3690_v34 }
 0x10a   :  { %2375 = vmatpush.bf16.msra.mxu2 %v3691_v39 }
 0x10b   :  { %v1007_v60 = vpop.f32.mrf.mxu2  ;;  %v1020_v61 = vpop.f32.mrf.mxu3  ;;  %2352 = vmatpush.bf16.msra.mxu0 %v3539_v40  ;;  %v3586_v40 = vld [vmem:[%s5814_s3 + $0x80] sm:$0xf] }
 0x10c   :  { %v3954_v60 = vld [vmem:[%s5814_s3 + $0x4] sm:$0xf0]  ;;  %v3618_v61 = vld [vmem:[%s5814_s3 + $0xc0] sm:$0xf]  ;;  %v3587_v21 = vor.u32 %v3970_v41, %v3586_v40  ;;  %v3989_v40 = vld [vmem:[%s5814_s3 + $0x124] sm:$0xf] }
 0x10d   :  { %v3523_v62 = vor.u32 %v3954_v60, %v3522_v57  ;;  %v3619_v0 = vor.u32 %v3978_v51, %v3618_v61  ;;  %v3973_v57 = vld [vmem:[%s5814_s3 + $0xa4] sm:$0xf]  ;;  %v3604_v60 = vld [vmem:[%s5814_s3 + $0xa8] sm:$0xf0] }
 0x10e   :  { %v3700_v51 = vld [vmem:[%s5814_s3 + $0x168] sm:$0xf0] }
 0x10f   :  { %2353 = vmatpush.bf16.msra.mxu0 %v3531_v44  ;;  %2363 = vmatpush.bf16.msra.mxu1 %v3619_v0  ;;  %v3612_v44 = vld [vmem:[%s5814_s3 + $0xb8] sm:$0xf0]  ;;  %v3607_v0 = vor.u32 %v3973_v57, %v3604_v60  ;;  %v3668_v41 = vld [vmem:[%s5814_s3 + $0x128] sm:$0xf0] }
 0x110   :  { %v3615_v50 = vor.u32 %v3975_v42, %v3612_v44 }
 0x113   :  { %2354 = vmatpush.bf16.msra.mxu0 %v3523_v62  ;;  %2364 = vmatpush.bf16.msra.mxu1 %v3611_v9  ;;  %v3997_v62 = vld [vmem:[%s5814_s3 + $0x164] sm:$0xf]  ;;  %v3599_v9 = vor.u32 %v3971_v4, %v3596_v5 }
 0x117   :  { %2399 = vmatpush.bf16.msrb.mxu0 %v3647_v3  ;;  %2365 = vmatpush.bf16.msra.mxu1 %v3603_v22  ;;  %v3703_v3 = vor.u32 %v3997_v62, %v3700_v51  ;;  %v3985_v51 = vld [vmem:[%s5814_s3 + $0x104] sm:$0xf] }
 0x118   :  { %v3655_v63 = vor.u32 %v3985_v51, %v3652_v1 }
 0x11b   :  { %2400 = vmatpush.bf16.msrb.mxu0 %v3639_v11  ;;  %2366 = vmatpush.bf16.msra.mxu1 %v3595_v58  ;;  %v3666_v11 = vld [vmem:[%s5814_s3 + $0x120] sm:$0xf] }
 0x11c   :  { %v3667_v14 = vor.u32 %v3990_v29, %v3666_v11 }
 0x11f   :  { %v5543_v43 = vpop.f32.mrf.mxu0  ;;  %2401 = vmatpush.bf16.msrb.mxu0 %v3631_v25  ;;  %2367 = vmatpush.bf16.msra.mxu1 %v3587_v21 }
 0x123   :  { %v5545_v46 = vpop.f32.mrf.mxu1  ;;  %2402 = vmatpush.bf16.msrb.mxu0 %v3623_v36  ;;  %v2038_v36 = vperm.slane %v5722_v13, 0  ;;  %v4003_v13 = vld [vmem:[%s5816_s5 + $0x10] sm:$0xff] }
 0x124   :  { %v1471_v26 = vadd.f32 %v5545_v46, %v5543_v43 }
 0x125   :  { %v5547_v45 = vpop.f32.mrf.mxu2 }
 0x126   :  { %v1526_v34 = vadd.f32 %v1471_v26, %v5449_v37  ;;  %v3671_v37 = vor.u32 %v3989_v40, %v3668_v41 }
 0x127   :  { %v1459_v49 = vpop.f32.mrf.mxu0  ;;  %2403 = vmatpush.bf16.msrb.mxu0 %v3615_v50 }
 0x128   :  { %v3999_v49 = vld [vmem:[%s5814_s3 + $0x174] sm:$0xf] }
 0x129   :  { %v5549_v47 = vpop.f32.mrf.mxu3 }
 0x12a   :  { %v1497_v10 = vadd.f32 %v5549_v47, %v5547_v45  ;;  %v3588_v45 = vld [vmem:[%s5814_s3 + $0x88] sm:$0xf0]  ;;  %v3993_v47 = vld [vmem:[%s5814_s3 + $0x144] sm:$0xf] }
 0x12b   :  { %v1472_v20 = vpop.f32.mrf.mxu1  ;;  %2404 = vmatpush.bf16.msrb.mxu0 %v3607_v0  ;;  %v3591_v7 = vor.u32 %v3969_v12, %v3588_v45  ;;  %v3687_v25 = vor.u32 %v3993_v47, %v3684_v17  ;;  %v4012_v12 = vld [vmem:[%s5816_s5 + $0x58] sm:$0xff]  ;;  %v4011_v47 = vld [vmem:[%s5816_s5 + $0x50] sm:$0xff] }
 0x12c   :  { %v3708_v20 = vld [vmem:[%s5814_s3 + $0x178] sm:$0xf0]  ;;  %v1527_v22 = vadd.f32 %v1497_v10, %v5446_v48  ;;  %v3650_v48 = vld [vmem:[%s5814_s3 + $0x100] sm:$0xf]  ;;  %2546 = vmatpush.bf16.msrb.mxu3 %v4012_v12 }
 0x12d   :  { %v1485_v52 = vpop.f32.mrf.mxu2  ;;  %v3711_v55 = vor.u32 %v3999_v49, %v3708_v20  ;;  %v3651_v39 = vor.u32 %v3986_v32, %v3650_v48  ;;  %v4004_v45 = vld [vmem:[%s5816_s5 + $0x18] sm:$0xff] }
 0x12e   :  { %v3682_v52 = vld [vmem:[%s5814_s3 + $0x140] sm:$0xf] }
 0x12f   :  { %v5557_v38 = vpop.f32.mrf.mxu0  ;;  %2412 = vmatpush.bf16.msrb.mxu1 %v3711_v55  ;;  %2405 = vmatpush.bf16.msrb.mxu0 %v3599_v9 }
 0x130   :  { %2547 = vmatpush.bf16.msrb.mxu3 %v4011_v47 }
 0x131   :  { %v1498_v54 = vpop.f32.mrf.mxu3 }
 0x132   :  { %v3994_v54 = vld [vmem:[%s5814_s3 + $0x144] sm:$0xf0] }
 0x133   :  { %v5559_v56 = vpop.f32.mrf.mxu1  ;;  %v3683_v61 = vor.u32 %v3994_v54, %v3682_v52  ;;  %2413 = vmatpush.bf16.msrb.mxu1 %v3703_v3  ;;  %2406 = vmatpush.bf16.msrb.mxu0 %v3591_v7  ;;  %v3987_v52 = vld [vmem:[%s5814_s3 + $0x114] sm:$0xf]  ;;  %v3660_v54 = vld [vmem:[%s5814_s3 + $0x118] sm:$0xf0]  ;;  %v4002_v7 = vld [vmem:[%s5816_s5 + $0x8] sm:$0xff] }
 0x134   :  { %v1523_v0 = vadd.f32 %v5559_v56, %v5557_v38  ;;  %v4008_v38 = vld [vmem:[%s5816_s5 + $0x38] sm:$0xff]  ;;  %v4006_v56 = vld [vmem:[%s5816_s5 + $0x28] sm:$0xff] }
 0x135   :  { %2376 = vmatpush.bf16.msra.mxu2 %v3683_v61  ;;  %v3663_v61 = vor.u32 %v3987_v52, %v3660_v54 }
 0x136   :  { %v1528_v5 = vadd.f32 %v1523_v0, %v5451_v59  ;;  %v4007_v59 = vld [vmem:[%s5816_s5 + $0x30] sm:$0xff] }
 0x137   :  { %v1511_v15 = vpop.f32.mrf.mxu0  ;;  %2414 = vmatpush.bf16.msrb.mxu1 %v3695_v2 }
 0x139   :  { %2377 = vmatpush.bf16.msra.mxu2 %v3675_v6 }
 0x13b   :  { %v1524_v18 = vpop.f32.mrf.mxu1  ;;  %2415 = vmatpush.bf16.msrb.mxu1 %v3687_v25  ;;  %v2101_v25 = vld [vmem:[%s5817_s4] sm:$0x3] }
 0x13c   :  { %v2104_v26 = vperm.slane %v2101_v25, 1  ;;  %v2103_v27 = vperm.slane %v2101_v25, 0 }
 0x13d   :  { %2378 = vmatpush.bf16.msra.mxu2 %v3667_v14  ;;  %v4005_v14 = vld [vmem:[%s5816_s5 + $0x20] sm:$0xff] }
 0x13f   :  { %2416 = vmatpush.bf16.msrb.mxu1 %v3679_v33 }
 0x141   :  { %2379 = vmatpush.bf16.msra.mxu2 %v3659_v53 }
 0x143   :  { %2417 = vmatpush.bf16.msrb.mxu1 %v3671_v37 }
 0x145   :  { %2380 = vmatpush.bf16.msra.mxu2 %v3651_v39 }
 0x147   :  { %2418 = vmatpush.bf16.msrb.mxu1 %v3663_v61 }
 0x149   :  { %2529 = vmatpush.bf16.msrb.mxu2 %v4008_v38 }
 0x14b   :  { %v1990_v15 = vpop.f32.mrf.mxu0  ;;  %v2003_v18 = vpop.f32.mrf.mxu1  ;;  %2419 = vmatpush.bf16.msrb.mxu1 %v3655_v63 }
 0x14c   :  { %v2004_v23 = vadd.f32 %v2003_v18, %v1990_v15  ;;  %v4010_v15 = vld [vmem:[%s5816_s5 + $0x48] sm:$0xff]  ;;  %v4009_v18 = vld [vmem:[%s5816_s5 + $0x40] sm:$0xff] }
 0x14d   :  { %v1964_v43 = vpop.f32.mrf.mxu2  ;;  %v1977_v46 = vpop.f32.mrf.mxu3  ;;  %2530 = vmatpush.bf16.msrb.mxu2 %v4007_v59  ;;  %2548 = vmatpush.bf16.msrb.mxu3 %v4010_v15 }
 0x14e   :  { %v2034_v31 = vadd.f32 %v2004_v23, %v1527_v22  ;;  %v1978_v35 = vadd.f32 %v1977_v46, %v1964_v43  ;;  %v4001_v22 = vld [vmem:[%s5816_s5] sm:$0xff] }
 0x150   :  { %v2045_v58 = vadd.f32 %v2039_v24, %v2034_v31  ;;  %v2033_v44 = vadd.f32 %v1978_v35, %v1526_v34 }
 0x151   :  { %2531 = vmatpush.bf16.msrb.mxu2 %v4006_v56  ;;  %2549 = vmatpush.bf16.msrb.mxu3 %v4009_v18 }
 0x152   :  { %v2048_v42 = vmax.f32 %v2045_v58, 0.0  ;;  %v2044_v50 = vadd.f32 %v2038_v36, %v2033_v44 }
 0x153   :  { %v1992_v49 = vpop.f32.mrf.mxu0  ;;  %v2005_v20 = vpop.f32.mrf.mxu1 }
 0x154   :  { %v2051_v21 = vpack.c.bf16 %v2048_v42, %v2048_v42  ;;  %v2047_v55 = vmax.f32 %v2044_v50, 0.0 }
 0x155   :  { %v1966_v57 = vpop.f32.mrf.mxu2  ;;  %v1979_v60 = vpop.f32.mrf.mxu3  ;;  %2532 = vmatpush.bf16.msrb.mxu2 %v4005_v14 }
 0x156   :  { %2368 = vmatmul.bf16.vlgmr.msra.gmra.mxu1 %v2051_v21  ;;  %v2050_v62 = vpack.c.bf16 %v2047_v55, %v2047_v55 }
 0x158   :  { %2355 = vmatmul.bf16.vlgmr.msra.gmra.mxu0 %v2050_v62  ;;  %2394 = vmatmul.bf16.vlgmr.msra.gmra.mxu3 %v2050_v62 }
 0x159   :  { %2533 = vmatpush.bf16.msrb.mxu2 %v4004_v45 }
 0x15d   :  { %v2016_v3 = vpop.f32.mrf.mxu2  ;;  %v2029_v4 = vpop.f32.mrf.mxu3  ;;  %2534 = vmatpush.bf16.msrb.mxu2 %v4003_v13 }
 0x15e   :  { %v2030_v6 = vadd.f32 %v2029_v4, %v2016_v3 }
 0x160   :  { %v2035_v8 = vadd.f32 %v2030_v6, %v1528_v5 }
 0x161   :  { %2535 = vmatpush.bf16.msrb.mxu2 %v4002_v7 }
 0x162   :  { %v2046_v9 = vadd.f32 %v2040_v28, %v2035_v8 }
 0x164   :  { %v2049_v10 = vmax.f32 %v2046_v9, 0.0 }
 0x165   :  { %v2018_v2 = vpop.f32.mrf.mxu2  ;;  %v2031_v11 = vpop.f32.mrf.mxu3  ;;  %2536 = vmatpush.bf16.msrb.mxu2 %v4001_v22 }
 0x166   :  { %v2052_v29 = vpack.c.bf16 %v2049_v10, %v2049_v10 }
 0x168   :  { %2407 = vmatmul.bf16.vlgmr.msrb.gmra.mxu0 %v2051_v21  ;;  %2381 = vmatmul.bf16.vlgmr.msra.gmra.mxu2 %v2052_v29 }
 0x169   :  { %2420 = vmatmul.bf16.vlgmr.msrb.gmra.mxu1 %v2052_v29 }
 0x1d3   :  { %v2369_v17 = vpop.f32.mrf.mxu1 }
 0x1d5   :  { %v2356_v16 = vpop.f32.mrf.mxu0 }
 0x1d6   :  { %v2357_v43 = vadd.f32 %v2356_v16, %v2103_v27 }
 0x1d8   :  { %v2370_v58 = vadd.f32 %v2369_v17, %v2357_v43 }
 0x1db   :  { %v2371_v19 = vpop.f32.mrf.mxu1  ;;  %v2395_v23 = vpop.f32.mrf.mxu3 }
 0x1dc   :  { %v2396_v30 = vadd.f32 %v2395_v23, %v2104_v26 }
 0x1dd   :  { %v2358_v24 = vpop.f32.mrf.mxu0 }
 0x1e3   :  { %v2397_v53 = vpop.f32.mrf.mxu3 }
 0x1e5   :  { %v2408_v31 = vpop.f32.mrf.mxu0 }
 0x1e6   :  { %v2409_v48 = vadd.f32 %v2408_v31, %v2396_v30  ;;  %v2421_v32 = vpop.f32.mrf.mxu1 }
 0x1e8   :  { %v2422_v46 = vadd.f32 %v2421_v32, %v2409_v48 }
 0x1ea   :  { %v2426_v33 = vmax.f32 %v2422_v46, 0.0 }
 0x1eb   :  { %v2382_v34 = vpop.f32.mrf.mxu2 }
 0x1ec   :  { %v2383_v35 = vadd.f32 %v2382_v34, %v2370_v58  ;;  %v2428_v36 = vpack.c.bf16 %v2426_v33, %v2426_v33 }
 0x1ed   :  { %v2410_v39 = vpop.f32.mrf.mxu0 }
 0x1ee   :  { %v2425_v40 = vmax.f32 %v2383_v35, 0.0  ;;  %3760 = vmatmul.msk.bf16.vlgmr.msrb.gmra.mxu3 %vm2525_vm7, %v2428_v36  ;;  %v2423_v41 = vpop.f32.mrf.mxu1 }
 0x1f0   :  { %v2427_v42 = vpack.c.bf16 %v2425_v40, %v2425_v40 }
 0x1f2   :  { %2537 = vmatmul.bf16.vlgmr.msrb.gmra.mxu2 %v2427_v42 }
 0x1f3   :  { %v2384_v44 = vpop.f32.mrf.mxu2 }
 0x271   :  { %v2551_v49 = vpop.f32.mrf.mxu3 }
 0x275   :  { %v2538_v20 = vpop.f32.mrf.mxu2 }
 0x276   :  { %v2552_v21 = vadd.f32 %v2551_v49, %v2538_v20 }
 0x278   :  { %2555 = vst [vmem:[%s5818_s6] sm:$0xff] %v2552_v21 }
 0x279   :  { %v2553_v37 = vpop.f32.mrf.mxu3 }
 0x27d   :  { %v2540_v50 = vpop.f32.mrf.mxu2 }

</bundles_post_ra>
